<compile_context>
chip_gen: v7x
topology: tpu7x:2x2x1
jax: 0.10.0
libtpu: 0.0.40
codegen_flags: <defaults>
</compile_context>

<pallas_src>
import functools

import jax
import jax.numpy as jnp
from jax import lax
from jax.experimental import pallas as pl
from jax.experimental.pallas import tpu as pltpu


# ----------------------------------------------------------------------------
# Tile-size helpers
# ----------------------------------------------------------------------------
def _choose_tk(K):
    """Largest K tile that exactly divides K (small VMEM footprint, no K padding)."""
    if K % 128 == 0:
        for tk in (1024, 512, 256, 128):
            if K % tk == 0:
                return tk
    return K  # small / irregular K: one full-width tile (block dim == array dim is legal)


def _choose_tm(M):
    if M % 8 == 0:
        # Prefer a tile that divides M evenly (no ragged last tile at these shapes).
        for tm in (256, 128, 64, 32, 16, 8):
            if tm <= M and M % tm == 0:
                return tm
        return min(256, M)
    return M if M <= 512 else 256  # ragged last tile: OOB writes are dropped by Pallas


# ----------------------------------------------------------------------------
# Pallas kernel: fused [BN affine -> pre-act -> bf16 matmul (K-tiled, f32 acc)
#                       -> bias -> post-act]
# ----------------------------------------------------------------------------
def _make_mm_kernel(pre_act, post_act, has_affine):
    def kernel(scale_ref, shift_ref, a_ref, b_ref, bias_ref, o_ref, acc_ref):
        @pl.when(pl.program_id(2) == 0)
        def _init():
            acc_ref[...] = jnp.zeros_like(acc_ref)

        a = a_ref[0]
        if has_affine:
            # Deferred BatchNorm affine of the producing layer (computed in f32).
            a = a.astype(jnp.float32) * scale_ref[...] + shift_ref[...]
        if pre_act == "leaky":
            a = jnp.where(a > 0, a, 0.2 * a)
        elif pre_act == "relu":
            a = jnp.maximum(a, 0)
        a = a.astype(jnp.bfloat16)

        acc_ref[...] += jnp.dot(a, b_ref[0], preferred_element_type=jnp.float32)

        @pl.when(pl.program_id(2) == pl.num_programs(2) - 1)
        def _finalize():
            out = acc_ref[...] + bias_ref[...]
            if post_act == "sigmoid":
                out = jax.nn.sigmoid(out)
            o_ref[0] = out.astype(o_ref.dtype)

    return kernel


def fused_matmul(A, B, bias, col_scale, col_shift, pre_act, post_act, out_dtype):
    """out[g] = post_act(pre_act(affine(A[g])) @ B[g] + bias).

    A: (G, M, K) im2col patches, B: (G, K, N) weights (both cast to bf16),
    bias: (N,) f32 or None, col_scale/col_shift: (1, K) f32 or None.
    """
    G, M, K = A.shape
    Nc = B.shape[2]
    has_affine = col_scale is not None

    if bias is None:
        bias = jnp.zeros((Nc,), jnp.float32)
    bias2 = bias.astype(jnp.float32).reshape(1, Nc)
    if col_scale is None:
        col_scale = jnp.ones((1, K), jnp.float32)
        col_shift = jnp.zeros((1, K), jnp.float32)
    else:
        col_scale = col_scale.astype(jnp.float32)
        col_shift = col_shift.astype(jnp.float32)

    TK = _choose_tk(K)
    TM = _choose_tm(M)
    grid = (G, pl.cdiv(M, TM), K // TK)

    return pl.pallas_call(
        _make_mm_kernel(pre_act, post_act, has_affine),
        out_shape=jax.ShapeDtypeStruct((G, M, Nc), out_dtype),
        grid=grid,
        in_specs=[
            pl.BlockSpec((1, TK), lambda g, i, k: (0, k)),          # per-column scale
            pl.BlockSpec((1, TK), lambda g, i, k: (0, k)),          # per-column shift
            pl.BlockSpec((1, TM, TK), lambda g, i, k: (g, i, k)),   # A (im2col patches)
            pl.BlockSpec((1, TK, Nc), lambda g, i, k: (g, k, 0)),   # B (weights)
            pl.BlockSpec((1, Nc), lambda g, i, k: (0, 0)),          # bias
        ],
        out_specs=pl.BlockSpec((1, TM, Nc), lambda g, i, k: (g, i, 0)),
        scratch_shapes=[pltpu.VMEM((TM, Nc), jnp.float32)],
        compiler_params=pltpu.CompilerParams(
            dimension_semantics=("parallel", "parallel", "arbitrary")),
    )(col_scale, col_shift, A.astype(jnp.bfloat16), B.astype(jnp.bfloat16), bias2)


# ----------------------------------------------------------------------------
# Pallas kernel: tiled BatchNorm2d batch statistics (sum / sum-of-squares)
# ----------------------------------------------------------------------------
def _make_bn_stats_kernel(tmb, m_total, needs_mask):
    def kernel(x_ref, s_ref, ss_ref):
        i = pl.program_id(0)

        @pl.when(i == 0)
        def _init():
            s_ref[...] = jnp.zeros_like(s_ref)
            ss_ref[...] = jnp.zeros_like(ss_ref)

        x = x_ref[...].astype(jnp.float32)
        if needs_mask:
            rows = lax.broadcasted_iota(jnp.int32, (tmb, 1), 0) + i * tmb
            x = jnp.where(rows < m_total, x, 0.0)
        s_ref[...] += jnp.sum(x, axis=0, keepdims=True)
        ss_ref[...] += jnp.sum(x * x, axis=0, keepdims=True)

    return kernel


def batchnorm_affine(x, gamma, beta, eps=1e-5):
    """Training-mode batch stats (PyTorch BatchNorm2d default forward).

    Returns per-channel (scale, shift) with BN(x) == x * scale + shift; the affine
    is applied inside the consumer matmul kernels (fused BN, no extra HBM pass).
    """
    N, H, W, C = x.shape
    M = N * H * W
    x2 = x.reshape(M, C)
    TMB = M if M <= 512 else 512
    needs_mask = (M % TMB) != 0
    s, ss = pl.pallas_call(
        _make_bn_stats_kernel(TMB, M, needs_mask),
        out_shape=(jax.ShapeDtypeStruct((1, C), jnp.float32),
                   jax.ShapeDtypeStruct((1, C), jnp.float32)),
        grid=(pl.cdiv(M, TMB),),
        in_specs=[pl.BlockSpec((TMB, C), lambda i: (i, 0))],
        out_specs=(pl.BlockSpec((1, C), lambda i: (0, 0)),
                   pl.BlockSpec((1, C), lambda i: (0, 0))),
        compiler_params=pltpu.CompilerParams(dimension_semantics=("arbitrary",)),
    )(x2)
    mean = s[0] / M
    var = jnp.maximum(ss[0] / M - mean * mean, 0.0)   # biased variance, clamped
    scale = gamma.astype(jnp.float32) * lax.rsqrt(var + eps)
    shift = beta.astype(jnp.float32) - mean * scale
    return scale, shift


# ----------------------------------------------------------------------------
# Conv / ConvTranspose wrappers (im2col glue in plain JAX, compute in Pallas)
# ----------------------------------------------------------------------------
def _im2col(xp, k, stride):
    """Gather-free im2col: k*k strided slices concatenated along channels.

    Column order is (ky, kx, C) with C fastest, matching the weight reshape below.
    """
    N, Hp, Wp, C = xp.shape
    OH = (Hp - k) // stride + 1
    OW = (Wp - k) // stride + 1
    cols = []
    for dy in range(k):
        for dx in range(k):
            cols.append(lax.slice(
                xp,
                (0, dy, dx, 0),
                (N, dy + (OH - 1) * stride + 1, dx + (OW - 1) * stride + 1, C),
                (1, stride, stride, 1)))
    patches = jnp.concatenate(cols, axis=-1)                      # (N, OH, OW, k*k*C)
    return patches.reshape(N * OH * OW, k * k * C), OH, OW


def _pad_values(scale_c, shift_c, dtype):
    # Channel-wise pad value p with affine(p) == 0, so the spatial zero padding is
    # effectively applied (as in PyTorch) to the normalized signal.
    # TODO(synk): channels with gamma exactly 0 would need explicit pad masking.
    scale_safe = jnp.where(jnp.abs(scale_c) < 1e-12, 1e-12, scale_c)
    return (-shift_c / scale_safe).astype(dtype)


def conv2d(x, scale_c, shift_c, w, bias, pre_act, post_act=None, out_dtype=jnp.bfloat16):
    # PyTorch Conv2d(k=4, s=2, p=1); x: NHWC bf16 raw values, w: (Cout, Cin, kh, kw).
    Cout, Cin, kh, kw = w.shape
    N, H, W, _ = x.shape
    pad = 1
    if scale_c is None:
        xp = jnp.pad(x, ((0, 0), (pad, pad), (pad, pad), (0, 0)))
        col_scale = col_shift = None
    else:
        pv = _pad_values(scale_c, shift_c, x.dtype)
        xp = jnp.broadcast_to(pv, (N, H + 2 * pad, W + 2 * pad, Cin))
        xp = xp.at[:, pad:pad + H, pad:pad + W, :].set(x)
        col_scale = jnp.tile(scale_c, kh * kw)[None, :]
        col_shift = jnp.tile(shift_c, kh * kw)[None, :]
    A, OH, OW = _im2col(xp, kh, 2)
    Bm = jnp.transpose(w, (2, 3, 1, 0)).reshape(kh * kw * Cin, Cout)
    out = fused_matmul(A[None], Bm[None], bias, col_scale, col_shift,
                       pre_act, post_act, out_dtype)
    return out[0].reshape(N, OH, OW, Cout)


def conv_transpose2d(x, scale_c, shift_c, w, bias, pre_act, post_act=None,
                     out_dtype=jnp.bfloat16):
    # PyTorch ConvTranspose2d(k=4, s=2, p=1) via sub-pixel phase decomposition:
    # 4 stride-1 2x2 convolutions (one per output parity), batched on the grid.
    Cin, Cout, kh, kw = w.shape
    N, H, W, _ = x.shape
    if scale_c is None:
        pv = jnp.zeros((Cin,), x.dtype)
        col_scale = col_shift = None
    else:
        pv = _pad_values(scale_c, shift_c, x.dtype)
        col_scale = jnp.tile(scale_c, 4)[None, :]
        col_shift = jnp.tile(shift_c, 4)[None, :]
    xpp = jnp.broadcast_to(pv, (N, H + 2, W + 2, Cin))
    xpp = xpp.at[:, 1:1 + H, 1:1 + W, :].set(x)

    A_list, B_list = [], []
    for ry in (0, 1):
        for rx in (0, 1):
            Ap, _, _ = _im2col(xpp[:, ry:ry + H + 1, rx:rx + W + 1, :], 2, 1)
            A_list.append(Ap)
            wsub = w[:, :, 3 - ry::-2, 3 - rx::-2]                 # (Cin, Cout, 2, 2)
            B_list.append(jnp.transpose(wsub, (2, 3, 0, 1)).reshape(4 * Cin, Cout))
    A = jnp.stack(A_list)                                          # (4, N*H*W, 4*Cin)
    Bm = jnp.stack(B_list)                                         # (4, 4*Cin, Cout)
    out = fused_matmul(A, Bm, bias, col_scale, col_shift,
                       pre_act, post_act, out_dtype)               # (4, N*H*W, Cout)
    out = out.reshape(2, 2, N, H, W, Cout)
    out = jnp.transpose(out, (2, 3, 0, 4, 1, 5)).reshape(N, 2 * H, 2 * W, Cout)
    return out


# ----------------------------------------------------------------------------
# UnetGenerator: config + deterministic parameter init + forward
# ----------------------------------------------------------------------------
def build_unet(key, input_nc, output_nc, num_downs, ngf):
    # Blocks ordered outermost -> innermost (mirrors the PyTorch constructor).
    cfgs = [dict(kind="outermost", outer=output_nc, inner=ngf, inp=input_nc)]
    cfgs.append(dict(kind="mid", outer=ngf, inner=ngf * 2, inp=ngf))
    cfgs.append(dict(kind="mid", outer=ngf * 2, inner=ngf * 4, inp=ngf * 2))
    cfgs.append(dict(kind="mid", outer=ngf * 4, inner=ngf * 8, inp=ngf * 4))
    for _ in range(num_downs - 5):
        cfgs.append(dict(kind="mid", outer=ngf * 8, inner=ngf * 8, inp=ngf * 8))
    cfgs.append(dict(kind="innermost", outer=ngf * 8, inner=ngf * 8, inp=ngf * 8))

    def normal(k, shape, scale):
        return scale * jax.random.normal(k, shape, dtype=jnp.float32)

    params = []
    for lvl, c in enumerate(cfgs):
        k = jax.random.fold_in(key, lvl)
        ks = jax.random.split(k, 8)
        p = {}
        # down conv: Conv2d(inp -> inner, k=4, s=2, p=1, bias=False)
        p["dw"] = normal(ks[0], (c["inner"], c["inp"], 4, 4), 0.05)
        if c["kind"] == "outermost":
            p["uw"] = normal(ks[1], (c["inner"] * 2, c["outer"], 4, 4), 0.05)
            p["ubias"] = normal(ks[2], (c["outer"],), 0.05)
        elif c["kind"] == "innermost":
            p["uw"] = normal(ks[1], (c["inner"], c["outer"], 4, 4), 0.05)
            p["up_gamma"] = 1.0 + normal(ks[3], (c["outer"],), 0.1)
            p["up_beta"] = normal(ks[4], (c["outer"],), 0.1)
        else:
            p["uw"] = normal(ks[1], (c["inner"] * 2, c["outer"], 4, 4), 0.05)
            p["down_gamma"] = 1.0 + normal(ks[5], (c["inner"],), 0.1)
            p["down_beta"] = normal(ks[6], (c["inner"],), 0.1)
            p["up_gamma"] = 1.0 + normal(ks[3], (c["outer"],), 0.1)
            p["up_beta"] = normal(ks[4], (c["outer"],), 0.1)
        params.append(p)
    return cfgs, params


def _identity_affine(C):
    return jnp.ones((C,), jnp.float32), jnp.zeros((C,), jnp.float32)


def unet_forward(cfgs, params, x, xs, xh, level=0):
    """x: raw NHWC bf16 feature map; (xs, xh): pending per-channel BN affine of x
    (None -> identity).  Non-outermost levels return (values, scale, shift)."""
    c, p = cfgs[level], params[level]
    if c["kind"] == "outermost":
        d = conv2d(x, None, None, p["dw"], None, pre_act=None)            # downconv
        mv, ms, mh = unet_forward(cfgs, params, d, None, None, level + 1)  # submodule
        return conv_transpose2d(mv, ms, mh, p["uw"], p["ubias"],           # relu, upconv,
                                pre_act="relu", post_act="sigmoid",        # sigmoid
                                out_dtype=jnp.float32)
    if c["kind"] == "innermost":
        d = conv2d(x, xs, xh, p["dw"], None, pre_act="leaky")              # lrelu, downconv
        u = conv_transpose2d(d, None, None, p["uw"], None, pre_act="relu")  # relu, upconv
        us, uh = batchnorm_affine(u, p["up_gamma"], p["up_beta"])          # upnorm (deferred)
    else:
        d = conv2d(x, xs, xh, p["dw"], None, pre_act="leaky")              # lrelu, downconv
        ds, dh = batchnorm_affine(d, p["down_gamma"], p["down_beta"])      # downnorm (deferred)
        mv, ms, mh = unet_forward(cfgs, params, d, ds, dh, level + 1)      # submodule
        u = conv_transpose2d(mv, ms, mh, p["uw"], None, pre_act="relu")    # relu, upconv
        us, uh = batchnorm_affine(u, p["up_gamma"], p["up_beta"])          # upnorm (deferred)
    if xs is None:
        xs, xh = _identity_affine(x.shape[-1])
    vals = jnp.concatenate([x, u], axis=-1)                                # skip connection
    return vals, jnp.concatenate([xs, us]), jnp.concatenate([xh, uh])


def unet_generator(cfgs, params, x_nchw):
    x = jnp.transpose(x_nchw, (0, 2, 3, 1)).astype(jnp.bfloat16)   # NCHW -> NHWC
    y = unet_forward(cfgs, params, x, None, None, 0)
    return jnp.transpose(y, (0, 3, 1, 2))                          # NHWC -> NCHW


# TODO(synk): use_dropout=False path only (nn.Dropout not needed at defaults).
# TODO(synk): the very small innermost down+up matmuls could be fused into one kernel
#             and large-spatial A-specs given pl.Buffered(3); left out for robustness.

# ----------------------------------------------------------------------------
# Demo
# ----------------------------------------------------------------------------
if __name__ == "__main__":
    input_nc, output_nc, num_downs, ngf = 4, 4, 5, 8
    N, H, W = 2, 32, 32   # H = W = 2**num_downs so the innermost map is 1x1

    key = jax.random.PRNGKey(0)
    kx, kp = jax.random.split(key)
    x = jax.random.normal(kx, (N, input_nc, H, W), dtype=jnp.float32)

    cfgs, params = build_unet(kp, input_nc, output_nc, num_downs, ngf)

    fwd = jax.jit(functools.partial(unet_generator, cfgs, params))
    out = fwd(x)
    jax.block_until_ready(out)

    assert out.shape == (N, output_nc, H, W), out.shape
    assert out.dtype == jnp.float32
    assert bool(jnp.all(jnp.isfinite(out)))
    assert bool(jnp.all((out >= 0.0) & (out <= 1.0)))   # sigmoid output
    print("KERNEL_OK")
</pallas_src>

<mosaic_0001>
module attributes {stable_mosaic.version = 11 : i64} {
  func.func @kernel(%arg0: i32, %arg1: i32, %arg2: i32, %arg3: memref<1x64xf32, #tpu.memory_space<vmem>>, %arg4: memref<1x64xf32, #tpu.memory_space<vmem>>, %arg5: memref<1x256x64xbf16, #tpu.memory_space<vmem>>, %arg6: memref<1x64x8xbf16, #tpu.memory_space<vmem>>, %arg7: memref<1x8xf32, #tpu.memory_space<vmem>>, %arg8: memref<1x256x8xbf16, #tpu.memory_space<vmem>>, %arg9: memref<256x8xf32, #tpu.memory_space<vmem>>) attributes {dimension_semantics = [#tpu.dimension_semantics<parallel>, #tpu.dimension_semantics<parallel>, #tpu.dimension_semantics<arbitrary>], iteration_bounds = array<i64: 1, 2, 1>, scalar_prefetch = 0 : i64, scratch_operands = 1 : i64, tpu.core_type = #tpu.core_type<tc>, window_params = [{transform_indices = @transform_0, window_bounds = array<i64: 1, 64>}, {transform_indices = @transform_1, window_bounds = array<i64: 1, 64>}, {transform_indices = @transform_2, window_bounds = array<i64: 1, 256, 64>}, {transform_indices = @transform_3, window_bounds = array<i64: 1, 64, 8>}, {pipeline_mode = #tpu.pipeline_mode<synchronous>, transform_indices = @transform_4, window_bounds = array<i64: 1, 8>}, {transform_indices = @transform_5, window_bounds = array<i64: 1, 256, 8>}]} {
    %c0_i32 = arith.constant 0 : i32
    %0 = arith.cmpi eq, %arg2, %c0_i32 : i32
    %1 = arith.extui %0 : i1 to i32
    %c0_i32_0 = arith.constant 0 : i32
    %2 = arith.cmpi ne, %1, %c0_i32_0 : i32
    scf.if %2 {
      %cst_12 = arith.constant 0.000000e+00 : f32
      %14 = vector.broadcast %cst_12 : f32 to vector<256x8xf32>
      %c0_13 = arith.constant 0 : index
      %c0_14 = arith.constant 0 : index
      %15 = vector.load %arg9[%c0_13, %c0_14] : memref<256x8xf32, #tpu.memory_space<vmem>>, vector<256x8xf32>
      tpu.vector_store %arg9[%c0_13, %c0_14], %14 {strides = array<i32>} : memref<256x8xf32, #tpu.memory_space<vmem>>, vector<256x8xf32>,
    } else {
    }
    %c0 = arith.constant 0 : index
    %c0_1 = arith.constant 0 : index
    %c0_2 = arith.constant 0 : index
    %3 = vector.load %arg5[%c0, %c0_1, %c0_2] : memref<1x256x64xbf16, #tpu.memory_space<vmem>>, vector<1x256x64xbf16>
    %4 = vector.shape_cast %3 : vector<1x256x64xbf16> to vector<256x64xbf16>
    %c0_3 = arith.constant 0 : index
    %c0_4 = arith.constant 0 : index
    %5 = vector.load %arg9[%c0_3, %c0_4] : memref<256x8xf32, #tpu.memory_space<vmem>>, vector<256x8xf32>
    %c0_5 = arith.constant 0 : index
    %c0_6 = arith.constant 0 : index
    %c0_7 = arith.constant 0 : index
    %6 = vector.load %arg6[%c0_5, %c0_6, %c0_7] : memref<1x64x8xbf16, #tpu.memory_space<vmem>>, vector<1x64x8xbf16>
    %7 = vector.shape_cast %6 : vector<1x64x8xbf16> to vector<64x8xbf16>
    %cst = arith.constant dense<0.000000e+00> : vector<256x8xf32>
    %8 = tpu.matmul %4, %7, %cst {dimension_numbers = #tpu.dot_dimension_numbers<[1], [0], [0], [1], [0, 0, 1, 1], [], []>} : vector<256x64xbf16>, vector<64x8xbf16>, vector<256x8xf32> -> vector<256x8xf32>
    %9 = arith.addf %5, %8 : vector<256x8xf32>
    %c0_8 = arith.constant 0 : index
    %c0_9 = arith.constant 0 : index
    %10 = vector.load %arg9[%c0_8, %c0_9] : memref<256x8xf32, #tpu.memory_space<vmem>>, vector<256x8xf32>
    tpu.vector_store %arg9[%c0_8, %c0_9], %9 {strides = array<i32>} : memref<256x8xf32, #tpu.memory_space<vmem>>, vector<256x8xf32>,
    %c0_i32_10 = arith.constant 0 : i32
    %11 = arith.cmpi eq, %arg2, %c0_i32_10 : i32
    %12 = arith.extui %11 : i1 to i32
    %c0_i32_11 = arith.constant 0 : i32
    %13 = arith.cmpi ne, %12, %c0_i32_11 : i32
    scf.if %13 {
      %c0_12 = arith.constant 0 : index
      %c0_13 = arith.constant 0 : index
      %14 = vector.load %arg9[%c0_12, %c0_13] : memref<256x8xf32, #tpu.memory_space<vmem>>, vector<256x8xf32>
      %c0_14 = arith.constant 0 : index
      %c0_15 = arith.constant 0 : index
      %15 = vector.load %arg7[%c0_14, %c0_15] : memref<1x8xf32, #tpu.memory_space<vmem>>, vector<1x8xf32>
      %16 = vector.broadcast %15 : vector<1x8xf32> to vector<256x8xf32>
      %17 = arith.addf %14, %16 : vector<256x8xf32>
      %18 = arith.truncf %17 : vector<256x8xf32> to vector<256x8xbf16>
      %c0_16 = arith.constant 0 : index
      %c0_17 = arith.constant 0 : index
      %c0_18 = arith.constant 0 : index
      %19 = vector.load %arg8[%c0_16, %c0_17, %c0_18] : memref<1x256x8xbf16, #tpu.memory_space<vmem>>, vector<1x256x8xbf16>
      %20 = vector.shape_cast %19 : vector<1x256x8xbf16> to vector<256x8xbf16>
      %21 = vector.shape_cast %18 : vector<256x8xbf16> to vector<1x256x8xbf16>
      tpu.vector_store %arg8[%c0_16, %c0_17, %c0_18], %21 {strides = array<i32>} : memref<1x256x8xbf16, #tpu.memory_space<vmem>>, vector<1x256x8xbf16>,
    } else {
    }
    return
  }
  func.func @transform_0(%arg0: i32, %arg1: i32, %arg2: i32) -> (i32, i32) {
    %c0_i32 = arith.constant 0 : i32
    %c0_i32_0 = arith.constant 0 : i32
    return %c0_i32, %arg2 : i32, i32
  }
  func.func @transform_1(%arg0: i32, %arg1: i32, %arg2: i32) -> (i32, i32) {
    %c0_i32 = arith.constant 0 : i32
    %c0_i32_0 = arith.constant 0 : i32
    return %c0_i32, %arg2 : i32, i32
  }
  func.func @transform_2(%arg0: i32, %arg1: i32, %arg2: i32) -> (i32, i32, i32) {
    %c0_i32 = arith.constant 0 : i32
    return %arg0, %arg1, %arg2 : i32, i32, i32
  }
  func.func @transform_3(%arg0: i32, %arg1: i32, %arg2: i32) -> (i32, i32, i32) {
    %c0_i32 = arith.constant 0 : i32
    %c0_i32_0 = arith.constant 0 : i32
    return %arg0, %arg2, %c0_i32 : i32, i32, i32
  }
  func.func @transform_4(%arg0: i32, %arg1: i32, %arg2: i32) -> (i32, i32) {
    %c0_i32 = arith.constant 0 : i32
    %c0_i32_0 = arith.constant 0 : i32
    %c0_i32_1 = arith.constant 0 : i32
    return %c0_i32, %c0_i32_0 : i32, i32
  }
  func.func @transform_5(%arg0: i32, %arg1: i32, %arg2: i32) -> (i32, i32, i32) {
    %c0_i32 = arith.constant 0 : i32
    %c0_i32_0 = arith.constant 0 : i32
    return %arg0, %arg1, %c0_i32 : i32, i32, i32
  }
}

module attributes {stable_mosaic.version = 11 : i64} {
  func.func @kernel(%arg0: i32, %arg1: memref<128x16xbf16, #tpu.memory_space<vmem>>, %arg2: memref<1x16xf32, #tpu.memory_space<vmem>>, %arg3: memref<1x16xf32, #tpu.memory_space<vmem>>) attributes {dimension_semantics = [#tpu.dimension_semantics<arbitrary>], iteration_bounds = array<i64: 1>, scalar_prefetch = 0 : i64, scratch_operands = 0 : i64, tpu.core_type = #tpu.core_type<tc>, window_params = [{transform_indices = @transform_0, window_bounds = array<i64: 128, 16>}, {pipeline_mode = #tpu.pipeline_mode<synchronous>, transform_indices = @transform_1, window_bounds = array<i64: 1, 16>}, {pipeline_mode = #tpu.pipeline_mode<synchronous>, transform_indices = @transform_2, window_bounds = array<i64: 1, 16>}]} {
    %c0_i32 = arith.constant 0 : i32
    %0 = arith.cmpi eq, %arg0, %c0_i32 : i32
    %1 = arith.extui %0 : i1 to i32
    %c0_i32_0 = arith.constant 0 : i32
    %2 = arith.cmpi ne, %1, %c0_i32_0 : i32
    scf.if %2 {
      %cst_11 = arith.constant 0.000000e+00 : f32
      %16 = vector.broadcast %cst_11 : f32 to vector<1x16xf32>
      %c0_12 = arith.constant 0 : index
      %c0_13 = arith.constant 0 : index
      %17 = vector.load %arg2[%c0_12, %c0_13] : memref<1x16xf32, #tpu.memory_space<vmem>>, vector<1x16xf32>
      tpu.vector_store %arg2[%c0_12, %c0_13], %16 {strides = array<i32>} : memref<1x16xf32, #tpu.memory_space<vmem>>, vector<1x16xf32>,
      %cst_14 = arith.constant 0.000000e+00 : f32
      %18 = vector.broadcast %cst_14 : f32 to vector<1x16xf32>
      %c0_15 = arith.constant 0 : index
      %c0_16 = arith.constant 0 : index
      %19 = vector.load %arg3[%c0_15, %c0_16] : memref<1x16xf32, #tpu.memory_space<vmem>>, vector<1x16xf32>
      tpu.vector_store %arg3[%c0_15, %c0_16], %18 {strides = array<i32>} : memref<1x16xf32, #tpu.memory_space<vmem>>, vector<1x16xf32>,
    } else {
    }
    %c0 = arith.constant 0 : index
    %c0_1 = arith.constant 0 : index
    %3 = vector.load %arg1[%c0, %c0_1] : memref<128x16xbf16, #tpu.memory_space<vmem>>, vector<128x16xbf16>
    %4 = arith.extf %3 : vector<128x16xbf16> to vector<128x16xf32>
    %c0_2 = arith.constant 0 : index
    %c0_3 = arith.constant 0 : index
    %5 = vector.load %arg2[%c0_2, %c0_3] : memref<1x16xf32, #tpu.memory_space<vmem>>, vector<1x16xf32>
    %cst = arith.constant dense<0.000000e+00> : vector<16xf32>
    %6 = vector.multi_reduction <add>, %4, %cst [0] : vector<128x16xf32> to vector<16xf32>
    %7 = vector.shape_cast %6 : vector<16xf32> to vector<1x16xf32>
    %8 = arith.addf %5, %7 : vector<1x16xf32>
    %c0_4 = arith.constant 0 : index
    %c0_5 = arith.constant 0 : index
    %9 = vector.load %arg2[%c0_4, %c0_5] : memref<1x16xf32, #tpu.memory_space<vmem>>, vector<1x16xf32>
    tpu.vector_store %arg2[%c0_4, %c0_5], %8 {strides = array<i32>} : memref<1x16xf32, #tpu.memory_space<vmem>>, vector<1x16xf32>,
    %c0_6 = arith.constant 0 : index
    %c0_7 = arith.constant 0 : index
    %10 = vector.load %arg3[%c0_6, %c0_7] : memref<1x16xf32, #tpu.memory_space<vmem>>, vector<1x16xf32>
    %11 = arith.mulf %4, %4 : vector<128x16xf32>
    %cst_8 = arith.constant dense<0.000000e+00> : vector<16xf32>
    %12 = vector.multi_reduction <add>, %11, %cst_8 [0] : vector<128x16xf32> to vector<16xf32>
    %13 = vector.shape_cast %12 : vector<16xf32> to vector<1x16xf32>
    %14 = arith.addf %10, %13 : vector<1x16xf32>
    %c0_9 = arith.constant 0 : index
    %c0_10 = arith.constant 0 : index
    %15 = vector.load %arg3[%c0_9, %c0_10] : memref<1x16xf32, #tpu.memory_space<vmem>>, vector<1x16xf32>
    tpu.vector_store %arg3[%c0_9, %c0_10], %14 {strides = array<i32>} : memref<1x16xf32, #tpu.memory_space<vmem>>, vector<1x16xf32>,
    return
  }
  func.func @transform_0(%arg0: i32) -> (i32, i32) {
    %c0_i32 = arith.constant 0 : i32
    %c0_i32_0 = arith.constant 0 : i32
    return %arg0, %c0_i32 : i32, i32
  }
  func.func @transform_1(%arg0: i32) -> (i32, i32) {
    %c0_i32 = arith.constant 0 : i32
    %c0_i32_0 = arith.constant 0 : i32
    %c0_i32_1 = arith.constant 0 : i32
    return %c0_i32, %c0_i32_0 : i32, i32
  }
  func.func @transform_2(%arg0: i32) -> (i32, i32) {
    %c0_i32 = arith.constant 0 : i32
    %c0_i32_0 = arith.constant 0 : i32
    %c0_i32_1 = arith.constant 0 : i32
    return %c0_i32, %c0_i32_0 : i32, i32
  }
}

module attributes {stable_mosaic.version = 11 : i64} {
  func.func @kernel(%arg0: i32, %arg1: i32, %arg2: i32, %arg3: memref<1x128xf32, #tpu.memory_space<vmem>>, %arg4: memref<1x128xf32, #tpu.memory_space<vmem>>, %arg5: memref<1x128x128xbf16, #tpu.memory_space<vmem>>, %arg6: memref<1x128x16xbf16, #tpu.memory_space<vmem>>, %arg7: memref<1x16xf32, #tpu.memory_space<vmem>>, %arg8: memref<1x128x16xbf16, #tpu.memory_space<vmem>>, %arg9: memref<128x16xf32, #tpu.memory_space<vmem>>) attributes {dimension_semantics = [#tpu.dimension_semantics<parallel>, #tpu.dimension_semantics<parallel>, #tpu.dimension_semantics<arbitrary>], iteration_bounds = array<i64: 1, 1, 1>, scalar_prefetch = 0 : i64, scratch_operands = 1 : i64, tpu.core_type = #tpu.core_type<tc>, window_params = [{transform_indices = @transform_0, window_bounds = array<i64: 1, 128>}, {transform_indices = @transform_1, window_bounds = array<i64: 1, 128>}, {transform_indices = @transform_2, window_bounds = array<i64: 1, 128, 128>}, {transform_indices = @transform_3, window_bounds = array<i64: 1, 128, 16>}, {pipeline_mode = #tpu.pipeline_mode<synchronous>, transform_indices = @transform_4, window_bounds = array<i64: 1, 16>}, {transform_indices = @transform_5, window_bounds = array<i64: 1, 128, 16>}]} {
    %c0_i32 = arith.constant 0 : i32
    %0 = arith.cmpi eq, %arg2, %c0_i32 : i32
    %1 = arith.extui %0 : i1 to i32
    %c0_i32_0 = arith.constant 0 : i32
    %2 = arith.cmpi ne, %1, %c0_i32_0 : i32
    scf.if %2 {
      %cst_14 = arith.constant 0.000000e+00 : f32
      %19 = vector.broadcast %cst_14 : f32 to vector<128x16xf32>
      %c0_15 = arith.constant 0 : index
      %c0_16 = arith.constant 0 : index
      %20 = vector.load %arg9[%c0_15, %c0_16] : memref<128x16xf32, #tpu.memory_space<vmem>>, vector<128x16xf32>
      tpu.vector_store %arg9[%c0_15, %c0_16], %19 {strides = array<i32>} : memref<128x16xf32, #tpu.memory_space<vmem>>, vector<128x16xf32>,
    } else {
    }
    %c0 = arith.constant 0 : index
    %c0_1 = arith.constant 0 : index
    %c0_2 = arith.constant 0 : index
    %3 = vector.load %arg5[%c0, %c0_1, %c0_2] : memref<1x128x128xbf16, #tpu.memory_space<vmem>>, vector<1x128x128xbf16>
    %4 = vector.shape_cast %3 : vector<1x128x128xbf16> to vector<128x128xbf16>
    %cst = arith.constant 0.000000e+00 : bf16
    %5 = vector.broadcast %cst : bf16 to vector<128x128xbf16>
    %6 = arith.cmpf ogt, %4, %5 : vector<128x128xbf16>
    %cst_3 = arith.constant 2.001950e-01 : bf16
    %7 = vector.broadcast %cst_3 : bf16 to vector<128x128xbf16>
    %8 = arith.mulf %7, %4 : vector<128x128xbf16>
    %9 = arith.select %6, %4, %8 : vector<128x128xi1>, vector<128x128xbf16>
    %c0_4 = arith.constant 0 : index
    %c0_5 = arith.constant 0 : index
    %10 = vector.load %arg9[%c0_4, %c0_5] : memref<128x16xf32, #tpu.memory_space<vmem>>, vector<128x16xf32>
    %c0_6 = arith.constant 0 : index
    %c0_7 = arith.constant 0 : index
    %c0_8 = arith.constant 0 : index
    %11 = vector.load %arg6[%c0_6, %c0_7, %c0_8] : memref<1x128x16xbf16, #tpu.memory_space<vmem>>, vector<1x128x16xbf16>
    %12 = vector.shape_cast %11 : vector<1x128x16xbf16> to vector<128x16xbf16>
    %cst_9 = arith.constant dense<0.000000e+00> : vector<128x16xf32>
    %13 = tpu.matmul %9, %12, %cst_9 {dimension_numbers = #tpu.dot_dimension_numbers<[1], [0], [0], [1], [0, 0, 1, 1], [], []>} : vector<128x128xbf16>, vector<128x16xbf16>, vector<128x16xf32> -> vector<128x16xf32>
    %14 = arith.addf %10, %13 : vector<128x16xf32>
    %c0_10 = arith.constant 0 : index
    %c0_11 = arith.constant 0 : index
    %15 = vector.load %arg9[%c0_10, %c0_11] : memref<128x16xf32, #tpu.memory_space<vmem>>, vector<128x16xf32>
    tpu.vector_store %arg9[%c0_10, %c0_11], %14 {strides = array<i32>} : memref<128x16xf32, #tpu.memory_space<vmem>>, vector<128x16xf32>,
    %c0_i32_12 = arith.constant 0 : i32
    %16 = arith.cmpi eq, %arg2, %c0_i32_12 : i32
    %17 = arith.extui %16 : i1 to i32
    %c0_i32_13 = arith.constant 0 : i32
    %18 = arith.cmpi ne, %17, %c0_i32_13 : i32
    scf.if %18 {
      %c0_14 = arith.constant 0 : index
      %c0_15 = arith.constant 0 : index
      %19 = vector.load %arg9[%c0_14, %c0_15] : memref<128x16xf32, #tpu.memory_space<vmem>>, vector<128x16xf32>
      %c0_16 = arith.constant 0 : index
      %c0_17 = arith.constant 0 : index
      %20 = vector.load %arg7[%c0_16, %c0_17] : memref<1x16xf32, #tpu.memory_space<vmem>>, vector<1x16xf32>
      %21 = vector.broadcast %20 : vector<1x16xf32> to vector<128x16xf32>
      %22 = arith.addf %19, %21 : vector<128x16xf32>
      %23 = arith.truncf %22 : vector<128x16xf32> to vector<128x16xbf16>
      %c0_18 = arith.constant 0 : index
      %c0_19 = arith.constant 0 : index
      %c0_20 = arith.constant 0 : index
      %24 = vector.load %arg8[%c0_18, %c0_19, %c0_20] : memref<1x128x16xbf16, #tpu.memory_space<vmem>>, vector<1x128x16xbf16>
      %25 = vector.shape_cast %24 : vector<1x128x16xbf16> to vector<128x16xbf16>
      %26 = vector.shape_cast %23 : vector<128x16xbf16> to vector<1x128x16xbf16>
      tpu.vector_store %arg8[%c0_18, %c0_19, %c0_20], %26 {strides = array<i32>} : memref<1x128x16xbf16, #tpu.memory_space<vmem>>, vector<1x128x16xbf16>,
    } else {
    }
    return
  }
  func.func @transform_0(%arg0: i32, %arg1: i32, %arg2: i32) -> (i32, i32) {
    %c0_i32 = arith.constant 0 : i32
    %c0_i32_0 = arith.constant 0 : i32
    return %c0_i32, %arg2 : i32, i32
  }
  func.func @transform_1(%arg0: i32, %arg1: i32, %arg2: i32) -> (i32, i32) {
    %c0_i32 = arith.constant 0 : i32
    %c0_i32_0 = arith.constant 0 : i32
    return %c0_i32, %arg2 : i32, i32
  }
  func.func @transform_2(%arg0: i32, %arg1: i32, %arg2: i32) -> (i32, i32, i32) {
    %c0_i32 = arith.constant 0 : i32
    return %arg0, %arg1, %arg2 : i32, i32, i32
  }
  func.func @transform_3(%arg0: i32, %arg1: i32, %arg2: i32) -> (i32, i32, i32) {
    %c0_i32 = arith.constant 0 : i32
    %c0_i32_0 = arith.constant 0 : i32
    return %arg0, %arg2, %c0_i32 : i32, i32, i32
  }
  func.func @transform_4(%arg0: i32, %arg1: i32, %arg2: i32) -> (i32, i32) {
    %c0_i32 = arith.constant 0 : i32
    %c0_i32_0 = arith.constant 0 : i32
    %c0_i32_1 = arith.constant 0 : i32
    return %c0_i32, %c0_i32_0 : i32, i32
  }
  func.func @transform_5(%arg0: i32, %arg1: i32, %arg2: i32) -> (i32, i32, i32) {
    %c0_i32 = arith.constant 0 : i32
    %c0_i32_0 = arith.constant 0 : i32
    return %arg0, %arg1, %c0_i32 : i32, i32, i32
  }
}

module attributes {stable_mosaic.version = 11 : i64} {
  func.func @kernel(%arg0: i32, %arg1: i32, %arg2: i32, %arg3: memref<1x256xf32, #tpu.memory_space<vmem>>, %arg4: memref<1x256xf32, #tpu.memory_space<vmem>>, %arg5: memref<1x32x256xbf16, #tpu.memory_space<vmem>>, %arg6: memref<1x256x32xbf16, #tpu.memory_space<vmem>>, %arg7: memref<1x32xf32, #tpu.memory_space<vmem>>, %arg8: memref<1x32x32xbf16, #tpu.memory_space<vmem>>, %arg9: memref<32x32xf32, #tpu.memory_space<vmem>>) attributes {dimension_semantics = [#tpu.dimension_semantics<parallel>, #tpu.dimension_semantics<parallel>, #tpu.dimension_semantics<arbitrary>], iteration_bounds = array<i64: 1, 1, 1>, scalar_prefetch = 0 : i64, scratch_operands = 1 : i64, tpu.core_type = #tpu.core_type<tc>, window_params = [{transform_indices = @transform_0, window_bounds = array<i64: 1, 256>}, {transform_indices = @transform_1, window_bounds = array<i64: 1, 256>}, {transform_indices = @transform_2, window_bounds = array<i64: 1, 32, 256>}, {transform_indices = @transform_3, window_bounds = array<i64: 1, 256, 32>}, {pipeline_mode = #tpu.pipeline_mode<synchronous>, transform_indices = @transform_4, window_bounds = array<i64: 1, 32>}, {transform_indices = @transform_5, window_bounds = array<i64: 1, 32, 32>}]} {
    %c0_i32 = arith.constant 0 : i32
    %0 = arith.cmpi eq, %arg2, %c0_i32 : i32
    %1 = arith.extui %0 : i1 to i32
    %c0_i32_0 = arith.constant 0 : i32
    %2 = arith.cmpi ne, %1, %c0_i32_0 : i32
    scf.if %2 {
      %cst_18 = arith.constant 0.000000e+00 : f32
      %27 = vector.broadcast %cst_18 : f32 to vector<32x32xf32>
      %c0_19 = arith.constant 0 : index
      %c0_20 = arith.constant 0 : index
      %28 = vector.load %arg9[%c0_19, %c0_20] : memref<32x32xf32, #tpu.memory_space<vmem>>, vector<32x32xf32>
      tpu.vector_store %arg9[%c0_19, %c0_20], %27 {strides = array<i32>} : memref<32x32xf32, #tpu.memory_space<vmem>>, vector<32x32xf32>,
    } else {
    }
    %c0 = arith.constant 0 : index
    %c0_1 = arith.constant 0 : index
    %c0_2 = arith.constant 0 : index
    %3 = vector.load %arg5[%c0, %c0_1, %c0_2] : memref<1x32x256xbf16, #tpu.memory_space<vmem>>, vector<1x32x256xbf16>
    %4 = vector.shape_cast %3 : vector<1x32x256xbf16> to vector<32x256xbf16>
    %5 = arith.extf %4 : vector<32x256xbf16> to vector<32x256xf32>
    %c0_3 = arith.constant 0 : index
    %c0_4 = arith.constant 0 : index
    %6 = vector.load %arg3[%c0_3, %c0_4] : memref<1x256xf32, #tpu.memory_space<vmem>>, vector<1x256xf32>
    %7 = vector.broadcast %6 : vector<1x256xf32> to vector<32x256xf32>
    %8 = arith.mulf %5, %7 : vector<32x256xf32>
    %c0_5 = arith.constant 0 : index
    %c0_6 = arith.constant 0 : index
    %9 = vector.load %arg4[%c0_5, %c0_6] : memref<1x256xf32, #tpu.memory_space<vmem>>, vector<1x256xf32>
    %10 = vector.broadcast %9 : vector<1x256xf32> to vector<32x256xf32>
    %11 = arith.addf %8, %10 : vector<32x256xf32>
    %cst = arith.constant 0.000000e+00 : f32
    %12 = vector.broadcast %cst : f32 to vector<32x256xf32>
    %13 = arith.cmpf ogt, %11, %12 : vector<32x256xf32>
    %cst_7 = arith.constant 2.000000e-01 : f32
    %14 = vector.broadcast %cst_7 : f32 to vector<32x256xf32>
    %15 = arith.mulf %14, %11 : vector<32x256xf32>
    %16 = arith.select %13, %11, %15 : vector<32x256xi1>, vector<32x256xf32>
    %17 = arith.truncf %16 : vector<32x256xf32> to vector<32x256xbf16>
    %c0_8 = arith.constant 0 : index
    %c0_9 = arith.constant 0 : index
    %18 = vector.load %arg9[%c0_8, %c0_9] : memref<32x32xf32, #tpu.memory_space<vmem>>, vector<32x32xf32>
    %c0_10 = arith.constant 0 : index
    %c0_11 = arith.constant 0 : index
    %c0_12 = arith.constant 0 : index
    %19 = vector.load %arg6[%c0_10, %c0_11, %c0_12] : memref<1x256x32xbf16, #tpu.memory_space<vmem>>, vector<1x256x32xbf16>
    %20 = vector.shape_cast %19 : vector<1x256x32xbf16> to vector<256x32xbf16>
    %cst_13 = arith.constant dense<0.000000e+00> : vector<32x32xf32>
    %21 = tpu.matmul %17, %20, %cst_13 {dimension_numbers = #tpu.dot_dimension_numbers<[1], [0], [0], [1], [0, 0, 1, 1], [], []>} : vector<32x256xbf16>, vector<256x32xbf16>, vector<32x32xf32> -> vector<32x32xf32>
    %22 = arith.addf %18, %21 : vector<32x32xf32>
    %c0_14 = arith.constant 0 : index
    %c0_15 = arith.constant 0 : index
    %23 = vector.load %arg9[%c0_14, %c0_15] : memref<32x32xf32, #tpu.memory_space<vmem>>, vector<32x32xf32>
    tpu.vector_store %arg9[%c0_14, %c0_15], %22 {strides = array<i32>} : memref<32x32xf32, #tpu.memory_space<vmem>>, vector<32x32xf32>,
    %c0_i32_16 = arith.constant 0 : i32
    %24 = arith.cmpi eq, %arg2, %c0_i32_16 : i32
    %25 = arith.extui %24 : i1 to i32
    %c0_i32_17 = arith.constant 0 : i32
    %26 = arith.cmpi ne, %25, %c0_i32_17 : i32
    scf.if %26 {
      %c0_18 = arith.constant 0 : index
      %c0_19 = arith.constant 0 : index
      %27 = vector.load %arg9[%c0_18, %c0_19] : memref<32x32xf32, #tpu.memory_space<vmem>>, vector<32x32xf32>
      %c0_20 = arith.constant 0 : index
      %c0_21 = arith.constant 0 : index
      %28 = vector.load %arg7[%c0_20, %c0_21] : memref<1x32xf32, #tpu.memory_space<vmem>>, vector<1x32xf32>
      %29 = vector.broadcast %28 : vector<1x32xf32> to vector<32x32xf32>
      %30 = arith.addf %27, %29 : vector<32x32xf32>
      %31 = arith.truncf %30 : vector<32x32xf32> to vector<32x32xbf16>
      %c0_22 = arith.constant 0 : index
      %c0_23 = arith.constant 0 : index
      %c0_24 = arith.constant 0 : index
      %32 = vector.load %arg8[%c0_22, %c0_23, %c0_24] : memref<1x32x32xbf16, #tpu.memory_space<vmem>>, vector<1x32x32xbf16>
      %33 = vector.shape_cast %32 : vector<1x32x32xbf16> to vector<32x32xbf16>
      %34 = vector.shape_cast %31 : vector<32x32xbf16> to vector<1x32x32xbf16>
      tpu.vector_store %arg8[%c0_22, %c0_23, %c0_24], %34 {strides = array<i32>} : memref<1x32x32xbf16, #tpu.memory_space<vmem>>, vector<1x32x32xbf16>,
    } else {
    }
    return
  }
  func.func @transform_0(%arg0: i32, %arg1: i32, %arg2: i32) -> (i32, i32) {
    %c0_i32 = arith.constant 0 : i32
    %c0_i32_0 = arith.constant 0 : i32
    return %c0_i32, %arg2 : i32, i32
  }
  func.func @transform_1(%arg0: i32, %arg1: i32, %arg2: i32) -> (i32, i32) {
    %c0_i32 = arith.constant 0 : i32
    %c0_i32_0 = arith.constant 0 : i32
    return %c0_i32, %arg2 : i32, i32
  }
  func.func @transform_2(%arg0: i32, %arg1: i32, %arg2: i32) -> (i32, i32, i32) {
    %c0_i32 = arith.constant 0 : i32
    return %arg0, %arg1, %arg2 : i32, i32, i32
  }
  func.func @transform_3(%arg0: i32, %arg1: i32, %arg2: i32) -> (i32, i32, i32) {
    %c0_i32 = arith.constant 0 : i32
    %c0_i32_0 = arith.constant 0 : i32
    return %arg0, %arg2, %c0_i32 : i32, i32, i32
  }
  func.func @transform_4(%arg0: i32, %arg1: i32, %arg2: i32) -> (i32, i32) {
    %c0_i32 = arith.constant 0 : i32
    %c0_i32_0 = arith.constant 0 : i32
    %c0_i32_1 = arith.constant 0 : i32
    return %c0_i32, %c0_i32_0 : i32, i32
  }
  func.func @transform_5(%arg0: i32, %arg1: i32, %arg2: i32) -> (i32, i32, i32) {
    %c0_i32 = arith.constant 0 : i32
    %c0_i32_0 = arith.constant 0 : i32
    return %arg0, %arg1, %c0_i32 : i32, i32, i32
  }
}

module attributes {stable_mosaic.version = 11 : i64} {
  func.func @kernel(%arg0: i32, %arg1: memref<32x32xbf16, #tpu.memory_space<vmem>>, %arg2: memref<1x32xf32, #tpu.memory_space<vmem>>, %arg3: memref<1x32xf32, #tpu.memory_space<vmem>>) attributes {dimension_semantics = [#tpu.dimension_semantics<arbitrary>], iteration_bounds = array<i64: 1>, scalar_prefetch = 0 : i64, scratch_operands = 0 : i64, tpu.core_type = #tpu.core_type<tc>, window_params = [{transform_indices = @transform_0, window_bounds = array<i64: 32, 32>}, {pipeline_mode = #tpu.pipeline_mode<synchronous>, transform_indices = @transform_1, window_bounds = array<i64: 1, 32>}, {pipeline_mode = #tpu.pipeline_mode<synchronous>, transform_indices = @transform_2, window_bounds = array<i64: 1, 32>}]} {
    %c0_i32 = arith.constant 0 : i32
    %0 = arith.cmpi eq, %arg0, %c0_i32 : i32
    %1 = arith.extui %0 : i1 to i32
    %c0_i32_0 = arith.constant 0 : i32
    %2 = arith.cmpi ne, %1, %c0_i32_0 : i32
    scf.if %2 {
      %cst_11 = arith.constant 0.000000e+00 : f32
      %16 = vector.broadcast %cst_11 : f32 to vector<1x32xf32>
      %c0_12 = arith.constant 0 : index
      %c0_13 = arith.constant 0 : index
      %17 = vector.load %arg2[%c0_12, %c0_13] : memref<1x32xf32, #tpu.memory_space<vmem>>, vector<1x32xf32>
      tpu.vector_store %arg2[%c0_12, %c0_13], %16 {strides = array<i32>} : memref<1x32xf32, #tpu.memory_space<vmem>>, vector<1x32xf32>,
      %cst_14 = arith.constant 0.000000e+00 : f32
      %18 = vector.broadcast %cst_14 : f32 to vector<1x32xf32>
      %c0_15 = arith.constant 0 : index
      %c0_16 = arith.constant 0 : index
      %19 = vector.load %arg3[%c0_15, %c0_16] : memref<1x32xf32, #tpu.memory_space<vmem>>, vector<1x32xf32>
      tpu.vector_store %arg3[%c0_15, %c0_16], %18 {strides = array<i32>} : memref<1x32xf32, #tpu.memory_space<vmem>>, vector<1x32xf32>,
    } else {
    }
    %c0 = arith.constant 0 : index
    %c0_1 = arith.constant 0 : index
    %3 = vector.load %arg1[%c0, %c0_1] : memref<32x32xbf16, #tpu.memory_space<vmem>>, vector<32x32xbf16>
    %4 = arith.extf %3 : vector<32x32xbf16> to vector<32x32xf32>
    %c0_2 = arith.constant 0 : index
    %c0_3 = arith.constant 0 : index
    %5 = vector.load %arg2[%c0_2, %c0_3] : memref<1x32xf32, #tpu.memory_space<vmem>>, vector<1x32xf32>
    %cst = arith.constant dense<0.000000e+00> : vector<32xf32>
    %6 = vector.multi_reduction <add>, %4, %cst [0] : vector<32x32xf32> to vector<32xf32>
    %7 = vector.shape_cast %6 : vector<32xf32> to vector<1x32xf32>
    %8 = arith.addf %5, %7 : vector<1x32xf32>
    %c0_4 = arith.constant 0 : index
    %c0_5 = arith.constant 0 : index
    %9 = vector.load %arg2[%c0_4, %c0_5] : memref<1x32xf32, #tpu.memory_space<vmem>>, vector<1x32xf32>
    tpu.vector_store %arg2[%c0_4, %c0_5], %8 {strides = array<i32>} : memref<1x32xf32, #tpu.memory_space<vmem>>, vector<1x32xf32>,
    %c0_6 = arith.constant 0 : index
    %c0_7 = arith.constant 0 : index
    %10 = vector.load %arg3[%c0_6, %c0_7] : memref<1x32xf32, #tpu.memory_space<vmem>>, vector<1x32xf32>
    %11 = arith.mulf %4, %4 : vector<32x32xf32>
    %cst_8 = arith.constant dense<0.000000e+00> : vector<32xf32>
    %12 = vector.multi_reduction <add>, %11, %cst_8 [0] : vector<32x32xf32> to vector<32xf32>
    %13 = vector.shape_cast %12 : vector<32xf32> to vector<1x32xf32>
    %14 = arith.addf %10, %13 : vector<1x32xf32>
    %c0_9 = arith.constant 0 : index
    %c0_10 = arith.constant 0 : index
    %15 = vector.load %arg3[%c0_9, %c0_10] : memref<1x32xf32, #tpu.memory_space<vmem>>, vector<1x32xf32>
    tpu.vector_store %arg3[%c0_9, %c0_10], %14 {strides = array<i32>} : memref<1x32xf32, #tpu.memory_space<vmem>>, vector<1x32xf32>,
    return
  }
  func.func @transform_0(%arg0: i32) -> (i32, i32) {
    %c0_i32 = arith.constant 0 : i32
    %c0_i32_0 = arith.constant 0 : i32
    return %arg0, %c0_i32 : i32, i32
  }
  func.func @transform_1(%arg0: i32) -> (i32, i32) {
    %c0_i32 = arith.constant 0 : i32
    %c0_i32_0 = arith.constant 0 : i32
    %c0_i32_1 = arith.constant 0 : i32
    return %c0_i32, %c0_i32_0 : i32, i32
  }
  func.func @transform_2(%arg0: i32) -> (i32, i32) {
    %c0_i32 = arith.constant 0 : i32
    %c0_i32_0 = arith.constant 0 : i32
    %c0_i32_1 = arith.constant 0 : i32
    return %c0_i32, %c0_i32_0 : i32, i32
  }
}

module attributes {stable_mosaic.version = 11 : i64} {
  func.func @kernel(%arg0: i32, %arg1: i32, %arg2: i32, %arg3: memref<1x512xf32, #tpu.memory_space<vmem>>, %arg4: memref<1x512xf32, #tpu.memory_space<vmem>>, %arg5: memref<1x8x512xbf16, #tpu.memory_space<vmem>>, %arg6: memref<1x512x64xbf16, #tpu.memory_space<vmem>>, %arg7: memref<1x64xf32, #tpu.memory_space<vmem>>, %arg8: memref<1x8x64xbf16, #tpu.memory_space<vmem>>, %arg9: memref<8x64xf32, #tpu.memory_space<vmem>>) attributes {dimension_semantics = [#tpu.dimension_semantics<parallel>, #tpu.dimension_semantics<parallel>, #tpu.dimension_semantics<arbitrary>], iteration_bounds = array<i64: 1, 1, 1>, scalar_prefetch = 0 : i64, scratch_operands = 1 : i64, tpu.core_type = #tpu.core_type<tc>, window_params = [{transform_indices = @transform_0, window_bounds = array<i64: 1, 512>}, {transform_indices = @transform_1, window_bounds = array<i64: 1, 512>}, {transform_indices = @transform_2, window_bounds = array<i64: 1, 8, 512>}, {transform_indices = @transform_3, window_bounds = array<i64: 1, 512, 64>}, {pipeline_mode = #tpu.pipeline_mode<synchronous>, transform_indices = @transform_4, window_bounds = array<i64: 1, 64>}, {transform_indices = @transform_5, window_bounds = array<i64: 1, 8, 64>}]} {
    %c0_i32 = arith.constant 0 : i32
    %0 = arith.cmpi eq, %arg2, %c0_i32 : i32
    %1 = arith.extui %0 : i1 to i32
    %c0_i32_0 = arith.constant 0 : i32
    %2 = arith.cmpi ne, %1, %c0_i32_0 : i32
    scf.if %2 {
      %cst_18 = arith.constant 0.000000e+00 : f32
      %27 = vector.broadcast %cst_18 : f32 to vector<8x64xf32>
      %c0_19 = arith.constant 0 : index
      %c0_20 = arith.constant 0 : index
      %28 = vector.load %arg9[%c0_19, %c0_20] : memref<8x64xf32, #tpu.memory_space<vmem>>, vector<8x64xf32>
      tpu.vector_store %arg9[%c0_19, %c0_20], %27 {strides = array<i32>} : memref<8x64xf32, #tpu.memory_space<vmem>>, vector<8x64xf32>,
    } else {
    }
    %c0 = arith.constant 0 : index
    %c0_1 = arith.constant 0 : index
    %c0_2 = arith.constant 0 : index
    %3 = vector.load %arg5[%c0, %c0_1, %c0_2] : memref<1x8x512xbf16, #tpu.memory_space<vmem>>, vector<1x8x512xbf16>
    %4 = vector.shape_cast %3 : vector<1x8x512xbf16> to vector<8x512xbf16>
    %5 = arith.extf %4 : vector<8x512xbf16> to vector<8x512xf32>
    %c0_3 = arith.constant 0 : index
    %c0_4 = arith.constant 0 : index
    %6 = vector.load %arg3[%c0_3, %c0_4] : memref<1x512xf32, #tpu.memory_space<vmem>>, vector<1x512xf32>
    %7 = vector.broadcast %6 : vector<1x512xf32> to vector<8x512xf32>
    %8 = arith.mulf %5, %7 : vector<8x512xf32>
    %c0_5 = arith.constant 0 : index
    %c0_6 = arith.constant 0 : index
    %9 = vector.load %arg4[%c0_5, %c0_6] : memref<1x512xf32, #tpu.memory_space<vmem>>, vector<1x512xf32>
    %10 = vector.broadcast %9 : vector<1x512xf32> to vector<8x512xf32>
    %11 = arith.addf %8, %10 : vector<8x512xf32>
    %cst = arith.constant 0.000000e+00 : f32
    %12 = vector.broadcast %cst : f32 to vector<8x512xf32>
    %13 = arith.cmpf ogt, %11, %12 : vector<8x512xf32>
    %cst_7 = arith.constant 2.000000e-01 : f32
    %14 = vector.broadcast %cst_7 : f32 to vector<8x512xf32>
    %15 = arith.mulf %14, %11 : vector<8x512xf32>
    %16 = arith.select %13, %11, %15 : vector<8x512xi1>, vector<8x512xf32>
    %17 = arith.truncf %16 : vector<8x512xf32> to vector<8x512xbf16>
    %c0_8 = arith.constant 0 : index
    %c0_9 = arith.constant 0 : index
    %18 = vector.load %arg9[%c0_8, %c0_9] : memref<8x64xf32, #tpu.memory_space<vmem>>, vector<8x64xf32>
    %c0_10 = arith.constant 0 : index
    %c0_11 = arith.constant 0 : index
    %c0_12 = arith.constant 0 : index
    %19 = vector.load %arg6[%c0_10, %c0_11, %c0_12] : memref<1x512x64xbf16, #tpu.memory_space<vmem>>, vector<1x512x64xbf16>
    %20 = vector.shape_cast %19 : vector<1x512x64xbf16> to vector<512x64xbf16>
    %cst_13 = arith.constant dense<0.000000e+00> : vector<8x64xf32>
    %21 = tpu.matmul %17, %20, %cst_13 {dimension_numbers = #tpu.dot_dimension_numbers<[1], [0], [0], [1], [0, 0, 1, 1], [], []>} : vector<8x512xbf16>, vector<512x64xbf16>, vector<8x64xf32> -> vector<8x64xf32>
    %22 = arith.addf %18, %21 : vector<8x64xf32>
    %c0_14 = arith.constant 0 : index
    %c0_15 = arith.constant 0 : index
    %23 = vector.load %arg9[%c0_14, %c0_15] : memref<8x64xf32, #tpu.memory_space<vmem>>, vector<8x64xf32>
    tpu.vector_store %arg9[%c0_14, %c0_15], %22 {strides = array<i32>} : memref<8x64xf32, #tpu.memory_space<vmem>>, vector<8x64xf32>,
    %c0_i32_16 = arith.constant 0 : i32
    %24 = arith.cmpi eq, %arg2, %c0_i32_16 : i32
    %25 = arith.extui %24 : i1 to i32
    %c0_i32_17 = arith.constant 0 : i32
    %26 = arith.cmpi ne, %25, %c0_i32_17 : i32
    scf.if %26 {
      %c0_18 = arith.constant 0 : index
      %c0_19 = arith.constant 0 : index
      %27 = vector.load %arg9[%c0_18, %c0_19] : memref<8x64xf32, #tpu.memory_space<vmem>>, vector<8x64xf32>
      %c0_20 = arith.constant 0 : index
      %c0_21 = arith.constant 0 : index
      %28 = vector.load %arg7[%c0_20, %c0_21] : memref<1x64xf32, #tpu.memory_space<vmem>>, vector<1x64xf32>
      %29 = vector.broadcast %28 : vector<1x64xf32> to vector<8x64xf32>
      %30 = arith.addf %27, %29 : vector<8x64xf32>
      %31 = arith.truncf %30 : vector<8x64xf32> to vector<8x64xbf16>
      %c0_22 = arith.constant 0 : index
      %c0_23 = arith.constant 0 : index
      %c0_24 = arith.constant 0 : index
      %32 = vector.load %arg8[%c0_22, %c0_23, %c0_24] : memref<1x8x64xbf16, #tpu.memory_space<vmem>>, vector<1x8x64xbf16>
      %33 = vector.shape_cast %32 : vector<1x8x64xbf16> to vector<8x64xbf16>
      %34 = vector.shape_cast %31 : vector<8x64xbf16> to vector<1x8x64xbf16>
      tpu.vector_store %arg8[%c0_22, %c0_23, %c0_24], %34 {strides = array<i32>} : memref<1x8x64xbf16, #tpu.memory_space<vmem>>, vector<1x8x64xbf16>,
    } else {
    }
    return
  }
  func.func @transform_0(%arg0: i32, %arg1: i32, %arg2: i32) -> (i32, i32) {
    %c0_i32 = arith.constant 0 : i32
    %c0_i32_0 = arith.constant 0 : i32
    return %c0_i32, %arg2 : i32, i32
  }
  func.func @transform_1(%arg0: i32, %arg1: i32, %arg2: i32) -> (i32, i32) {
    %c0_i32 = arith.constant 0 : i32
    %c0_i32_0 = arith.constant 0 : i32
    return %c0_i32, %arg2 : i32, i32
  }
  func.func @transform_2(%arg0: i32, %arg1: i32, %arg2: i32) -> (i32, i32, i32) {
    %c0_i32 = arith.constant 0 : i32
    return %arg0, %arg1, %arg2 : i32, i32, i32
  }
  func.func @transform_3(%arg0: i32, %arg1: i32, %arg2: i32) -> (i32, i32, i32) {
    %c0_i32 = arith.constant 0 : i32
    %c0_i32_0 = arith.constant 0 : i32
    return %arg0, %arg2, %c0_i32 : i32, i32, i32
  }
  func.func @transform_4(%arg0: i32, %arg1: i32, %arg2: i32) -> (i32, i32) {
    %c0_i32 = arith.constant 0 : i32
    %c0_i32_0 = arith.constant 0 : i32
    %c0_i32_1 = arith.constant 0 : i32
    return %c0_i32, %c0_i32_0 : i32, i32
  }
  func.func @transform_5(%arg0: i32, %arg1: i32, %arg2: i32) -> (i32, i32, i32) {
    %c0_i32 = arith.constant 0 : i32
    %c0_i32_0 = arith.constant 0 : i32
    return %arg0, %arg1, %c0_i32 : i32, i32, i32
  }
}

module attributes {stable_mosaic.version = 11 : i64} {
  func.func @kernel(%arg0: i32, %arg1: memref<8x64xbf16, #tpu.memory_space<vmem>>, %arg2: memref<1x64xf32, #tpu.memory_space<vmem>>, %arg3: memref<1x64xf32, #tpu.memory_space<vmem>>) attributes {dimension_semantics = [#tpu.dimension_semantics<arbitrary>], iteration_bounds = array<i64: 1>, scalar_prefetch = 0 : i64, scratch_operands = 0 : i64, tpu.core_type = #tpu.core_type<tc>, window_params = [{transform_indices = @transform_0, window_bounds = array<i64: 8, 64>}, {pipeline_mode = #tpu.pipeline_mode<synchronous>, transform_indices = @transform_1, window_bounds = array<i64: 1, 64>}, {pipeline_mode = #tpu.pipeline_mode<synchronous>, transform_indices = @transform_2, window_bounds = array<i64: 1, 64>}]} {
    %c0_i32 = arith.constant 0 : i32
    %0 = arith.cmpi eq, %arg0, %c0_i32 : i32
    %1 = arith.extui %0 : i1 to i32
    %c0_i32_0 = arith.constant 0 : i32
    %2 = arith.cmpi ne, %1, %c0_i32_0 : i32
    scf.if %2 {
      %cst_11 = arith.constant 0.000000e+00 : f32
      %16 = vector.broadcast %cst_11 : f32 to vector<1x64xf32>
      %c0_12 = arith.constant 0 : index
      %c0_13 = arith.constant 0 : index
      %17 = vector.load %arg2[%c0_12, %c0_13] : memref<1x64xf32, #tpu.memory_space<vmem>>, vector<1x64xf32>
      tpu.vector_store %arg2[%c0_12, %c0_13], %16 {strides = array<i32>} : memref<1x64xf32, #tpu.memory_space<vmem>>, vector<1x64xf32>,
      %cst_14 = arith.constant 0.000000e+00 : f32
      %18 = vector.broadcast %cst_14 : f32 to vector<1x64xf32>
      %c0_15 = arith.constant 0 : index
      %c0_16 = arith.constant 0 : index
      %19 = vector.load %arg3[%c0_15, %c0_16] : memref<1x64xf32, #tpu.memory_space<vmem>>, vector<1x64xf32>
      tpu.vector_store %arg3[%c0_15, %c0_16], %18 {strides = array<i32>} : memref<1x64xf32, #tpu.memory_space<vmem>>, vector<1x64xf32>,
    } else {
    }
    %c0 = arith.constant 0 : index
    %c0_1 = arith.constant 0 : index
    %3 = vector.load %arg1[%c0, %c0_1] : memref<8x64xbf16, #tpu.memory_space<vmem>>, vector<8x64xbf16>
    %4 = arith.extf %3 : vector<8x64xbf16> to vector<8x64xf32>
    %c0_2 = arith.constant 0 : index
    %c0_3 = arith.constant 0 : index
    %5 = vector.load %arg2[%c0_2, %c0_3] : memref<1x64xf32, #tpu.memory_space<vmem>>, vector<1x64xf32>
    %cst = arith.constant dense<0.000000e+00> : vector<64xf32>
    %6 = vector.multi_reduction <add>, %4, %cst [0] : vector<8x64xf32> to vector<64xf32>
    %7 = vector.shape_cast %6 : vector<64xf32> to vector<1x64xf32>
    %8 = arith.addf %5, %7 : vector<1x64xf32>
    %c0_4 = arith.constant 0 : index
    %c0_5 = arith.constant 0 : index
    %9 = vector.load %arg2[%c0_4, %c0_5] : memref<1x64xf32, #tpu.memory_space<vmem>>, vector<1x64xf32>
    tpu.vector_store %arg2[%c0_4, %c0_5], %8 {strides = array<i32>} : memref<1x64xf32, #tpu.memory_space<vmem>>, vector<1x64xf32>,
    %c0_6 = arith.constant 0 : index
    %c0_7 = arith.constant 0 : index
    %10 = vector.load %arg3[%c0_6, %c0_7] : memref<1x64xf32, #tpu.memory_space<vmem>>, vector<1x64xf32>
    %11 = arith.mulf %4, %4 : vector<8x64xf32>
    %cst_8 = arith.constant dense<0.000000e+00> : vector<64xf32>
    %12 = vector.multi_reduction <add>, %11, %cst_8 [0] : vector<8x64xf32> to vector<64xf32>
    %13 = vector.shape_cast %12 : vector<64xf32> to vector<1x64xf32>
    %14 = arith.addf %10, %13 : vector<1x64xf32>
    %c0_9 = arith.constant 0 : index
    %c0_10 = arith.constant 0 : index
    %15 = vector.load %arg3[%c0_9, %c0_10] : memref<1x64xf32, #tpu.memory_space<vmem>>, vector<1x64xf32>
    tpu.vector_store %arg3[%c0_9, %c0_10], %14 {strides = array<i32>} : memref<1x64xf32, #tpu.memory_space<vmem>>, vector<1x64xf32>,
    return
  }
  func.func @transform_0(%arg0: i32) -> (i32, i32) {
    %c0_i32 = arith.constant 0 : i32
    %c0_i32_0 = arith.constant 0 : i32
    return %arg0, %c0_i32 : i32, i32
  }
  func.func @transform_1(%arg0: i32) -> (i32, i32) {
    %c0_i32 = arith.constant 0 : i32
    %c0_i32_0 = arith.constant 0 : i32
    %c0_i32_1 = arith.constant 0 : i32
    return %c0_i32, %c0_i32_0 : i32, i32
  }
  func.func @transform_2(%arg0: i32) -> (i32, i32) {
    %c0_i32 = arith.constant 0 : i32
    %c0_i32_0 = arith.constant 0 : i32
    %c0_i32_1 = arith.constant 0 : i32
    return %c0_i32, %c0_i32_0 : i32, i32
  }
}

module attributes {stable_mosaic.version = 11 : i64} {
  func.func @kernel(%arg0: i32, %arg1: i32, %arg2: i32, %arg3: memref<1x256xf32, #tpu.memory_space<vmem>>, %arg4: memref<1x256xf32, #tpu.memory_space<vmem>>, %arg5: memref<1x2x256xbf16, #tpu.memory_space<vmem>>, %arg6: memref<1x256x64xbf16, #tpu.memory_space<vmem>>, %arg7: memref<1x64xf32, #tpu.memory_space<vmem>>, %arg8: memref<1x2x64xbf16, #tpu.memory_space<vmem>>, %arg9: memref<2x64xf32, #tpu.memory_space<vmem>>) attributes {dimension_semantics = [#tpu.dimension_semantics<parallel>, #tpu.dimension_semantics<parallel>, #tpu.dimension_semantics<arbitrary>], iteration_bounds = array<i64: 4, 1, 1>, scalar_prefetch = 0 : i64, scratch_operands = 1 : i64, tpu.core_type = #tpu.core_type<tc>, window_params = [{transform_indices = @transform_0, window_bounds = array<i64: 1, 256>}, {transform_indices = @transform_1, window_bounds = array<i64: 1, 256>}, {transform_indices = @transform_2, window_bounds = array<i64: 1, 2, 256>}, {transform_indices = @transform_3, window_bounds = array<i64: 1, 256, 64>}, {pipeline_mode = #tpu.pipeline_mode<synchronous>, transform_indices = @transform_4, window_bounds = array<i64: 1, 64>}, {transform_indices = @transform_5, window_bounds = array<i64: 1, 2, 64>}]} {
    %c0_i32 = arith.constant 0 : i32
    %0 = arith.cmpi eq, %arg2, %c0_i32 : i32
    %1 = arith.extui %0 : i1 to i32
    %c0_i32_0 = arith.constant 0 : i32
    %2 = arith.cmpi ne, %1, %c0_i32_0 : i32
    scf.if %2 {
      %cst_13 = arith.constant 0.000000e+00 : f32
      %16 = vector.broadcast %cst_13 : f32 to vector<2x64xf32>
      %c0_14 = arith.constant 0 : index
      %c0_15 = arith.constant 0 : index
      %17 = vector.load %arg9[%c0_14, %c0_15] : memref<2x64xf32, #tpu.memory_space<vmem>>, vector<2x64xf32>
      tpu.vector_store %arg9[%c0_14, %c0_15], %16 {strides = array<i32>} : memref<2x64xf32, #tpu.memory_space<vmem>>, vector<2x64xf32>,
    } else {
    }
    %c0 = arith.constant 0 : index
    %c0_1 = arith.constant 0 : index
    %c0_2 = arith.constant 0 : index
    %3 = vector.load %arg5[%c0, %c0_1, %c0_2] : memref<1x2x256xbf16, #tpu.memory_space<vmem>>, vector<1x2x256xbf16>
    %4 = vector.shape_cast %3 : vector<1x2x256xbf16> to vector<2x256xbf16>
    %cst = arith.constant 0.000000e+00 : bf16
    %5 = vector.broadcast %cst : bf16 to vector<2x256xbf16>
    %6 = arith.maximumf %4, %5 : vector<2x256xbf16>
    %c0_3 = arith.constant 0 : index
    %c0_4 = arith.constant 0 : index
    %7 = vector.load %arg9[%c0_3, %c0_4] : memref<2x64xf32, #tpu.memory_space<vmem>>, vector<2x64xf32>
    %c0_5 = arith.constant 0 : index
    %c0_6 = arith.constant 0 : index
    %c0_7 = arith.constant 0 : index
    %8 = vector.load %arg6[%c0_5, %c0_6, %c0_7] : memref<1x256x64xbf16, #tpu.memory_space<vmem>>, vector<1x256x64xbf16>
    %9 = vector.shape_cast %8 : vector<1x256x64xbf16> to vector<256x64xbf16>
    %cst_8 = arith.constant dense<0.000000e+00> : vector<2x64xf32>
    %10 = tpu.matmul %6, %9, %cst_8 {dimension_numbers = #tpu.dot_dimension_numbers<[1], [0], [0], [1], [0, 0, 1, 1], [], []>} : vector<2x256xbf16>, vector<256x64xbf16>, vector<2x64xf32> -> vector<2x64xf32>
    %11 = arith.addf %7, %10 : vector<2x64xf32>
    %c0_9 = arith.constant 0 : index
    %c0_10 = arith.constant 0 : index
    %12 = vector.load %arg9[%c0_9, %c0_10] : memref<2x64xf32, #tpu.memory_space<vmem>>, vector<2x64xf32>
    tpu.vector_store %arg9[%c0_9, %c0_10], %11 {strides = array<i32>} : memref<2x64xf32, #tpu.memory_space<vmem>>, vector<2x64xf32>,
    %c0_i32_11 = arith.constant 0 : i32
    %13 = arith.cmpi eq, %arg2, %c0_i32_11 : i32
    %14 = arith.extui %13 : i1 to i32
    %c0_i32_12 = arith.constant 0 : i32
    %15 = arith.cmpi ne, %14, %c0_i32_12 : i32
    scf.if %15 {
      %c0_13 = arith.constant 0 : index
      %c0_14 = arith.constant 0 : index
      %16 = vector.load %arg9[%c0_13, %c0_14] : memref<2x64xf32, #tpu.memory_space<vmem>>, vector<2x64xf32>
      %c0_15 = arith.constant 0 : index
      %c0_16 = arith.constant 0 : index
      %17 = vector.load %arg7[%c0_15, %c0_16] : memref<1x64xf32, #tpu.memory_space<vmem>>, vector<1x64xf32>
      %18 = vector.broadcast %17 : vector<1x64xf32> to vector<2x64xf32>
      %19 = arith.addf %16, %18 : vector<2x64xf32>
      %20 = arith.truncf %19 : vector<2x64xf32> to vector<2x64xbf16>
      %c0_17 = arith.constant 0 : index
      %c0_18 = arith.constant 0 : index
      %c0_19 = arith.constant 0 : index
      %21 = vector.load %arg8[%c0_17, %c0_18, %c0_19] : memref<1x2x64xbf16, #tpu.memory_space<vmem>>, vector<1x2x64xbf16>
      %22 = vector.shape_cast %21 : vector<1x2x64xbf16> to vector<2x64xbf16>
      %23 = vector.shape_cast %20 : vector<2x64xbf16> to vector<1x2x64xbf16>
      tpu.vector_store %arg8[%c0_17, %c0_18, %c0_19], %23 {strides = array<i32>} : memref<1x2x64xbf16, #tpu.memory_space<vmem>>, vector<1x2x64xbf16>,
    } else {
    }
    return
  }
  func.func @transform_0(%arg0: i32, %arg1: i32, %arg2: i32) -> (i32, i32) {
    %c0_i32 = arith.constant 0 : i32
    %c0_i32_0 = arith.constant 0 : i32
    return %c0_i32, %arg2 : i32, i32
  }
  func.func @transform_1(%arg0: i32, %arg1: i32, %arg2: i32) -> (i32, i32) {
    %c0_i32 = arith.constant 0 : i32
    %c0_i32_0 = arith.constant 0 : i32
    return %c0_i32, %arg2 : i32, i32
  }
  func.func @transform_2(%arg0: i32, %arg1: i32, %arg2: i32) -> (i32, i32, i32) {
    %c0_i32 = arith.constant 0 : i32
    return %arg0, %arg1, %arg2 : i32, i32, i32
  }
  func.func @transform_3(%arg0: i32, %arg1: i32, %arg2: i32) -> (i32, i32, i32) {
    %c0_i32 = arith.constant 0 : i32
    %c0_i32_0 = arith.constant 0 : i32
    return %arg0, %arg2, %c0_i32 : i32, i32, i32
  }
  func.func @transform_4(%arg0: i32, %arg1: i32, %arg2: i32) -> (i32, i32) {
    %c0_i32 = arith.constant 0 : i32
    %c0_i32_0 = arith.constant 0 : i32
    %c0_i32_1 = arith.constant 0 : i32
    return %c0_i32, %c0_i32_0 : i32, i32
  }
  func.func @transform_5(%arg0: i32, %arg1: i32, %arg2: i32) -> (i32, i32, i32) {
    %c0_i32 = arith.constant 0 : i32
    %c0_i32_0 = arith.constant 0 : i32
    return %arg0, %arg1, %c0_i32 : i32, i32, i32
  }
}

module attributes {stable_mosaic.version = 11 : i64} {
  func.func @kernel(%arg0: i32, %arg1: i32, %arg2: i32, %arg3: memref<1x1024xf32, #tpu.memory_space<vmem>>, %arg4: memref<1x1024xf32, #tpu.memory_space<vmem>>, %arg5: memref<1x2x1024xbf16, #tpu.memory_space<vmem>>, %arg6: memref<1x1024x64xbf16, #tpu.memory_space<vmem>>, %arg7: memref<1x64xf32, #tpu.memory_space<vmem>>, %arg8: memref<1x2x64xbf16, #tpu.memory_space<vmem>>, %arg9: memref<2x64xf32, #tpu.memory_space<vmem>>) attributes {dimension_semantics = [#tpu.dimension_semantics<parallel>, #tpu.dimension_semantics<parallel>, #tpu.dimension_semantics<arbitrary>], iteration_bounds = array<i64: 1, 1, 1>, scalar_prefetch = 0 : i64, scratch_operands = 1 : i64, tpu.core_type = #tpu.core_type<tc>, window_params = [{transform_indices = @transform_0, window_bounds = array<i64: 1, 1024>}, {transform_indices = @transform_1, window_bounds = array<i64: 1, 1024>}, {transform_indices = @transform_2, window_bounds = array<i64: 1, 2, 1024>}, {transform_indices = @transform_3, window_bounds = array<i64: 1, 1024, 64>}, {pipeline_mode = #tpu.pipeline_mode<synchronous>, transform_indices = @transform_4, window_bounds = array<i64: 1, 64>}, {transform_indices = @transform_5, window_bounds = array<i64: 1, 2, 64>}]} {
    %c0_i32 = arith.constant 0 : i32
    %0 = arith.cmpi eq, %arg2, %c0_i32 : i32
    %1 = arith.extui %0 : i1 to i32
    %c0_i32_0 = arith.constant 0 : i32
    %2 = arith.cmpi ne, %1, %c0_i32_0 : i32
    scf.if %2 {
      %cst_18 = arith.constant 0.000000e+00 : f32
      %27 = vector.broadcast %cst_18 : f32 to vector<2x64xf32>
      %c0_19 = arith.constant 0 : index
      %c0_20 = arith.constant 0 : index
      %28 = vector.load %arg9[%c0_19, %c0_20] : memref<2x64xf32, #tpu.memory_space<vmem>>, vector<2x64xf32>
      tpu.vector_store %arg9[%c0_19, %c0_20], %27 {strides = array<i32>} : memref<2x64xf32, #tpu.memory_space<vmem>>, vector<2x64xf32>,
    } else {
    }
    %c0 = arith.constant 0 : index
    %c0_1 = arith.constant 0 : index
    %c0_2 = arith.constant 0 : index
    %3 = vector.load %arg5[%c0, %c0_1, %c0_2] : memref<1x2x1024xbf16, #tpu.memory_space<vmem>>, vector<1x2x1024xbf16>
    %4 = vector.shape_cast %3 : vector<1x2x1024xbf16> to vector<2x1024xbf16>
    %5 = arith.extf %4 : vector<2x1024xbf16> to vector<2x1024xf32>
    %c0_3 = arith.constant 0 : index
    %c0_4 = arith.constant 0 : index
    %6 = vector.load %arg3[%c0_3, %c0_4] : memref<1x1024xf32, #tpu.memory_space<vmem>>, vector<1x1024xf32>
    %7 = vector.broadcast %6 : vector<1x1024xf32> to vector<2x1024xf32>
    %8 = arith.mulf %5, %7 : vector<2x1024xf32>
    %c0_5 = arith.constant 0 : index
    %c0_6 = arith.constant 0 : index
    %9 = vector.load %arg4[%c0_5, %c0_6] : memref<1x1024xf32, #tpu.memory_space<vmem>>, vector<1x1024xf32>
    %10 = vector.broadcast %9 : vector<1x1024xf32> to vector<2x1024xf32>
    %11 = arith.addf %8, %10 : vector<2x1024xf32>
    %cst = arith.constant 0.000000e+00 : f32
    %12 = vector.broadcast %cst : f32 to vector<2x1024xf32>
    %13 = arith.cmpf ogt, %11, %12 : vector<2x1024xf32>
    %cst_7 = arith.constant 2.000000e-01 : f32
    %14 = vector.broadcast %cst_7 : f32 to vector<2x1024xf32>
    %15 = arith.mulf %14, %11 : vector<2x1024xf32>
    %16 = arith.select %13, %11, %15 : vector<2x1024xi1>, vector<2x1024xf32>
    %17 = arith.truncf %16 : vector<2x1024xf32> to vector<2x1024xbf16>
    %c0_8 = arith.constant 0 : index
    %c0_9 = arith.constant 0 : index
    %18 = vector.load %arg9[%c0_8, %c0_9] : memref<2x64xf32, #tpu.memory_space<vmem>>, vector<2x64xf32>
    %c0_10 = arith.constant 0 : index
    %c0_11 = arith.constant 0 : index
    %c0_12 = arith.constant 0 : index
    %19 = vector.load %arg6[%c0_10, %c0_11, %c0_12] : memref<1x1024x64xbf16, #tpu.memory_space<vmem>>, vector<1x1024x64xbf16>
    %20 = vector.shape_cast %19 : vector<1x1024x64xbf16> to vector<1024x64xbf16>
    %cst_13 = arith.constant dense<0.000000e+00> : vector<2x64xf32>
    %21 = tpu.matmul %17, %20, %cst_13 {dimension_numbers = #tpu.dot_dimension_numbers<[1], [0], [0], [1], [0, 0, 1, 1], [], []>} : vector<2x1024xbf16>, vector<1024x64xbf16>, vector<2x64xf32> -> vector<2x64xf32>
    %22 = arith.addf %18, %21 : vector<2x64xf32>
    %c0_14 = arith.constant 0 : index
    %c0_15 = arith.constant 0 : index
    %23 = vector.load %arg9[%c0_14, %c0_15] : memref<2x64xf32, #tpu.memory_space<vmem>>, vector<2x64xf32>
    tpu.vector_store %arg9[%c0_14, %c0_15], %22 {strides = array<i32>} : memref<2x64xf32, #tpu.memory_space<vmem>>, vector<2x64xf32>,
    %c0_i32_16 = arith.constant 0 : i32
    %24 = arith.cmpi eq, %arg2, %c0_i32_16 : i32
    %25 = arith.extui %24 : i1 to i32
    %c0_i32_17 = arith.constant 0 : i32
    %26 = arith.cmpi ne, %25, %c0_i32_17 : i32
    scf.if %26 {
      %c0_18 = arith.constant 0 : index
      %c0_19 = arith.constant 0 : index
      %27 = vector.load %arg9[%c0_18, %c0_19] : memref<2x64xf32, #tpu.memory_space<vmem>>, vector<2x64xf32>
      %c0_20 = arith.constant 0 : index
      %c0_21 = arith.constant 0 : index
      %28 = vector.load %arg7[%c0_20, %c0_21] : memref<1x64xf32, #tpu.memory_space<vmem>>, vector<1x64xf32>
      %29 = vector.broadcast %28 : vector<1x64xf32> to vector<2x64xf32>
      %30 = arith.addf %27, %29 : vector<2x64xf32>
      %31 = arith.truncf %30 : vector<2x64xf32> to vector<2x64xbf16>
      %c0_22 = arith.constant 0 : index
      %c0_23 = arith.constant 0 : index
      %c0_24 = arith.constant 0 : index
      %32 = vector.load %arg8[%c0_22, %c0_23, %c0_24] : memref<1x2x64xbf16, #tpu.memory_space<vmem>>, vector<1x2x64xbf16>
      %33 = vector.shape_cast %32 : vector<1x2x64xbf16> to vector<2x64xbf16>
      %34 = vector.shape_cast %31 : vector<2x64xbf16> to vector<1x2x64xbf16>
      tpu.vector_store %arg8[%c0_22, %c0_23, %c0_24], %34 {strides = array<i32>} : memref<1x2x64xbf16, #tpu.memory_space<vmem>>, vector<1x2x64xbf16>,
    } else {
    }
    return
  }
  func.func @transform_0(%arg0: i32, %arg1: i32, %arg2: i32) -> (i32, i32) {
    %c0_i32 = arith.constant 0 : i32
    %c0_i32_0 = arith.constant 0 : i32
    return %c0_i32, %arg2 : i32, i32
  }
  func.func @transform_1(%arg0: i32, %arg1: i32, %arg2: i32) -> (i32, i32) {
    %c0_i32 = arith.constant 0 : i32
    %c0_i32_0 = arith.constant 0 : i32
    return %c0_i32, %arg2 : i32, i32
  }
  func.func @transform_2(%arg0: i32, %arg1: i32, %arg2: i32) -> (i32, i32, i32) {
    %c0_i32 = arith.constant 0 : i32
    return %arg0, %arg1, %arg2 : i32, i32, i32
  }
  func.func @transform_3(%arg0: i32, %arg1: i32, %arg2: i32) -> (i32, i32, i32) {
    %c0_i32 = arith.constant 0 : i32
    %c0_i32_0 = arith.constant 0 : i32
    return %arg0, %arg2, %c0_i32 : i32, i32, i32
  }
  func.func @transform_4(%arg0: i32, %arg1: i32, %arg2: i32) -> (i32, i32) {
    %c0_i32 = arith.constant 0 : i32
    %c0_i32_0 = arith.constant 0 : i32
    %c0_i32_1 = arith.constant 0 : i32
    return %c0_i32, %c0_i32_0 : i32, i32
  }
  func.func @transform_5(%arg0: i32, %arg1: i32, %arg2: i32) -> (i32, i32, i32) {
    %c0_i32 = arith.constant 0 : i32
    %c0_i32_0 = arith.constant 0 : i32
    return %arg0, %arg1, %c0_i32 : i32, i32, i32
  }
}

module attributes {stable_mosaic.version = 11 : i64} {
  func.func @kernel(%arg0: i32, %arg1: i32, %arg2: i32, %arg3: memref<1x512xf32, #tpu.memory_space<vmem>>, %arg4: memref<1x512xf32, #tpu.memory_space<vmem>>, %arg5: memref<1x8x512xbf16, #tpu.memory_space<vmem>>, %arg6: memref<1x512x32xbf16, #tpu.memory_space<vmem>>, %arg7: memref<1x32xf32, #tpu.memory_space<vmem>>, %arg8: memref<1x8x32xbf16, #tpu.memory_space<vmem>>, %arg9: memref<8x32xf32, #tpu.memory_space<vmem>>) attributes {dimension_semantics = [#tpu.dimension_semantics<parallel>, #tpu.dimension_semantics<parallel>, #tpu.dimension_semantics<arbitrary>], iteration_bounds = array<i64: 4, 1, 1>, scalar_prefetch = 0 : i64, scratch_operands = 1 : i64, tpu.core_type = #tpu.core_type<tc>, window_params = [{transform_indices = @transform_0, window_bounds = array<i64: 1, 512>}, {transform_indices = @transform_1, window_bounds = array<i64: 1, 512>}, {transform_indices = @transform_2, window_bounds = array<i64: 1, 8, 512>}, {transform_indices = @transform_3, window_bounds = array<i64: 1, 512, 32>}, {pipeline_mode = #tpu.pipeline_mode<synchronous>, transform_indices = @transform_4, window_bounds = array<i64: 1, 32>}, {transform_indices = @transform_5, window_bounds = array<i64: 1, 8, 32>}]} {
    %c0_i32 = arith.constant 0 : i32
    %0 = arith.cmpi eq, %arg2, %c0_i32 : i32
    %1 = arith.extui %0 : i1 to i32
    %c0_i32_0 = arith.constant 0 : i32
    %2 = arith.cmpi ne, %1, %c0_i32_0 : i32
    scf.if %2 {
      %cst_17 = arith.constant 0.000000e+00 : f32
      %24 = vector.broadcast %cst_17 : f32 to vector<8x32xf32>
      %c0_18 = arith.constant 0 : index
      %c0_19 = arith.constant 0 : index
      %25 = vector.load %arg9[%c0_18, %c0_19] : memref<8x32xf32, #tpu.memory_space<vmem>>, vector<8x32xf32>
      tpu.vector_store %arg9[%c0_18, %c0_19], %24 {strides = array<i32>} : memref<8x32xf32, #tpu.memory_space<vmem>>, vector<8x32xf32>,
    } else {
    }
    %c0 = arith.constant 0 : index
    %c0_1 = arith.constant 0 : index
    %c0_2 = arith.constant 0 : index
    %3 = vector.load %arg5[%c0, %c0_1, %c0_2] : memref<1x8x512xbf16, #tpu.memory_space<vmem>>, vector<1x8x512xbf16>
    %4 = vector.shape_cast %3 : vector<1x8x512xbf16> to vector<8x512xbf16>
    %5 = arith.extf %4 : vector<8x512xbf16> to vector<8x512xf32>
    %c0_3 = arith.constant 0 : index
    %c0_4 = arith.constant 0 : index
    %6 = vector.load %arg3[%c0_3, %c0_4] : memref<1x512xf32, #tpu.memory_space<vmem>>, vector<1x512xf32>
    %7 = vector.broadcast %6 : vector<1x512xf32> to vector<8x512xf32>
    %8 = arith.mulf %5, %7 : vector<8x512xf32>
    %c0_5 = arith.constant 0 : index
    %c0_6 = arith.constant 0 : index
    %9 = vector.load %arg4[%c0_5, %c0_6] : memref<1x512xf32, #tpu.memory_space<vmem>>, vector<1x512xf32>
    %10 = vector.broadcast %9 : vector<1x512xf32> to vector<8x512xf32>
    %11 = arith.addf %8, %10 : vector<8x512xf32>
    %cst = arith.constant 0.000000e+00 : f32
    %12 = vector.broadcast %cst : f32 to vector<8x512xf32>
    %13 = arith.maximumf %11, %12 : vector<8x512xf32>
    %14 = arith.truncf %13 : vector<8x512xf32> to vector<8x512xbf16>
    %c0_7 = arith.constant 0 : index
    %c0_8 = arith.constant 0 : index
    %15 = vector.load %arg9[%c0_7, %c0_8] : memref<8x32xf32, #tpu.memory_space<vmem>>, vector<8x32xf32>
    %c0_9 = arith.constant 0 : index
    %c0_10 = arith.constant 0 : index
    %c0_11 = arith.constant 0 : index
    %16 = vector.load %arg6[%c0_9, %c0_10, %c0_11] : memref<1x512x32xbf16, #tpu.memory_space<vmem>>, vector<1x512x32xbf16>
    %17 = vector.shape_cast %16 : vector<1x512x32xbf16> to vector<512x32xbf16>
    %cst_12 = arith.constant dense<0.000000e+00> : vector<8x32xf32>
    %18 = tpu.matmul %14, %17, %cst_12 {dimension_numbers = #tpu.dot_dimension_numbers<[1], [0], [0], [1], [0, 0, 1, 1], [], []>} : vector<8x512xbf16>, vector<512x32xbf16>, vector<8x32xf32> -> vector<8x32xf32>
    %19 = arith.addf %15, %18 : vector<8x32xf32>
    %c0_13 = arith.constant 0 : index
    %c0_14 = arith.constant 0 : index
    %20 = vector.load %arg9[%c0_13, %c0_14] : memref<8x32xf32, #tpu.memory_space<vmem>>, vector<8x32xf32>
    tpu.vector_store %arg9[%c0_13, %c0_14], %19 {strides = array<i32>} : memref<8x32xf32, #tpu.memory_space<vmem>>, vector<8x32xf32>,
    %c0_i32_15 = arith.constant 0 : i32
    %21 = arith.cmpi eq, %arg2, %c0_i32_15 : i32
    %22 = arith.extui %21 : i1 to i32
    %c0_i32_16 = arith.constant 0 : i32
    %23 = arith.cmpi ne, %22, %c0_i32_16 : i32
    scf.if %23 {
      %c0_17 = arith.constant 0 : index
      %c0_18 = arith.constant 0 : index
      %24 = vector.load %arg9[%c0_17, %c0_18] : memref<8x32xf32, #tpu.memory_space<vmem>>, vector<8x32xf32>
      %c0_19 = arith.constant 0 : index
      %c0_20 = arith.constant 0 : index
      %25 = vector.load %arg7[%c0_19, %c0_20] : memref<1x32xf32, #tpu.memory_space<vmem>>, vector<1x32xf32>
      %26 = vector.broadcast %25 : vector<1x32xf32> to vector<8x32xf32>
      %27 = arith.addf %24, %26 : vector<8x32xf32>
      %28 = arith.truncf %27 : vector<8x32xf32> to vector<8x32xbf16>
      %c0_21 = arith.constant 0 : index
      %c0_22 = arith.constant 0 : index
      %c0_23 = arith.constant 0 : index
      %29 = vector.load %arg8[%c0_21, %c0_22, %c0_23] : memref<1x8x32xbf16, #tpu.memory_space<vmem>>, vector<1x8x32xbf16>
      %30 = vector.shape_cast %29 : vector<1x8x32xbf16> to vector<8x32xbf16>
      %31 = vector.shape_cast %28 : vector<8x32xbf16> to vector<1x8x32xbf16>
      tpu.vector_store %arg8[%c0_21, %c0_22, %c0_23], %31 {strides = array<i32>} : memref<1x8x32xbf16, #tpu.memory_space<vmem>>, vector<1x8x32xbf16>,
    } else {
    }
    return
  }
  func.func @transform_0(%arg0: i32, %arg1: i32, %arg2: i32) -> (i32, i32) {
    %c0_i32 = arith.constant 0 : i32
    %c0_i32_0 = arith.constant 0 : i32
    return %c0_i32, %arg2 : i32, i32
  }
  func.func @transform_1(%arg0: i32, %arg1: i32, %arg2: i32) -> (i32, i32) {
    %c0_i32 = arith.constant 0 : i32
    %c0_i32_0 = arith.constant 0 : i32
    return %c0_i32, %arg2 : i32, i32
  }
  func.func @transform_2(%arg0: i32, %arg1: i32, %arg2: i32) -> (i32, i32, i32) {
    %c0_i32 = arith.constant 0 : i32
    return %arg0, %arg1, %arg2 : i32, i32, i32
  }
  func.func @transform_3(%arg0: i32, %arg1: i32, %arg2: i32) -> (i32, i32, i32) {
    %c0_i32 = arith.constant 0 : i32
    %c0_i32_0 = arith.constant 0 : i32
    return %arg0, %arg2, %c0_i32 : i32, i32, i32
  }
  func.func @transform_4(%arg0: i32, %arg1: i32, %arg2: i32) -> (i32, i32) {
    %c0_i32 = arith.constant 0 : i32
    %c0_i32_0 = arith.constant 0 : i32
    %c0_i32_1 = arith.constant 0 : i32
    return %c0_i32, %c0_i32_0 : i32, i32
  }
  func.func @transform_5(%arg0: i32, %arg1: i32, %arg2: i32) -> (i32, i32, i32) {
    %c0_i32 = arith.constant 0 : i32
    %c0_i32_0 = arith.constant 0 : i32
    return %arg0, %arg1, %c0_i32 : i32, i32, i32
  }
}

module attributes {stable_mosaic.version = 11 : i64} {
  func.func @kernel(%arg0: i32, %arg1: i32, %arg2: i32, %arg3: memref<1x256xf32, #tpu.memory_space<vmem>>, %arg4: memref<1x256xf32, #tpu.memory_space<vmem>>, %arg5: memref<1x32x256xbf16, #tpu.memory_space<vmem>>, %arg6: memref<1x256x16xbf16, #tpu.memory_space<vmem>>, %arg7: memref<1x16xf32, #tpu.memory_space<vmem>>, %arg8: memref<1x32x16xbf16, #tpu.memory_space<vmem>>, %arg9: memref<32x16xf32, #tpu.memory_space<vmem>>) attributes {dimension_semantics = [#tpu.dimension_semantics<parallel>, #tpu.dimension_semantics<parallel>, #tpu.dimension_semantics<arbitrary>], iteration_bounds = array<i64: 4, 1, 1>, scalar_prefetch = 0 : i64, scratch_operands = 1 : i64, tpu.core_type = #tpu.core_type<tc>, window_params = [{transform_indices = @transform_0, window_bounds = array<i64: 1, 256>}, {transform_indices = @transform_1, window_bounds = array<i64: 1, 256>}, {transform_indices = @transform_2, window_bounds = array<i64: 1, 32, 256>}, {transform_indices = @transform_3, window_bounds = array<i64: 1, 256, 16>}, {pipeline_mode = #tpu.pipeline_mode<synchronous>, transform_indices = @transform_4, window_bounds = array<i64: 1, 16>}, {transform_indices = @transform_5, window_bounds = array<i64: 1, 32, 16>}]} {
    %c0_i32 = arith.constant 0 : i32
    %0 = arith.cmpi eq, %arg2, %c0_i32 : i32
    %1 = arith.extui %0 : i1 to i32
    %c0_i32_0 = arith.constant 0 : i32
    %2 = arith.cmpi ne, %1, %c0_i32_0 : i32
    scf.if %2 {
      %cst_17 = arith.constant 0.000000e+00 : f32
      %24 = vector.broadcast %cst_17 : f32 to vector<32x16xf32>
      %c0_18 = arith.constant 0 : index
      %c0_19 = arith.constant 0 : index
      %25 = vector.load %arg9[%c0_18, %c0_19] : memref<32x16xf32, #tpu.memory_space<vmem>>, vector<32x16xf32>
      tpu.vector_store %arg9[%c0_18, %c0_19], %24 {strides = array<i32>} : memref<32x16xf32, #tpu.memory_space<vmem>>, vector<32x16xf32>,
    } else {
    }
    %c0 = arith.constant 0 : index
    %c0_1 = arith.constant 0 : index
    %c0_2 = arith.constant 0 : index
    %3 = vector.load %arg5[%c0, %c0_1, %c0_2] : memref<1x32x256xbf16, #tpu.memory_space<vmem>>, vector<1x32x256xbf16>
    %4 = vector.shape_cast %3 : vector<1x32x256xbf16> to vector<32x256xbf16>
    %5 = arith.extf %4 : vector<32x256xbf16> to vector<32x256xf32>
    %c0_3 = arith.constant 0 : index
    %c0_4 = arith.constant 0 : index
    %6 = vector.load %arg3[%c0_3, %c0_4] : memref<1x256xf32, #tpu.memory_space<vmem>>, vector<1x256xf32>
    %7 = vector.broadcast %6 : vector<1x256xf32> to vector<32x256xf32>
    %8 = arith.mulf %5, %7 : vector<32x256xf32>
    %c0_5 = arith.constant 0 : index
    %c0_6 = arith.constant 0 : index
    %9 = vector.load %arg4[%c0_5, %c0_6] : memref<1x256xf32, #tpu.memory_space<vmem>>, vector<1x256xf32>
    %10 = vector.broadcast %9 : vector<1x256xf32> to vector<32x256xf32>
    %11 = arith.addf %8, %10 : vector<32x256xf32>
    %cst = arith.constant 0.000000e+00 : f32
    %12 = vector.broadcast %cst : f32 to vector<32x256xf32>
    %13 = arith.maximumf %11, %12 : vector<32x256xf32>
    %14 = arith.truncf %13 : vector<32x256xf32> to vector<32x256xbf16>
    %c0_7 = arith.constant 0 : index
    %c0_8 = arith.constant 0 : index
    %15 = vector.load %arg9[%c0_7, %c0_8] : memref<32x16xf32, #tpu.memory_space<vmem>>, vector<32x16xf32>
    %c0_9 = arith.constant 0 : index
    %c0_10 = arith.constant 0 : index
    %c0_11 = arith.constant 0 : index
    %16 = vector.load %arg6[%c0_9, %c0_10, %c0_11] : memref<1x256x16xbf16, #tpu.memory_space<vmem>>, vector<1x256x16xbf16>
    %17 = vector.shape_cast %16 : vector<1x256x16xbf16> to vector<256x16xbf16>
    %cst_12 = arith.constant dense<0.000000e+00> : vector<32x16xf32>
    %18 = tpu.matmul %14, %17, %cst_12 {dimension_numbers = #tpu.dot_dimension_numbers<[1], [0], [0], [1], [0, 0, 1, 1], [], []>} : vector<32x256xbf16>, vector<256x16xbf16>, vector<32x16xf32> -> vector<32x16xf32>
    %19 = arith.addf %15, %18 : vector<32x16xf32>
    %c0_13 = arith.constant 0 : index
    %c0_14 = arith.constant 0 : index
    %20 = vector.load %arg9[%c0_13, %c0_14] : memref<32x16xf32, #tpu.memory_space<vmem>>, vector<32x16xf32>
    tpu.vector_store %arg9[%c0_13, %c0_14], %19 {strides = array<i32>} : memref<32x16xf32, #tpu.memory_space<vmem>>, vector<32x16xf32>,
    %c0_i32_15 = arith.constant 0 : i32
    %21 = arith.cmpi eq, %arg2, %c0_i32_15 : i32
    %22 = arith.extui %21 : i1 to i32
    %c0_i32_16 = arith.constant 0 : i32
    %23 = arith.cmpi ne, %22, %c0_i32_16 : i32
    scf.if %23 {
      %c0_17 = arith.constant 0 : index
      %c0_18 = arith.constant 0 : index
      %24 = vector.load %arg9[%c0_17, %c0_18] : memref<32x16xf32, #tpu.memory_space<vmem>>, vector<32x16xf32>
      %c0_19 = arith.constant 0 : index
      %c0_20 = arith.constant 0 : index
      %25 = vector.load %arg7[%c0_19, %c0_20] : memref<1x16xf32, #tpu.memory_space<vmem>>, vector<1x16xf32>
      %26 = vector.broadcast %25 : vector<1x16xf32> to vector<32x16xf32>
      %27 = arith.addf %24, %26 : vector<32x16xf32>
      %28 = arith.truncf %27 : vector<32x16xf32> to vector<32x16xbf16>
      %c0_21 = arith.constant 0 : index
      %c0_22 = arith.constant 0 : index
      %c0_23 = arith.constant 0 : index
      %29 = vector.load %arg8[%c0_21, %c0_22, %c0_23] : memref<1x32x16xbf16, #tpu.memory_space<vmem>>, vector<1x32x16xbf16>
      %30 = vector.shape_cast %29 : vector<1x32x16xbf16> to vector<32x16xbf16>
      %31 = vector.shape_cast %28 : vector<32x16xbf16> to vector<1x32x16xbf16>
      tpu.vector_store %arg8[%c0_21, %c0_22, %c0_23], %31 {strides = array<i32>} : memref<1x32x16xbf16, #tpu.memory_space<vmem>>, vector<1x32x16xbf16>,
    } else {
    }
    return
  }
  func.func @transform_0(%arg0: i32, %arg1: i32, %arg2: i32) -> (i32, i32) {
    %c0_i32 = arith.constant 0 : i32
    %c0_i32_0 = arith.constant 0 : i32
    return %c0_i32, %arg2 : i32, i32
  }
  func.func @transform_1(%arg0: i32, %arg1: i32, %arg2: i32) -> (i32, i32) {
    %c0_i32 = arith.constant 0 : i32
    %c0_i32_0 = arith.constant 0 : i32
    return %c0_i32, %arg2 : i32, i32
  }
  func.func @transform_2(%arg0: i32, %arg1: i32, %arg2: i32) -> (i32, i32, i32) {
    %c0_i32 = arith.constant 0 : i32
    return %arg0, %arg1, %arg2 : i32, i32, i32
  }
  func.func @transform_3(%arg0: i32, %arg1: i32, %arg2: i32) -> (i32, i32, i32) {
    %c0_i32 = arith.constant 0 : i32
    %c0_i32_0 = arith.constant 0 : i32
    return %arg0, %arg2, %c0_i32 : i32, i32, i32
  }
  func.func @transform_4(%arg0: i32, %arg1: i32, %arg2: i32) -> (i32, i32) {
    %c0_i32 = arith.constant 0 : i32
    %c0_i32_0 = arith.constant 0 : i32
    %c0_i32_1 = arith.constant 0 : i32
    return %c0_i32, %c0_i32_0 : i32, i32
  }
  func.func @transform_5(%arg0: i32, %arg1: i32, %arg2: i32) -> (i32, i32, i32) {
    %c0_i32 = arith.constant 0 : i32
    %c0_i32_0 = arith.constant 0 : i32
    return %arg0, %arg1, %c0_i32 : i32, i32, i32
  }
}

module attributes {stable_mosaic.version = 11 : i64} {
  func.func @kernel(%arg0: i32, %arg1: i32, %arg2: i32, %arg3: memref<1x128xf32, #tpu.memory_space<vmem>>, %arg4: memref<1x128xf32, #tpu.memory_space<vmem>>, %arg5: memref<1x128x128xbf16, #tpu.memory_space<vmem>>, %arg6: memref<1x128x8xbf16, #tpu.memory_space<vmem>>, %arg7: memref<1x8xf32, #tpu.memory_space<vmem>>, %arg8: memref<1x128x8xbf16, #tpu.memory_space<vmem>>, %arg9: memref<128x8xf32, #tpu.memory_space<vmem>>) attributes {dimension_semantics = [#tpu.dimension_semantics<parallel>, #tpu.dimension_semantics<parallel>, #tpu.dimension_semantics<arbitrary>], iteration_bounds = array<i64: 4, 1, 1>, scalar_prefetch = 0 : i64, scratch_operands = 1 : i64, tpu.core_type = #tpu.core_type<tc>, window_params = [{transform_indices = @transform_0, window_bounds = array<i64: 1, 128>}, {transform_indices = @transform_1, window_bounds = array<i64: 1, 128>}, {transform_indices = @transform_2, window_bounds = array<i64: 1, 128, 128>}, {transform_indices = @transform_3, window_bounds = array<i64: 1, 128, 8>}, {pipeline_mode = #tpu.pipeline_mode<synchronous>, transform_indices = @transform_4, window_bounds = array<i64: 1, 8>}, {transform_indices = @transform_5, window_bounds = array<i64: 1, 128, 8>}]} {
    %c0_i32 = arith.constant 0 : i32
    %0 = arith.cmpi eq, %arg2, %c0_i32 : i32
    %1 = arith.extui %0 : i1 to i32
    %c0_i32_0 = arith.constant 0 : i32
    %2 = arith.cmpi ne, %1, %c0_i32_0 : i32
    scf.if %2 {
      %cst_17 = arith.constant 0.000000e+00 : f32
      %24 = vector.broadcast %cst_17 : f32 to vector<128x8xf32>
      %c0_18 = arith.constant 0 : index
      %c0_19 = arith.constant 0 : index
      %25 = vector.load %arg9[%c0_18, %c0_19] : memref<128x8xf32, #tpu.memory_space<vmem>>, vector<128x8xf32>
      tpu.vector_store %arg9[%c0_18, %c0_19], %24 {strides = array<i32>} : memref<128x8xf32, #tpu.memory_space<vmem>>, vector<128x8xf32>,
    } else {
    }
    %c0 = arith.constant 0 : index
    %c0_1 = arith.constant 0 : index
    %c0_2 = arith.constant 0 : index
    %3 = vector.load %arg5[%c0, %c0_1, %c0_2] : memref<1x128x128xbf16, #tpu.memory_space<vmem>>, vector<1x128x128xbf16>
    %4 = vector.shape_cast %3 : vector<1x128x128xbf16> to vector<128x128xbf16>
    %5 = arith.extf %4 : vector<128x128xbf16> to vector<128x128xf32>
    %c0_3 = arith.constant 0 : index
    %c0_4 = arith.constant 0 : index
    %6 = vector.load %arg3[%c0_3, %c0_4] : memref<1x128xf32, #tpu.memory_space<vmem>>, vector<1x128xf32>
    %7 = vector.broadcast %6 : vector<1x128xf32> to vector<128x128xf32>
    %8 = arith.mulf %5, %7 : vector<128x128xf32>
    %c0_5 = arith.constant 0 : index
    %c0_6 = arith.constant 0 : index
    %9 = vector.load %arg4[%c0_5, %c0_6] : memref<1x128xf32, #tpu.memory_space<vmem>>, vector<1x128xf32>
    %10 = vector.broadcast %9 : vector<1x128xf32> to vector<128x128xf32>
    %11 = arith.addf %8, %10 : vector<128x128xf32>
    %cst = arith.constant 0.000000e+00 : f32
    %12 = vector.broadcast %cst : f32 to vector<128x128xf32>
    %13 = arith.maximumf %11, %12 : vector<128x128xf32>
    %14 = arith.truncf %13 : vector<128x128xf32> to vector<128x128xbf16>
    %c0_7 = arith.constant 0 : index
    %c0_8 = arith.constant 0 : index
    %15 = vector.load %arg9[%c0_7, %c0_8] : memref<128x8xf32, #tpu.memory_space<vmem>>, vector<128x8xf32>
    %c0_9 = arith.constant 0 : index
    %c0_10 = arith.constant 0 : index
    %c0_11 = arith.constant 0 : index
    %16 = vector.load %arg6[%c0_9, %c0_10, %c0_11] : memref<1x128x8xbf16, #tpu.memory_space<vmem>>, vector<1x128x8xbf16>
    %17 = vector.shape_cast %16 : vector<1x128x8xbf16> to vector<128x8xbf16>
    %cst_12 = arith.constant dense<0.000000e+00> : vector<128x8xf32>
    %18 = tpu.matmul %14, %17, %cst_12 {dimension_numbers = #tpu.dot_dimension_numbers<[1], [0], [0], [1], [0, 0, 1, 1], [], []>} : vector<128x128xbf16>, vector<128x8xbf16>, vector<128x8xf32> -> vector<128x8xf32>
    %19 = arith.addf %15, %18 : vector<128x8xf32>
    %c0_13 = arith.constant 0 : index
    %c0_14 = arith.constant 0 : index
    %20 = vector.load %arg9[%c0_13, %c0_14] : memref<128x8xf32, #tpu.memory_space<vmem>>, vector<128x8xf32>
    tpu.vector_store %arg9[%c0_13, %c0_14], %19 {strides = array<i32>} : memref<128x8xf32, #tpu.memory_space<vmem>>, vector<128x8xf32>,
    %c0_i32_15 = arith.constant 0 : i32
    %21 = arith.cmpi eq, %arg2, %c0_i32_15 : i32
    %22 = arith.extui %21 : i1 to i32
    %c0_i32_16 = arith.constant 0 : i32
    %23 = arith.cmpi ne, %22, %c0_i32_16 : i32
    scf.if %23 {
      %c0_17 = arith.constant 0 : index
      %c0_18 = arith.constant 0 : index
      %24 = vector.load %arg9[%c0_17, %c0_18] : memref<128x8xf32, #tpu.memory_space<vmem>>, vector<128x8xf32>
      %c0_19 = arith.constant 0 : index
      %c0_20 = arith.constant 0 : index
      %25 = vector.load %arg7[%c0_19, %c0_20] : memref<1x8xf32, #tpu.memory_space<vmem>>, vector<1x8xf32>
      %26 = vector.broadcast %25 : vector<1x8xf32> to vector<128x8xf32>
      %27 = arith.addf %24, %26 : vector<128x8xf32>
      %28 = arith.truncf %27 : vector<128x8xf32> to vector<128x8xbf16>
      %c0_21 = arith.constant 0 : index
      %c0_22 = arith.constant 0 : index
      %c0_23 = arith.constant 0 : index
      %29 = vector.load %arg8[%c0_21, %c0_22, %c0_23] : memref<1x128x8xbf16, #tpu.memory_space<vmem>>, vector<1x128x8xbf16>
      %30 = vector.shape_cast %29 : vector<1x128x8xbf16> to vector<128x8xbf16>
      %31 = vector.shape_cast %28 : vector<128x8xbf16> to vector<1x128x8xbf16>
      tpu.vector_store %arg8[%c0_21, %c0_22, %c0_23], %31 {strides = array<i32>} : memref<1x128x8xbf16, #tpu.memory_space<vmem>>, vector<1x128x8xbf16>,
    } else {
    }
    return
  }
  func.func @transform_0(%arg0: i32, %arg1: i32, %arg2: i32) -> (i32, i32) {
    %c0_i32 = arith.constant 0 : i32
    %c0_i32_0 = arith.constant 0 : i32
    return %c0_i32, %arg2 : i32, i32
  }
  func.func @transform_1(%arg0: i32, %arg1: i32, %arg2: i32) -> (i32, i32) {
    %c0_i32 = arith.constant 0 : i32
    %c0_i32_0 = arith.constant 0 : i32
    return %c0_i32, %arg2 : i32, i32
  }
  func.func @transform_2(%arg0: i32, %arg1: i32, %arg2: i32) -> (i32, i32, i32) {
    %c0_i32 = arith.constant 0 : i32
    return %arg0, %arg1, %arg2 : i32, i32, i32
  }
  func.func @transform_3(%arg0: i32, %arg1: i32, %arg2: i32) -> (i32, i32, i32) {
    %c0_i32 = arith.constant 0 : i32
    %c0_i32_0 = arith.constant 0 : i32
    return %arg0, %arg2, %c0_i32 : i32, i32, i32
  }
  func.func @transform_4(%arg0: i32, %arg1: i32, %arg2: i32) -> (i32, i32) {
    %c0_i32 = arith.constant 0 : i32
    %c0_i32_0 = arith.constant 0 : i32
    %c0_i32_1 = arith.constant 0 : i32
    return %c0_i32, %c0_i32_0 : i32, i32
  }
  func.func @transform_5(%arg0: i32, %arg1: i32, %arg2: i32) -> (i32, i32, i32) {
    %c0_i32 = arith.constant 0 : i32
    %c0_i32_0 = arith.constant 0 : i32
    return %arg0, %arg1, %c0_i32 : i32, i32, i32
  }
}

module attributes {stable_mosaic.version = 11 : i64} {
  func.func @kernel(%arg0: i32, %arg1: memref<512x8xbf16, #tpu.memory_space<vmem>>, %arg2: memref<1x8xf32, #tpu.memory_space<vmem>>, %arg3: memref<1x8xf32, #tpu.memory_space<vmem>>) attributes {dimension_semantics = [#tpu.dimension_semantics<arbitrary>], iteration_bounds = array<i64: 1>, scalar_prefetch = 0 : i64, scratch_operands = 0 : i64, tpu.core_type = #tpu.core_type<tc>, window_params = [{transform_indices = @transform_0, window_bounds = array<i64: 512, 8>}, {pipeline_mode = #tpu.pipeline_mode<synchronous>, transform_indices = @transform_1, window_bounds = array<i64: 1, 8>}, {pipeline_mode = #tpu.pipeline_mode<synchronous>, transform_indices = @transform_2, window_bounds = array<i64: 1, 8>}]} {
    %c0_i32 = arith.constant 0 : i32
    %0 = arith.cmpi eq, %arg0, %c0_i32 : i32
    %1 = arith.extui %0 : i1 to i32
    %c0_i32_0 = arith.constant 0 : i32
    %2 = arith.cmpi ne, %1, %c0_i32_0 : i32
    scf.if %2 {
      %cst_11 = arith.constant 0.000000e+00 : f32
      %16 = vector.broadcast %cst_11 : f32 to vector<1x8xf32>
      %c0_12 = arith.constant 0 : index
      %c0_13 = arith.constant 0 : index
      %17 = vector.load %arg2[%c0_12, %c0_13] : memref<1x8xf32, #tpu.memory_space<vmem>>, vector<1x8xf32>
      tpu.vector_store %arg2[%c0_12, %c0_13], %16 {strides = array<i32>} : memref<1x8xf32, #tpu.memory_space<vmem>>, vector<1x8xf32>,
      %cst_14 = arith.constant 0.000000e+00 : f32
      %18 = vector.broadcast %cst_14 : f32 to vector<1x8xf32>
      %c0_15 = arith.constant 0 : index
      %c0_16 = arith.constant 0 : index
      %19 = vector.load %arg3[%c0_15, %c0_16] : memref<1x8xf32, #tpu.memory_space<vmem>>, vector<1x8xf32>
      tpu.vector_store %arg3[%c0_15, %c0_16], %18 {strides = array<i32>} : memref<1x8xf32, #tpu.memory_space<vmem>>, vector<1x8xf32>,
    } else {
    }
    %c0 = arith.constant 0 : index
    %c0_1 = arith.constant 0 : index
    %3 = vector.load %arg1[%c0, %c0_1] : memref<512x8xbf16, #tpu.memory_space<vmem>>, vector<512x8xbf16>
    %4 = arith.extf %3 : vector<512x8xbf16> to vector<512x8xf32>
    %c0_2 = arith.constant 0 : index
    %c0_3 = arith.constant 0 : index
    %5 = vector.load %arg2[%c0_2, %c0_3] : memref<1x8xf32, #tpu.memory_space<vmem>>, vector<1x8xf32>
    %cst = arith.constant dense<0.000000e+00> : vector<8xf32>
    %6 = vector.multi_reduction <add>, %4, %cst [0] : vector<512x8xf32> to vector<8xf32>
    %7 = vector.shape_cast %6 : vector<8xf32> to vector<1x8xf32>
    %8 = arith.addf %5, %7 : vector<1x8xf32>
    %c0_4 = arith.constant 0 : index
    %c0_5 = arith.constant 0 : index
    %9 = vector.load %arg2[%c0_4, %c0_5] : memref<1x8xf32, #tpu.memory_space<vmem>>, vector<1x8xf32>
    tpu.vector_store %arg2[%c0_4, %c0_5], %8 {strides = array<i32>} : memref<1x8xf32, #tpu.memory_space<vmem>>, vector<1x8xf32>,
    %c0_6 = arith.constant 0 : index
    %c0_7 = arith.constant 0 : index
    %10 = vector.load %arg3[%c0_6, %c0_7] : memref<1x8xf32, #tpu.memory_space<vmem>>, vector<1x8xf32>
    %11 = arith.mulf %4, %4 : vector<512x8xf32>
    %cst_8 = arith.constant dense<0.000000e+00> : vector<8xf32>
    %12 = vector.multi_reduction <add>, %11, %cst_8 [0] : vector<512x8xf32> to vector<8xf32>
    %13 = vector.shape_cast %12 : vector<8xf32> to vector<1x8xf32>
    %14 = arith.addf %10, %13 : vector<1x8xf32>
    %c0_9 = arith.constant 0 : index
    %c0_10 = arith.constant 0 : index
    %15 = vector.load %arg3[%c0_9, %c0_10] : memref<1x8xf32, #tpu.memory_space<vmem>>, vector<1x8xf32>
    tpu.vector_store %arg3[%c0_9, %c0_10], %14 {strides = array<i32>} : memref<1x8xf32, #tpu.memory_space<vmem>>, vector<1x8xf32>,
    return
  }
  func.func @transform_0(%arg0: i32) -> (i32, i32) {
    %c0_i32 = arith.constant 0 : i32
    %c0_i32_0 = arith.constant 0 : i32
    return %arg0, %c0_i32 : i32, i32
  }
  func.func @transform_1(%arg0: i32) -> (i32, i32) {
    %c0_i32 = arith.constant 0 : i32
    %c0_i32_0 = arith.constant 0 : i32
    %c0_i32_1 = arith.constant 0 : i32
    return %c0_i32, %c0_i32_0 : i32, i32
  }
  func.func @transform_2(%arg0: i32) -> (i32, i32) {
    %c0_i32 = arith.constant 0 : i32
    %c0_i32_0 = arith.constant 0 : i32
    %c0_i32_1 = arith.constant 0 : i32
    return %c0_i32, %c0_i32_0 : i32, i32
  }
}

module attributes {stable_mosaic.version = 11 : i64} {
  func.func @kernel(%arg0: i32, %arg1: i32, %arg2: i32, %arg3: memref<1x64xf32, #tpu.memory_space<vmem>>, %arg4: memref<1x64xf32, #tpu.memory_space<vmem>>, %arg5: memref<1x256x64xbf16, #tpu.memory_space<vmem>>, %arg6: memref<1x64x4xbf16, #tpu.memory_space<vmem>>, %arg7: memref<1x4xf32, #tpu.memory_space<vmem>>, %arg8: memref<1x256x4xf32, #tpu.memory_space<vmem>>, %arg9: memref<256x4xf32, #tpu.memory_space<vmem>>) attributes {dimension_semantics = [#tpu.dimension_semantics<parallel>, #tpu.dimension_semantics<parallel>, #tpu.dimension_semantics<arbitrary>], iteration_bounds = array<i64: 4, 2, 1>, scalar_prefetch = 0 : i64, scratch_operands = 1 : i64, tpu.core_type = #tpu.core_type<tc>, window_params = [{transform_indices = @transform_0, window_bounds = array<i64: 1, 64>}, {transform_indices = @transform_1, window_bounds = array<i64: 1, 64>}, {transform_indices = @transform_2, window_bounds = array<i64: 1, 256, 64>}, {transform_indices = @transform_3, window_bounds = array<i64: 1, 64, 4>}, {pipeline_mode = #tpu.pipeline_mode<synchronous>, transform_indices = @transform_4, window_bounds = array<i64: 1, 4>}, {transform_indices = @transform_5, window_bounds = array<i64: 1, 256, 4>}]} {
    %c0_i32 = arith.constant 0 : i32
    %0 = arith.cmpi eq, %arg2, %c0_i32 : i32
    %1 = arith.extui %0 : i1 to i32
    %c0_i32_0 = arith.constant 0 : i32
    %2 = arith.cmpi ne, %1, %c0_i32_0 : i32
    scf.if %2 {
      %cst_17 = arith.constant 0.000000e+00 : f32
      %24 = vector.broadcast %cst_17 : f32 to vector<256x4xf32>
      %c0_18 = arith.constant 0 : index
      %c0_19 = arith.constant 0 : index
      %25 = vector.load %arg9[%c0_18, %c0_19] : memref<256x4xf32, #tpu.memory_space<vmem>>, vector<256x4xf32>
      tpu.vector_store %arg9[%c0_18, %c0_19], %24 {strides = array<i32>} : memref<256x4xf32, #tpu.memory_space<vmem>>, vector<256x4xf32>,
    } else {
    }
    %c0 = arith.constant 0 : index
    %c0_1 = arith.constant 0 : index
    %c0_2 = arith.constant 0 : index
    %3 = vector.load %arg5[%c0, %c0_1, %c0_2] : memref<1x256x64xbf16, #tpu.memory_space<vmem>>, vector<1x256x64xbf16>
    %4 = vector.shape_cast %3 : vector<1x256x64xbf16> to vector<256x64xbf16>
    %5 = arith.extf %4 : vector<256x64xbf16> to vector<256x64xf32>
    %c0_3 = arith.constant 0 : index
    %c0_4 = arith.constant 0 : index
    %6 = vector.load %arg3[%c0_3, %c0_4] : memref<1x64xf32, #tpu.memory_space<vmem>>, vector<1x64xf32>
    %7 = vector.broadcast %6 : vector<1x64xf32> to vector<256x64xf32>
    %8 = arith.mulf %5, %7 : vector<256x64xf32>
    %c0_5 = arith.constant 0 : index
    %c0_6 = arith.constant 0 : index
    %9 = vector.load %arg4[%c0_5, %c0_6] : memref<1x64xf32, #tpu.memory_space<vmem>>, vector<1x64xf32>
    %10 = vector.broadcast %9 : vector<1x64xf32> to vector<256x64xf32>
    %11 = arith.addf %8, %10 : vector<256x64xf32>
    %cst = arith.constant 0.000000e+00 : f32
    %12 = vector.broadcast %cst : f32 to vector<256x64xf32>
    %13 = arith.maximumf %11, %12 : vector<256x64xf32>
    %14 = arith.truncf %13 : vector<256x64xf32> to vector<256x64xbf16>
    %c0_7 = arith.constant 0 : index
    %c0_8 = arith.constant 0 : index
    %15 = vector.load %arg9[%c0_7, %c0_8] : memref<256x4xf32, #tpu.memory_space<vmem>>, vector<256x4xf32>
    %c0_9 = arith.constant 0 : index
    %c0_10 = arith.constant 0 : index
    %c0_11 = arith.constant 0 : index
    %16 = vector.load %arg6[%c0_9, %c0_10, %c0_11] : memref<1x64x4xbf16, #tpu.memory_space<vmem>>, vector<1x64x4xbf16>
    %17 = vector.shape_cast %16 : vector<1x64x4xbf16> to vector<64x4xbf16>
    %cst_12 = arith.constant dense<0.000000e+00> : vector<256x4xf32>
    %18 = tpu.matmul %14, %17, %cst_12 {dimension_numbers = #tpu.dot_dimension_numbers<[1], [0], [0], [1], [0, 0, 1, 1], [], []>} : vector<256x64xbf16>, vector<64x4xbf16>, vector<256x4xf32> -> vector<256x4xf32>
    %19 = arith.addf %15, %18 : vector<256x4xf32>
    %c0_13 = arith.constant 0 : index
    %c0_14 = arith.constant 0 : index
    %20 = vector.load %arg9[%c0_13, %c0_14] : memref<256x4xf32, #tpu.memory_space<vmem>>, vector<256x4xf32>
    tpu.vector_store %arg9[%c0_13, %c0_14], %19 {strides = array<i32>} : memref<256x4xf32, #tpu.memory_space<vmem>>, vector<256x4xf32>,
    %c0_i32_15 = arith.constant 0 : i32
    %21 = arith.cmpi eq, %arg2, %c0_i32_15 : i32
    %22 = arith.extui %21 : i1 to i32
    %c0_i32_16 = arith.constant 0 : i32
    %23 = arith.cmpi ne, %22, %c0_i32_16 : i32
    scf.if %23 {
      %c0_17 = arith.constant 0 : index
      %c0_18 = arith.constant 0 : index
      %24 = vector.load %arg9[%c0_17, %c0_18] : memref<256x4xf32, #tpu.memory_space<vmem>>, vector<256x4xf32>
      %c0_19 = arith.constant 0 : index
      %c0_20 = arith.constant 0 : index
      %25 = vector.load %arg7[%c0_19, %c0_20] : memref<1x4xf32, #tpu.memory_space<vmem>>, vector<1x4xf32>
      %26 = vector.broadcast %25 : vector<1x4xf32> to vector<256x4xf32>
      %27 = arith.addf %24, %26 : vector<256x4xf32>
      %28 = arith.negf %27 : vector<256x4xf32>
      %29 = math.exp %28 : vector<256x4xf32>
      %cst_21 = arith.constant 1.000000e+00 : f32
      %30 = vector.broadcast %cst_21 : f32 to vector<256x4xf32>
      %31 = arith.addf %30, %29 : vector<256x4xf32>
      %32 = arith.divf %30, %31 : vector<256x4xf32>
      %c0_22 = arith.constant 0 : index
      %c0_23 = arith.constant 0 : index
      %c0_24 = arith.constant 0 : index
      %33 = vector.load %arg8[%c0_22, %c0_23, %c0_24] : memref<1x256x4xf32, #tpu.memory_space<vmem>>, vector<1x256x4xf32>
      %34 = vector.shape_cast %33 : vector<1x256x4xf32> to vector<256x4xf32>
      %35 = vector.shape_cast %32 : vector<256x4xf32> to vector<1x256x4xf32>
      tpu.vector_store %arg8[%c0_22, %c0_23, %c0_24], %35 {strides = array<i32>} : memref<1x256x4xf32, #tpu.memory_space<vmem>>, vector<1x256x4xf32>,
    } else {
    }
    return
  }
  func.func @transform_0(%arg0: i32, %arg1: i32, %arg2: i32) -> (i32, i32) {
    %c0_i32 = arith.constant 0 : i32
    %c0_i32_0 = arith.constant 0 : i32
    return %c0_i32, %arg2 : i32, i32
  }
  func.func @transform_1(%arg0: i32, %arg1: i32, %arg2: i32) -> (i32, i32) {
    %c0_i32 = arith.constant 0 : i32
    %c0_i32_0 = arith.constant 0 : i32
    return %c0_i32, %arg2 : i32, i32
  }
  func.func @transform_2(%arg0: i32, %arg1: i32, %arg2: i32) -> (i32, i32, i32) {
    %c0_i32 = arith.constant 0 : i32
    return %arg0, %arg1, %arg2 : i32, i32, i32
  }
  func.func @transform_3(%arg0: i32, %arg1: i32, %arg2: i32) -> (i32, i32, i32) {
    %c0_i32 = arith.constant 0 : i32
    %c0_i32_0 = arith.constant 0 : i32
    return %arg0, %arg2, %c0_i32 : i32, i32, i32
  }
  func.func @transform_4(%arg0: i32, %arg1: i32, %arg2: i32) -> (i32, i32) {
    %c0_i32 = arith.constant 0 : i32
    %c0_i32_0 = arith.constant 0 : i32
    %c0_i32_1 = arith.constant 0 : i32
    return %c0_i32, %c0_i32_0 : i32, i32
  }
  func.func @transform_5(%arg0: i32, %arg1: i32, %arg2: i32) -> (i32, i32, i32) {
    %c0_i32 = arith.constant 0 : i32
    %c0_i32_0 = arith.constant 0 : i32
    return %arg0, %arg1, %c0_i32 : i32, i32, i32
  }
}

</mosaic_0001>

<bundles_post_ra>
// kernel: unet_generator.17
= control target key start
LH: loop header
LB: loop body
LE: loop exit
PB: predicated region body
PF: predicated region fallthrough
CT: control target
= control target key end

     0   :  { %s1491_s18 = smov 0   ;;  %s1493_s19 = smov 0   ;;  %s1744_s0 = inlined_call_operand.vmem [shape: f32[1,64], index: 0, kind: input, shape index: {}]   ;;  %s1745_s1 = inlined_call_operand.vmem [shape: f32[1,64], index: 1, kind: input, shape index: {}]   ;;  %s1746_s2 = inlined_call_operand.vmem [shape: bf16[1,512,64], index: 2, kind: input, shape index: {}]   ;;  %s1747_s3 = inlined_call_operand.vmem [shape: bf16[1,64,8], index: 3, kind: input, shape index: {}]   ;;  %s1748_s4 = inlined_call_operand.vmem [shape: f32[1,8], index: 4, kind: input, shape index: {}]   ;;  %s1749_s5 = inlined_call_operand.vmem [shape: bf16[1,512,8], index: 5, kind: output, shape index: {}]  }
   0x1   :  { %s1495_s0 = smov 0  }
   0x2 LB: > { %s30_s1 = sadd.s32 1, %s1454_s19  ;;  %p1215_p0 = scmp.ge.s32.totalorder %s1458_s0, 1  ;;  %s1458_s0 = sphi %s1495_s0, %s15_s0   ;;  %s1454_s19 = sphi %s1493_s19, %s1751_s19   ;;  %s1450_s18 = sphi %s1491_s18, %s1750_s18  }
   0x3   : > { %p32_p1 = scmp.ge.s32.totalorder %s30_s1, 2  ;;  %p253_p2 = scmp.lt.s32.totalorder %s1458_s0, 3 }
   0x5   : > { %s1753_s1 = smov (%p32_p1, %s30_s1), 0  ;;  %p254_p3 = pnand %p1215_p0, %p253_p2 }
   0x6   : > { %v1416_v0 = vld [vmem:[%s1747_s3] sm:$0xff] (!%p254_p3)   ;;  %s1216_s22 = sshll.u32 (!%p254_p3), %s1450_s18, 5  ;;  %v1417_v1 = vld [vmem:[%s1747_s3 + $0x8] sm:$0xff] (!%p254_p3)   ;;  %v1418_v2 = vld [vmem:[%s1747_s3 + $0x10] sm:$0xff] (!%p254_p3)   ;;  %vm351_vm0 = vcmask (!%p254_p3), 64512   ;;  %v1460_v3 = vmov (!%p254_p3), 0.0  }
   0x7   : > { %257 = sbr.rel (%p254_p3) target bundleno = 281 (0x119), region = 40  ;;  %p316_p4 = scmp.lt.s32.totalorder (!%p254_p3), %s1216_s22, 63  ;;  %1343 = vmatprep.subr.bf16.mxu0 (!%p254_p3), %v1416_v0  ;;  %1383 = vmatprep.subr.bf16.mxu1 (!%p254_p3), %v1416_v0  ;;  %354 = vst.msk [vmem:[#allocation2 + $0x10] sm:$0xff] (!%p254_p3), %vm351_vm0, %v1460_v3  ;;  %352 = vst.msk [vmem:[#allocation2] sm:$0xff] (!%p254_p3), %vm351_vm0, %v1460_v3  ;;  %v1419_v4 = vld [vmem:[%s1747_s3 + $0x18] sm:$0xff] (!%p254_p3)   ;;  %vm560_vm1 = vcmask (!%p254_p3), 523264  }
   0x8   : > { %1344 = vmatpush3.bf16.msra.mxu0 (!%p254_p3), %v1416_v0  ;;  %1387 = vmatpush3.bf16.msra.mxu1 (!%p254_p3), %v1416_v0  ;;  %353 = vst.msk [vmem:[#allocation2 + $0x8] sm:$0xff] (!%p254_p3), %vm351_vm0, %v1460_v3  ;;  %355 = vst.msk [vmem:[#allocation2 + $0x18] sm:$0xff] (!%p254_p3), %vm351_vm0, %v1460_v3  ;;  %v1606_v49 = vld [vmem:[%s1748_s4] ss:$0 sm:$0xff] (!%p254_p3)  ;;  %vm1037_vm2 = vcmask (!%p254_p3), 60416  }
   0x9   : > { %1345 = vmatprep.subr.bf16.mxu0 (!%p254_p3), %v1417_v1  ;;  %1384 = vmatprep.subr.bf16.mxu1 (!%p254_p3), %v1417_v1  ;;  %356 = vst.msk [vmem:[#allocation2 + $0x20] sm:$0xff] (!%p254_p3), %vm351_vm0, %v1460_v3  ;;  %357 = vst.msk [vmem:[#allocation2 + $0x28] sm:$0xff] (!%p254_p3), %vm351_vm0, %v1460_v3 }
   0xa   : > { %358 = vst.msk [vmem:[#allocation2 + $0x30] sm:$0xff] (!%p254_p3), %vm351_vm0, %v1460_v3  ;;  %359 = vst.msk [vmem:[#allocation2 + $0x38] sm:$0xff] (!%p254_p3), %vm351_vm0, %v1460_v3 }
   0xb   : > { %360 = vst.msk [vmem:[#allocation2 + $0x40] sm:$0xff] (!%p254_p3), %vm351_vm0, %v1460_v3  ;;  %361 = vst.msk [vmem:[#allocation2 + $0x48] sm:$0xff] (!%p254_p3), %vm351_vm0, %v1460_v3 }
   0xc   : > { %362 = vst.msk [vmem:[#allocation2 + $0x50] sm:$0xff] (!%p254_p3), %vm351_vm0, %v1460_v3  ;;  %363 = vst.msk [vmem:[#allocation2 + $0x58] sm:$0xff] (!%p254_p3), %vm351_vm0, %v1460_v3  ;;  %1346 = vmatpush3.bf16.msra.mxu0 (!%p254_p3), %v1417_v1  ;;  %1388 = vmatpush3.bf16.msra.mxu1 (!%p254_p3), %v1417_v1 }
   0xd   : > { %364 = vst.msk [vmem:[#allocation2 + $0x60] sm:$0xff] (!%p254_p3), %vm351_vm0, %v1460_v3  ;;  %365 = vst.msk [vmem:[#allocation2 + $0x68] sm:$0xff] (!%p254_p3), %vm351_vm0, %v1460_v3  ;;  %1347 = vmatprep.subr.bf16.mxu0 (!%p254_p3), %v1418_v2  ;;  %1385 = vmatprep.subr.bf16.mxu1 (!%p254_p3), %v1418_v2 }
   0xe   : > { %s1755_s22 = smov (!%p316_p4, %s1216_s22), 63  ;;  %366 = vst.msk [vmem:[#allocation2 + $0x70] sm:$0xff] %vm351_vm0, %v1460_v3  ;;  %367 = vst.msk [vmem:[#allocation2 + $0x78] sm:$0xff] %vm351_vm0, %v1460_v3  ;;  %v418_v21 = vld [vmem:[#allocation2 + $0x10] sm:$0xff]  ;;  %v416_v23 = vld [vmem:[#allocation2] sm:$0xff] }
   0xf   : > { %s1217_s27 = sshll.u32 %s1755_s22, 2  ;;  %368 = vst.msk [vmem:[#allocation2 + $0x80] sm:$0xff] %vm351_vm0, %v1460_v3  ;;  %369 = vst.msk [vmem:[#allocation2 + $0x88] sm:$0xff] %vm351_vm0, %v1460_v3  ;;  %v419_v27 = vld [vmem:[#allocation2 + $0x18] sm:$0xff]  ;;  %v417_v33 = vld [vmem:[#allocation2 + $0x8] sm:$0xff] }
  0x10   : > { %370 = vst.msk [vmem:[#allocation2 + $0x90] sm:$0xff] %vm351_vm0, %v1460_v3  ;;  %371 = vst.msk [vmem:[#allocation2 + $0x98] sm:$0xff] %vm351_vm0, %v1460_v3  ;;  %s1561_s7 = scalar_lea.vmem %s1746_s2, %s1217_s27  ;;  %1348 = vmatpush3.bf16.msra.mxu0 %v1418_v2  ;;  %1389 = vmatpush3.bf16.msra.mxu1 %v1418_v2  ;;  %v420_v47 = vld [vmem:[#allocation2 + $0x20] sm:$0xff]  ;;  %v421_v58 = vld [vmem:[#allocation2 + $0x28] sm:$0xff]  ;;  %s1617_s12 = scalar_lea.vmem %s1749_s5, %s1217_s27 }
  0x11   : > { %372 = vst.msk [vmem:[#allocation2 + $0xa0] sm:$0xff] %vm351_vm0, %v1460_v3  ;;  %373 = vst.msk [vmem:[#allocation2 + $0xa8] sm:$0xff] %vm351_vm0, %v1460_v3  ;;  %v1420_v5 = vld [vmem:[%s1561_s7] sm:$0xff]   ;;  %1349 = vmatprep.subr.bf16.mxu0 %v1419_v4  ;;  %1386 = vmatprep.subr.bf16.mxu1 %v1419_v4  ;;  %v1422_v7 = vld [vmem:[%s1561_s7 + $0x8] sm:$0xff]  }
  0x12   : > { %374 = vst.msk [vmem:[#allocation2 + $0xb0] sm:$0xff] %vm351_vm0, %v1460_v3  ;;  %375 = vst.msk [vmem:[#allocation2 + $0xb8] sm:$0xff] %vm351_vm0, %v1460_v3  ;;  %v1421_v6 = vld [vmem:[%s1561_s7 + $0x40] sm:$0xff]   ;;  %1351 = vmatprep.mubr.msk.bf16.mxu0 %vm560_vm1, %v1420_v5  ;;  %v1423_v8 = vld [vmem:[%s1561_s7 + $0x48] sm:$0xff]  }
  0x13   : > { %376 = vst.msk [vmem:[#allocation2 + $0xc0] sm:$0xff] %vm351_vm0, %v1460_v3  ;;  %377 = vst.msk [vmem:[#allocation2 + $0xc8] sm:$0xff] %vm351_vm0, %v1460_v3  ;;  %1367 = vmatprep.mubr.msk.bf16.mxu1 %vm560_vm1, %v1421_v6  ;;  %v1424_v9 = vld [vmem:[%s1561_s7 + $0x10] sm:$0xff]   ;;  %v1426_v11 = vld [vmem:[%s1561_s7 + $0x18] sm:$0xff]  }
  0x14   : > { %378 = vst.msk [vmem:[#allocation2 + $0xd0] sm:$0xff] %vm351_vm0, %v1460_v3  ;;  %379 = vst.msk [vmem:[#allocation2 + $0xd8] sm:$0xff] %vm351_vm0, %v1460_v3  ;;  %1350 = vmatpush3.bf16.msra.mxu0 %v1419_v4  ;;  %1390 = vmatpush3.bf16.msra.mxu1 %v1419_v4  ;;  %v1425_v10 = vld [vmem:[%s1561_s7 + $0x50] sm:$0xff]   ;;  %v1427_v12 = vld [vmem:[%s1561_s7 + $0x58] sm:$0xff]  }
  0x15   : > { %380 = vst.msk [vmem:[#allocation2 + $0xe0] sm:$0xff] %vm351_vm0, %v1460_v3  ;;  %381 = vst.msk [vmem:[#allocation2 + $0xe8] sm:$0xff] %vm351_vm0, %v1460_v3  ;;  %v1428_v13 = vld [vmem:[%s1561_s7 + $0x20] sm:$0xff]   ;;  %v1430_v15 = vld [vmem:[%s1561_s7 + $0x28] sm:$0xff]  }
  0x16   : > { %382 = vst.msk [vmem:[#allocation2 + $0xf0] sm:$0xff] %vm351_vm0, %v1460_v3  ;;  %383 = vst.msk [vmem:[#allocation2 + $0xf8] sm:$0xff] %vm351_vm0, %v1460_v3  ;;  %v1429_v14 = vld [vmem:[%s1561_s7 + $0x60] sm:$0xff]   ;;  %v1431_v16 = vld [vmem:[%s1561_s7 + $0x68] sm:$0xff]  }
  0x17   : > { %1352 = vmatmul.mubr.msk.bf16.vlgmr.msra.gmra.mrb[0].mxu0 %vm560_vm1, %v1422_v7  ;;  %1368 = vmatmul.mubr.msk.bf16.vlgmr.msra.gmra.mrb[0].mxu1 %vm560_vm1, %v1423_v8  ;;  %v1432_v17 = vld [vmem:[%s1561_s7 + $0x30] sm:$0xff]   ;;  %v1434_v19 = vld [vmem:[%s1561_s7 + $0x38] sm:$0xff]   ;;  %v432_v24 = vld [vmem:[#allocation2 + $0x80] sm:$0xff] }
  0x18   : > { %1355 = vmatprep.mubr.msk.bf16.mxu0 %vm560_vm1, %v1424_v9  ;;  %1371 = vmatprep.mubr.msk.bf16.mxu1 %vm560_vm1, %v1425_v10  ;;  %v1433_v18 = vld [vmem:[%s1561_s7 + $0x70] sm:$0xff]   ;;  %v1435_v20 = vld [vmem:[%s1561_s7 + $0x78] sm:$0xff]   ;;  %v433_v34 = vld [vmem:[#allocation2 + $0x88] sm:$0xff] }
  0x19   : > { %v434_v22 = vld [vmem:[#allocation2 + $0x90] sm:$0xff]  ;;  %v435_v28 = vld [vmem:[#allocation2 + $0x98] sm:$0xff]  ;;  %v436_v48 = vld [vmem:[#allocation2 + $0xa0] sm:$0xff] }
  0x1a   : > { %v422_v45 = vld [vmem:[#allocation2 + $0x30] sm:$0xff]  ;;  %v423_v52 = vld [vmem:[#allocation2 + $0x38] sm:$0xff]  ;;  %v437_v59 = vld [vmem:[#allocation2 + $0xa8] sm:$0xff] }
  0x1b   : > { %v438_v46 = vld [vmem:[#allocation2 + $0xb0] sm:$0xff]  ;;  %v439_v53 = vld [vmem:[#allocation2 + $0xb8] sm:$0xff] }
  0x1f   : > { %1356 = vmatmul.mubr.msk.bf16.gmra.mrb[4].mxu0 %vm560_vm1, %v1426_v11  ;;  %1372 = vmatmul.mubr.msk.bf16.gmra.mrb[4].mxu1 %vm560_vm1, %v1427_v12 }
  0x20   : > { %1359 = vmatprep.mubr.msk.bf16.mxu0 %vm560_vm1, %v1428_v13  ;;  %1375 = vmatprep.mubr.msk.bf16.mxu1 %vm560_vm1, %v1429_v14 }
  0x27   : > { %1360 = vmatmul.mubr.msk.bf16.gmra.mrb[8].mxu0 %vm560_vm1, %v1430_v15  ;;  %1376 = vmatmul.mubr.msk.bf16.gmra.mrb[8].mxu1 %vm560_vm1, %v1431_v16 }
  0x28   : > { %1363 = vmatprep.mubr.msk.bf16.mxu0 %vm560_vm1, %v1432_v17  ;;  %1379 = vmatprep.mubr.msk.bf16.mxu1 %vm560_vm1, %v1433_v18 }
  0x2f   : > { %1364 = vmatmul.mubr.msk.bf16.gmra.mrb[12].mxu0 %vm560_vm1, %v1434_v19  ;;  %1380 = vmatmul.mubr.msk.bf16.gmra.mrb[12].mxu1 %vm560_vm1, %v1435_v20 }
  0xea   : > { %v1353_v25 = vpop.f32.mrb[0].mxu0  ;;  %v1369_v26 = vpop.f32.mrb[0].mxu1 }
  0xeb   : > { %v772_v29 = vadd.f32 %v1353_v25, %v418_v21  ;;  %v788_v30 = vadd.f32 %v1369_v26, %v434_v22  ;;  %v643_v31 = vpop.f32.mrb[1].mxu0  ;;  %v707_v32 = vpop.f32.mrb[1].mxu1  ;;  %v426_v26 = vld [vmem:[#allocation2 + $0x50] sm:$0xff] }
  0xec   : > { %v770_v35 = vadd.f32 %v643_v31, %v416_v23  ;;  %v786_v36 = vadd.f32 %v707_v32, %v432_v24  ;;  %v1354_v37 = vpop.f32.mrb[2].mxu0  ;;  %v1370_v38 = vpop.f32.mrb[2].mxu1  ;;  %v440_v31 = vld [vmem:[#allocation2 + $0xc0] sm:$0xff] }
  0xed   : > { %805 = vst.msk [vmem:[#allocation2 + $0x10] sm:$0xff] %vm351_vm0, %v772_v29  ;;  %821 = vst.msk [vmem:[#allocation2 + $0x90] sm:$0xff] %vm351_vm0, %v788_v30  ;;  %v773_v39 = vadd.f32 %v1354_v37, %v419_v27  ;;  %v789_v40 = vadd.f32 %v1370_v38, %v435_v28  ;;  %v646_v41 = vpop.f32.mrb[3].mxu0  ;;  %v710_v42 = vpop.f32.mrb[3].mxu1  ;;  %v442_v27 = vld [vmem:[#allocation2 + $0xd0] sm:$0xff]  ;;  %v424_v30 = vld [vmem:[#allocation2 + $0x40] sm:$0xff] }
  0xee   : > { %803 = vst.msk [vmem:[#allocation2] sm:$0xff] %vm351_vm0, %v770_v35  ;;  %819 = vst.msk [vmem:[#allocation2 + $0x80] sm:$0xff] %vm351_vm0, %v786_v36  ;;  %v771_v43 = vadd.f32 %v646_v41, %v417_v33  ;;  %v787_v44 = vadd.f32 %v710_v42, %v433_v34  ;;  %v427_v36 = vld [vmem:[#allocation2 + $0x58] sm:$0xff]  ;;  %v425_v42 = vld [vmem:[#allocation2 + $0x48] sm:$0xff] }
  0xef   : > { %806 = vst.msk [vmem:[#allocation2 + $0x18] sm:$0xff] %vm351_vm0, %v773_v39  ;;  %822 = vst.msk [vmem:[#allocation2 + $0x98] sm:$0xff] %vm351_vm0, %v789_v40  ;;  %v443_v37 = vld [vmem:[#allocation2 + $0xd8] sm:$0xff] }
  0xf0   : > { %804 = vst.msk [vmem:[#allocation2 + $0x8] sm:$0xff] %vm351_vm0, %v771_v43  ;;  %820 = vst.msk [vmem:[#allocation2 + $0x88] sm:$0xff] %vm351_vm0, %v787_v44  ;;  %v441_v43 = vld [vmem:[#allocation2 + $0xc8] sm:$0xff] }
  0xf2   : > { %v1357_v50 = vpop.f32.mrb[4].mxu0  ;;  %v1373_v51 = vpop.f32.mrb[4].mxu1 }
  0xf3   : > { %v776_v54 = vadd.f32 %v1357_v50, %v422_v45  ;;  %v792_v55 = vadd.f32 %v1373_v51, %v438_v46  ;;  %v659_v56 = vpop.f32.mrb[5].mxu0  ;;  %v723_v57 = vpop.f32.mrb[5].mxu1 }
  0xf4   : > { %v840_v60 = vld [vmem:[#allocation2 + $0x10] sm:$0xff]  ;;  %v774_v62 = vadd.f32 %v659_v56, %v420_v47  ;;  %v790_v63 = vadd.f32 %v723_v57, %v436_v48  ;;  %v1358_v0 = vpop.f32.mrb[6].mxu0  ;;  %v1374_v1 = vpop.f32.mrb[6].mxu1 }
  0xf5   : > { %v856_v61 = vld [vmem:[#allocation2 + $0x90] sm:$0xff]  ;;  %v879_v2 = vadd.f32 %v1606_v49, %v840_v60  ;;  %v838_v4 = vld [vmem:[#allocation2] sm:$0xff]  ;;  %809 = vst.msk [vmem:[#allocation2 + $0x30] sm:$0xff] %vm351_vm0, %v776_v54  ;;  %825 = vst.msk [vmem:[#allocation2 + $0xb0] sm:$0xff] %vm351_vm0, %v792_v55  ;;  %v777_v6 = vadd.f32 %v1358_v0, %v423_v52  ;;  %v793_v7 = vadd.f32 %v1374_v1, %v439_v53  ;;  %v662_v8 = vpop.f32.mrb[7].mxu0  ;;  %v726_v9 = vpop.f32.mrb[7].mxu1 }
  0xf6   : > { %v895_v3 = vadd.f32 %v1606_v49, %v856_v61  ;;  %v854_v5 = vld [vmem:[#allocation2 + $0x80] sm:$0xff]  ;;  %v877_v10 = vadd.f32 %v1606_v49, %v838_v4  ;;  %v841_v12 = vld [vmem:[#allocation2 + $0x18] sm:$0xff]  ;;  %807 = vst.msk [vmem:[#allocation2 + $0x20] sm:$0xff] %vm351_vm0, %v774_v62  ;;  %823 = vst.msk [vmem:[#allocation2 + $0xa0] sm:$0xff] %vm351_vm0, %v790_v63  ;;  %v775_v14 = vadd.f32 %v662_v8, %v421_v58 }
  0xf7   : > { %v893_v11 = vadd.f32 %v1606_v49, %v854_v5  ;;  %v857_v13 = vld [vmem:[#allocation2 + $0x98] sm:$0xff]  ;;  %v791_v15 = vadd.f32 %v726_v9, %v437_v59  ;;  %v1293_v16 = vpack.c.bf16 %v879_v2, %v879_v2  ;;  %v880_v18 = vadd.f32 %v1606_v49, %v841_v12  ;;  %v839_v20 = vld [vmem:[#allocation2 + $0x8] sm:$0xff]  ;;  %810 = vst.msk [vmem:[#allocation2 + $0x38] sm:$0xff] %vm351_vm0, %v777_v6  ;;  %v446_v12 = vld [vmem:[#allocation2 + $0xf0] sm:$0xff] }
  0xf8   : > { %v1309_v17 = vpack.c.bf16 %v895_v3, %v895_v3  ;;  %v896_v19 = vadd.f32 %v1606_v49, %v857_v13  ;;  %v855_v21 = vld [vmem:[#allocation2 + $0x88] sm:$0xff]  ;;  %826 = vst.msk [vmem:[#allocation2 + $0xb8] sm:$0xff] %vm351_vm0, %v793_v7  ;;  %v1291_v22 = vpack.c.bf16 %v877_v10, %v877_v10  ;;  %v878_v24 = vadd.f32 %v1606_v49, %v839_v20 }
  0xf9   : > { %v1307_v23 = vpack.c.bf16 %v893_v11, %v893_v11  ;;  %v894_v25 = vadd.f32 %v1606_v49, %v855_v21  ;;  %808 = vst.msk [vmem:[#allocation2 + $0x28] sm:$0xff] %vm351_vm0, %v775_v14  ;;  %824 = vst.msk [vmem:[#allocation2 + $0xa8] sm:$0xff] %vm351_vm0, %v791_v15  ;;  %v1294_v28 = vpack.c.bf16 %v880_v18, %v880_v18  ;;  %v430_v11 = vld [vmem:[#allocation2 + $0x70] sm:$0xff]  ;;  %v428_v15 = vld [vmem:[#allocation2 + $0x60] sm:$0xff] }
  0xfa   : > { %1040 = vst.msk [vmem:[%s1617_s12 + $0x8] sm:$0xf] %vm1037_vm2, %v1293_v16  ;;  %1056 = vst.msk [vmem:[%s1617_s12 + $0x48] sm:$0xf] %vm1037_vm2, %v1309_v17  ;;  %v1310_v29 = vpack.c.bf16 %v896_v19, %v896_v19  ;;  %v1292_v32 = vpack.c.bf16 %v878_v24, %v878_v24  ;;  %v1361_v34 = vpop.f32.mrb[8].mxu0  ;;  %v1377_v35 = vpop.f32.mrb[8].mxu1 }
  0xfb   : > { %1038 = vst.msk [vmem:[%s1617_s12] sm:$0xf] %vm1037_vm2, %v1291_v22  ;;  %1054 = vst.msk [vmem:[%s1617_s12 + $0x40] sm:$0xf] %vm1037_vm2, %v1307_v23  ;;  %v1308_v33 = vpack.c.bf16 %v894_v25, %v894_v25  ;;  %v780_v38 = vadd.f32 %v1361_v34, %v426_v26  ;;  %v796_v39 = vadd.f32 %v1377_v35, %v442_v27  ;;  %v675_v40 = vpop.f32.mrb[9].mxu0  ;;  %v739_v41 = vpop.f32.mrb[9].mxu1 }
  0xfc   : > { %1041 = vst.msk [vmem:[%s1617_s12 + $0xc] sm:$0xf] %vm1037_vm2, %v1294_v28  ;;  %1057 = vst.msk [vmem:[%s1617_s12 + $0x4c] sm:$0xf] %vm1037_vm2, %v1310_v29  ;;  %v844_v44 = vld [vmem:[#allocation2 + $0x30] sm:$0xff]  ;;  %v778_v46 = vadd.f32 %v675_v40, %v424_v30  ;;  %v794_v47 = vadd.f32 %v739_v41, %v440_v31  ;;  %v1362_v48 = vpop.f32.mrb[10].mxu0 }
  0xfd   : > { %1039 = vst.msk [vmem:[%s1617_s12 + $0x4] sm:$0xf] %vm1037_vm2, %v1292_v32  ;;  %1055 = vst.msk [vmem:[%s1617_s12 + $0x44] sm:$0xf] %vm1037_vm2, %v1308_v33  ;;  %v860_v45 = vld [vmem:[#allocation2 + $0xb0] sm:$0xff]  ;;  %v1378_v50 = vpop.f32.mrb[10].mxu1  ;;  %v883_v51 = vadd.f32 %v1606_v49, %v844_v44  ;;  %v781_v55 = vadd.f32 %v1362_v48, %v427_v36 }
  0xfe   : > { %v899_v52 = vadd.f32 %v1606_v49, %v860_v45  ;;  %v842_v53 = vld [vmem:[#allocation2 + $0x20] sm:$0xff]  ;;  %813 = vst.msk [vmem:[#allocation2 + $0x50] sm:$0xff] %vm351_vm0, %v780_v38  ;;  %829 = vst.msk [vmem:[#allocation2 + $0xd0] sm:$0xff] %vm351_vm0, %v796_v39  ;;  %v797_v56 = vadd.f32 %v1378_v50, %v443_v37  ;;  %v678_v57 = vpop.f32.mrb[11].mxu0  ;;  %v742_v58 = vpop.f32.mrb[11].mxu1  ;;  %v845_v61 = vld [vmem:[#allocation2 + $0x38] sm:$0xff] }
  0xff   : > { %v858_v54 = vld [vmem:[#allocation2 + $0xa0] sm:$0xff]  ;;  %v881_v59 = vadd.f32 %v1606_v49, %v842_v53  ;;  %v861_v62 = vld [vmem:[#allocation2 + $0xb8] sm:$0xff]  ;;  %811 = vst.msk [vmem:[#allocation2 + $0x40] sm:$0xff] %vm351_vm0, %v778_v46  ;;  %827 = vst.msk [vmem:[#allocation2 + $0xc0] sm:$0xff] %vm351_vm0, %v794_v47  ;;  %v779_v63 = vadd.f32 %v678_v57, %v425_v42  ;;  %v795_v0 = vadd.f32 %v742_v58, %v441_v43 }
 0x100   : > { %v897_v60 = vadd.f32 %v1606_v49, %v858_v54  ;;  %v1297_v1 = vpack.c.bf16 %v883_v51, %v883_v51  ;;  %v1313_v2 = vpack.c.bf16 %v899_v52, %v899_v52  ;;  %v884_v3 = vadd.f32 %v1606_v49, %v845_v61  ;;  %v843_v5 = vld [vmem:[#allocation2 + $0x28] sm:$0xff]  ;;  %814 = vst.msk [vmem:[#allocation2 + $0x58] sm:$0xff] %vm351_vm0, %v781_v55  ;;  %v444_v16 = vld [vmem:[#allocation2 + $0xe0] sm:$0xff]  ;;  %v431_v21 = vld [vmem:[#allocation2 + $0x78] sm:$0xff] }
 0x101   : > { %v900_v4 = vadd.f32 %v1606_v49, %v861_v62  ;;  %v859_v6 = vld [vmem:[#allocation2 + $0xa8] sm:$0xff]  ;;  %830 = vst.msk [vmem:[#allocation2 + $0xd8] sm:$0xff] %vm351_vm0, %v797_v56  ;;  %v1295_v7 = vpack.c.bf16 %v881_v59, %v881_v59  ;;  %v882_v9 = vadd.f32 %v1606_v49, %v843_v5  ;;  %812 = vst.msk [vmem:[#allocation2 + $0x48] sm:$0xff] %vm351_vm0, %v779_v63  ;;  %v447_v22 = vld [vmem:[#allocation2 + $0xf8] sm:$0xff] }
 0x102   : > { %v1311_v8 = vpack.c.bf16 %v897_v60, %v897_v60  ;;  %v898_v10 = vadd.f32 %v1606_v49, %v859_v6  ;;  %828 = vst.msk [vmem:[#allocation2 + $0xc8] sm:$0xff] %vm351_vm0, %v795_v0  ;;  %v1298_v13 = vpack.c.bf16 %v884_v3, %v884_v3  ;;  %v1365_v19 = vpop.f32.mrb[12].mxu0  ;;  %v1381_v20 = vpop.f32.mrb[12].mxu1  ;;  %v429_v27 = vld [vmem:[#allocation2 + $0x68] sm:$0xff] }
 0x103   : > { %1044 = vst.msk [vmem:[%s1617_s12 + $0x18] sm:$0xf] %vm1037_vm2, %v1297_v1  ;;  %1060 = vst.msk [vmem:[%s1617_s12 + $0x58] sm:$0xf] %vm1037_vm2, %v1313_v2  ;;  %v1314_v14 = vpack.c.bf16 %v900_v4, %v900_v4  ;;  %v1296_v17 = vpack.c.bf16 %v882_v9, %v882_v9  ;;  %v784_v23 = vadd.f32 %v1365_v19, %v430_v11  ;;  %v691_v25 = vpop.f32.mrb[13].mxu0  ;;  %v755_v26 = vpop.f32.mrb[13].mxu1 }
 0x104   : > { %1042 = vst.msk [vmem:[%s1617_s12 + $0x10] sm:$0xf] %vm1037_vm2, %v1295_v7  ;;  %1058 = vst.msk [vmem:[%s1617_s12 + $0x50] sm:$0xf] %vm1037_vm2, %v1311_v8  ;;  %v1312_v18 = vpack.c.bf16 %v898_v10, %v898_v10  ;;  %v800_v24 = vadd.f32 %v1381_v20, %v446_v12  ;;  %v445_v28 = vld [vmem:[#allocation2 + $0xe8] sm:$0xff]  ;;  %v782_v31 = vadd.f32 %v691_v25, %v428_v15  ;;  %v1366_v33 = vpop.f32.mrb[14].mxu0 }
 0x105   : > { %1045 = vst.msk [vmem:[%s1617_s12 + $0x1c] sm:$0xf] %vm1037_vm2, %v1298_v13  ;;  %1061 = vst.msk [vmem:[%s1617_s12 + $0x5c] sm:$0xf] %vm1037_vm2, %v1314_v14  ;;  %v848_v29 = vld [vmem:[#allocation2 + $0x50] sm:$0xff]  ;;  %v798_v32 = vadd.f32 %v755_v26, %v444_v16  ;;  %v1382_v34 = vpop.f32.mrb[14].mxu1  ;;  %v785_v39 = vadd.f32 %v1366_v33, %v431_v21 }
 0x106   : > { %1043 = vst.msk [vmem:[%s1617_s12 + $0x14] sm:$0xf] %vm1037_vm2, %v1296_v17  ;;  %1059 = vst.msk [vmem:[%s1617_s12 + $0x54] sm:$0xf] %vm1037_vm2, %v1312_v18  ;;  %v864_v30 = vld [vmem:[#allocation2 + $0xd0] sm:$0xff]  ;;  %v887_v35 = vadd.f32 %v1606_v49, %v848_v29  ;;  %v846_v37 = vld [vmem:[#allocation2 + $0x40] sm:$0xff]  ;;  %v801_v40 = vadd.f32 %v1382_v34, %v447_v22 }
 0x107   : > { %v903_v36 = vadd.f32 %v1606_v49, %v864_v30  ;;  %v862_v38 = vld [vmem:[#allocation2 + $0xc0] sm:$0xff]  ;;  %817 = vst.msk [vmem:[#allocation2 + $0x70] sm:$0xff] %vm351_vm0, %v784_v23  ;;  %833 = vst.msk [vmem:[#allocation2 + $0xf0] sm:$0xff] %vm351_vm0, %v800_v24  ;;  %v694_v41 = vpop.f32.mrb[15].mxu0  ;;  %v758_v42 = vpop.f32.mrb[15].mxu1  ;;  %v885_v43 = vadd.f32 %v1606_v49, %v846_v37  ;;  %v849_v45 = vld [vmem:[#allocation2 + $0x58] sm:$0xff] }
 0x108   : > { %v901_v44 = vadd.f32 %v1606_v49, %v862_v38  ;;  %v865_v46 = vld [vmem:[#allocation2 + $0xd8] sm:$0xff]  ;;  %815 = vst.msk [vmem:[#allocation2 + $0x60] sm:$0xff] %vm351_vm0, %v782_v31  ;;  %831 = vst.msk [vmem:[#allocation2 + $0xe0] sm:$0xff] %vm351_vm0, %v798_v32  ;;  %v783_v47 = vadd.f32 %v694_v41, %v429_v27  ;;  %v799_v48 = vadd.f32 %v758_v42, %v445_v28  ;;  %v847_v54 = vld [vmem:[#allocation2 + $0x48] sm:$0xff] }
 0x109   : > { %v1301_v50 = vpack.c.bf16 %v887_v35, %v887_v35  ;;  %v1317_v51 = vpack.c.bf16 %v903_v36, %v903_v36  ;;  %v888_v52 = vadd.f32 %v1606_v49, %v849_v45  ;;  %v904_v53 = vadd.f32 %v1606_v49, %v865_v46  ;;  %v863_v55 = vld [vmem:[#allocation2 + $0xc8] sm:$0xff]  ;;  %818 = vst.msk [vmem:[#allocation2 + $0x78] sm:$0xff] %vm351_vm0, %v785_v39 }
 0x10a   : > { %834 = vst.msk [vmem:[#allocation2 + $0xf8] sm:$0xff] %vm351_vm0, %v801_v40  ;;  %v1299_v56 = vpack.c.bf16 %v885_v43, %v885_v43  ;;  %v1315_v57 = vpack.c.bf16 %v901_v44, %v901_v44  ;;  %v886_v58 = vadd.f32 %v1606_v49, %v847_v54  ;;  %v902_v59 = vadd.f32 %v1606_v49, %v863_v55 }
 0x10b   : > { %816 = vst.msk [vmem:[#allocation2 + $0x68] sm:$0xff] %vm351_vm0, %v783_v47  ;;  %832 = vst.msk [vmem:[#allocation2 + $0xe8] sm:$0xff] %vm351_vm0, %v799_v48  ;;  %v1302_v60 = vpack.c.bf16 %v888_v52, %v888_v52  ;;  %v1318_v61 = vpack.c.bf16 %v904_v53, %v904_v53 }
 0x10c   : > { %1048 = vst.msk [vmem:[%s1617_s12 + $0x28] sm:$0xf] %vm1037_vm2, %v1301_v50  ;;  %1064 = vst.msk [vmem:[%s1617_s12 + $0x68] sm:$0xf] %vm1037_vm2, %v1317_v51  ;;  %v1300_v62 = vpack.c.bf16 %v886_v58, %v886_v58  ;;  %v1316_v63 = vpack.c.bf16 %v902_v59, %v902_v59 }
 0x10d   : > { %1046 = vst.msk [vmem:[%s1617_s12 + $0x20] sm:$0xf] %vm1037_vm2, %v1299_v56  ;;  %1062 = vst.msk [vmem:[%s1617_s12 + $0x60] sm:$0xf] %vm1037_vm2, %v1315_v57 }
 0x10e   : > { %1049 = vst.msk [vmem:[%s1617_s12 + $0x2c] sm:$0xf] %vm1037_vm2, %v1302_v60  ;;  %1065 = vst.msk [vmem:[%s1617_s12 + $0x6c] sm:$0xf] %vm1037_vm2, %v1318_v61  ;;  %v852_v0 = vld [vmem:[#allocation2 + $0x70] sm:$0xff] }
 0x10f   : > { %1047 = vst.msk [vmem:[%s1617_s12 + $0x24] sm:$0xf] %vm1037_vm2, %v1300_v62  ;;  %1063 = vst.msk [vmem:[%s1617_s12 + $0x64] sm:$0xf] %vm1037_vm2, %v1316_v63  ;;  %v868_v1 = vld [vmem:[#allocation2 + $0xf0] sm:$0xff]  ;;  %v891_v2 = vadd.f32 %v1606_v49, %v852_v0  ;;  %v850_v4 = vld [vmem:[#allocation2 + $0x60] sm:$0xff] }
 0x110   : > { %v907_v3 = vadd.f32 %v1606_v49, %v868_v1  ;;  %v866_v5 = vld [vmem:[#allocation2 + $0xe0] sm:$0xff]  ;;  %v889_v6 = vadd.f32 %v1606_v49, %v850_v4  ;;  %v853_v8 = vld [vmem:[#allocation2 + $0x78] sm:$0xff] }
 0x111   : > { %v905_v7 = vadd.f32 %v1606_v49, %v866_v5  ;;  %v869_v9 = vld [vmem:[#allocation2 + $0xf8] sm:$0xff]  ;;  %v1305_v10 = vpack.c.bf16 %v891_v2, %v891_v2  ;;  %v892_v12 = vadd.f32 %v1606_v49, %v853_v8 }
 0x112   : > { %v1321_v11 = vpack.c.bf16 %v907_v3, %v907_v3  ;;  %v908_v13 = vadd.f32 %v1606_v49, %v869_v9  ;;  %v851_v14 = vld [vmem:[#allocation2 + $0x68] sm:$0xff]  ;;  %v1303_v16 = vpack.c.bf16 %v889_v6, %v889_v6 }
 0x113   : > { %v867_v15 = vld [vmem:[#allocation2 + $0xe8] sm:$0xff]  ;;  %v1319_v17 = vpack.c.bf16 %v905_v7, %v905_v7  ;;  %v890_v18 = vadd.f32 %v1606_v49, %v851_v14  ;;  %1052 = vst.msk [vmem:[%s1617_s12 + $0x38] sm:$0xf] %vm1037_vm2, %v1305_v10  ;;  %v1306_v20 = vpack.c.bf16 %v892_v12, %v892_v12 }
 0x114   : > { %v906_v19 = vadd.f32 %v1606_v49, %v867_v15  ;;  %1068 = vst.msk [vmem:[%s1617_s12 + $0x78] sm:$0xf] %vm1037_vm2, %v1321_v11  ;;  %v1322_v21 = vpack.c.bf16 %v908_v13, %v908_v13  ;;  %1050 = vst.msk [vmem:[%s1617_s12 + $0x30] sm:$0xf] %vm1037_vm2, %v1303_v16 }
 0x115   : > { %1066 = vst.msk [vmem:[%s1617_s12 + $0x70] sm:$0xf] %vm1037_vm2, %v1319_v17  ;;  %v1304_v22 = vpack.c.bf16 %v890_v18, %v890_v18  ;;  %1053 = vst.msk [vmem:[%s1617_s12 + $0x3c] sm:$0xf] %vm1037_vm2, %v1306_v20 }
 0x116   : > { %v1320_v23 = vpack.c.bf16 %v906_v19, %v906_v19  ;;  %1069 = vst.msk [vmem:[%s1617_s12 + $0x7c] sm:$0xf] %vm1037_vm2, %v1322_v21 }
 0x117   : > { %1051 = vst.msk [vmem:[%s1617_s12 + $0x34] sm:$0xf] %vm1037_vm2, %v1304_v22 }
 0x118   : > { %1067 = vst.msk [vmem:[%s1617_s12 + $0x74] sm:$0xf] %vm1037_vm2, %v1320_v23 }
 0x119 PF: > { %s15_s0 = sadd.s32 1, %s1458_s0   ;;  %s1750_s18 = smov %s1454_s19 }
 0x11a   : > { %p12_p5 = scmp.ge.s32.totalorder %s15_s0, 4   ;;  %s1751_s19 = smov %s1753_s1 }
 0x11c   :  { %14 = sbr.rel (!%p12_p5) target bundleno = 2 (0x2), region = 87 }

// kernel: unet_generator.19
= control target key start
LH: loop header
LB: loop body
LE: loop exit
PB: predicated region body
PF: predicated region fallthrough
CT: control target
= control target key end

     0   :  { %vm14_vm0 = vcmask 122880   ;;  %v195_v0 = vmov 0.0   ;;  %vm50_vm1 = vcmask 130048   ;;  %s289_s0 = inlined_call_operand.vmem [shape: bf16[128,16], index: 0, kind: input, shape index: {}]   ;;  %s290_s1 = inlined_call_operand.vmem [shape: f32[1,16], index: 1, kind: output, shape index: {0}]   ;;  %s291_s2 = inlined_call_operand.vmem [shape: f32[1,16], index: 2, kind: output, shape index: {1}]  }
   0x1   :  { %15 = vst.msk [vmem:[%s290_s1] sm:$0x1] %vm14_vm0, %v195_v0  ;;  %v156_v1 = vld [vmem:[%s289_s0] sm:$0xff]   ;;  %v187_v2 = vld [vmem:[%s289_s0 + $0x8] sm:$0xff]   ;;  %16 = vst.msk [vmem:[%s291_s2] sm:$0x1] %vm14_vm0, %v195_v0 }
   0x2   :  { %v157_v3 = vunpack.c.l.bf16 %v156_v1  ;;  %v158_v4 = vunpack.c.h.bf16 %v156_v1  ;;  %v161_v5 = vunpack.c.l.bf16 %v187_v2  ;;  %v188_v6 = vld [vmem:[%s289_s0 + $0x10] sm:$0xff]   ;;  %v162_v7 = vunpack.c.h.bf16 %v187_v2  ;;  %v189_v14 = vld [vmem:[%s289_s0 + $0x18] sm:$0xff]   ;;  %v190_v24 = vld [vmem:[%s289_s0 + $0x20] sm:$0xff]  }
   0x3   :  { %v165_v12 = vunpack.c.l.bf16 %v188_v6  ;;  %v166_v16 = vunpack.c.h.bf16 %v188_v6  ;;  %v169_v22 = vunpack.c.l.bf16 %v189_v14  ;;  %v170_v27 = vunpack.c.h.bf16 %v189_v14  ;;  %v191_v37 = vld [vmem:[%s289_s0 + $0x28] sm:$0xff]   ;;  %v192_v50 = vld [vmem:[%s289_s0 + $0x30] sm:$0xff]   ;;  %v193_v63 = vld [vmem:[%s289_s0 + $0x38] sm:$0xff]  }
   0x4   :  { %v51_v8 = vsel %vm50_vm1, %v157_v3, 0.0  ;;  %v52_v9 = vsel %vm50_vm1, %v158_v4, 0.0  ;;  %v54_v10 = vsel %vm50_vm1, %v161_v5, 0.0  ;;  %v56_v13 = vsel %vm50_vm1, %v162_v7, 0.0 }
   0x5   :  { %v53_v11 = vadd.f32 %v52_v9, %v51_v8  ;;  %v58_v17 = vsel %vm50_vm1, %v165_v12, 0.0  ;;  %v92_v19 = vmul.f32 %v157_v3, %v157_v3  ;;  %v93_v20 = vmul.f32 %v158_v4, %v158_v4 }
   0x6   :  { %v94_v21 = vmul.f32 %v161_v5, %v161_v5  ;;  %v60_v23 = vsel %vm50_vm1, %v166_v16, 0.0  ;;  %v95_v26 = vmul.f32 %v162_v7, %v162_v7  ;;  %v62_v28 = vsel %vm50_vm1, %v169_v22, 0.0 }
   0x7   :  { %v55_v15 = vadd.f32 %v54_v10, %v53_v11  ;;  %v96_v29 = vmul.f32 %v165_v12, %v165_v12  ;;  %v108_v31 = vsel %vm50_vm1, %v92_v19, 0.0  ;;  %v109_v32 = vsel %vm50_vm1, %v93_v20, 0.0 }
   0x8   :  { %v111_v33 = vsel %vm50_vm1, %v94_v21, 0.0  ;;  %v173_v34 = vunpack.c.l.bf16 %v190_v24  ;;  %v64_v35 = vsel %vm50_vm1, %v170_v27, 0.0  ;;  %v110_v36 = vadd.f32 %v109_v32, %v108_v31 }
   0x9   :  { %v57_v18 = vadd.f32 %v56_v13, %v55_v15  ;;  %v97_v39 = vmul.f32 %v166_v16, %v166_v16  ;;  %v113_v40 = vsel %vm50_vm1, %v95_v26, 0.0  ;;  %v174_v41 = vunpack.c.h.bf16 %v190_v24 }
   0xa   :  { %v66_v42 = vsel %vm50_vm1, %v173_v34, 0.0  ;;  %v112_v43 = vadd.f32 %v111_v33, %v110_v36  ;;  %v98_v45 = vmul.f32 %v169_v22, %v169_v22  ;;  %v115_v46 = vsel %vm50_vm1, %v96_v29, 0.0 }
   0xb   :  { %v59_v25 = vadd.f32 %v58_v17, %v57_v18  ;;  %v177_v47 = vunpack.c.l.bf16 %v191_v37  ;;  %v68_v48 = vsel %vm50_vm1, %v174_v41, 0.0  ;;  %v99_v52 = vmul.f32 %v170_v27, %v170_v27 }
   0xc   :  { %v114_v49 = vadd.f32 %v113_v40, %v112_v43  ;;  %v117_v53 = vsel %vm50_vm1, %v97_v39, 0.0  ;;  %v178_v54 = vunpack.c.h.bf16 %v191_v37  ;;  %v100_v58 = vmul.f32 %v173_v34, %v173_v34 }
   0xd   :  { %v61_v30 = vadd.f32 %v60_v23, %v59_v25  ;;  %v70_v55 = vsel %vm50_vm1, %v177_v47, 0.0  ;;  %v119_v59 = vsel %vm50_vm1, %v98_v45, 0.0  ;;  %v181_v60 = vunpack.c.l.bf16 %v192_v50 }
   0xe   :  { %v116_v56 = vadd.f32 %v115_v46, %v114_v49  ;;  %v72_v61 = vsel %vm50_vm1, %v178_v54, 0.0  ;;  %v101_v1 = vmul.f32 %v174_v41, %v174_v41  ;;  %v121_v2 = vsel %vm50_vm1, %v99_v52, 0.0  ;;  %v91_v52 = vld [vmem:[%s291_s2] sm:$0x1] }
   0xf   :  { %v63_v38 = vadd.f32 %v62_v28, %v61_v30  ;;  %v182_v3 = vunpack.c.h.bf16 %v192_v50  ;;  %v74_v4 = vsel %vm50_vm1, %v181_v60, 0.0  ;;  %v102_v7 = vmul.f32 %v177_v47, %v177_v47 }
  0x10   :  { %v118_v62 = vadd.f32 %v117_v53, %v116_v56  ;;  %v123_v8 = vsel %vm50_vm1, %v100_v58, 0.0  ;;  %v185_v9 = vunpack.c.l.bf16 %v193_v63  ;;  %v103_v13 = vmul.f32 %v178_v54, %v178_v54 }
  0x11   :  { %v65_v44 = vadd.f32 %v64_v35, %v63_v38  ;;  %v76_v10 = vsel %vm50_vm1, %v182_v3, 0.0  ;;  %v125_v14 = vsel %vm50_vm1, %v101_v1, 0.0  ;;  %v186_v15 = vunpack.c.h.bf16 %v193_v63 }
  0x12   :  { %v120_v5 = vadd.f32 %v119_v59, %v118_v62  ;;  %v78_v16 = vsel %vm50_vm1, %v185_v9, 0.0  ;;  %v104_v19 = vmul.f32 %v181_v60, %v181_v60  ;;  %v127_v20 = vsel %vm50_vm1, %v102_v7, 0.0 }
  0x13   :  { %v67_v51 = vadd.f32 %v66_v42, %v65_v44  ;;  %v80_v21 = vsel %vm50_vm1, %v186_v15, 0.0  ;;  %v105_v24 = vmul.f32 %v182_v3, %v182_v3  ;;  %v129_v25 = vsel %vm50_vm1, %v103_v13, 0.0  ;;  %v49_v44 = vld [vmem:[%s290_s1] sm:$0x1] }
  0x14   :  { %v122_v11 = vadd.f32 %v121_v2, %v120_v5  ;;  %v106_v28 = vmul.f32 %v185_v9, %v185_v9  ;;  %v131_v29 = vsel %vm50_vm1, %v104_v19, 0.0  ;;  %v107_v32 = vmul.f32 %v186_v15, %v186_v15 }
  0x15   :  { %v69_v57 = vadd.f32 %v68_v48, %v67_v51  ;;  %v133_v33 = vsel %vm50_vm1, %v105_v24, 0.0 }
  0x16   :  { %v124_v17 = vadd.f32 %v123_v8, %v122_v11  ;;  %v135_v36 = vsel %vm50_vm1, %v106_v28, 0.0  ;;  %v137_v39 = vsel %vm50_vm1, %v107_v32, 0.0 }
  0x17   :  { %v71_v0 = vadd.f32 %v70_v55, %v69_v57 }
  0x18   :  { %v126_v22 = vadd.f32 %v125_v14, %v124_v17 }
  0x19   :  { %v73_v6 = vadd.f32 %v72_v61, %v71_v0 }
  0x1a   :  { %v128_v26 = vadd.f32 %v127_v20, %v126_v22 }
  0x1b   :  { %v75_v12 = vadd.f32 %v74_v4, %v73_v6 }
  0x1c   :  { %v130_v30 = vadd.f32 %v129_v25, %v128_v26 }
  0x1d   :  { %v77_v18 = vadd.f32 %v76_v10, %v75_v12 }
  0x1e   :  { %v132_v34 = vadd.f32 %v131_v29, %v130_v30 }
  0x1f   :  { %v79_v23 = vadd.f32 %v78_v16, %v77_v18 }
  0x20   :  { %v134_v37 = vadd.f32 %v133_v33, %v132_v34 }
  0x21   :  { %v81_v27 = vadd.f32 %v80_v21, %v79_v23 }
  0x22   :  { %v136_v40 = vadd.f32 %v135_v36, %v134_v37 }
  0x23   :  { %v82_v31 = vrot.slane %v81_v27, 4 }
  0x24   :  { %v138_v42 = vadd.f32 %v137_v39, %v136_v40 }
  0x25   :  { %v83_v35 = vadd.f32 %v82_v31, %v81_v27 }
  0x26   :  { %v139_v45 = vrot.slane %v138_v42, 4 }
  0x27   :  { %v84_v38 = vrot.slane %v83_v35, 2 }
  0x28   :  { %v140_v47 = vadd.f32 %v139_v45, %v138_v42 }
  0x29   :  { %v85_v41 = vadd.f32 %v84_v38, %v83_v35 }
  0x2a   :  { %v141_v49 = vrot.slane %v140_v47, 2 }
  0x2b   :  { %v86_v43 = vrot.slane %v85_v41, 1 }
  0x2c   :  { %v142_v50 = vadd.f32 %v141_v49, %v140_v47 }
  0x2d   :  { %v87_v46 = vadd.f32 %v86_v43, %v85_v41 }
  0x2e   :  { %v143_v51 = vrot.slane %v142_v50, 1 }
  0x2f   :  { %v88_v48 = vadd.f32 %v87_v46, %v49_v44 }
  0x30   :  { %v144_v53 = vadd.f32 %v143_v51, %v142_v50 }
  0x31   :  { %90 = vst.msk [vmem:[%s290_s1] sm:$0x1] %vm14_vm0, %v88_v48 }
  0x32   :  { %v145_v54 = vadd.f32 %v144_v53, %v91_v52 }
  0x34   :  { %146 = vst.msk [vmem:[%s291_s2] sm:$0x1] %vm14_vm0, %v145_v54 }

// kernel: unet_generator.18
= control target key start
LH: loop header
LB: loop body
LE: loop exit
PB: predicated region body
PF: predicated region fallthrough
CT: control target
= control target key end

     0   :  { %vm26_vm0 = vcmask 130048   ;;  %v614_v1 = vmov 0.0   ;;  %s838_s0 = inlined_call_operand.vmem [shape: f32[1,128], index: 0, kind: input, shape index: {}]   ;;  %s839_s1 = inlined_call_operand.vmem [shape: f32[1,128], index: 1, kind: input, shape index: {}]   ;;  %s840_s3 = inlined_call_operand.vmem [shape: bf16[1,128,16], index: 3, kind: input, shape index: {}]   ;;  %s841_s2 = inlined_call_operand.vmem [shape: bf16[1,128,128], index: 2, kind: input, shape index: {}]   ;;  %s842_s4 = inlined_call_operand.vmem [shape: f32[1,16], index: 4, kind: input, shape index: {}]   ;;  %s843_s5 = inlined_call_operand.vmem [shape: bf16[1,128,16], index: 5, kind: output, shape index: {}]  }
   0x1   :  { %v606_v0 = vld [vmem:[%s840_s3] sm:$0xff]   ;;  %29 = vst.msk [vmem:[#allocation2 + $0x10] sm:$0xff] %vm26_vm0, %v614_v1  ;;  %27 = vst.msk [vmem:[#allocation2] sm:$0xff] %vm26_vm0, %v614_v1  ;;  %v607_v2 = vld [vmem:[%s840_s3 + $0x8] sm:$0xff]  }
   0x2   :  { %28 = vst.msk [vmem:[#allocation2 + $0x8] sm:$0xff] %vm26_vm0, %v614_v1  ;;  %30 = vst.msk [vmem:[#allocation2 + $0x18] sm:$0xff] %vm26_vm0, %v614_v1  ;;  %557 = vmatprep.subr.bf16.mxu0 %v606_v0  ;;  %589 = vmatprep.subr.bf16.mxu1 %v606_v0  ;;  %v608_v3 = vld [vmem:[%s840_s3 + $0x10] sm:$0xff]   ;;  %v609_v4 = vld [vmem:[%s840_s3 + $0x18] sm:$0xff]  }
   0x3   :  { %31 = vst.msk [vmem:[#allocation2 + $0x20] sm:$0xff] %vm26_vm0, %v614_v1  ;;  %32 = vst.msk [vmem:[#allocation2 + $0x28] sm:$0xff] %vm26_vm0, %v614_v1  ;;  %558 = vmatpush3.bf16.msra.mxu0 %v606_v0  ;;  %597 = vmatpush3.bf16.msra.mxu1 %v606_v0  ;;  %v43_v5 = vld [vmem:[%s841_s2] sm:$0xf]  ;;  %v44_v6 = vld [vmem:[%s841_s2 + $0x4] sm:$0xf] }
   0x4   :  { %33 = vst.msk [vmem:[#allocation2 + $0x30] sm:$0xff] %vm26_vm0, %v614_v1  ;;  %34 = vst.msk [vmem:[#allocation2 + $0x38] sm:$0xff] %vm26_vm0, %v614_v1  ;;  %559 = vmatprep.subr.bf16.mxu0 %v607_v2  ;;  %590 = vmatprep.subr.bf16.mxu1 %v607_v2  ;;  %v51_v7 = vld [vmem:[%s841_s2 + $0x20] sm:$0xf]  ;;  %vm59_vm1 = vcmp.gt.bf16.partialorder %v43_v5, 0  ;;  %vm60_vm2 = vcmp.gt.bf16.partialorder %v44_v6, 0 }
   0x5   :  { %35 = vst.msk [vmem:[#allocation2 + $0x40] sm:$0xff] %vm26_vm0, %v614_v1  ;;  %36 = vst.msk [vmem:[#allocation2 + $0x48] sm:$0xff] %vm26_vm0, %v614_v1  ;;  %v75_v8 = vmul.bf16 1045249613, %v43_v5  ;;  %v76_v9 = vmul.bf16 1045249613, %v44_v6 }
   0x6   :  { %37 = vst.msk [vmem:[#allocation2 + $0x50] sm:$0xff] %vm26_vm0, %v614_v1  ;;  %38 = vst.msk [vmem:[#allocation2 + $0x58] sm:$0xff] %vm26_vm0, %v614_v1  ;;  %v52_v10 = vld [vmem:[%s841_s2 + $0x24] sm:$0xf]  ;;  %vm67_vm3 = vcmp.gt.bf16.partialorder %v51_v7, 0  ;;  %v611_v20 = vld [vmem:[%s840_s3 + $0x28] sm:$0xff]  }
   0x7   :  { %39 = vst.msk [vmem:[#allocation2 + $0x60] sm:$0xff] %vm26_vm0, %v614_v1  ;;  %40 = vst.msk [vmem:[#allocation2 + $0x68] sm:$0xff] %vm26_vm0, %v614_v1  ;;  %560 = vmatpush3.bf16.msra.mxu0 %v607_v2  ;;  %598 = vmatpush3.bf16.msra.mxu1 %v607_v2  ;;  %v83_v11 = vmul.bf16 1045249613, %v51_v7  ;;  %v91_v12 = vsel %vm59_vm1, %v43_v5, %v75_v8  ;;  %v92_v13 = vsel %vm60_vm2, %v44_v6, %v76_v9  ;;  %v610_v15 = vld [vmem:[%s840_s3 + $0x20] sm:$0xff]   ;;  %v612_v23 = vld [vmem:[%s840_s3 + $0x30] sm:$0xff]  }
   0x8   :  { %41 = vst.msk [vmem:[#allocation2 + $0x70] sm:$0xff] %vm26_vm0, %v614_v1  ;;  %42 = vst.msk [vmem:[#allocation2 + $0x78] sm:$0xff] %vm26_vm0, %v614_v1  ;;  %561 = vmatprep.subr.bf16.mxu0 %v608_v3  ;;  %591 = vmatprep.subr.bf16.mxu1 %v608_v3  ;;  %vm68_vm4 = vcmp.gt.bf16.partialorder %v52_v10, 0  ;;  %v84_v14 = vmul.bf16 1045249613, %v52_v10  ;;  %v492_v16 = vcombine.low %v91_v12, %v92_v13  ;;  %v613_v31 = vld [vmem:[%s840_s3 + $0x38] sm:$0xff]  }
   0x9   :  { %v99_v17 = vsel %vm67_vm3, %v51_v7, %v83_v11  ;;  %v45_v21 = vld [vmem:[%s841_s2 + $0x8] sm:$0xf]  ;;  %v46_v22 = vld [vmem:[%s841_s2 + $0xc] sm:$0xf]  ;;  %v47_v27 = vld [vmem:[%s841_s2 + $0x10] sm:$0xf] }
   0xa   :  { %v100_v18 = vsel %vm68_vm4, %v52_v10, %v84_v14  ;;  %573 = vmatprep.mubr.bf16.mxu0 %v492_v16  ;;  %v53_v24 = vld [vmem:[%s841_s2 + $0x28] sm:$0xf]  ;;  %v54_v25 = vld [vmem:[%s841_s2 + $0x2c] sm:$0xf]  ;;  %v77_v26 = vmul.bf16 1045249613, %v45_v21 }
   0xb   :  { %562 = vmatpush3.bf16.msra.mxu0 %v608_v3  ;;  %599 = vmatpush3.bf16.msra.mxu1 %v608_v3  ;;  %v496_v19 = vcombine.low %v99_v17, %v100_v18  ;;  %v48_v28 = vld [vmem:[%s841_s2 + $0x14] sm:$0xf]  ;;  %vm61_vm5 = vcmp.gt.bf16.partialorder %v45_v21, 0  ;;  %vm62_vm6 = vcmp.gt.bf16.partialorder %v46_v22, 0  ;;  %v55_v29 = vld [vmem:[%s841_s2 + $0x30] sm:$0xf] }
   0xc   :  { %563 = vmatprep.subr.bf16.mxu0 %v609_v4  ;;  %592 = vmatprep.subr.bf16.mxu1 %v609_v4  ;;  %v56_v30 = vld [vmem:[%s841_s2 + $0x34] sm:$0xf]  ;;  %v78_v32 = vmul.bf16 1045249613, %v46_v22  ;;  %vm69_vm7 = vcmp.gt.bf16.partialorder %v53_v24, 0  ;;  %vm70_vm8 = vcmp.gt.bf16.partialorder %v54_v25, 0  ;;  %v93_v39 = vsel %vm61_vm5, %v45_v21, %v77_v26 }
   0xd   :  { %581 = vmatprep.mubr.bf16.mxu1 %v496_v19  ;;  %v85_v33 = vmul.bf16 1045249613, %v53_v24  ;;  %v86_v34 = vmul.bf16 1045249613, %v54_v25  ;;  %v79_v35 = vmul.bf16 1045249613, %v47_v27 }
   0xe   :  { %v80_v36 = vmul.bf16 1045249613, %v48_v28  ;;  %vm63_vm9 = vcmp.gt.bf16.partialorder %v47_v27, 0  ;;  %vm64_vm10 = vcmp.gt.bf16.partialorder %v48_v28, 0  ;;  %v87_v37 = vmul.bf16 1045249613, %v55_v29 }
   0xf   :  { %564 = vmatpush3.bf16.msra.mxu0 %v609_v4  ;;  %600 = vmatpush3.bf16.msra.mxu1 %v609_v4  ;;  %v88_v38 = vmul.bf16 1045249613, %v56_v30  ;;  %vm71_vm11 = vcmp.gt.bf16.partialorder %v55_v29, 0  ;;  %vm72_vm12 = vcmp.gt.bf16.partialorder %v56_v30, 0  ;;  %v94_v40 = vsel %vm62_vm6, %v46_v22, %v78_v32  ;;  %v49_v45 = vld [vmem:[%s841_s2 + $0x18] sm:$0xf] }
  0x10   :  { %565 = vmatprep.subr.bf16.mxu0 %v610_v15  ;;  %593 = vmatprep.subr.bf16.mxu1 %v610_v15  ;;  %v101_v41 = vsel %vm69_vm7, %v53_v24, %v85_v33  ;;  %v102_v42 = vsel %vm70_vm8, %v54_v25, %v86_v34  ;;  %v95_v43 = vsel %vm63_vm9, %v47_v27, %v79_v35  ;;  %v50_v48 = vld [vmem:[%s841_s2 + $0x1c] sm:$0xf]  ;;  %v57_v49 = vld [vmem:[%s841_s2 + $0x38] sm:$0xf]  ;;  %vm65_vm13 = vcmp.gt.bf16.partialorder %v49_v45, 0  ;;  %v109_v1 = vld [vmem:[#allocation2 + $0x10] sm:$0xff] }
  0x11   :  { %v96_v44 = vsel %vm64_vm10, %v48_v28, %v80_v36  ;;  %v103_v46 = vsel %vm71_vm11, %v55_v29, %v87_v37  ;;  %v104_v47 = vsel %vm72_vm12, %v56_v30, %v88_v38  ;;  %v58_v50 = vld [vmem:[%s841_s2 + $0x3c] sm:$0xf]  ;;  %v493_v51 = vcombine.low %v93_v39, %v94_v40  ;;  %v117_v2 = vld [vmem:[#allocation2 + $0x50] sm:$0xff]  ;;  %v107_v3 = vld [vmem:[#allocation2] sm:$0xff] }
  0x12   :  { %v497_v52 = vcombine.low %v101_v41, %v102_v42  ;;  %v494_v53 = vcombine.low %v95_v43, %v96_v44  ;;  %v81_v54 = vmul.bf16 1045249613, %v49_v45  ;;  %v498_v55 = vcombine.low %v103_v46, %v104_v47  ;;  %v115_v4 = vld [vmem:[#allocation2 + $0x40] sm:$0xff]  ;;  %v110_v7 = vld [vmem:[#allocation2 + $0x18] sm:$0xff]  ;;  %v108_v13 = vld [vmem:[#allocation2 + $0x8] sm:$0xff] }
  0x13   :  { %566 = vmatpush3.bf16.msra.mxu0 %v610_v15  ;;  %601 = vmatpush3.bf16.msra.mxu1 %v610_v15  ;;  %v82_v56 = vmul.bf16 1045249613, %v50_v48  ;;  %v89_v57 = vmul.bf16 1045249613, %v57_v49  ;;  %v90_v58 = vmul.bf16 1045249613, %v58_v50 }
  0x14   :  { %567 = vmatprep.subr.bf16.mxu0 %v611_v20  ;;  %594 = vmatprep.subr.bf16.mxu1 %v611_v20  ;;  %vm66_vm14 = vcmp.gt.bf16.partialorder %v50_v48, 0  ;;  %vm73_vm15 = vcmp.gt.bf16.partialorder %v57_v49, 0  ;;  %vm74_vm1 = vcmp.gt.bf16.partialorder %v58_v50, 0  ;;  %v97_v59 = vsel %vm65_vm13, %v49_v45, %v81_v54  ;;  %v118_v8 = vld [vmem:[#allocation2 + $0x58] sm:$0xff]  ;;  %v116_v14 = vld [vmem:[#allocation2 + $0x48] sm:$0xff]  ;;  %v113_v25 = vld [vmem:[#allocation2 + $0x30] sm:$0xff] }
  0x15   :  { %v98_v60 = vsel %vm66_vm14, %v50_v48, %v82_v56  ;;  %v105_v61 = vsel %vm73_vm15, %v57_v49, %v89_v57  ;;  %v106_v62 = vsel %vm74_vm1, %v58_v50, %v90_v58  ;;  %v121_v26 = vld [vmem:[#allocation2 + $0x70] sm:$0xff]  ;;  %v111_v27 = vld [vmem:[#allocation2 + $0x20] sm:$0xff]  ;;  %v114_v32 = vld [vmem:[#allocation2 + $0x38] sm:$0xff]  ;;  %vm471_vm2 = vcmask 125952  }
  0x16   :  { %v495_v63 = vcombine.low %v97_v59, %v98_v60  ;;  %v499_v0 = vcombine.low %v105_v61, %v106_v62  ;;  %v119_v28 = vld [vmem:[#allocation2 + $0x60] sm:$0xff]  ;;  %v122_v33 = vld [vmem:[#allocation2 + $0x78] sm:$0xff]  ;;  %v112_v38 = vld [vmem:[#allocation2 + $0x28] sm:$0xff] }
  0x17   :  { %568 = vmatpush3.bf16.msra.mxu0 %v611_v20  ;;  %602 = vmatpush3.bf16.msra.mxu1 %v611_v20  ;;  %v748_v29 = vld [vmem:[%s842_s4] ss:$0 sm:$0xff]  ;;  %v120_v39 = vld [vmem:[#allocation2 + $0x68] sm:$0xff] }
  0x18   :  { %569 = vmatprep.subr.bf16.mxu0 %v612_v23  ;;  %595 = vmatprep.subr.bf16.mxu1 %v612_v23 }
  0x1b   :  { %570 = vmatpush3.bf16.msra.mxu0 %v612_v23  ;;  %603 = vmatpush3.bf16.msra.mxu1 %v612_v23 }
  0x1c   :  { %571 = vmatprep.subr.bf16.mxu0 %v613_v31  ;;  %596 = vmatprep.subr.bf16.mxu1 %v613_v31 }
  0x1f   :  { %572 = vmatpush3.bf16.msra.mxu0 %v613_v31  ;;  %604 = vmatpush3.bf16.msra.mxu1 %v613_v31 }
  0x22   :  { %574 = vmatmul.mubr.bf16.vlgmr.msra.gmra.mrb[0].mxu0 %v493_v51  ;;  %582 = vmatmul.mubr.bf16.vlgmr.msra.gmra.mrb[0].mxu1 %v497_v52 }
  0x23   :  { %577 = vmatprep.mubr.bf16.mxu0 %v494_v53  ;;  %585 = vmatprep.mubr.bf16.mxu1 %v498_v55 }
  0x2a   :  { %578 = vmatmul.mubr.bf16.gmra.mrb[4].mxu0 %v495_v63  ;;  %586 = vmatmul.mubr.bf16.gmra.mrb[4].mxu1 %v499_v0 }
  0xf5   :  { %v575_v5 = vpop.f32.mrb[0].mxu0  ;;  %v583_v6 = vpop.f32.mrb[0].mxu1 }
  0xf6   :  { %v334_v9 = vadd.f32 %v575_v5, %v109_v1  ;;  %v342_v10 = vadd.f32 %v583_v6, %v117_v2  ;;  %v269_v11 = vpop.f32.mrb[1].mxu0  ;;  %v301_v12 = vpop.f32.mrb[1].mxu1 }
  0xf7   :  { %v332_v15 = vadd.f32 %v269_v11, %v107_v3  ;;  %v340_v16 = vadd.f32 %v301_v12, %v115_v4  ;;  %v576_v17 = vpop.f32.mrb[2].mxu0  ;;  %v584_v18 = vpop.f32.mrb[2].mxu1 }
  0xf8   :  { %351 = vst.msk [vmem:[#allocation2 + $0x10] sm:$0xff] %vm26_vm0, %v334_v9  ;;  %359 = vst.msk [vmem:[#allocation2 + $0x50] sm:$0xff] %vm26_vm0, %v342_v10  ;;  %v335_v19 = vadd.f32 %v576_v17, %v110_v7  ;;  %v343_v20 = vadd.f32 %v584_v18, %v118_v8  ;;  %v272_v21 = vpop.f32.mrb[3].mxu0  ;;  %v304_v22 = vpop.f32.mrb[3].mxu1 }
  0xf9   :  { %349 = vst.msk [vmem:[#allocation2] sm:$0xff] %vm26_vm0, %v332_v15  ;;  %357 = vst.msk [vmem:[#allocation2 + $0x40] sm:$0xff] %vm26_vm0, %v340_v16  ;;  %v333_v23 = vadd.f32 %v272_v21, %v108_v13  ;;  %v341_v24 = vadd.f32 %v304_v22, %v116_v14 }
  0xfa   :  { %352 = vst.msk [vmem:[#allocation2 + $0x18] sm:$0xff] %vm26_vm0, %v335_v19  ;;  %360 = vst.msk [vmem:[#allocation2 + $0x58] sm:$0xff] %vm26_vm0, %v343_v20 }
  0xfb   :  { %350 = vst.msk [vmem:[#allocation2 + $0x8] sm:$0xff] %vm26_vm0, %v333_v23  ;;  %358 = vst.msk [vmem:[#allocation2 + $0x48] sm:$0xff] %vm26_vm0, %v341_v24 }
  0xfd   :  { %v579_v30 = vpop.f32.mrb[4].mxu0  ;;  %v587_v31 = vpop.f32.mrb[4].mxu1 }
  0xfe   :  { %v338_v34 = vadd.f32 %v579_v30, %v113_v25  ;;  %v346_v35 = vadd.f32 %v587_v31, %v121_v26  ;;  %v285_v36 = vpop.f32.mrb[5].mxu0  ;;  %v317_v37 = vpop.f32.mrb[5].mxu1 }
  0xff   :  { %v370_v40 = vld [vmem:[#allocation2 + $0x10] sm:$0xff]  ;;  %v336_v42 = vadd.f32 %v285_v36, %v111_v27  ;;  %v344_v43 = vadd.f32 %v317_v37, %v119_v28  ;;  %v580_v44 = vpop.f32.mrb[6].mxu0  ;;  %v588_v45 = vpop.f32.mrb[6].mxu1 }
 0x100   :  { %v378_v41 = vld [vmem:[#allocation2 + $0x50] sm:$0xff]  ;;  %v393_v46 = vadd.f32 %v748_v29, %v370_v40  ;;  %v368_v48 = vld [vmem:[#allocation2] sm:$0xff]  ;;  %355 = vst.msk [vmem:[#allocation2 + $0x30] sm:$0xff] %vm26_vm0, %v338_v34  ;;  %363 = vst.msk [vmem:[#allocation2 + $0x70] sm:$0xff] %vm26_vm0, %v346_v35  ;;  %v339_v50 = vadd.f32 %v580_v44, %v114_v32  ;;  %v347_v51 = vadd.f32 %v588_v45, %v122_v33  ;;  %v288_v52 = vpop.f32.mrb[7].mxu0  ;;  %v320_v53 = vpop.f32.mrb[7].mxu1 }
 0x101   :  { %v401_v47 = vadd.f32 %v748_v29, %v378_v41  ;;  %v376_v49 = vld [vmem:[#allocation2 + $0x40] sm:$0xff]  ;;  %v391_v54 = vadd.f32 %v748_v29, %v368_v48  ;;  %v371_v56 = vld [vmem:[#allocation2 + $0x18] sm:$0xff]  ;;  %353 = vst.msk [vmem:[#allocation2 + $0x20] sm:$0xff] %vm26_vm0, %v336_v42  ;;  %361 = vst.msk [vmem:[#allocation2 + $0x60] sm:$0xff] %vm26_vm0, %v344_v43  ;;  %v337_v58 = vadd.f32 %v288_v52, %v112_v38 }
 0x102   :  { %v399_v55 = vadd.f32 %v748_v29, %v376_v49  ;;  %v379_v57 = vld [vmem:[#allocation2 + $0x58] sm:$0xff]  ;;  %v345_v59 = vadd.f32 %v320_v53, %v120_v39  ;;  %v527_v60 = vpack.c.bf16 %v393_v46, %v393_v46  ;;  %v394_v62 = vadd.f32 %v748_v29, %v371_v56  ;;  %v369_v0 = vld [vmem:[#allocation2 + $0x8] sm:$0xff]  ;;  %356 = vst.msk [vmem:[#allocation2 + $0x38] sm:$0xff] %vm26_vm0, %v339_v50 }
 0x103   :  { %v535_v61 = vpack.c.bf16 %v401_v47, %v401_v47  ;;  %v402_v63 = vadd.f32 %v748_v29, %v379_v57  ;;  %v377_v1 = vld [vmem:[#allocation2 + $0x48] sm:$0xff]  ;;  %364 = vst.msk [vmem:[#allocation2 + $0x78] sm:$0xff] %vm26_vm0, %v347_v51  ;;  %v525_v2 = vpack.c.bf16 %v391_v54, %v391_v54  ;;  %v392_v4 = vadd.f32 %v748_v29, %v369_v0 }
 0x104   :  { %v533_v3 = vpack.c.bf16 %v399_v55, %v399_v55  ;;  %v400_v5 = vadd.f32 %v748_v29, %v377_v1  ;;  %354 = vst.msk [vmem:[#allocation2 + $0x28] sm:$0xff] %vm26_vm0, %v337_v58  ;;  %362 = vst.msk [vmem:[#allocation2 + $0x68] sm:$0xff] %vm26_vm0, %v345_v59  ;;  %v528_v6 = vpack.c.bf16 %v394_v62, %v394_v62 }
 0x105   :  { %474 = vst.msk [vmem:[%s843_s5 + $0x8] sm:$0xf] %vm471_vm2, %v527_v60  ;;  %482 = vst.msk [vmem:[%s843_s5 + $0x28] sm:$0xf] %vm471_vm2, %v535_v61  ;;  %v536_v7 = vpack.c.bf16 %v402_v63, %v402_v63  ;;  %v526_v8 = vpack.c.bf16 %v392_v4, %v392_v4 }
 0x106   :  { %472 = vst.msk [vmem:[%s843_s5] sm:$0xf] %vm471_vm2, %v525_v2  ;;  %480 = vst.msk [vmem:[%s843_s5 + $0x20] sm:$0xf] %vm471_vm2, %v533_v3  ;;  %v534_v9 = vpack.c.bf16 %v400_v5, %v400_v5 }
 0x107   :  { %475 = vst.msk [vmem:[%s843_s5 + $0xc] sm:$0xf] %vm471_vm2, %v528_v6  ;;  %483 = vst.msk [vmem:[%s843_s5 + $0x2c] sm:$0xf] %vm471_vm2, %v536_v7  ;;  %v374_v10 = vld [vmem:[#allocation2 + $0x30] sm:$0xff] }
 0x108   :  { %473 = vst.msk [vmem:[%s843_s5 + $0x4] sm:$0xf] %vm471_vm2, %v526_v8  ;;  %481 = vst.msk [vmem:[%s843_s5 + $0x24] sm:$0xf] %vm471_vm2, %v534_v9  ;;  %v382_v11 = vld [vmem:[#allocation2 + $0x70] sm:$0xff]  ;;  %v397_v12 = vadd.f32 %v748_v29, %v374_v10  ;;  %v372_v14 = vld [vmem:[#allocation2 + $0x20] sm:$0xff] }
 0x109   :  { %v405_v13 = vadd.f32 %v748_v29, %v382_v11  ;;  %v380_v15 = vld [vmem:[#allocation2 + $0x60] sm:$0xff]  ;;  %v395_v16 = vadd.f32 %v748_v29, %v372_v14  ;;  %v375_v18 = vld [vmem:[#allocation2 + $0x38] sm:$0xff] }
 0x10a   :  { %v403_v17 = vadd.f32 %v748_v29, %v380_v15  ;;  %v383_v19 = vld [vmem:[#allocation2 + $0x78] sm:$0xff]  ;;  %v531_v20 = vpack.c.bf16 %v397_v12, %v397_v12  ;;  %v398_v22 = vadd.f32 %v748_v29, %v375_v18 }
 0x10b   :  { %v539_v21 = vpack.c.bf16 %v405_v13, %v405_v13  ;;  %v406_v23 = vadd.f32 %v748_v29, %v383_v19  ;;  %v373_v24 = vld [vmem:[#allocation2 + $0x28] sm:$0xff]  ;;  %v529_v26 = vpack.c.bf16 %v395_v16, %v395_v16 }
 0x10c   :  { %v381_v25 = vld [vmem:[#allocation2 + $0x68] sm:$0xff]  ;;  %v537_v27 = vpack.c.bf16 %v403_v17, %v403_v17  ;;  %v396_v28 = vadd.f32 %v748_v29, %v373_v24  ;;  %478 = vst.msk [vmem:[%s843_s5 + $0x18] sm:$0xf] %vm471_vm2, %v531_v20  ;;  %v532_v31 = vpack.c.bf16 %v398_v22, %v398_v22 }
 0x10d   :  { %v404_v30 = vadd.f32 %v748_v29, %v381_v25  ;;  %486 = vst.msk [vmem:[%s843_s5 + $0x38] sm:$0xf] %vm471_vm2, %v539_v21  ;;  %v540_v32 = vpack.c.bf16 %v406_v23, %v406_v23  ;;  %476 = vst.msk [vmem:[%s843_s5 + $0x10] sm:$0xf] %vm471_vm2, %v529_v26 }
 0x10e   :  { %484 = vst.msk [vmem:[%s843_s5 + $0x30] sm:$0xf] %vm471_vm2, %v537_v27  ;;  %v530_v29 = vpack.c.bf16 %v396_v28, %v396_v28  ;;  %479 = vst.msk [vmem:[%s843_s5 + $0x1c] sm:$0xf] %vm471_vm2, %v532_v31 }
 0x10f   :  { %v538_v33 = vpack.c.bf16 %v404_v30, %v404_v30  ;;  %487 = vst.msk [vmem:[%s843_s5 + $0x3c] sm:$0xf] %vm471_vm2, %v540_v32 }
 0x110   :  { %477 = vst.msk [vmem:[%s843_s5 + $0x14] sm:$0xf] %vm471_vm2, %v530_v29 }
 0x111   :  { %485 = vst.msk [vmem:[%s843_s5 + $0x34] sm:$0xf] %vm471_vm2, %v538_v33 }

// kernel: tile.73
= control target key start
LH: loop header
LB: loop body
LE: loop exit
PB: predicated region body
PF: predicated region fallthrough
CT: control target
= control target key end

     0   :  { %s28_s0 = inlined_call_operand.vmem [shape: f32[16], index: 0, kind: input, shape index: {}]   ;;  %s29_s1 = inlined_call_operand.vmem [shape: f32[16,16], index: 1, kind: output, shape index: {}]  }
   0x1   :  { %v4_v0 = vld [vmem:[%s28_s0] ss:$0 sm:$0xff] }
   0x2   :  { %5 = vst [vmem:[%s29_s1] sm:$0xff] %v4_v0  ;;  %8 = vst [vmem:[%s29_s1 + $0x8] sm:$0xff] %v4_v0 }

// kernel: tile.74
= control target key start
LH: loop header
LB: loop body
LE: loop exit
PB: predicated region body
PF: predicated region fallthrough
CT: control target
= control target key end

     0   :  { %s7_s6 = smov 3  ;;  %s21_s9 = smov 3  ;;  %vm4_vm0 = vcmask 130048   ;;  %vm11_vm1 = vcmask 1048448   ;;  %vm18_vm2 = vcmask 917248   ;;  %vm25_vm3 = vcmask 786048   ;;  %s128_s0 = inlined_call_operand.vmem [shape: f32[16,16], index: 0, kind: input, shape index: {}]   ;;  %s129_s1 = inlined_call_operand.vmem [shape: f32[1,256], index: 1, kind: output, shape index: {}]  }
   0x1   :  { %v66_v0 = vld [vmem:[%s128_s0 + $0x7] ss:$8 sm:%s7_s6]   ;;  %s81_s10 = smov 112   ;;  %v68_v1 = vld [vmem:[%s128_s0 + $0x5] ss:$8 sm:%s21_s9]   ;;  %s14_s13 = smov 3 }
   0x2   :  { %9 = vrot.lane.b32.xlu0 %v66_v0, %s81_s10  ;;  %s82_s14 = smov 80   ;;  %v67_v2 = vld [vmem:[%s128_s0 + $0x6] ss:$8 sm:%s14_s13]   ;;  %s28_s17 = smov 3  ;;  %vm32_vm4 = vcmask 654848   ;;  %vm39_vm5 = vcmask 523648  }
   0x3   :  { %23 = vrot.lane.b32.xlu1 %v68_v1, %s82_s14  ;;  %v69_v3 = vld [vmem:[%s128_s0 + $0x4] ss:$8 sm:%s28_s17]   ;;  %s35_s20 = smov 3  ;;  %s42_s21 = smov 3  ;;  %vm46_vm6 = vcmask 392448   ;;  %vm53_vm7 = vcmask 261248  }
   0x4   :  { %s83_s22 = smov 96   ;;  %s84_s23 = smov 64   ;;  %v70_v4 = vld [vmem:[%s128_s0 + $0x3] ss:$8 sm:%s35_s20]   ;;  %v71_v5 = vld [vmem:[%s128_s0 + $0x2] ss:$8 sm:%s42_s21]  }
   0x5   :  { %s2_s26 = smov 3  ;;  %s49_s29 = smov 3 }
   0x6   :  { %16 = vrot.lane.b32.xlu0 %v67_v2, %s83_s22  ;;  %v3_v6 = vld [vmem:[%s128_s0] ss:$8 sm:%s2_s26]   ;;  %s85_s3 = smov 48   ;;  %s86_s4 = smov 32  }
   0x7   :  { %30 = vrot.lane.b32.xlu1 %v69_v3, %s84_s23  ;;  %5 = vst.msk [vmem:[#allocation0] ss:$8 sm:$0x3] %vm4_vm0, %v3_v6   ;;  %v72_v7 = vld [vmem:[%s128_s0 + $0x1] ss:$8 sm:%s49_s29]   ;;  %s87_s0 = smov 16  }
   0xa   :  { %37 = vrot.lane.b32.xlu0 %v70_v4, %s85_s3 }
   0xb   :  { %44 = vrot.lane.b32.xlu1 %v71_v5, %s86_s4 }
   0xe   :  { %51 = vrot.lane.b32.xlu0 %v72_v7, %s87_s0 }
  0x74   :  { %v10_v8 = vpop.permute.xlu0 %9  }
  0x75   :  { %12 = vst.msk [vmem:[#allocation0] ss:$8 sm:$0x3] %vm11_vm1, %v10_v8   ;;  %v24_v9 = vpop.permute.xlu1 %23  }
  0x78   :  { %v17_v10 = vpop.permute.xlu0 %16  }
  0x79   :  { %19 = vst.msk [vmem:[#allocation0] ss:$8 sm:$0x3] %vm18_vm2, %v17_v10   ;;  %v31_v11 = vpop.permute.xlu1 %30  }
  0x7a   :  { %26 = vst.msk [vmem:[#allocation0] ss:$8 sm:$0x3] %vm25_vm3, %v24_v9  }
  0x7b   :  { %33 = vst.msk [vmem:[#allocation0] ss:$8 sm:$0x3] %vm32_vm4, %v31_v11  }
  0x7c   :  { %v38_v12 = vpop.permute.xlu0 %37  }
  0x7d   :  { %40 = vst.msk [vmem:[#allocation0] ss:$8 sm:$0x3] %vm39_vm5, %v38_v12   ;;  %v45_v13 = vpop.permute.xlu1 %44  }
  0x7e   :  { %47 = vst.msk [vmem:[#allocation0] ss:$8 sm:$0x3] %vm46_vm6, %v45_v13  }
  0x80   :  { %v52_v14 = vpop.permute.xlu0 %51  }
  0x81   :  { %54 = vst.msk [vmem:[#allocation0] ss:$8 sm:$0x3] %vm53_vm7, %v52_v14  }
  0x88   :  { %v58_v15 = vld [vmem:[#allocation0] sm:$0x1]  ;;  %v62_v16 = vld [vmem:[#allocation0 + $0x8] sm:$0x1] }
  0x89   :  { %60 = vst [vmem:[%s129_s1] sm:$0x1] %v58_v15  ;;  %73 = vst [vmem:[%s129_s1 + $0x1] sm:$0x1] %v62_v16 }

// kernel: unet_generator.21
= control target key start
LH: loop header
LB: loop body
LE: loop exit
PB: predicated region body
PF: predicated region fallthrough
CT: control target
= control target key end

     0   :  { %vm14_vm0 = vcmask 253952   ;;  %v81_v0 = vmov 0.0   ;;  %vm26_vm1 = vcmask 261120   ;;  %s133_s0 = inlined_call_operand.vmem [shape: bf16[32,32], index: 0, kind: input, shape index: {}]   ;;  %s134_s1 = inlined_call_operand.vmem [shape: f32[1,32], index: 1, kind: output, shape index: {0}]   ;;  %s135_s2 = inlined_call_operand.vmem [shape: f32[1,32], index: 2, kind: output, shape index: {1}]  }
   0x1   :  { %15 = vst.msk [vmem:[%s134_s1] sm:$0x1] %vm14_vm0, %v81_v0  ;;  %v72_v1 = vld [vmem:[%s133_s0] sm:$0xff]   ;;  %v79_v2 = vld [vmem:[%s133_s0 + $0x8] sm:$0xff]   ;;  %16 = vst.msk [vmem:[%s135_s2] sm:$0x1] %vm14_vm0, %v81_v0 }
   0x2   :  { %v73_v3 = vunpack.c.l.bf16 %v72_v1  ;;  %v74_v4 = vunpack.c.h.bf16 %v72_v1  ;;  %v77_v5 = vunpack.c.l.bf16 %v79_v2  ;;  %v78_v6 = vunpack.c.h.bf16 %v79_v2 }
   0x4   :  { %v27_v7 = vsel %vm26_vm1, %v73_v3, 0.0  ;;  %v28_v8 = vsel %vm26_vm1, %v74_v4, 0.0  ;;  %v30_v9 = vsel %vm26_vm1, %v77_v5, 0.0  ;;  %v44_v11 = vmul.f32 %v73_v3, %v73_v3 }
   0x5   :  { %v29_v10 = vadd.f32 %v28_v8, %v27_v7  ;;  %v45_v12 = vmul.f32 %v74_v4, %v74_v4  ;;  %v46_v13 = vmul.f32 %v77_v5, %v77_v5  ;;  %v32_v14 = vsel %vm26_vm1, %v78_v6, 0.0 }
   0x6   :  { %v47_v15 = vmul.f32 %v78_v6, %v78_v6  ;;  %v48_v17 = vsel %vm26_vm1, %v44_v11, 0.0 }
   0x7   :  { %v31_v16 = vadd.f32 %v30_v9, %v29_v10  ;;  %v49_v18 = vsel %vm26_vm1, %v45_v12, 0.0  ;;  %v51_v19 = vsel %vm26_vm1, %v46_v13, 0.0 }
   0x8   :  { %v50_v20 = vadd.f32 %v49_v18, %v48_v17  ;;  %v53_v22 = vsel %vm26_vm1, %v47_v15, 0.0  ;;  %v25_v33 = vld [vmem:[%s134_s1] sm:$0x1] }
   0x9   :  { %v33_v21 = vadd.f32 %v32_v14, %v31_v16  ;;  %v43_v38 = vld [vmem:[%s135_s2] sm:$0x1] }
   0xa   :  { %v52_v23 = vadd.f32 %v51_v19, %v50_v20 }
   0xb   :  { %v34_v24 = vrot.slane %v33_v21, 4 }
   0xc   :  { %v54_v25 = vadd.f32 %v53_v22, %v52_v23 }
   0xd   :  { %v35_v26 = vadd.f32 %v34_v24, %v33_v21 }
   0xe   :  { %v55_v27 = vrot.slane %v54_v25, 4 }
   0xf   :  { %v36_v28 = vrot.slane %v35_v26, 2 }
  0x10   :  { %v56_v29 = vadd.f32 %v55_v27, %v54_v25 }
  0x11   :  { %v37_v30 = vadd.f32 %v36_v28, %v35_v26 }
  0x12   :  { %v57_v31 = vrot.slane %v56_v29, 2 }
  0x13   :  { %v38_v32 = vrot.slane %v37_v30, 1 }
  0x14   :  { %v58_v34 = vadd.f32 %v57_v31, %v56_v29 }
  0x15   :  { %v39_v35 = vadd.f32 %v38_v32, %v37_v30 }
  0x16   :  { %v59_v36 = vrot.slane %v58_v34, 1 }
  0x17   :  { %v40_v37 = vadd.f32 %v39_v35, %v25_v33 }
  0x18   :  { %v60_v39 = vadd.f32 %v59_v36, %v58_v34 }
  0x19   :  { %42 = vst.msk [vmem:[%s134_s1] sm:$0x1] %vm14_vm0, %v40_v37 }
  0x1a   :  { %v61_v40 = vadd.f32 %v60_v39, %v43_v38 }
  0x1c   :  { %62 = vst.msk [vmem:[%s135_s2] sm:$0x1] %vm14_vm0, %v61_v40 }

// kernel: unet_generator.20
= control target key start
LH: loop header
LB: loop body
LE: loop exit
PB: predicated region body
PF: predicated region fallthrough
CT: control target
= control target key end

     0   :  { %v44_v5 = vlaneseq  ;;  %vm25_vm8 = vcmask 261120   ;;  %vm334_vm9 = vcmask 257024   ;;  %s551_s3 = inlined_call_operand.vmem [shape: bf16[1,256,32], index: 3, kind: input, shape index: {}]   ;;  %s552_s0 = inlined_call_operand.vmem [shape: f32[1,256], index: 0, kind: input, shape index: {}]   ;;  %s553_s2 = inlined_call_operand.vmem [shape: bf16[1,32,256], index: 2, kind: input, shape index: {}]   ;;  %s554_s1 = inlined_call_operand.vmem [shape: f32[1,256], index: 1, kind: input, shape index: {}]   ;;  %s555_s4 = inlined_call_operand.vmem [shape: f32[1,32], index: 4, kind: input, shape index: {}]   ;;  %s556_s5 = inlined_call_operand.vmem [shape: bf16[1,32,32], index: 5, kind: output, shape index: {}]  }
   0x1   :  { %v413_v0 = vld [vmem:[%s551_s3 + $0x40] sm:$0xff]   ;;  %v415_v2 = vld [vmem:[%s551_s3 + $0x48] sm:$0xff]   ;;  %v417_v4 = vld [vmem:[%s551_s3 + $0x50] sm:$0xff]  }
   0x2   :  { %v414_v1 = vld [vmem:[%s551_s3] sm:$0xff]   ;;  %368 = vmatprep.subr.bf16.mxu0 %v413_v0  ;;  %396 = vmatprep.subr.bf16.mxu1 %v413_v0  ;;  %v416_v3 = vld [vmem:[%s551_s3 + $0x8] sm:$0xff]   ;;  %v418_v6 = vld [vmem:[%s551_s3 + $0x10] sm:$0xff]   ;;  %v45_v8 = vshrl.u32 %v44_v5, 7 }
   0x3   :  { %369 = vmatpush3.bf16.msra.mxu0 %v414_v1  ;;  %404 = vmatpush3.bf16.msra.mxu1 %v414_v1  ;;  %v419_v7 = vld [vmem:[%s551_s3 + $0x58] sm:$0xff]   ;;  %v421_v10 = vld [vmem:[%s551_s3 + $0x60] sm:$0xff]   ;;  %v423_v14 = vld [vmem:[%s551_s3 + $0x68] sm:$0xff]  }
   0x4   :  { %370 = vmatprep.subr.bf16.mxu0 %v415_v2  ;;  %397 = vmatprep.subr.bf16.mxu1 %v415_v2  ;;  %v420_v9 = vld [vmem:[%s551_s3 + $0x18] sm:$0xff]   ;;  %v46_v11 = vsub.s32 0, %v45_v8  ;;  %v422_v12 = vld [vmem:[%s551_s3 + $0x20] sm:$0xff]   ;;  %v50_v13 = vsub.s32 1, %v45_v8  ;;  %v31_v16 = vld [vmem:[%s553_s2 + $0x8] sm:$0xff] }
   0x5   :  { %v30_v15 = vld [vmem:[%s553_s2] sm:$0xff]  ;;  %v36_v20 = vunpack.c.l.bf16 %v31_v16  ;;  %v37_v21 = vunpack.c.h.bf16 %v31_v16  ;;  %v32_v23 = vld [vmem:[%s553_s2 + $0x10] sm:$0xff]  ;;  %v33_v24 = vld [vmem:[%s553_s2 + $0x18] sm:$0xff] }
   0x6   :  { %v42_v17 = vld [vmem:[%s552_s0] sm:$0x3]  ;;  %v34_v18 = vunpack.c.l.bf16 %v30_v15  ;;  %v35_v19 = vunpack.c.h.bf16 %v30_v15  ;;  %v424_v29 = vld [vmem:[%s551_s3 + $0x28] sm:$0xff]   ;;  %v38_v30 = vunpack.c.l.bf16 %v32_v23  ;;  %v39_v31 = vunpack.c.h.bf16 %v32_v23  ;;  %v425_v34 = vld [vmem:[%s551_s3 + $0x70] sm:$0xff]  }
   0x7   :  { %371 = vmatpush3.bf16.msra.mxu0 %v416_v3  ;;  %405 = vmatpush3.bf16.msra.mxu1 %v416_v3  ;;  %v62_v22 = vld [vmem:[%s554_s1] sm:$0x3]  ;;  %v47_v25 = vrot.slane %v42_v17, %v46_v11  ;;  %v51_v26 = vrot.slane %v42_v17, %v50_v13  ;;  %v40_v32 = vunpack.c.l.bf16 %v33_v24  ;;  %v41_v33 = vunpack.c.h.bf16 %v33_v24  ;;  %v426_v46 = vld [vmem:[%s551_s3 + $0x30] sm:$0xff]   ;;  %v427_v47 = vld [vmem:[%s551_s3 + $0x78] sm:$0xff]  }
   0x8   :  { %372 = vmatprep.subr.bf16.mxu0 %v417_v4  ;;  %398 = vmatprep.subr.bf16.mxu1 %v417_v4  ;;  %v67_v27 = vrot.slane %v62_v22, %v46_v11  ;;  %v71_v28 = vrot.slane %v62_v22, %v50_v13  ;;  %v428_v57 = vld [vmem:[%s551_s3 + $0x38] sm:$0xff]  }
   0x9   :  { %v55_v35 = vmul.f32 %v51_v26, %v35_v19  ;;  %v57_v36 = vmul.f32 %v51_v26, %v37_v21  ;;  %v54_v37 = vmul.f32 %v47_v25, %v34_v18  ;;  %v59_v38 = vmul.f32 %v51_v26, %v39_v31  ;;  %v359_v31 = vld [vmem:[%s555_s4] ss:$0 sm:$0xff] }
   0xa   :  { %v61_v39 = vmul.f32 %v51_v26, %v41_v33  ;;  %v56_v40 = vmul.f32 %v47_v25, %v36_v20  ;;  %v58_v41 = vmul.f32 %v47_v25, %v38_v30  ;;  %v60_v45 = vmul.f32 %v47_v25, %v40_v32 }
   0xb   :  { %373 = vmatpush3.bf16.msra.mxu0 %v418_v6  ;;  %406 = vmatpush3.bf16.msra.mxu1 %v418_v6  ;;  %v75_v42 = vadd.f32 %v71_v28, %v55_v35  ;;  %v77_v43 = vadd.f32 %v71_v28, %v57_v36  ;;  %v74_v44 = vadd.f32 %v67_v27, %v54_v37 }
   0xc   :  { %374 = vmatprep.subr.bf16.mxu0 %v419_v7  ;;  %399 = vmatprep.subr.bf16.mxu1 %v419_v7  ;;  %v79_v48 = vadd.f32 %v71_v28, %v59_v38  ;;  %v81_v49 = vadd.f32 %v71_v28, %v61_v39  ;;  %v76_v50 = vadd.f32 %v67_v27, %v56_v40 }
   0xd   :  { %vm83_vm0 = vcmp.gt.f32.partialorder %v75_v42, 0.0  ;;  %vm85_vm1 = vcmp.gt.f32.partialorder %v77_v43, 0.0  ;;  %v91_v51 = vmul.f32 0.2, %v75_v42  ;;  %v93_v52 = vmul.f32 0.2, %v77_v43 }
   0xe   :  { %vm87_vm2 = vcmp.gt.f32.partialorder %v79_v48, 0.0  ;;  %vm89_vm3 = vcmp.gt.f32.partialorder %v81_v49, 0.0  ;;  %v95_v53 = vmul.f32 0.2, %v79_v48  ;;  %v97_v54 = vmul.f32 0.2, %v81_v49 }
   0xf   :  { %375 = vmatpush3.bf16.msra.mxu0 %v420_v9  ;;  %407 = vmatpush3.bf16.msra.mxu1 %v420_v9  ;;  %v99_v55 = vsel %vm83_vm0, %v75_v42, %v91_v51  ;;  %v101_v56 = vsel %vm85_vm1, %v77_v43, %v93_v52  ;;  %vm82_vm4 = vcmp.gt.f32.partialorder %v74_v44, 0.0  ;;  %vm84_vm5 = vcmp.gt.f32.partialorder %v76_v50, 0.0 }
  0x10   :  { %376 = vmatprep.subr.bf16.mxu0 %v421_v10  ;;  %400 = vmatprep.subr.bf16.mxu1 %v421_v10  ;;  %v107_v58 = vpack.c.bf16 %v101_v56, %v99_v55  ;;  %v103_v59 = vsel %vm87_vm2, %v79_v48, %v95_v53  ;;  %v105_v60 = vsel %vm89_vm3, %v81_v49, %v97_v54  ;;  %v90_v61 = vmul.f32 0.2, %v74_v44 }
  0x11   :  { %v109_v62 = vpack.c.bf16 %v105_v60, %v103_v59  ;;  %v92_v63 = vmul.f32 0.2, %v76_v50  ;;  %v78_v0 = vadd.f32 %v67_v27, %v58_v41  ;;  %v80_v1 = vadd.f32 %v67_v27, %v60_v45 }
  0x12   :  { %274 = vmatprep.mubr.bf16.mxu0 %v107_v58  ;;  %v98_v2 = vsel %vm82_vm4, %v74_v44, %v90_v61  ;;  %v429_v10 = vmov 0.0  }
  0x13   :  { %377 = vmatpush3.bf16.msra.mxu0 %v422_v12  ;;  %408 = vmatpush3.bf16.msra.mxu1 %v422_v12  ;;  %v100_v3 = vsel %vm84_vm5, %v76_v50, %v92_v63  ;;  %vm86_vm6 = vcmp.gt.f32.partialorder %v78_v0, 0.0  ;;  %vm88_vm7 = vcmp.gt.f32.partialorder %v80_v1, 0.0  ;;  %v94_v4 = vmul.f32 0.2, %v78_v0  ;;  %26 = vst.msk [vmem:[#allocation2] sm:$0xff] %vm25_vm8, %v429_v10  ;;  %27 = vst.msk [vmem:[#allocation2 + $0x8] sm:$0xff] %vm25_vm8, %v429_v10 }
  0x14   :  { %378 = vmatprep.subr.bf16.mxu0 %v423_v14  ;;  %401 = vmatprep.subr.bf16.mxu1 %v423_v14  ;;  %v106_v5 = vpack.c.bf16 %v100_v3, %v98_v2  ;;  %v96_v6 = vmul.f32 0.2, %v80_v1  ;;  %28 = vst.msk [vmem:[#allocation2 + $0x10] sm:$0xff] %vm25_vm8, %v429_v10  ;;  %29 = vst.msk [vmem:[#allocation2 + $0x18] sm:$0xff] %vm25_vm8, %v429_v10 }
  0x15   :  { %282 = vmatprep.mubr.bf16.mxu1 %v109_v62  ;;  %v102_v7 = vsel %vm86_vm6, %v78_v0, %v94_v4 }
  0x16   :  { %v104_v8 = vsel %vm88_vm7, %v80_v1, %v96_v6 }
  0x17   :  { %379 = vmatpush3.bf16.msra.mxu0 %v424_v29  ;;  %409 = vmatpush3.bf16.msra.mxu1 %v424_v29  ;;  %v108_v9 = vpack.c.bf16 %v104_v8, %v102_v7 }
  0x18   :  { %380 = vmatprep.subr.bf16.mxu0 %v425_v34  ;;  %402 = vmatprep.subr.bf16.mxu1 %v425_v34 }
  0x1a   :  { %v110_v12 = vld [vmem:[#allocation2] sm:$0xff]  ;;  %v111_v19 = vld [vmem:[#allocation2 + $0x8] sm:$0xff] }
  0x1b   :  { %381 = vmatpush3.bf16.msra.mxu0 %v426_v46  ;;  %410 = vmatpush3.bf16.msra.mxu1 %v426_v46  ;;  %v112_v17 = vld [vmem:[#allocation2 + $0x10] sm:$0xff]  ;;  %v113_v25 = vld [vmem:[#allocation2 + $0x18] sm:$0xff] }
  0x1c   :  { %382 = vmatprep.subr.bf16.mxu0 %v427_v47  ;;  %403 = vmatprep.subr.bf16.mxu1 %v427_v47 }
  0x1f   :  { %383 = vmatpush3.bf16.msra.mxu0 %v428_v57  ;;  %411 = vmatpush3.bf16.msra.mxu1 %v428_v57 }
  0x22   :  { %275 = vmatmul.mubr.bf16.vlgmr.msra.gmra.mrb[0].mxu0 %v106_v5  ;;  %283 = vmatmul.mubr.bf16.vlgmr.msra.gmra.mrb[0].mxu1 %v108_v9 }
  0xf5   :  { %v384_v11 = vpop.f32.mrb[0].mxu0  ;;  %v390_v14 = vpop.f32.mrb[0].mxu1 }
  0xf6   :  { %v385_v13 = vpop.f32.mrb[1].mxu0  ;;  %v391_v18 = vpop.f32.mrb[1].mxu1 }
  0xf7   :  { %v386_v15 = vadd.f32 %v385_v13, %v384_v11  ;;  %v387_v16 = vpop.f32.mrb[2].mxu0  ;;  %v392_v22 = vadd.f32 %v391_v18, %v390_v14  ;;  %v393_v23 = vpop.f32.mrb[2].mxu1 }
  0xf8   :  { %v388_v20 = vpop.f32.mrb[3].mxu0  ;;  %v394_v26 = vpop.f32.mrb[3].mxu1 }
  0xf9   :  { %v291_v21 = vadd.f32 %v386_v15, %v110_v12  ;;  %v389_v24 = vadd.f32 %v388_v20, %v387_v16  ;;  %v293_v27 = vadd.f32 %v392_v22, %v112_v17  ;;  %v395_v29 = vadd.f32 %v394_v26, %v393_v23 }
  0xfb   :  { %296 = vst.msk [vmem:[#allocation2] sm:$0xff] %vm25_vm8, %v291_v21  ;;  %v292_v28 = vadd.f32 %v389_v24, %v111_v19  ;;  %298 = vst.msk [vmem:[#allocation2 + $0x10] sm:$0xff] %vm25_vm8, %v293_v27  ;;  %v294_v30 = vadd.f32 %v395_v29, %v113_v25 }
  0xfd   :  { %297 = vst.msk [vmem:[#allocation2 + $0x8] sm:$0xff] %vm25_vm8, %v292_v28  ;;  %299 = vst.msk [vmem:[#allocation2 + $0x18] sm:$0xff] %vm25_vm8, %v294_v30 }
 0x102   :  { %v303_v32 = vld [vmem:[#allocation2] sm:$0xff]  ;;  %v305_v34 = vld [vmem:[#allocation2 + $0x10] sm:$0xff] }
 0x103   :  { %v314_v33 = vadd.f32 %v359_v31, %v303_v32  ;;  %v316_v37 = vadd.f32 %v359_v31, %v305_v34 }
 0x104   :  { %v304_v35 = vld [vmem:[#allocation2 + $0x8] sm:$0xff]  ;;  %v306_v39 = vld [vmem:[#allocation2 + $0x18] sm:$0xff] }
 0x105   :  { %v364_v36 = vpack.c.bf16 %v314_v33, %v314_v33  ;;  %v315_v38 = vadd.f32 %v359_v31, %v304_v35  ;;  %v366_v40 = vpack.c.bf16 %v316_v37, %v316_v37  ;;  %v317_v42 = vadd.f32 %v359_v31, %v306_v39 }
 0x107   :  { %335 = vst.msk [vmem:[%s556_s5] sm:$0xf] %vm334_vm9, %v364_v36  ;;  %v365_v41 = vpack.c.bf16 %v315_v38, %v315_v38  ;;  %337 = vst.msk [vmem:[%s556_s5 + $0x8] sm:$0xf] %vm334_vm9, %v366_v40  ;;  %v367_v43 = vpack.c.bf16 %v317_v42, %v317_v42 }
 0x109   :  { %336 = vst.msk [vmem:[%s556_s5 + $0x4] sm:$0xf] %vm334_vm9, %v365_v41  ;;  %338 = vst.msk [vmem:[%s556_s5 + $0xc] sm:$0xf] %vm334_vm9, %v367_v43 }

// kernel: tile.83
= control target key start
LH: loop header
LB: loop body
LE: loop exit
PB: predicated region body
PF: predicated region fallthrough
CT: control target
= control target key end

     0   :  { %s28_s0 = inlined_call_operand.vmem [shape: f32[32], index: 0, kind: input, shape index: {}]   ;;  %s29_s1 = inlined_call_operand.vmem [shape: f32[16,32], index: 1, kind: output, shape index: {}]  }
   0x1   :  { %v4_v0 = vld [vmem:[%s28_s0] ss:$0 sm:$0xff] }
   0x2   :  { %5 = vst [vmem:[%s29_s1] sm:$0xff] %v4_v0  ;;  %8 = vst [vmem:[%s29_s1 + $0x8] sm:$0xff] %v4_v0 }

// kernel: tile.84
= control target key start
LH: loop header
LB: loop body
LE: loop exit
PB: predicated region body
PF: predicated region fallthrough
CT: control target
= control target key end

     0   :  { %s57_s8 = smov 96   ;;  %vm3_vm0 = vcmask 261120   ;;  %s59_s15 = smov 64   ;;  %vm9_vm1 = vcmask 1048320   ;;  %vm15_vm2 = vcmask 785920   ;;  %vm21_vm3 = vcmask 523520   ;;  %s94_s0 = inlined_call_operand.vmem [shape: f32[16,32], index: 0, kind: input, shape index: {}]   ;;  %s95_s1 = inlined_call_operand.vmem [shape: f32[1,512], index: 1, kind: output, shape index: {}]  }
   0x1   :  { %v48_v0 = vld [vmem:[%s94_s0 + $0x3] ss:$4 sm:$0xf]   ;;  %v49_v1 = vld [vmem:[%s94_s0 + $0x2] ss:$4 sm:$0xf]  }
   0x2   :  { %7 = vrot.lane.b32.xlu0 %v48_v0, %s57_s8  ;;  %v50_v2 = vld [vmem:[%s94_s0 + $0x1] ss:$4 sm:$0xf]   ;;  %v2_v3 = vld [vmem:[%s94_s0] ss:$4 sm:$0xf]  }
   0x3   :  { %s58_s0 = smov 32   ;;  %4 = vst.msk [vmem:[#allocation0] ss:$8 sm:$0xf] %vm3_vm0, %v2_v3  }
   0x4   :  { %19 = vrot.lane.b32.xlu1 %v50_v2, %s58_s0 }
   0x6   :  { %13 = vrot.lane.b32.xlu0 %v49_v1, %s59_s15 }
  0x74   :  { %v8_v4 = vpop.permute.xlu0 %7  }
  0x75   :  { %10 = vst.msk [vmem:[#allocation0] ss:$8 sm:$0xf] %vm9_vm1, %v8_v4  }
  0x76   :  { %v20_v5 = vpop.permute.xlu1 %19  }
  0x78   :  { %v14_v6 = vpop.permute.xlu0 %13  }
  0x79   :  { %16 = vst.msk [vmem:[#allocation0] ss:$8 sm:$0xf] %vm15_vm2, %v14_v6  }
  0x7a   :  { %22 = vst.msk [vmem:[#allocation0] ss:$8 sm:$0xf] %vm21_vm3, %v20_v5  }
  0x81   :  { %v26_v7 = vld [vmem:[#allocation0] sm:$0x1]  ;;  %v30_v8 = vld [vmem:[#allocation0 + $0x8] sm:$0x1]  ;;  %v35_v9 = vld [vmem:[#allocation0 + $0x10] sm:$0x1] }
  0x82   :  { %28 = vst [vmem:[%s95_s1] sm:$0x1] %v26_v7  ;;  %51 = vst [vmem:[%s95_s1 + $0x1] sm:$0x1] %v30_v8  ;;  %v41_v10 = vld [vmem:[#allocation0 + $0x18] sm:$0x1] }
  0x83   :  { %52 = vst [vmem:[%s95_s1 + $0x2] sm:$0x1] %v35_v9  ;;  %53 = vst [vmem:[%s95_s1 + $0x3] sm:$0x1] %v41_v10 }

// kernel: tile.93
= control target key start
LH: loop header
LB: loop body
LE: loop exit
PB: predicated region body
PF: predicated region fallthrough
CT: control target
= control target key end

     0   :  { %s28_s0 = inlined_call_operand.vmem [shape: f32[64], index: 0, kind: input, shape index: {}]   ;;  %s29_s1 = inlined_call_operand.vmem [shape: f32[16,64], index: 1, kind: output, shape index: {}]  }
   0x1   :  { %v4_v0 = vld [vmem:[%s28_s0] ss:$0 sm:$0xff] }
   0x2   :  { %5 = vst [vmem:[%s29_s1] sm:$0xff] %v4_v0  ;;  %8 = vst [vmem:[%s29_s1 + $0x8] sm:$0xff] %v4_v0 }

// kernel: tile.94
= control target key start
LH: loop header
LB: loop body
LE: loop exit
PB: predicated region body
PF: predicated region fallthrough
CT: control target
= control target key end

     0   :  { %vm3_vm0 = vcmask 523264   ;;  %vm10_vm1 = vcmask 1048064   ;;  %s116_s0 = inlined_call_operand.vmem [shape: f32[16,64], index: 0, kind: input, shape index: {}]   ;;  %s117_s1 = inlined_call_operand.vmem [shape: f32[1,1024], index: 1, kind: output, shape index: {}]  }
   0x1   :  { %v66_v0 = vld [vmem:[%s116_s0 + $0x1] ss:$2 sm:$0xff]   ;;  %v2_v1 = vld [vmem:[%s116_s0] ss:$2 sm:$0xff]   ;;  %s75_s0 = smov 64  }
   0x2   :  { %8 = vrot.lane.b32.xlu0 %v66_v0, %s75_s0  ;;  %4 = vst.msk [vmem:[#allocation0] ss:$8 sm:$0xf] %vm3_vm0, %v2_v1   ;;  %5 = vst.msk [vmem:[#allocation0] ss:$8 sm:$0xf0] %vm3_vm0, %v2_v1  }
  0x74   :  { %v9_v2 = vpop.permute.xlu0 %8  }
  0x75   :  { %11 = vst.msk [vmem:[#allocation0] ss:$8 sm:$0xf] %vm10_vm1, %v9_v2   ;;  %12 = vst.msk [vmem:[#allocation0] ss:$8 sm:$0xf0] %vm10_vm1, %v9_v2  }
  0x7c   :  { %v16_v3 = vld [vmem:[#allocation0] sm:$0x1]  ;;  %v20_v4 = vld [vmem:[#allocation0 + $0x8] sm:$0x1]  ;;  %v25_v5 = vld [vmem:[#allocation0 + $0x10] sm:$0x1] }
  0x7d   :  { %18 = vst [vmem:[%s117_s1] sm:$0x1] %v16_v3  ;;  %67 = vst [vmem:[%s117_s1 + $0x1] sm:$0x1] %v20_v4  ;;  %v31_v6 = vld [vmem:[#allocation0 + $0x18] sm:$0x1] }
  0x7e   :  { %68 = vst [vmem:[%s117_s1 + $0x2] sm:$0x1] %v25_v5  ;;  %v37_v7 = vld [vmem:[#allocation0 + $0x20] sm:$0x1]  ;;  %v43_v8 = vld [vmem:[#allocation0 + $0x28] sm:$0x1] }
  0x7f   :  { %69 = vst [vmem:[%s117_s1 + $0x3] sm:$0x1] %v31_v6  ;;  %70 = vst [vmem:[%s117_s1 + $0x4] sm:$0x1] %v37_v7  ;;  %v49_v9 = vld [vmem:[#allocation0 + $0x30] sm:$0x1] }
  0x80   :  { %71 = vst [vmem:[%s117_s1 + $0x5] sm:$0x1] %v43_v8  ;;  %v55_v10 = vld [vmem:[#allocation0 + $0x38] sm:$0x1]  ;;  %72 = vst [vmem:[%s117_s1 + $0x6] sm:$0x1] %v49_v9 }
  0x81   :  { %73 = vst [vmem:[%s117_s1 + $0x7] sm:$0x1] %v55_v10 }

// kernel: unet_generator.23
= control target key start
LH: loop header
LB: loop body
LE: loop exit
PB: predicated region body
PF: predicated region fallthrough
CT: control target
= control target key end

     0   :  { %vm14_vm0 = vcmask 516096   ;;  %v51_v0 = vmov 0.0   ;;  %vm20_vm1 = vcmask 523264   ;;  %s92_s0 = inlined_call_operand.vmem [shape: bf16[8,64], index: 0, kind: input, shape index: {}]   ;;  %s93_s1 = inlined_call_operand.vmem [shape: f32[1,64], index: 1, kind: output, shape index: {0}]   ;;  %s94_s2 = inlined_call_operand.vmem [shape: f32[1,64], index: 2, kind: output, shape index: {1}]  }
   0x1   :  { %15 = vst.msk [vmem:[%s93_s1] sm:$0x1] %vm14_vm0, %v51_v0  ;;  %v17_v1 = vld [vmem:[%s92_s0] sm:$0xf]  ;;  %16 = vst.msk [vmem:[%s94_s2] sm:$0x1] %vm14_vm0, %v51_v0 }
   0x2   :  { %v18_v2 = vunpack.c.l.bf16 %v17_v1 }
   0x4   :  { %v21_v3 = vsel %vm20_vm1, %v18_v2, 0.0  ;;  %v32_v4 = vmul.f32 %v18_v2, %v18_v2 }
   0x5   :  { %v22_v5 = vrot.slane %v21_v3, 4 }
   0x6   :  { %v33_v6 = vsel %vm20_vm1, %v32_v4, 0.0 }
   0x7   :  { %v23_v7 = vadd.f32 %v22_v5, %v21_v3  ;;  %v34_v8 = vrot.slane %v33_v6, 4 }
   0x8   :  { %v19_v15 = vld [vmem:[%s93_s1] sm:$0x1] }
   0x9   :  { %v24_v9 = vrot.slane %v23_v7, 2  ;;  %v35_v10 = vadd.f32 %v34_v8, %v33_v6  ;;  %v31_v18 = vld [vmem:[%s94_s2] sm:$0x1] }
   0xb   :  { %v25_v11 = vadd.f32 %v24_v9, %v23_v7  ;;  %v36_v12 = vrot.slane %v35_v10, 2 }
   0xd   :  { %v26_v13 = vrot.slane %v25_v11, 1  ;;  %v37_v14 = vadd.f32 %v36_v12, %v35_v10 }
   0xf   :  { %v27_v16 = vadd.f32 %v26_v13, %v25_v11  ;;  %v38_v17 = vrot.slane %v37_v14, 1 }
  0x11   :  { %v28_v19 = vadd.f32 %v27_v16, %v19_v15  ;;  %v39_v20 = vadd.f32 %v38_v17, %v37_v14 }
  0x13   :  { %30 = vst.msk [vmem:[%s93_s1] sm:$0x1] %vm14_vm0, %v28_v19  ;;  %v40_v21 = vadd.f32 %v39_v20, %v31_v18 }
  0x15   :  { %41 = vst.msk [vmem:[%s94_s2] sm:$0x1] %vm14_vm0, %v40_v21 }

// kernel: unet_generator.22
= control target key start
LH: loop header
LB: loop body
LE: loop exit
PB: predicated region body
PF: predicated region fallthrough
CT: control target
= control target key end

     0   :  { %v35_v21 = vlaneseq  ;;  %vm25_vm4 = vcmask 523264   ;;  %vm454_vm5 = vcmask 519168   ;;  %s717_s3 = inlined_call_operand.vmem [shape: bf16[1,512,64], index: 3, kind: input, shape index: {}]   ;;  %s718_s0 = inlined_call_operand.vmem [shape: f32[1,512], index: 0, kind: input, shape index: {}]   ;;  %s719_s1 = inlined_call_operand.vmem [shape: f32[1,512], index: 1, kind: input, shape index: {}]   ;;  %s720_s2 = inlined_call_operand.vmem [shape: bf16[1,8,512], index: 2, kind: input, shape index: {}]   ;;  %s721_s4 = inlined_call_operand.vmem [shape: f32[1,64], index: 4, kind: input, shape index: {}]   ;;  %s722_s5 = inlined_call_operand.vmem [shape: bf16[1,8,64], index: 5, kind: output, shape index: {}]  }
   0x1   :  { %v538_v0 = vld [vmem:[%s717_s3 + $0x40] sm:$0xff]   ;;  %v542_v4 = vld [vmem:[%s717_s3 + $0x48] sm:$0xff]   ;;  %v546_v8 = vld [vmem:[%s717_s3 + $0x50] sm:$0xff]  }
   0x2   :  { %v539_v1 = vld [vmem:[%s717_s3 + $0xc0] sm:$0xff]   ;;  %493 = vmatprep.subr.bf16.mxu0 %v538_v0  ;;  %v543_v5 = vld [vmem:[%s717_s3 + $0xc8] sm:$0xff]   ;;  %v547_v9 = vld [vmem:[%s717_s3 + $0xd0] sm:$0xff]   ;;  %v36_v26 = vshrl.u32 %v35_v21, 7 }
   0x3   :  { %v540_v2 = vld [vmem:[%s717_s3] sm:$0xff]   ;;  %515 = vmatprep.subr.bf16.mxu1 %v539_v1  ;;  %v544_v6 = vld [vmem:[%s717_s3 + $0x8] sm:$0xff]   ;;  %v548_v10 = vld [vmem:[%s717_s3 + $0x10] sm:$0xff]  }
   0x4   :  { %v541_v3 = vld [vmem:[%s717_s3 + $0x80] sm:$0xff]   ;;  %494 = vmatpush3.bf16.msra.mxu0 %v540_v2  ;;  %v545_v7 = vld [vmem:[%s717_s3 + $0x88] sm:$0xff]   ;;  %v549_v11 = vld [vmem:[%s717_s3 + $0x90] sm:$0xff]   ;;  %v41_v31 = vsub.s32 1, %v36_v26  ;;  %v49_v33 = vsub.s32 3, %v36_v26  ;;  %v37_v35 = vsub.s32 0, %v36_v26 }
   0x5   :  { %516 = vmatpush3.bf16.msra.mxu1 %v541_v3  ;;  %495 = vmatprep.subr.bf16.mxu0 %v542_v4  ;;  %v550_v12 = vld [vmem:[%s717_s3 + $0x58] sm:$0xff]   ;;  %v554_v16 = vld [vmem:[%s717_s3 + $0x60] sm:$0xff]   ;;  %v558_v20 = vld [vmem:[%s717_s3 + $0x68] sm:$0xff]   ;;  %v45_v37 = vsub.s32 2, %v36_v26 }
   0x6   :  { %517 = vmatprep.subr.bf16.mxu1 %v543_v5  ;;  %v551_v13 = vld [vmem:[%s717_s3 + $0xd8] sm:$0xff]   ;;  %v555_v17 = vld [vmem:[%s717_s3 + $0xe0] sm:$0xff]   ;;  %v559_v22 = vld [vmem:[%s717_s3 + $0xe8] sm:$0xff]  }
   0x7   :  { %v552_v14 = vld [vmem:[%s717_s3 + $0x18] sm:$0xff]   ;;  %v556_v18 = vld [vmem:[%s717_s3 + $0x20] sm:$0xff]   ;;  %v560_v23 = vld [vmem:[%s717_s3 + $0x28] sm:$0xff]  }
   0x8   :  { %496 = vmatpush3.bf16.msra.mxu0 %v544_v6  ;;  %v553_v15 = vld [vmem:[%s717_s3 + $0x98] sm:$0xff]   ;;  %v557_v19 = vld [vmem:[%s717_s3 + $0xa0] sm:$0xff]   ;;  %v561_v24 = vld [vmem:[%s717_s3 + $0xa8] sm:$0xff]  }
   0x9   :  { %518 = vmatpush3.bf16.msra.mxu1 %v545_v7  ;;  %497 = vmatprep.subr.bf16.mxu0 %v546_v8  ;;  %v562_v25 = vld [vmem:[%s717_s3 + $0x70] sm:$0xff]   ;;  %v566_v30 = vld [vmem:[%s717_s3 + $0x78] sm:$0xff]   ;;  %v27_v38 = vld [vmem:[%s720_s2] sm:$0xff] }
   0xa   :  { %519 = vmatprep.subr.bf16.mxu1 %v547_v9  ;;  %v563_v27 = vld [vmem:[%s717_s3 + $0xf0] sm:$0xff]   ;;  %v567_v32 = vld [vmem:[%s717_s3 + $0xf8] sm:$0xff]   ;;  %v33_v39 = vld [vmem:[%s718_s0] sm:$0xf]  ;;  %v29_v41 = vunpack.c.l.bf16 %v27_v38  ;;  %v30_v42 = vunpack.c.h.bf16 %v27_v38 }
   0xb   :  { %v564_v28 = vld [vmem:[%s717_s3 + $0x30] sm:$0xff]   ;;  %v568_v34 = vld [vmem:[%s717_s3 + $0x38] sm:$0xff]   ;;  %v59_v40 = vld [vmem:[%s719_s1] sm:$0xf]  ;;  %v42_v43 = vrot.slane %v33_v39, %v41_v31  ;;  %v50_v48 = vrot.slane %v33_v39, %v49_v33  ;;  %v38_v51 = vrot.slane %v33_v39, %v37_v35  ;;  %v46_v53 = vrot.slane %v33_v39, %v45_v37 }
   0xc   :  { %498 = vmatpush3.bf16.msra.mxu0 %v548_v10  ;;  %v565_v29 = vld [vmem:[%s717_s3 + $0xb0] sm:$0xff]   ;;  %v569_v36 = vld [vmem:[%s717_s3 + $0xb8] sm:$0xff]   ;;  %v68_v44 = vrot.slane %v59_v40, %v41_v31  ;;  %v28_v45 = vld [vmem:[%s720_s2 + $0x8] sm:$0xff]  ;;  %v76_v49 = vrot.slane %v59_v40, %v49_v33  ;;  %v64_v52 = vrot.slane %v59_v40, %v37_v35  ;;  %v72_v55 = vrot.slane %v59_v40, %v45_v37 }
   0xd   :  { %520 = vmatpush3.bf16.msra.mxu1 %v549_v11  ;;  %499 = vmatprep.subr.bf16.mxu0 %v550_v12  ;;  %v31_v46 = vunpack.c.l.bf16 %v28_v45  ;;  %v32_v47 = vunpack.c.h.bf16 %v28_v45  ;;  %v56_v50 = vmul.f32 %v42_v43, %v30_v42  ;;  %v55_v57 = vmul.f32 %v38_v51, %v29_v41 }
   0xe   :  { %521 = vmatprep.subr.bf16.mxu1 %v551_v13  ;;  %v570_v10 = vmov 0.0  }
   0xf   :  { %v58_v54 = vmul.f32 %v50_v48, %v32_v47  ;;  %v82_v56 = vadd.f32 %v68_v44, %v56_v50  ;;  %v57_v58 = vmul.f32 %v46_v53, %v31_v46  ;;  %v81_v61 = vadd.f32 %v64_v52, %v55_v57  ;;  %26 = vst.msk [vmem:[#allocation2] sm:$0xff] %vm25_vm4, %v570_v10 }
  0x10   :  { %500 = vmatpush3.bf16.msra.mxu0 %v552_v14 }
  0x11   :  { %522 = vmatpush3.bf16.msra.mxu1 %v553_v15  ;;  %501 = vmatprep.subr.bf16.mxu0 %v554_v16  ;;  %v84_v59 = vadd.f32 %v76_v49, %v58_v54  ;;  %vm86_vm0 = vcmp.gt.f32.partialorder %v82_v56, 0.0  ;;  %v90_v60 = vmul.f32 0.2, %v82_v56  ;;  %v83_v62 = vadd.f32 %v72_v55, %v57_v58 }
  0x12   :  { %523 = vmatprep.subr.bf16.mxu1 %v555_v17  ;;  %vm85_vm2 = vcmp.gt.f32.partialorder %v81_v61, 0.0  ;;  %v89_v1 = vmul.f32 0.2, %v81_v61 }
  0x13   :  { %vm88_vm1 = vcmp.gt.f32.partialorder %v84_v59, 0.0  ;;  %v92_v63 = vmul.f32 0.2, %v84_v59  ;;  %v94_v0 = vsel %vm86_vm0, %v82_v56, %v90_v60  ;;  %vm87_vm3 = vcmp.gt.f32.partialorder %v83_v62, 0.0 }
  0x14   :  { %502 = vmatpush3.bf16.msra.mxu0 %v556_v18  ;;  %v98_v2 = vpack.c.bf16 %v94_v0, %v94_v0  ;;  %v91_v4 = vmul.f32 0.2, %v83_v62  ;;  %v93_v6 = vsel %vm85_vm2, %v81_v61, %v89_v1 }
  0x15   :  { %524 = vmatpush3.bf16.msra.mxu1 %v557_v19  ;;  %503 = vmatprep.subr.bf16.mxu0 %v558_v20  ;;  %v96_v3 = vsel %vm88_vm1, %v84_v59, %v92_v63  ;;  %v97_v7 = vpack.c.bf16 %v93_v6, %v93_v6 }
  0x16   :  { %525 = vmatprep.subr.bf16.mxu1 %v559_v22  ;;  %v100_v5 = vpack.c.bf16 %v96_v3, %v96_v3  ;;  %390 = vmatprep.mubr.bf16.mxu0 %v98_v2  ;;  %v95_v8 = vsel %vm87_vm3, %v83_v62, %v91_v4  ;;  %v101_v20 = vld [vmem:[#allocation2] sm:$0xff] }
  0x17   :  { %v99_v9 = vpack.c.bf16 %v95_v8, %v95_v8 }
  0x18   :  { %504 = vmatpush3.bf16.msra.mxu0 %v560_v23  ;;  %430 = vmatprep.mubr.bf16.mxu1 %v100_v5 }
  0x19   :  { %526 = vmatpush3.bf16.msra.mxu1 %v561_v24  ;;  %505 = vmatprep.subr.bf16.mxu0 %v562_v25  ;;  %v492_v24 = vld [vmem:[%s721_s4] ss:$0 sm:$0xff] }
  0x1a   :  { %527 = vmatprep.subr.bf16.mxu1 %v563_v27 }
  0x1c   :  { %506 = vmatpush3.bf16.msra.mxu0 %v564_v28 }
  0x1d   :  { %528 = vmatpush3.bf16.msra.mxu1 %v565_v29  ;;  %507 = vmatprep.subr.bf16.mxu0 %v566_v30 }
  0x1e   :  { %529 = vmatprep.subr.bf16.mxu1 %v567_v32 }
  0x20   :  { %508 = vmatpush3.bf16.msra.mxu0 %v568_v34 }
  0x21   :  { %530 = vmatpush3.bf16.msra.mxu1 %v569_v36 }
  0x23   :  { %391 = vmatmul.mubr.bf16.vlgmr.msra.gmra.mrb[0].mxu0 %v97_v7 }
  0x24   :  { %431 = vmatmul.mubr.bf16.vlgmr.msra.gmra.mrb[0].mxu1 %v99_v9 }
  0xf6   :  { %v509_v11 = vpop.f32.mrb[0].mxu0 }
  0xf7   :  { %v531_v12 = vpop.f32.mrb[0].mxu1  ;;  %v510_v13 = vpop.f32.mrb[1].mxu0 }
  0xf8   :  { %v511_v14 = vadd.f32 %v510_v13, %v509_v11  ;;  %v532_v15 = vpop.f32.mrb[1].mxu1  ;;  %v512_v16 = vpop.f32.mrb[2].mxu0 }
  0xf9   :  { %v533_v17 = vadd.f32 %v532_v15, %v531_v12  ;;  %v534_v18 = vpop.f32.mrb[2].mxu1  ;;  %v513_v19 = vpop.f32.mrb[3].mxu0 }
  0xfa   :  { %v535_v21 = vpop.f32.mrb[3].mxu1 }
  0xfb   :  { %v433_v22 = vadd.f32 %v533_v17, %v511_v14 }
  0xfd   :  { %v438_v23 = vadd.f32 %v433_v22, %v101_v20 }
  0xff   :  { %440 = vst.msk [vmem:[#allocation2] sm:$0xff] %vm25_vm4, %v438_v23 }
 0x106   :  { %v444_v25 = vld [vmem:[#allocation2] sm:$0xff] }
 0x107   :  { %v452_v26 = vadd.f32 %v492_v24, %v444_v25 }
 0x109   :  { %v453_v27 = vpack.c.bf16 %v452_v26, %v452_v26 }
 0x10b   :  { %455 = vst.msk [vmem:[%s722_s5] sm:$0xf] %vm454_vm5, %v453_v27 }

// kernel: unet_generator.25
= control target key start
LH: loop header
LB: loop body
LE: loop exit
PB: predicated region body
PF: predicated region fallthrough
CT: control target
= control target key end

     0   :  { %s842_s18 = smov 0   ;;  %s844_s19 = smov 0   ;;  %s904_s0 = inlined_call_operand.vmem [shape: f32[1,256], index: 0, kind: input, shape index: {}]   ;;  %s905_s1 = inlined_call_operand.vmem [shape: f32[1,256], index: 1, kind: input, shape index: {}]   ;;  %s906_s2 = inlined_call_operand.vmem [shape: bf16[4,2,256], index: 2, kind: input, shape index: {}]   ;;  %s907_s3 = inlined_call_operand.vmem [shape: bf16[4,256,64], index: 3, kind: input, shape index: {}]   ;;  %s908_s4 = inlined_call_operand.vmem [shape: f32[1,64], index: 4, kind: input, shape index: {}]   ;;  %s909_s5 = inlined_call_operand.vmem [shape: bf16[4,2,64], index: 5, kind: output, shape index: {}]  }
   0x1   :  { %s846_s0 = smov 0  }
   0x2 LB: > { %s34_s1 = sadd.s32 1, %s803_s19  ;;  %p696_p0 = scmp.ge.s32.totalorder %s807_s0, 1  ;;  %s807_s0 = sphi %s846_s0, %s15_s0   ;;  %s803_s19 = sphi %s844_s19, %s911_s19   ;;  %s799_s18 = sphi %s842_s18, %s910_s18  }
   0x3   : > { %p36_p1 = scmp.ge.s32.totalorder %s34_s1, 4  ;;  %p257_p2 = scmp.lt.s32.totalorder %s807_s0, 5 }
   0x5   : > { %s913_s1 = smov (%p36_p1, %s34_s1), 0  ;;  %p258_p3 = pnand %p696_p0, %p257_p2 }
   0x6   : > { %p321_p4 = scmp.lt.s32.totalorder (!%p258_p3), %s799_s18, 3  ;;  %v809_v6 = vmov (!%p258_p3), 1966171168   ;;  %v395_v8 = vlaneseq (!%p258_p3)  ;;  %v810_v18 = vmov (!%p258_p3), 0   ;;  %vm354_vm0 = vcmask (!%p258_p3), 517120  }
   0x7   : > { %261 = sbr.rel (%p258_p3) target bundleno = 280 (0x118), region = 40  ;;  %v393_v7 = vunpack.c.l.s4 (!%p258_p3), %v809_v6  ;;  %v811_v29 = vmov (!%p258_p3), 0.0   ;;  %v716_v37 = vld [vmem:[%s908_s4] ss:$0 sm:$0xff] (!%p258_p3)  ;;  %vm568_vm1 = vcmask (!%p258_p3), 516096  }
   0x8   : > { %v396_v12 = vshrl.u32 (!%p258_p3), %v395_v8, 7  ;;  %355 = vst.msk [vmem:[#allocation2] sm:$0x3] (!%p258_p3), %vm354_vm0, %v811_v29 }
   0x9   : > { %v394_v11 = vunpack.c.0.s8 (!%p258_p3), %v393_v7 }
   0xb   : > { %v397_v15 = vsub.s32 (!%p258_p3), %v394_v11, %v396_v12 }
   0xe   : > { %s915_s18 = smov (!%p321_p4, %s799_s18), 3 }
   0xf   : > { %s719_s20 = sshll.u32 %s915_s18, 7  ;;  %s697_s24 = sshll.u32 %s915_s18, 1  ;;  %v358_v31 = vld [vmem:[#allocation2] sm:$0x3] }
  0x10   : > { %s866_s23 = scalar_lea.vmem %s907_s3, %s719_s20  ;;  %s331_s27 = scalar_lea.vmem %s906_s2, %s697_s24 }
  0x11   : > { %v769_v0 = vld [vmem:[%s866_s23 + $0x40] sm:$0xff]   ;;  %v771_v2 = vld [vmem:[%s866_s23 + $0x48] sm:$0xff]   ;;  %v773_v4 = vld [vmem:[%s866_s23 + $0x50] sm:$0xff]   ;;  %s348_s7 = scalar_lea.vmem %s909_s5, %s915_s18 }
  0x12   : > { %v770_v1 = vld [vmem:[%s866_s23] sm:$0xff]   ;;  %720 = vmatprep.subr.bf16.mxu0 %v769_v0  ;;  %v772_v3 = vld [vmem:[%s866_s23 + $0x8] sm:$0xff]   ;;  %v774_v5 = vld [vmem:[%s866_s23 + $0x10] sm:$0xff]  }
  0x13   : > { %721 = vmatpush3.bf16.msra.mxu0 %v770_v1  ;;  %v775_v9 = vld [vmem:[%s866_s23 + $0x58] sm:$0xff]   ;;  %v777_v13 = vld [vmem:[%s866_s23 + $0x60] sm:$0xff]   ;;  %v779_v16 = vld [vmem:[%s866_s23 + $0x68] sm:$0xff]  }
  0x14   : > { %722 = vmatprep.subr.bf16.mxu0 %v771_v2  ;;  %v776_v10 = vld [vmem:[%s866_s23 + $0x18] sm:$0xff]   ;;  %v778_v14 = vld [vmem:[%s866_s23 + $0x20] sm:$0xff]   ;;  %v780_v20 = vld [vmem:[%s866_s23 + $0x28] sm:$0xff]  }
  0x15   : > { %v356_v17 = vld [vmem:[%s331_s27] sm:$0x3]  ;;  %v781_v22 = vld [vmem:[%s866_s23 + $0x70] sm:$0xff]   ;;  %v783_v26 = vld [vmem:[%s866_s23 + $0x78] sm:$0xff]  }
  0x16   : > { %v357_v19 = vmax.bf16 %v810_v18, %v356_v17  ;;  %v782_v24 = vld [vmem:[%s866_s23 + $0x30] sm:$0xff]   ;;  %v784_v27 = vld [vmem:[%s866_s23 + $0x38] sm:$0xff]  }
  0x17   : > { %723 = vmatpush3.bf16.msra.mxu0 %v772_v3 }
  0x18   : > { %724 = vmatprep.subr.bf16.mxu0 %v773_v4  ;;  %v398_v21 = vrot.slane %v357_v19, %v397_v15 }
  0x1a   : > { %v399_v23 = vcombine.high %v398_v21, %v398_v21  ;;  %v406_v28 = vrot.slane %v398_v21, %v397_v15 }
  0x1b   : > { %725 = vmatpush3.bf16.msra.mxu0 %v774_v5 }
  0x1c   : > { %726 = vmatprep.subr.bf16.mxu0 %v775_v9  ;;  %v413_v25 = vrot.slane %v399_v23, %v397_v15 }
  0x1e   : > { %544 = vmatprep.mubr.bf16.mxu0 %v413_v25 }
  0x1f   : > { %727 = vmatpush3.bf16.msra.mxu0 %v776_v10 }
  0x20   : > { %728 = vmatprep.subr.bf16.mxu0 %v777_v13 }
  0x23   : > { %729 = vmatpush3.bf16.msra.mxu0 %v778_v14 }
  0x24   : > { %730 = vmatprep.subr.bf16.mxu0 %v779_v16 }
  0x27   : > { %731 = vmatpush3.bf16.msra.mxu0 %v780_v20 }
  0x28   : > { %732 = vmatprep.subr.bf16.mxu0 %v781_v22 }
  0x2b   : > { %733 = vmatpush3.bf16.msra.mxu0 %v782_v24 }
  0x2c   : > { %734 = vmatprep.subr.bf16.mxu0 %v783_v26 }
  0x2f   : > { %735 = vmatpush3.bf16.msra.mxu0 %v784_v27 }
  0x32   : > { %545 = vmatmul.mubr.bf16.vlgmr.msra.gmra.mrb[0].mxu0 %v406_v28 }
 0x105   : > { %v736_v30 = vpop.f32.mrb[0].mxu0 }
 0x106   : > { %v737_v32 = vpop.f32.mrb[1].mxu0 }
 0x107   : > { %v738_v33 = vadd.f32 %v737_v32, %v736_v30  ;;  %v739_v34 = vpop.f32.mrb[2].mxu0 }
 0x108   : > { %v740_v35 = vpop.f32.mrb[3].mxu0 }
 0x109   : > { %v552_v36 = vadd.f32 %v738_v33, %v358_v31 }
 0x10b   : > { %554 = vst.msk [vmem:[#allocation2] sm:$0x3] %vm354_vm0, %v552_v36 }
 0x112   : > { %v558_v38 = vld [vmem:[#allocation2] sm:$0x3] }
 0x113   : > { %v566_v39 = vadd.f32 %v716_v37, %v558_v38 }
 0x115   : > { %v567_v40 = vpack.c.bf16 %v566_v39, %v566_v39 }
 0x117   : > { %569 = vst.msk [vmem:[%s348_s7] sm:$0x1] %vm568_vm1, %v567_v40 }
 0x118 PF: > { %s15_s0 = sadd.s32 1, %s807_s0   ;;  %s910_s18 = smov %s803_s19 }
 0x119   : > { %p12_p5 = scmp.ge.s32.totalorder %s15_s0, 6   ;;  %s911_s19 = smov %s913_s1 }
 0x11b   :  { %14 = sbr.rel (!%p12_p5) target bundleno = 2 (0x2), region = 87 }

// kernel: tile.103
= control target key start
LH: loop header
LB: loop body
LE: loop exit
PB: predicated region body
PF: predicated region fallthrough
CT: control target
= control target key end

     0   :  { %s22_s0 = inlined_call_operand.vmem [shape: f32[128], index: 0, kind: input, shape index: {}]   ;;  %s23_s1 = inlined_call_operand.vmem [shape: f32[4,128], index: 1, kind: output, shape index: {}]  }
   0x1   :  { %v4_v0 = vld [vmem:[%s22_s0] ss:$0 sm:$0xff] }
   0x2   :  { %5 = vst [vmem:[%s23_s1] sm:$0xf] %v4_v0 }

// kernel: unet_generator.24
= control target key start
LH: loop header
LB: loop body
LE: loop exit
PB: predicated region body
PF: predicated region fallthrough
CT: control target
= control target key end

     0   :  { %v32_v20 = vlaneseq  ;;  %v1146_v28 = vmov 1983009808   ;;  %vm25_vm2 = vcmask 517120   ;;  %vm921_vm3 = vcmask 516096   ;;  %s1412_s3 = inlined_call_operand.vmem [shape: bf16[1,1024,64], index: 3, kind: input, shape index: {}]   ;;  %s1413_s0 = inlined_call_operand.vmem [shape: f32[1,1024], index: 0, kind: input, shape index: {}]   ;;  %s1414_s1 = inlined_call_operand.vmem [shape: f32[1,1024], index: 1, kind: input, shape index: {}]   ;;  %s1415_s2 = inlined_call_operand.vmem [shape: bf16[1,2,1024], index: 2, kind: input, shape index: {}]   ;;  %s1416_s4 = inlined_call_operand.vmem [shape: f32[1,64], index: 4, kind: input, shape index: {}]   ;;  %s1417_s5 = inlined_call_operand.vmem [shape: bf16[1,2,64], index: 5, kind: output, shape index: {}]  }
   0x1   :  { %v1082_v0 = vld [vmem:[%s1412_s3 + $0x40] sm:$0xff]   ;;  %v1086_v4 = vld [vmem:[%s1412_s3 + $0x48] sm:$0xff]   ;;  %v1090_v8 = vld [vmem:[%s1412_s3 + $0x50] sm:$0xff]   ;;  %v67_v29 = vunpack.c.l.s4 %v1146_v28 }
   0x2   :  { %v1083_v1 = vld [vmem:[%s1412_s3 + $0xc0] sm:$0xff]   ;;  %992 = vmatprep.subr.bf16.mxu0 %v1082_v0  ;;  %v1087_v5 = vld [vmem:[%s1412_s3 + $0xc8] sm:$0xff]   ;;  %v1091_v9 = vld [vmem:[%s1412_s3 + $0xd0] sm:$0xff]   ;;  %v1250_v25 = vshrl.u32 %v32_v20, 7 }
   0x3   :  { %v1084_v2 = vld [vmem:[%s1412_s3] sm:$0xff]   ;;  %1014 = vmatprep.subr.bf16.mxu1 %v1083_v1  ;;  %v1088_v6 = vld [vmem:[%s1412_s3 + $0x8] sm:$0xff]   ;;  %v1092_v10 = vld [vmem:[%s1412_s3 + $0x10] sm:$0xff]   ;;  %v68_v37 = vunpack.c.0.s8 %v67_v29 }
   0x4   :  { %v1085_v3 = vld [vmem:[%s1412_s3 + $0x80] sm:$0xff]   ;;  %993 = vmatpush3.bf16.msra.mxu0 %v1084_v2  ;;  %v1089_v7 = vld [vmem:[%s1412_s3 + $0x88] sm:$0xff]   ;;  %v1093_v11 = vld [vmem:[%s1412_s3 + $0x90] sm:$0xff]   ;;  %v34_v32 = vsub.s32 0, %v1250_v25  ;;  %v38_v34 = vsub.s32 1, %v1250_v25  ;;  %v42_v36 = vsub.s32 2, %v1250_v25 }
   0x5   :  { %1015 = vmatpush3.bf16.msra.mxu1 %v1085_v3  ;;  %994 = vmatprep.subr.bf16.mxu0 %v1086_v4  ;;  %v1094_v12 = vld [vmem:[%s1412_s3 + $0x58] sm:$0xff]   ;;  %v1098_v16 = vld [vmem:[%s1412_s3 + $0x60] sm:$0xff]   ;;  %v1102_v21 = vld [vmem:[%s1412_s3 + $0x68] sm:$0xff]   ;;  %v46_v39 = vsub.s32 3, %v1250_v25  ;;  %v1287_v45 = vsub.s32 %v68_v37, %v1250_v25  ;;  %v50_v47 = vsub.s32 4, %v1250_v25  ;;  %v54_v57 = vsub.s32 5, %v1250_v25 }
   0x6   :  { %1016 = vmatprep.subr.bf16.mxu1 %v1087_v5  ;;  %v1095_v13 = vld [vmem:[%s1412_s3 + $0xd8] sm:$0xff]   ;;  %v1099_v17 = vld [vmem:[%s1412_s3 + $0xe0] sm:$0xff]   ;;  %v1103_v22 = vld [vmem:[%s1412_s3 + $0xe8] sm:$0xff]   ;;  %v58_v60 = vsub.s32 6, %v1250_v25  ;;  %v62_v61 = vsub.s32 7, %v1250_v25 }
   0x7   :  { %v1096_v14 = vld [vmem:[%s1412_s3 + $0x18] sm:$0xff]   ;;  %v1100_v18 = vld [vmem:[%s1412_s3 + $0x20] sm:$0xff]   ;;  %v1104_v23 = vld [vmem:[%s1412_s3 + $0x28] sm:$0xff]  }
   0x8   :  { %995 = vmatpush3.bf16.msra.mxu0 %v1088_v6  ;;  %v1097_v15 = vld [vmem:[%s1412_s3 + $0x98] sm:$0xff]   ;;  %v1101_v19 = vld [vmem:[%s1412_s3 + $0xa0] sm:$0xff]   ;;  %v1105_v24 = vld [vmem:[%s1412_s3 + $0xa8] sm:$0xff]  }
   0x9   :  { %1017 = vmatpush3.bf16.msra.mxu1 %v1089_v7  ;;  %996 = vmatprep.subr.bf16.mxu0 %v1090_v8  ;;  %v1106_v26 = vld [vmem:[%s1412_s3 + $0x70] sm:$0xff]   ;;  %v1110_v33 = vld [vmem:[%s1412_s3 + $0x78] sm:$0xff]   ;;  %v30_v41 = vld [vmem:[%s1413_s0] sm:$0xff] }
   0xa   :  { %1018 = vmatprep.subr.bf16.mxu1 %v1091_v9  ;;  %v1107_v27 = vld [vmem:[%s1412_s3 + $0xf0] sm:$0xff]   ;;  %v1111_v35 = vld [vmem:[%s1412_s3 + $0xf8] sm:$0xff]   ;;  %v102_v42 = vld [vmem:[%s1414_s1] sm:$0xff]  ;;  %v35_v43 = vrot.slane %v30_v41, %v34_v32  ;;  %v39_v44 = vrot.slane %v30_v41, %v38_v34  ;;  %v43_v48 = vrot.slane %v30_v41, %v42_v36  ;;  %v47_v49 = vrot.slane %v30_v41, %v46_v39 }
   0xb   :  { %v1108_v30 = vld [vmem:[%s1412_s3 + $0x30] sm:$0xff]   ;;  %v1112_v38 = vld [vmem:[%s1412_s3 + $0x38] sm:$0xff]   ;;  %v1114_v46 = vld [vmem:[%s1412_s3 + $0x140] sm:$0xff]   ;;  %v107_v50 = vrot.slane %v102_v42, %v34_v32  ;;  %v111_v51 = vrot.slane %v102_v42, %v38_v34  ;;  %v115_v55 = vrot.slane %v102_v42, %v42_v36  ;;  %v119_v56 = vrot.slane %v102_v42, %v46_v39 }
   0xc   :  { %997 = vmatpush3.bf16.msra.mxu0 %v1092_v10  ;;  %v1109_v31 = vld [vmem:[%s1412_s3 + $0xb0] sm:$0xff]   ;;  %v1113_v40 = vld [vmem:[%s1412_s3 + $0xb8] sm:$0xff]   ;;  %v1115_v52 = vld [vmem:[%s1412_s3 + $0x1c0] sm:$0xff]   ;;  %v64_v54 = vcombine.low %v35_v43, %v39_v44  ;;  %v65_v58 = vcombine.low %v43_v48, %v47_v49  ;;  %v51_v4 = vrot.slane %v30_v41, %v50_v47  ;;  %v55_v5 = vrot.slane %v30_v41, %v54_v57 }
   0xd   :  { %1019 = vmatpush3.bf16.msra.mxu1 %v1093_v11  ;;  %998 = vmatprep.subr.bf16.mxu0 %v1094_v12  ;;  %v27_v53 = vld [vmem:[%s1415_s2] sm:$0xff]  ;;  %v136_v59 = vcombine.low %v107_v50, %v111_v51  ;;  %v137_v63 = vcombine.low %v115_v55, %v119_v56  ;;  %v59_v7 = vrot.slane %v30_v41, %v58_v60  ;;  %v1118_v37 = vld [vmem:[%s1412_s3 + $0x148] sm:$0xff]   ;;  %v1122_v44 = vld [vmem:[%s1412_s3 + $0x150] sm:$0xff]  }
   0xe   :  { %1020 = vmatprep.subr.bf16.mxu1 %v1095_v13  ;;  %v72_v62 = vrot.slane %v64_v54, %v1287_v45  ;;  %v28_v0 = vunpack.c.l.bf16 %v27_v53  ;;  %v79_v1 = vrot.slane %v65_v58, %v1287_v45  ;;  %v63_v8 = vrot.slane %v30_v41, %v62_v61  ;;  %v1117_v39 = vld [vmem:[%s1412_s3 + $0x180] sm:$0xff]   ;;  %v1120_v43 = vld [vmem:[%s1412_s3 + $0x108] sm:$0xff]   ;;  %v1124_v49 = vld [vmem:[%s1412_s3 + $0x110] sm:$0xff]  }
   0xf   :  { %v144_v2 = vrot.slane %v136_v59, %v1287_v45  ;;  %v151_v3 = vrot.slane %v137_v63, %v1287_v45  ;;  %v81_v11 = vcombine.low %v51_v4, %v55_v5  ;;  %v123_v12 = vrot.slane %v102_v42, %v50_v47  ;;  %v1123_v47 = vld [vmem:[%s1412_s3 + $0x1d0] sm:$0xff]   ;;  %v1126_v50 = vld [vmem:[%s1412_s3 + $0x158] sm:$0xff]   ;;  %v1130_v55 = vld [vmem:[%s1412_s3 + $0x160] sm:$0xff]  }
  0x10   :  { %999 = vmatpush3.bf16.msra.mxu0 %v1096_v14  ;;  %v80_v6 = vcombine.low %v72_v62, %v79_v1  ;;  %v127_v13 = vrot.slane %v102_v42, %v54_v57  ;;  %v1125_v51 = vld [vmem:[%s1412_s3 + $0x190] sm:$0xff]   ;;  %v1129_v56 = vld [vmem:[%s1412_s3 + $0x198] sm:$0xff]   ;;  %v1131_v58 = vld [vmem:[%s1412_s3 + $0x1e0] sm:$0xff]  }
  0x11   :  { %1021 = vmatpush3.bf16.msra.mxu1 %v1097_v15  ;;  %1000 = vmatprep.subr.bf16.mxu0 %v1098_v16  ;;  %v152_v9 = vcombine.low %v144_v2, %v151_v3  ;;  %v82_v15 = vcombine.low %v59_v7, %v63_v8  ;;  %v131_v16 = vrot.slane %v102_v42, %v58_v60  ;;  %v1134_v62 = vld [vmem:[%s1412_s3 + $0x168] sm:$0xff]   ;;  %v1133_v1 = vld [vmem:[%s1412_s3 + $0x1a0] sm:$0xff]   ;;  %v1139_v8 = vld [vmem:[%s1412_s3 + $0x1f0] sm:$0xff]  }
  0x12   :  { %1022 = vmatprep.subr.bf16.mxu1 %v1099_v17  ;;  %v100_v10 = vmul.f32 %v80_v6, %v28_v0  ;;  %v135_v17 = vrot.slane %v102_v42, %v62_v61  ;;  %v1132_v61 = vld [vmem:[%s1412_s3 + $0x120] sm:$0xff]   ;;  %v1135_v2 = vld [vmem:[%s1412_s3 + $0x1e8] sm:$0xff]  }
  0x13   :  { %v1136_v5 = vld [vmem:[%s1412_s3 + $0x128] sm:$0xff]  }
  0x14   :  { %1001 = vmatpush3.bf16.msra.mxu0 %v1100_v18  ;;  %v172_v14 = vadd.f32 %v152_v9, %v100_v10  ;;  %v1137_v7 = vld [vmem:[%s1412_s3 + $0x1a8] sm:$0xff]   ;;  %v1140_v9 = vld [vmem:[%s1412_s3 + $0x130] sm:$0xff]   ;;  %v1142_v10 = vld [vmem:[%s1412_s3 + $0x178] sm:$0xff]  }
  0x15   :  { %1023 = vmatpush3.bf16.msra.mxu1 %v1101_v19  ;;  %1002 = vmatprep.subr.bf16.mxu0 %v1102_v21  ;;  %v89_v19 = vrot.slane %v81_v11, %v1287_v45  ;;  %v96_v21 = vrot.slane %v82_v15, %v1287_v45  ;;  %v1141_v11 = vld [vmem:[%s1412_s3 + $0x1b0] sm:$0xff]  }
  0x16   :  { %1024 = vmatprep.subr.bf16.mxu1 %v1103_v22  ;;  %vm174_vm0 = vcmp.gt.f32.partialorder %v172_v14, 0.0  ;;  %v176_v18 = vmul.f32 0.2, %v172_v14  ;;  %v153_v22 = vcombine.low %v123_v12, %v127_v13  ;;  %v1143_v12 = vld [vmem:[%s1412_s3 + $0x1f8] sm:$0xff]  }
  0x17   :  { %v1144_v13 = vld [vmem:[%s1412_s3 + $0x138] sm:$0xff]  }
  0x18   :  { %1003 = vmatpush3.bf16.msra.mxu0 %v1104_v23  ;;  %v178_v20 = vsel %vm174_vm0, %v172_v14, %v176_v18  ;;  %v154_v23 = vcombine.low %v131_v16, %v135_v17  ;;  %v1145_v14 = vld [vmem:[%s1412_s3 + $0x1b8] sm:$0xff]   ;;  %v1147_v17 = vmov 0.0  }
  0x19   :  { %1025 = vmatpush3.bf16.msra.mxu1 %v1105_v24  ;;  %1004 = vmatprep.subr.bf16.mxu0 %v1106_v26  ;;  %v189_v24 = vrot.slane %v178_v20, %v1287_v45  ;;  %v182_v25 = vcombine.high %v178_v20, %v178_v20  ;;  %v29_v26 = vunpack.c.h.bf16 %v27_v53  ;;  %v1128_v53 = vld [vmem:[%s1412_s3 + $0x118] sm:$0xff]   ;;  %26 = vst.msk [vmem:[#allocation2] sm:$0x3] %vm25_vm2, %v1147_v17 }
  0x1a   :  { %1026 = vmatprep.subr.bf16.mxu1 %v1107_v27  ;;  %v168_v32 = vrot.slane %v154_v23, %v1287_v45 }
  0x1b   :  { %v197_v27 = vcombine.high %v189_v24, %v189_v24  ;;  %v196_v28 = vrot.slane %v182_v25, %v1287_v45  ;;  %v224_v29 = vpack.c.bf16 %v189_v24, %v189_v24 }
  0x1c   :  { %1005 = vmatpush3.bf16.msra.mxu0 %v1108_v30  ;;  %v97_v30 = vcombine.low %v89_v19, %v96_v21 }
  0x1d   :  { %1027 = vmatpush3.bf16.msra.mxu1 %v1109_v31  ;;  %1006 = vmatprep.subr.bf16.mxu0 %v1110_v33  ;;  %v161_v31 = vrot.slane %v153_v22, %v1287_v45  ;;  %v225_v33 = vpack.c.bf16 %v197_v27, %v197_v27  ;;  %v198_v34 = vcombine.high %v196_v28, %v196_v28 }
  0x1e   :  { %1028 = vmatprep.subr.bf16.mxu1 %v1111_v35  ;;  %v1116_v35 = vld [vmem:[%s1412_s3 + $0x100] sm:$0xff]   ;;  %v226_v36 = vpack.c.bf16 %v196_v28, %v196_v28  ;;  %v101_v41 = vmul.f32 %v97_v30, %v29_v26 }
  0x1f   :  { %777 = vmatprep.mubr.bf16.mxu0 %v225_v33  ;;  %v169_v42 = vcombine.low %v161_v31, %v168_v32 }
  0x20   :  { %1007 = vmatpush3.bf16.msra.mxu0 %v1112_v38  ;;  %v227_v38 = vpack.c.bf16 %v198_v34, %v198_v34 }
  0x21   :  { %1029 = vmatpush3.bf16.msra.mxu1 %v1113_v40  ;;  %1036 = vmatprep.subr.bf16.mxu0 %v1114_v46  ;;  %v1119_v40 = vld [vmem:[%s1412_s3 + $0x1c8] sm:$0xff]   ;;  %v173_v48 = vadd.f32 %v169_v42, %v101_v41 }
  0x22   :  { %1058 = vmatprep.subr.bf16.mxu1 %v1115_v52  ;;  %817 = vmatprep.mubr.bf16.mxu1 %v227_v38  ;;  %v1121_v46 = vld [vmem:[%s1412_s3 + $0x188] sm:$0xff]   ;;  %v1127_v52 = vld [vmem:[%s1412_s3 + $0x1d8] sm:$0xff]  }
  0x23   :  { %778 = vmatmul.mubr.bf16.vlgmr.msra.gmra.mrb[0].mxu0 %v224_v29  ;;  %vm175_vm1 = vcmp.gt.f32.partialorder %v173_v48, 0.0  ;;  %v177_v54 = vmul.f32 0.2, %v173_v48 }
  0x24   :  { %1037 = vmatpush3.bf16.msra.mxu0 %v1116_v35  ;;  %818 = vmatmul.mubr.bf16.vlgmr.msra.gmra.mrb[0].mxu1 %v226_v36 }
  0x25   :  { %1038 = vmatprep.subr.bf16.mxu0 %v1118_v37  ;;  %1059 = vmatpush3.bf16.msra.mxu1 %v1117_v39  ;;  %v179_v57 = vsel %vm175_vm1, %v173_v48, %v177_v54  ;;  %v232_v39 = vld [vmem:[#allocation2] sm:$0x3] }
  0x26   :  { %1060 = vmatprep.subr.bf16.mxu1 %v1119_v40  ;;  %v206_v59 = vrot.slane %v179_v57, %v1287_v45  ;;  %v199_v60 = vcombine.high %v179_v57, %v179_v57 }
  0x28   :  { %1039 = vmatpush3.bf16.msra.mxu0 %v1120_v43  ;;  %v214_v63 = vcombine.high %v206_v59, %v206_v59  ;;  %v213_v0 = vrot.slane %v199_v60, %v1287_v45  ;;  %v1138_v45 = vld [vmem:[%s1412_s3 + $0x170] sm:$0xff]   ;;  %v228_v15 = vpack.c.bf16 %v206_v59, %v206_v59  ;;  %v991_v43 = vld [vmem:[%s1416_s4] ss:$0 sm:$0xff] }
  0x29   :  { %1040 = vmatprep.subr.bf16.mxu0 %v1122_v44  ;;  %1061 = vmatpush3.bf16.msra.mxu1 %v1121_v46 }
  0x2a   :  { %1062 = vmatprep.subr.bf16.mxu1 %v1123_v47  ;;  %v229_v3 = vpack.c.bf16 %v214_v63, %v214_v63  ;;  %v215_v4 = vcombine.high %v213_v0, %v213_v0  ;;  %v230_v16 = vpack.c.bf16 %v213_v0, %v213_v0 }
  0x2c   :  { %1041 = vmatpush3.bf16.msra.mxu0 %v1124_v49  ;;  %857 = vmatprep.mubr.bf16.mxu0 %v229_v3  ;;  %v231_v6 = vpack.c.bf16 %v215_v4, %v215_v4 }
  0x2d   :  { %1042 = vmatprep.subr.bf16.mxu0 %v1126_v50  ;;  %1063 = vmatpush3.bf16.msra.mxu1 %v1125_v51 }
  0x2e   :  { %1064 = vmatprep.subr.bf16.mxu1 %v1127_v52  ;;  %897 = vmatprep.mubr.bf16.mxu1 %v231_v6 }
  0x30   :  { %1043 = vmatpush3.bf16.msra.mxu0 %v1128_v53 }
  0x31   :  { %1044 = vmatprep.subr.bf16.mxu0 %v1130_v55  ;;  %1065 = vmatpush3.bf16.msra.mxu1 %v1129_v56 }
  0x32   :  { %1066 = vmatprep.subr.bf16.mxu1 %v1131_v58 }
  0x34   :  { %1045 = vmatpush3.bf16.msra.mxu0 %v1132_v61 }
  0x35   :  { %1046 = vmatprep.subr.bf16.mxu0 %v1134_v62  ;;  %1067 = vmatpush3.bf16.msra.mxu1 %v1133_v1 }
  0x36   :  { %1068 = vmatprep.subr.bf16.mxu1 %v1135_v2 }
  0x38   :  { %1047 = vmatpush3.bf16.msra.mxu0 %v1136_v5 }
  0x39   :  { %1048 = vmatprep.subr.bf16.mxu0 %v1138_v45  ;;  %1069 = vmatpush3.bf16.msra.mxu1 %v1137_v7 }
  0x3a   :  { %1070 = vmatprep.subr.bf16.mxu1 %v1139_v8 }
  0x3c   :  { %1049 = vmatpush3.bf16.msra.mxu0 %v1140_v9 }
  0x3d   :  { %1050 = vmatprep.subr.bf16.mxu0 %v1142_v10  ;;  %1071 = vmatpush3.bf16.msra.mxu1 %v1141_v11 }
  0x3e   :  { %1072 = vmatprep.subr.bf16.mxu1 %v1143_v12 }
  0x40   :  { %1051 = vmatpush3.bf16.msra.mxu0 %v1144_v13 }
  0x41   :  { %1073 = vmatpush3.bf16.msra.mxu1 %v1145_v14 }
  0x43   :  { %858 = vmatmul.mubr.bf16.vlgmr.msra.gmra.mrb[4].mxu0 %v228_v15 }
  0x44   :  { %898 = vmatmul.mubr.bf16.vlgmr.msra.gmra.mrb[4].mxu1 %v230_v16 }
  0xf6   :  { %v1008_v18 = vpop.f32.mrb[0].mxu0 }
  0xf7   :  { %v1009_v19 = vpop.f32.mrb[1].mxu0  ;;  %v1030_v20 = vpop.f32.mrb[0].mxu1 }
  0xf8   :  { %v1010_v21 = vadd.f32 %v1009_v19, %v1008_v18  ;;  %v1011_v22 = vpop.f32.mrb[2].mxu0  ;;  %v1031_v23 = vpop.f32.mrb[1].mxu1 }
  0xf9   :  { %v1012_v24 = vpop.f32.mrb[3].mxu0  ;;  %v1032_v25 = vadd.f32 %v1031_v23, %v1030_v20  ;;  %v1033_v26 = vpop.f32.mrb[2].mxu1 }
  0xfa   :  { %v1034_v27 = vpop.f32.mrb[3].mxu1 }
  0xfb   :  { %v820_v28 = vadd.f32 %v1032_v25, %v1010_v21 }
 0x116   :  { %v1052_v29 = vpop.f32.mrb[4].mxu0 }
 0x117   :  { %v1053_v30 = vpop.f32.mrb[5].mxu0  ;;  %v1074_v31 = vpop.f32.mrb[4].mxu1 }
 0x118   :  { %v1054_v32 = vadd.f32 %v1053_v30, %v1052_v29  ;;  %v1055_v33 = vpop.f32.mrb[6].mxu0  ;;  %v1075_v34 = vpop.f32.mrb[5].mxu1 }
 0x119   :  { %v1056_v35 = vpop.f32.mrb[7].mxu0  ;;  %v1076_v37 = vadd.f32 %v1075_v34, %v1074_v31  ;;  %v1077_v38 = vpop.f32.mrb[6].mxu1 }
 0x11a   :  { %v860_v36 = vadd.f32 %v1054_v32, %v820_v28  ;;  %v1078_v40 = vpop.f32.mrb[7].mxu1 }
 0x11c   :  { %v900_v41 = vadd.f32 %v1076_v37, %v860_v36 }
 0x11e   :  { %v905_v42 = vadd.f32 %v900_v41, %v232_v39 }
 0x120   :  { %907 = vst.msk [vmem:[#allocation2] sm:$0x3] %vm25_vm2, %v905_v42 }
 0x127   :  { %v911_v44 = vld [vmem:[#allocation2] sm:$0x3] }
 0x128   :  { %v919_v46 = vadd.f32 %v991_v43, %v911_v44 }
 0x12a   :  { %v920_v47 = vpack.c.bf16 %v919_v46, %v919_v46 }
 0x12c   :  { %922 = vst.msk [vmem:[%s1417_s5] sm:$0x1] %vm921_vm3, %v920_v47 }

// kernel: tile.113
= control target key start
LH: loop header
LB: loop body
LE: loop exit
PB: predicated region body
PF: predicated region fallthrough
CT: control target
= control target key end

     0   :  { %s22_s0 = inlined_call_operand.vmem [shape: f32[64], index: 0, kind: input, shape index: {}]   ;;  %s23_s1 = inlined_call_operand.vmem [shape: f32[4,64], index: 1, kind: output, shape index: {}]  }
   0x1   :  { %v4_v0 = vld [vmem:[%s22_s0] ss:$0 sm:$0xff] }
   0x2   :  { %5 = vst [vmem:[%s23_s1] sm:$0xf] %v4_v0 }

// kernel: tile.114
= control target key start
LH: loop header
LB: loop body
LE: loop exit
PB: predicated region body
PF: predicated region fallthrough
CT: control target
= control target key end

     0   :  { %s6_s8 = smov 3  ;;  %vm8_vm0 = vcmask 523264   ;;  %s30_s9 = smov 64   ;;  %vm15_vm1 = vcmask 1048064   ;;  %s50_s0 = inlined_call_operand.vmem [shape: f32[4,64], index: 0, kind: input, shape index: {}]   ;;  %s51_s1 = inlined_call_operand.vmem [shape: f32[1,256], index: 1, kind: output, shape index: {}]  }
   0x1   :  { %v4_v0 = vld [vmem:[%s50_s0] sm:$0xf]  ;;  %s11_s0 = smov 3 }
   0x2   :  { %5 = vst [vmem:[#allocation1] sm:$0xf] %v4_v0 }
   0x9   :  { %v12_v1 = vld [vmem:[#allocation1 + $0x1] ss:$2 sm:%s11_s0]   ;;  %v7_v2 = vld [vmem:[#allocation1] ss:$2 sm:%s6_s8]  }
   0xa   :  { %13 = vrot.lane.b32.xlu0 %v12_v1, %s30_s9  ;;  %9 = vst.msk [vmem:[#allocation0] ss:$8 sm:$0x3] %vm8_vm0, %v7_v2  }
  0x7c   :  { %v14_v3 = vpop.permute.xlu0 %13  }
  0x7d   :  { %16 = vst.msk [vmem:[#allocation0] ss:$8 sm:$0x3] %vm15_vm1, %v14_v3  }
  0x84   :  { %v20_v4 = vld [vmem:[#allocation0] sm:$0x1]  ;;  %v24_v5 = vld [vmem:[#allocation0 + $0x8] sm:$0x1] }
  0x85   :  { %22 = vst [vmem:[%s51_s1] sm:$0x1] %v20_v4  ;;  %28 = vst [vmem:[%s51_s1 + $0x1] sm:$0x1] %v24_v5 }

// kernel: unet_generator.27
= control target key start
LH: loop header
LB: loop body
LE: loop exit
PB: predicated region body
PF: predicated region fallthrough
CT: control target
= control target key end

     0   :  { %s1116_s18 = smov 0   ;;  %s1118_s19 = smov 0   ;;  %s1202_s0 = inlined_call_operand.vmem [shape: f32[1,512], index: 0, kind: input, shape index: {}]   ;;  %s1203_s1 = inlined_call_operand.vmem [shape: f32[1,512], index: 1, kind: input, shape index: {}]   ;;  %s1204_s2 = inlined_call_operand.vmem [shape: bf16[4,8,512], index: 2, kind: input, shape index: {}]   ;;  %s1205_s3 = inlined_call_operand.vmem [shape: bf16[4,512,32], index: 3, kind: input, shape index: {}]   ;;  %s1206_s4 = inlined_call_operand.vmem [shape: f32[1,32], index: 4, kind: input, shape index: {}]   ;;  %s1207_s5 = inlined_call_operand.vmem [shape: bf16[4,8,32], index: 5, kind: output, shape index: {}]  }
   0x1   :  { %s1120_s20 = smov 0  }
   0x2 LB: > { %s34_s21 = sadd.s32 1, %s1079_s19  ;;  %p917_p0 = scmp.ge.s32.totalorder %s1083_s20, 1  ;;  %s1083_s20 = sphi %s1120_s20, %s15_s20   ;;  %s1079_s19 = sphi %s1118_s19, %s1209_s19   ;;  %s1075_s18 = sphi %s1116_s18, %s1208_s18  }
   0x3   : > { %p36_p1 = scmp.ge.s32.totalorder %s34_s21, 4  ;;  %p258_p2 = scmp.lt.s32.totalorder %s1083_s20, 5 }
   0x5   : > { %s1211_s21 = smov (%p36_p1, %s34_s21), 0  ;;  %p259_p3 = pnand %p917_p0, %p258_p2 }
   0x6   : > { %p324_p4 = scmp.lt.s32.totalorder (!%p259_p3), %s1075_s18, 3  ;;  %v369_v17 = vlaneseq (!%p259_p3)  ;;  %v367_v31 = vld [vmem:[%s1202_s0] sm:$0xf] (!%p259_p3)  ;;  %vm359_vm0 = vcmask (!%p259_p3), 261120   ;;  %vm780_vm1 = vcmask (!%p259_p3), 257024  }
   0x7   : > { %262 = sbr.rel (%p259_p3) target bundleno = 284 (0x11c), region = 40  ;;  %v393_v34 = vld [vmem:[%s1203_s1] sm:$0xf] (!%p259_p3) }
   0x8   : > { %v370_v22 = vshrl.u32 (!%p259_p3), %v369_v17, 7 }
   0xa   : > { %v375_v27 = vsub.s32 (!%p259_p3), 1, %v370_v22  ;;  %v383_v29 = vsub.s32 (!%p259_p3), 3, %v370_v22  ;;  %v371_v32 = vsub.s32 (!%p259_p3), 0, %v370_v22  ;;  %v379_v35 = vsub.s32 (!%p259_p3), 2, %v370_v22 }
   0xc   : > { %v376_v40 = vrot.slane (!%p259_p3), %v367_v31, %v375_v27  ;;  %v384_v41 = vrot.slane (!%p259_p3), %v367_v31, %v383_v29  ;;  %v372_v42 = vrot.slane (!%p259_p3), %v367_v31, %v371_v32  ;;  %v380_v43 = vrot.slane (!%p259_p3), %v367_v31, %v379_v35 }
   0xd   : > { %v402_v45 = vrot.slane (!%p259_p3), %v393_v34, %v375_v27  ;;  %v410_v47 = vrot.slane (!%p259_p3), %v393_v34, %v383_v29  ;;  %v398_v48 = vrot.slane (!%p259_p3), %v393_v34, %v371_v32  ;;  %v406_v49 = vrot.slane (!%p259_p3), %v393_v34, %v379_v35 }
   0xe   : > { %s1213_s18 = smov (!%p324_p4, %s1075_s18), 3 }
   0xf   : > { %s959_s22 = sshll.u32 %s1213_s18, 8  ;;  %s958_s26 = sshll.u32 %s1213_s18, 4 }
  0x10   : > { %s1140_s25 = scalar_lea.vmem %s1205_s3, %s959_s22  ;;  %s335_s8 = scalar_lea.vmem %s1204_s2, %s958_s26 }
  0x11   : > { %v1029_v0 = vld [vmem:[%s1140_s25 + $0x40] sm:$0xff]   ;;  %v1033_v4 = vld [vmem:[%s1140_s25 + $0x48] sm:$0xff]   ;;  %v1037_v8 = vld [vmem:[%s1140_s25 + $0x50] sm:$0xff]   ;;  %s922_s11 = sshll.u32 %s1213_s18, 2 }
  0x12   : > { %v1030_v1 = vld [vmem:[%s1140_s25 + $0xc0] sm:$0xff]   ;;  %960 = vmatprep.subr.bf16.mxu0 %v1029_v0  ;;  %v1034_v5 = vld [vmem:[%s1140_s25 + $0xc8] sm:$0xff]   ;;  %v1038_v9 = vld [vmem:[%s1140_s25 + $0xd0] sm:$0xff]   ;;  %s353_s14 = scalar_lea.vmem %s1207_s5, %s922_s11 }
  0x13   : > { %v1031_v2 = vld [vmem:[%s1140_s25] sm:$0xff]   ;;  %982 = vmatprep.subr.bf16.mxu1 %v1030_v1  ;;  %v1035_v6 = vld [vmem:[%s1140_s25 + $0x8] sm:$0xff]   ;;  %v1039_v10 = vld [vmem:[%s1140_s25 + $0x10] sm:$0xff]  }
  0x14   : > { %v1032_v3 = vld [vmem:[%s1140_s25 + $0x80] sm:$0xff]   ;;  %961 = vmatpush3.bf16.msra.mxu0 %v1031_v2  ;;  %v1036_v7 = vld [vmem:[%s1140_s25 + $0x88] sm:$0xff]   ;;  %v1040_v11 = vld [vmem:[%s1140_s25 + $0x90] sm:$0xff]  }
  0x15   : > { %983 = vmatpush3.bf16.msra.mxu1 %v1032_v3  ;;  %962 = vmatprep.subr.bf16.mxu0 %v1033_v4  ;;  %v1041_v12 = vld [vmem:[%s1140_s25 + $0x58] sm:$0xff]   ;;  %v1045_v16 = vld [vmem:[%s1140_s25 + $0x60] sm:$0xff]   ;;  %v1049_v21 = vld [vmem:[%s1140_s25 + $0x68] sm:$0xff]  }
  0x16   : > { %984 = vmatprep.subr.bf16.mxu1 %v1034_v5  ;;  %v1042_v13 = vld [vmem:[%s1140_s25 + $0xd8] sm:$0xff]   ;;  %v1046_v18 = vld [vmem:[%s1140_s25 + $0xe0] sm:$0xff]   ;;  %v1050_v23 = vld [vmem:[%s1140_s25 + $0xe8] sm:$0xff]  }
  0x17   : > { %v1043_v14 = vld [vmem:[%s1140_s25 + $0x18] sm:$0xff]   ;;  %v1047_v19 = vld [vmem:[%s1140_s25 + $0x20] sm:$0xff]   ;;  %v1051_v24 = vld [vmem:[%s1140_s25 + $0x28] sm:$0xff]  }
  0x18   : > { %963 = vmatpush3.bf16.msra.mxu0 %v1035_v6  ;;  %v1044_v15 = vld [vmem:[%s1140_s25 + $0x98] sm:$0xff]   ;;  %v1048_v20 = vld [vmem:[%s1140_s25 + $0xa0] sm:$0xff]   ;;  %v1052_v25 = vld [vmem:[%s1140_s25 + $0xa8] sm:$0xff]   ;;  %v1085_v6 = vmov 0.0  }
  0x19   : > { %985 = vmatpush3.bf16.msra.mxu1 %v1036_v7  ;;  %964 = vmatprep.subr.bf16.mxu0 %v1037_v8  ;;  %v1053_v26 = vld [vmem:[%s1140_s25 + $0x70] sm:$0xff]   ;;  %v1057_v36 = vld [vmem:[%s1140_s25 + $0x78] sm:$0xff]   ;;  %v361_v44 = vld [vmem:[%s335_s8] sm:$0xff]  ;;  %360 = vst.msk [vmem:[#allocation2] sm:$0xff] %vm359_vm0, %v1085_v6 }
  0x1a   : > { %986 = vmatprep.subr.bf16.mxu1 %v1038_v9  ;;  %v1054_v28 = vld [vmem:[%s1140_s25 + $0xf0] sm:$0xff]   ;;  %v1058_v37 = vld [vmem:[%s1140_s25 + $0xf8] sm:$0xff]   ;;  %v362_v46 = vld [vmem:[%s335_s8 + $0x8] sm:$0xff]  ;;  %v363_v50 = vunpack.c.l.bf16 %v361_v44  ;;  %v364_v51 = vunpack.c.h.bf16 %v361_v44 }
  0x1b   : > { %v1055_v30 = vld [vmem:[%s1140_s25 + $0x30] sm:$0xff]   ;;  %v1059_v38 = vld [vmem:[%s1140_s25 + $0x38] sm:$0xff]   ;;  %v365_v52 = vunpack.c.l.bf16 %v362_v46  ;;  %v366_v53 = vunpack.c.h.bf16 %v362_v46 }
  0x1c   : > { %965 = vmatpush3.bf16.msra.mxu0 %v1039_v10  ;;  %v1056_v33 = vld [vmem:[%s1140_s25 + $0xb0] sm:$0xff]   ;;  %v1060_v39 = vld [vmem:[%s1140_s25 + $0xb8] sm:$0xff]   ;;  %v390_v54 = vmul.f32 %v376_v40, %v364_v51  ;;  %v389_v56 = vmul.f32 %v372_v42, %v363_v50 }
  0x1d   : > { %987 = vmatpush3.bf16.msra.mxu1 %v1040_v11  ;;  %966 = vmatprep.subr.bf16.mxu0 %v1041_v12  ;;  %v392_v55 = vmul.f32 %v384_v41, %v366_v53  ;;  %v391_v57 = vmul.f32 %v380_v43, %v365_v52 }
  0x1e   : > { %988 = vmatprep.subr.bf16.mxu1 %v1042_v13  ;;  %v416_v58 = vadd.f32 %v402_v45, %v390_v54  ;;  %v415_v60 = vadd.f32 %v398_v48, %v389_v56 }
  0x1f   : > { %v418_v59 = vadd.f32 %v410_v47, %v392_v55  ;;  %v417_v61 = vadd.f32 %v406_v49, %v391_v57 }
  0x20   : > { %967 = vmatpush3.bf16.msra.mxu0 %v1043_v14  ;;  %v420_v62 = vmax.f32 %v416_v58, 0.0  ;;  %v419_v0 = vmax.f32 %v415_v60, 0.0 }
  0x21   : > { %989 = vmatpush3.bf16.msra.mxu1 %v1044_v15  ;;  %968 = vmatprep.subr.bf16.mxu0 %v1045_v16  ;;  %v422_v63 = vmax.f32 %v418_v59, 0.0  ;;  %v421_v1 = vmax.f32 %v417_v61, 0.0  ;;  %v427_v15 = vld [vmem:[#allocation2] sm:$0xff] }
  0x22   : > { %990 = vmatprep.subr.bf16.mxu1 %v1046_v18  ;;  %v424_v2 = vpack.c.bf16 %v420_v62, %v420_v62  ;;  %v423_v4 = vpack.c.bf16 %v419_v0, %v419_v0 }
  0x23   : > { %v426_v3 = vpack.c.bf16 %v422_v63, %v422_v63  ;;  %v425_v5 = vpack.c.bf16 %v421_v1, %v421_v1 }
  0x24   : > { %969 = vmatpush3.bf16.msra.mxu0 %v1047_v19  ;;  %716 = vmatprep.mubr.bf16.mxu0 %v424_v2 }
  0x25   : > { %991 = vmatpush3.bf16.msra.mxu1 %v1048_v20  ;;  %970 = vmatprep.subr.bf16.mxu0 %v1049_v21  ;;  %v955_v20 = vld [vmem:[%s1206_s4] ss:$0 sm:$0xff] }
  0x26   : > { %992 = vmatprep.subr.bf16.mxu1 %v1050_v23  ;;  %756 = vmatprep.mubr.bf16.mxu1 %v426_v3 }
  0x28   : > { %971 = vmatpush3.bf16.msra.mxu0 %v1051_v24 }
  0x29   : > { %993 = vmatpush3.bf16.msra.mxu1 %v1052_v25  ;;  %972 = vmatprep.subr.bf16.mxu0 %v1053_v26 }
  0x2a   : > { %994 = vmatprep.subr.bf16.mxu1 %v1054_v28 }
  0x2c   : > { %973 = vmatpush3.bf16.msra.mxu0 %v1055_v30 }
  0x2d   : > { %995 = vmatpush3.bf16.msra.mxu1 %v1056_v33  ;;  %974 = vmatprep.subr.bf16.mxu0 %v1057_v36 }
  0x2e   : > { %996 = vmatprep.subr.bf16.mxu1 %v1058_v37 }
  0x30   : > { %975 = vmatpush3.bf16.msra.mxu0 %v1059_v38 }
  0x31   : > { %997 = vmatpush3.bf16.msra.mxu1 %v1060_v39 }
  0x33   : > { %717 = vmatmul.mubr.bf16.vlgmr.msra.gmra.mrb[0].mxu0 %v423_v4 }
  0x34   : > { %757 = vmatmul.mubr.bf16.vlgmr.msra.gmra.mrb[0].mxu1 %v425_v5 }
 0x106   : > { %v976_v7 = vpop.f32.mrb[0].mxu0 }
 0x107   : > { %v998_v8 = vpop.f32.mrb[0].mxu1  ;;  %v977_v9 = vpop.f32.mrb[1].mxu0 }
 0x108   : > { %v999_v10 = vpop.f32.mrb[1].mxu1  ;;  %v978_v11 = vadd.f32 %v977_v9, %v976_v7  ;;  %v979_v13 = vpop.f32.mrb[2].mxu0 }
 0x109   : > { %v1000_v12 = vadd.f32 %v999_v10, %v998_v8  ;;  %v1001_v14 = vpop.f32.mrb[2].mxu1  ;;  %v980_v16 = vpop.f32.mrb[3].mxu0 }
 0x10a   : > { %v1002_v17 = vpop.f32.mrb[3].mxu1 }
 0x10b   : > { %v759_v18 = vadd.f32 %v1000_v12, %v978_v11 }
 0x10d   : > { %v764_v19 = vadd.f32 %v759_v18, %v427_v15 }
 0x10f   : > { %766 = vst.msk [vmem:[#allocation2] sm:$0xff] %vm359_vm0, %v764_v19 }
 0x116   : > { %v770_v21 = vld [vmem:[#allocation2] sm:$0xff] }
 0x117   : > { %v778_v22 = vadd.f32 %v955_v20, %v770_v21 }
 0x119   : > { %v779_v23 = vpack.c.bf16 %v778_v22, %v778_v22 }
 0x11b   : > { %781 = vst.msk [vmem:[%s353_s14] sm:$0xf] %vm780_vm1, %v779_v23 }
 0x11c PF: > { %s15_s20 = sadd.s32 1, %s1083_s20   ;;  %s1208_s18 = smov %s1079_s19 }
 0x11d   : > { %p12_p5 = scmp.ge.s32.totalorder %s15_s20, 6   ;;  %s1209_s19 = smov %s1211_s21 }
 0x11f   :  { %14 = sbr.rel (!%p12_p5) target bundleno = 2 (0x2), region = 87 }

// kernel: unet_generator.29
= control target key start
LH: loop header
LB: loop body
LE: loop exit
PB: predicated region body
PF: predicated region fallthrough
CT: control target
= control target key end

     0   :  { %s988_s18 = smov 0   ;;  %s990_s19 = smov 0   ;;  %s1064_s0 = inlined_call_operand.vmem [shape: f32[1,256], index: 0, kind: input, shape index: {}]   ;;  %s1065_s1 = inlined_call_operand.vmem [shape: f32[1,256], index: 1, kind: input, shape index: {}]   ;;  %s1066_s2 = inlined_call_operand.vmem [shape: bf16[4,32,256], index: 2, kind: input, shape index: {}]   ;;  %s1067_s3 = inlined_call_operand.vmem [shape: bf16[4,256,16], index: 3, kind: input, shape index: {}]   ;;  %s1068_s4 = inlined_call_operand.vmem [shape: f32[1,16], index: 4, kind: input, shape index: {}]   ;;  %s1069_s5 = inlined_call_operand.vmem [shape: bf16[4,32,16], index: 5, kind: output, shape index: {}]  }
   0x1   :  { %s992_s20 = smov 0  }
   0x2 LB: > { %s34_s21 = sadd.s32 1, %s951_s19  ;;  %p811_p0 = scmp.ge.s32.totalorder %s955_s20, 1  ;;  %s955_s20 = sphi %s992_s20, %s15_s20   ;;  %s951_s19 = sphi %s990_s19, %s1071_s19   ;;  %s947_s18 = sphi %s988_s18, %s1070_s18  }
   0x3   : > { %p36_p1 = scmp.ge.s32.totalorder %s34_s21, 4  ;;  %p260_p2 = scmp.lt.s32.totalorder %s955_s20, 5 }
   0x5   : > { %s1073_s21 = smov (%p36_p1, %s34_s21), 0  ;;  %p261_p3 = pnand %p811_p0, %p260_p2 }
   0x6   : > { %p330_p4 = scmp.lt.s32.totalorder (!%p261_p3), %s947_s18, 3  ;;  %v388_v3 = vlaneseq (!%p261_p3)  ;;  %v386_v9 = vld [vmem:[%s1064_s0] sm:$0x3] (!%p261_p3)  ;;  %vm369_vm0 = vcmask (!%p261_p3), 130048   ;;  %vm662_vm1 = vcmask (!%p261_p3), 125952  }
   0x7   : > { %264 = sbr.rel (%p261_p3) target bundleno = 282 (0x11a), region = 40  ;;  %v406_v14 = vld [vmem:[%s1065_s1] sm:$0x3] (!%p261_p3) }
   0x8   : > { %v389_v6 = vshrl.u32 (!%p261_p3), %v388_v3, 7 }
   0xa   : > { %v390_v10 = vsub.s32 (!%p261_p3), 0, %v389_v6  ;;  %v394_v12 = vsub.s32 (!%p261_p3), 1, %v389_v6 }
   0xc   : > { %v391_v17 = vrot.slane (!%p261_p3), %v386_v9, %v390_v10  ;;  %v395_v18 = vrot.slane (!%p261_p3), %v386_v9, %v394_v12  ;;  %v411_v21 = vrot.slane (!%p261_p3), %v406_v14, %v390_v10  ;;  %v415_v22 = vrot.slane (!%p261_p3), %v406_v14, %v394_v12 }
   0xe   : > { %s1075_s18 = smov (!%p330_p4, %s947_s18), 3 }
   0xf   : > { %s842_s22 = sshll.u32 %s1075_s18, 7  ;;  %s841_s26 = sshll.u32 %s1075_s18, 5 }
  0x10   : > { %s1012_s25 = scalar_lea.vmem %s1067_s3, %s842_s22  ;;  %s341_s6 = scalar_lea.vmem %s1066_s2, %s841_s26 }
  0x11   : > { %v917_v0 = vld [vmem:[%s1012_s25 + $0x40] sm:$0xff]   ;;  %v919_v2 = vld [vmem:[%s1012_s25 + $0x48] sm:$0xff]   ;;  %v921_v5 = vld [vmem:[%s1012_s25 + $0x50] sm:$0xff]   ;;  %s843_s11 = sshll.u32 %s1075_s18, 4 }
  0x12   : > { %v918_v1 = vld [vmem:[%s1012_s25] sm:$0xff]   ;;  %848 = vmatprep.subr.bf16.mxu0 %v917_v0  ;;  %876 = vmatprep.subr.bf16.mxu1 %v917_v0  ;;  %v920_v4 = vld [vmem:[%s1012_s25 + $0x8] sm:$0xff]   ;;  %v922_v7 = vld [vmem:[%s1012_s25 + $0x10] sm:$0xff]   ;;  %s362_s14 = scalar_lea.vmem %s1069_s5, %s843_s11 }
  0x13   : > { %849 = vmatpush3.bf16.msra.mxu0 %v918_v1  ;;  %884 = vmatpush3.bf16.msra.mxu1 %v918_v1  ;;  %v923_v8 = vld [vmem:[%s1012_s25 + $0x58] sm:$0xff]   ;;  %v925_v13 = vld [vmem:[%s1012_s25 + $0x60] sm:$0xff]   ;;  %v927_v16 = vld [vmem:[%s1012_s25 + $0x68] sm:$0xff]  }
  0x14   : > { %850 = vmatprep.subr.bf16.mxu0 %v919_v2  ;;  %877 = vmatprep.subr.bf16.mxu1 %v919_v2  ;;  %v924_v11 = vld [vmem:[%s1012_s25 + $0x18] sm:$0xff]   ;;  %v926_v15 = vld [vmem:[%s1012_s25 + $0x20] sm:$0xff]   ;;  %v375_v20 = vld [vmem:[%s341_s6 + $0x8] sm:$0xff]  ;;  %v957_v2 = vmov 0.0  }
  0x15   : > { %v374_v19 = vld [vmem:[%s341_s6] sm:$0xff]  ;;  %v376_v23 = vld [vmem:[%s341_s6 + $0x10] sm:$0xff]  ;;  %v380_v26 = vunpack.c.l.bf16 %v375_v20  ;;  %v381_v27 = vunpack.c.h.bf16 %v375_v20  ;;  %v377_v28 = vld [vmem:[%s341_s6 + $0x18] sm:$0xff]  ;;  %370 = vst.msk [vmem:[#allocation2] sm:$0xff] %vm369_vm0, %v957_v2 }
  0x16   : > { %v378_v24 = vunpack.c.l.bf16 %v374_v19  ;;  %v379_v25 = vunpack.c.h.bf16 %v374_v19  ;;  %v382_v29 = vunpack.c.l.bf16 %v376_v23  ;;  %v383_v30 = vunpack.c.h.bf16 %v376_v23  ;;  %v928_v33 = vld [vmem:[%s1012_s25 + $0x28] sm:$0xff]   ;;  %v929_v37 = vld [vmem:[%s1012_s25 + $0x70] sm:$0xff]   ;;  %v931_v53 = vld [vmem:[%s1012_s25 + $0x78] sm:$0xff]   ;;  %371 = vst.msk [vmem:[#allocation2 + $0x8] sm:$0xff] %vm369_vm0, %v957_v2 }
  0x17   : > { %851 = vmatpush3.bf16.msra.mxu0 %v920_v4  ;;  %885 = vmatpush3.bf16.msra.mxu1 %v920_v4  ;;  %v384_v31 = vunpack.c.l.bf16 %v377_v28  ;;  %v385_v32 = vunpack.c.h.bf16 %v377_v28  ;;  %v401_v35 = vmul.f32 %v395_v18, %v381_v27  ;;  %v400_v40 = vmul.f32 %v391_v17, %v380_v26  ;;  %v930_v49 = vld [vmem:[%s1012_s25 + $0x30] sm:$0xff]   ;;  %v932_v63 = vld [vmem:[%s1012_s25 + $0x38] sm:$0xff]   ;;  %372 = vst.msk [vmem:[#allocation2 + $0x10] sm:$0xff] %vm369_vm0, %v957_v2  ;;  %v834_v23 = vld [vmem:[%s1068_s4] ss:$0 sm:$0xff] }
  0x18   : > { %852 = vmatprep.subr.bf16.mxu0 %v921_v5  ;;  %878 = vmatprep.subr.bf16.mxu1 %v921_v5  ;;  %v399_v34 = vmul.f32 %v395_v18, %v379_v25  ;;  %v398_v36 = vmul.f32 %v391_v17, %v378_v24  ;;  %v403_v38 = vmul.f32 %v395_v18, %v383_v30 }
  0x19   : > { %v405_v39 = vmul.f32 %v395_v18, %v385_v32  ;;  %v421_v42 = vadd.f32 %v415_v22, %v401_v35  ;;  %v402_v44 = vmul.f32 %v391_v17, %v382_v29  ;;  %v420_v47 = vadd.f32 %v411_v21, %v400_v40  ;;  %373 = vst.msk [vmem:[#allocation2 + $0x18] sm:$0xff] %vm369_vm0, %v957_v2 }
  0x1a   : > { %v419_v41 = vadd.f32 %v415_v22, %v399_v34  ;;  %v418_v43 = vadd.f32 %v411_v21, %v398_v36  ;;  %v423_v45 = vadd.f32 %v415_v22, %v403_v38  ;;  %v404_v48 = vmul.f32 %v391_v17, %v384_v31 }
  0x1b   : > { %853 = vmatpush3.bf16.msra.mxu0 %v922_v7  ;;  %886 = vmatpush3.bf16.msra.mxu1 %v922_v7  ;;  %v425_v46 = vadd.f32 %v415_v22, %v405_v39  ;;  %v429_v51 = vmax.f32 %v421_v42, 0.0  ;;  %v422_v52 = vadd.f32 %v411_v21, %v402_v44  ;;  %v428_v60 = vmax.f32 %v420_v47, 0.0 }
  0x1c   : > { %854 = vmatprep.subr.bf16.mxu0 %v923_v8  ;;  %879 = vmatprep.subr.bf16.mxu1 %v923_v8  ;;  %v427_v50 = vmax.f32 %v419_v41, 0.0  ;;  %v431_v54 = vmax.f32 %v423_v45, 0.0  ;;  %v424_v56 = vadd.f32 %v411_v21, %v404_v48  ;;  %v426_v58 = vmax.f32 %v418_v43, 0.0  ;;  %v438_v5 = vld [vmem:[#allocation2] sm:$0xff] }
  0x1d   : > { %v433_v55 = vmax.f32 %v425_v46, 0.0  ;;  %v430_v61 = vmax.f32 %v422_v52, 0.0 }
  0x1e   : > { %v435_v57 = vpack.c.bf16 %v429_v51, %v427_v50  ;;  %v432_v62 = vmax.f32 %v424_v56, 0.0  ;;  %v434_v0 = vpack.c.bf16 %v428_v60, %v426_v58  ;;  %v440_v7 = vld [vmem:[#allocation2 + $0x10] sm:$0xff] }
  0x1f   : > { %855 = vmatpush3.bf16.msra.mxu0 %v924_v11  ;;  %887 = vmatpush3.bf16.msra.mxu1 %v924_v11  ;;  %v437_v59 = vpack.c.bf16 %v433_v55, %v431_v54 }
  0x20   : > { %856 = vmatprep.subr.bf16.mxu0 %v925_v13  ;;  %880 = vmatprep.subr.bf16.mxu1 %v925_v13  ;;  %v436_v1 = vpack.c.bf16 %v432_v62, %v430_v61  ;;  %v439_v13 = vld [vmem:[#allocation2 + $0x8] sm:$0xff] }
  0x21   : > { %602 = vmatprep.mubr.bf16.mxu0 %v435_v57  ;;  %610 = vmatprep.mubr.bf16.mxu1 %v437_v59 }
  0x23   : > { %857 = vmatpush3.bf16.msra.mxu0 %v926_v15  ;;  %888 = vmatpush3.bf16.msra.mxu1 %v926_v15  ;;  %v441_v15 = vld [vmem:[#allocation2 + $0x18] sm:$0xff] }
  0x24   : > { %858 = vmatprep.subr.bf16.mxu0 %v927_v16  ;;  %881 = vmatprep.subr.bf16.mxu1 %v927_v16 }
  0x27   : > { %859 = vmatpush3.bf16.msra.mxu0 %v928_v33  ;;  %889 = vmatpush3.bf16.msra.mxu1 %v928_v33 }
  0x28   : > { %860 = vmatprep.subr.bf16.mxu0 %v929_v37  ;;  %882 = vmatprep.subr.bf16.mxu1 %v929_v37 }
  0x2b   : > { %861 = vmatpush3.bf16.msra.mxu0 %v930_v49  ;;  %890 = vmatpush3.bf16.msra.mxu1 %v930_v49 }
  0x2c   : > { %862 = vmatprep.subr.bf16.mxu0 %v931_v53  ;;  %883 = vmatprep.subr.bf16.mxu1 %v931_v53 }
  0x2f   : > { %863 = vmatpush3.bf16.msra.mxu0 %v932_v63  ;;  %891 = vmatpush3.bf16.msra.mxu1 %v932_v63 }
  0x32   : > { %603 = vmatmul.mubr.bf16.vlgmr.msra.gmra.mrb[0].mxu0 %v434_v0  ;;  %611 = vmatmul.mubr.bf16.vlgmr.msra.gmra.mrb[0].mxu1 %v436_v1 }
 0x105   : > { %v864_v3 = vpop.f32.mrb[0].mxu0  ;;  %v870_v4 = vpop.f32.mrb[0].mxu1 }
 0x106   : > { %v865_v6 = vpop.f32.mrb[1].mxu0  ;;  %v871_v8 = vpop.f32.mrb[1].mxu1 }
 0x107   : > { %v866_v9 = vadd.f32 %v865_v6, %v864_v3  ;;  %v872_v10 = vadd.f32 %v871_v8, %v870_v4  ;;  %v867_v11 = vpop.f32.mrb[2].mxu0  ;;  %v873_v12 = vpop.f32.mrb[2].mxu1 }
 0x108   : > { %v868_v14 = vpop.f32.mrb[3].mxu0  ;;  %v874_v16 = vpop.f32.mrb[3].mxu1 }
 0x109   : > { %v619_v17 = vadd.f32 %v866_v9, %v438_v5  ;;  %v621_v18 = vadd.f32 %v872_v10, %v440_v7  ;;  %v869_v19 = vadd.f32 %v868_v14, %v867_v11  ;;  %v875_v20 = vadd.f32 %v874_v16, %v873_v12 }
 0x10b   : > { %624 = vst.msk [vmem:[#allocation2] sm:$0xff] %vm369_vm0, %v619_v17  ;;  %626 = vst.msk [vmem:[#allocation2 + $0x10] sm:$0xff] %vm369_vm0, %v621_v18  ;;  %v620_v21 = vadd.f32 %v869_v19, %v439_v13  ;;  %v622_v22 = vadd.f32 %v875_v20, %v441_v15 }
 0x10d   : > { %625 = vst.msk [vmem:[#allocation2 + $0x8] sm:$0xff] %vm369_vm0, %v620_v21  ;;  %627 = vst.msk [vmem:[#allocation2 + $0x18] sm:$0xff] %vm369_vm0, %v622_v22 }
 0x112   : > { %v631_v24 = vld [vmem:[#allocation2] sm:$0xff]  ;;  %v633_v25 = vld [vmem:[#allocation2 + $0x10] sm:$0xff] }
 0x113   : > { %v642_v26 = vadd.f32 %v834_v23, %v631_v24  ;;  %v644_v27 = vadd.f32 %v834_v23, %v633_v25 }
 0x114   : > { %v632_v28 = vld [vmem:[#allocation2 + $0x8] sm:$0xff]  ;;  %v634_v29 = vld [vmem:[#allocation2 + $0x18] sm:$0xff] }
 0x115   : > { %v844_v30 = vpack.c.bf16 %v642_v26, %v642_v26  ;;  %v846_v31 = vpack.c.bf16 %v644_v27, %v644_v27  ;;  %v643_v32 = vadd.f32 %v834_v23, %v632_v28  ;;  %v645_v33 = vadd.f32 %v834_v23, %v634_v29 }
 0x117   : > { %663 = vst.msk [vmem:[%s362_s14] sm:$0xf] %vm662_vm1, %v844_v30  ;;  %665 = vst.msk [vmem:[%s362_s14 + $0x8] sm:$0xf] %vm662_vm1, %v846_v31  ;;  %v845_v34 = vpack.c.bf16 %v643_v32, %v643_v32  ;;  %v847_v35 = vpack.c.bf16 %v645_v33, %v645_v33 }
 0x119   : > { %664 = vst.msk [vmem:[%s362_s14 + $0x4] sm:$0xf] %vm662_vm1, %v845_v34  ;;  %666 = vst.msk [vmem:[%s362_s14 + $0xc] sm:$0xf] %vm662_vm1, %v847_v35 }
 0x11a PF: > { %s15_s20 = sadd.s32 1, %s955_s20   ;;  %s1070_s18 = smov %s951_s19 }
 0x11b   : > { %p12_p5 = scmp.ge.s32.totalorder %s15_s20, 6   ;;  %s1071_s19 = smov %s1073_s21 }
 0x11d   :  { %14 = sbr.rel (!%p12_p5) target bundleno = 2 (0x2), region = 87 }

// kernel: tile.123
= control target key start
LH: loop header
LB: loop body
LE: loop exit
PB: predicated region body
PF: predicated region fallthrough
CT: control target
= control target key end

     0   :  { %s22_s0 = inlined_call_operand.vmem [shape: f32[32], index: 0, kind: input, shape index: {}]   ;;  %s23_s1 = inlined_call_operand.vmem [shape: f32[4,32], index: 1, kind: output, shape index: {}]  }
   0x1   :  { %v4_v0 = vld [vmem:[%s22_s0] ss:$0 sm:$0xff] }
   0x2   :  { %5 = vst [vmem:[%s23_s1] sm:$0xf] %v4_v0 }

// kernel: tile.124
= control target key start
LH: loop header
LB: loop body
LE: loop exit
PB: predicated region body
PF: predicated region fallthrough
CT: control target
= control target key end

     0   :  { %vm7_vm0 = vcmask 261120   ;;  %s37_s8 = smov 32   ;;  %s38_s9 = smov 64   ;;  %vm13_vm1 = vcmask 1048320   ;;  %vm19_vm2 = vcmask 785920   ;;  %vm25_vm3 = vcmask 523520   ;;  %s55_s0 = inlined_call_operand.vmem [shape: f32[4,32], index: 0, kind: input, shape index: {}]   ;;  %s56_s1 = inlined_call_operand.vmem [shape: f32[1,128], index: 1, kind: output, shape index: {}]  }
   0x1   :  { %v4_v0 = vld [vmem:[%s55_s0] sm:$0xf]  ;;  %s36_s0 = smov 96  }
   0x2   :  { %5 = vst [vmem:[#allocation1] sm:$0xf] %v4_v0 }
   0x9   :  { %v10_v1 = vld [vmem:[#allocation1 + $0x3] sm:$0x1]   ;;  %v22_v2 = vld [vmem:[#allocation1 + $0x1] sm:$0x1]   ;;  %v6_v3 = vld [vmem:[#allocation1] sm:$0x1]  }
   0xa   :  { %11 = vrot.lane.b32.xlu0 %v10_v1, %s36_s0  ;;  %23 = vrot.lane.b32.xlu1 %v22_v2, %s37_s8  ;;  %v16_v4 = vld [vmem:[#allocation1 + $0x2] sm:$0x1]   ;;  %8 = vst.msk [vmem:[#allocation0] sm:$0x1] %vm7_vm0, %v6_v3  }
   0xe   :  { %17 = vrot.lane.b32.xlu0 %v16_v4, %s38_s9 }
  0x7c   :  { %v12_v5 = vpop.permute.xlu0 %11   ;;  %v24_v6 = vpop.permute.xlu1 %23  }
  0x7d   :  { %14 = vst.msk [vmem:[#allocation0] sm:$0x1] %vm13_vm1, %v12_v5  }
  0x80   :  { %v18_v7 = vpop.permute.xlu0 %17  }
  0x81   :  { %20 = vst.msk [vmem:[#allocation0] sm:$0x1] %vm19_vm2, %v18_v7  }
  0x82   :  { %26 = vst.msk [vmem:[#allocation0] sm:$0x1] %vm25_vm3, %v24_v6  }
  0x89   :  { %v30_v8 = vld [vmem:[#allocation0] sm:$0x1] }
  0x8a   :  { %32 = vst [vmem:[%s56_s1] sm:$0x1] %v30_v8 }

// kernel: unet_generator.31
= control target key start
LH: loop header
LB: loop body
LE: loop exit
PB: predicated region body
PF: predicated region fallthrough
CT: control target
= control target key end

     0   :  { %s1190_s18 = smov 0   ;;  %s1192_s19 = smov 0   ;;  %s1380_s0 = inlined_call_operand.vmem [shape: f32[1,128], index: 0, kind: input, shape index: {}]   ;;  %s1381_s1 = inlined_call_operand.vmem [shape: f32[1,128], index: 1, kind: input, shape index: {}]   ;;  %s1382_s2 = inlined_call_operand.vmem [shape: bf16[4,128,128], index: 2, kind: input, shape index: {}]   ;;  %s1383_s3 = inlined_call_operand.vmem [shape: bf16[4,128,8], index: 3, kind: input, shape index: {}]   ;;  %s1384_s4 = inlined_call_operand.vmem [shape: f32[1,8], index: 4, kind: input, shape index: {}]   ;;  %s1385_s5 = inlined_call_operand.vmem [shape: bf16[4,128,8], index: 5, kind: output, shape index: {}]  }
   0x1   :  { %s1194_s20 = smov 0  }
   0x2 LB: > { %s34_s21 = sadd.s32 1, %s1153_s19  ;;  %p944_p0 = scmp.ge.s32.totalorder %s1157_s20, 1  ;;  %s1157_s20 = sphi %s1194_s20, %s15_s20   ;;  %s1153_s19 = sphi %s1192_s19, %s1387_s19   ;;  %s1149_s18 = sphi %s1190_s18, %s1386_s18  }
   0x3   : > { %p36_p1 = scmp.ge.s32.totalorder %s34_s21, 4  ;;  %p253_p2 = scmp.lt.s32.totalorder %s1157_s20, 5 }
   0x5   : > { %s1389_s21 = smov (%p36_p1, %s34_s21), 0  ;;  %p254_p3 = pnand %p944_p0, %p253_p2 }
   0x6   : > { %p314_p4 = scmp.lt.s32.totalorder (!%p254_p3), %s1149_s18, 3  ;;  %vm351_vm0 = vcmask (!%p254_p3), 64512   ;;  %v1159_v0 = vmov (!%p254_p3), 0.0   ;;  %v1244_v4 = vld [vmem:[%s1380_s0] ss:$0 sm:$0xff] (!%p254_p3)  ;;  %vm786_vm1 = vcmask (!%p254_p3), 60416  }
   0x7   : > { %257 = sbr.rel (%p254_p3) target bundleno = 290 (0x122), region = 40  ;;  %354 = vst.msk [vmem:[#allocation2 + $0x10] sm:$0xff] (!%p254_p3), %vm351_vm0, %v1159_v0  ;;  %352 = vst.msk [vmem:[#allocation2] sm:$0xff] (!%p254_p3), %vm351_vm0, %v1159_v0  ;;  %v1254_v14 = vld [vmem:[%s1381_s1] ss:$0 sm:$0xff] (!%p254_p3) }
   0x8   : > { %353 = vst.msk [vmem:[#allocation2 + $0x8] sm:$0xff] (!%p254_p3), %vm351_vm0, %v1159_v0  ;;  %355 = vst.msk [vmem:[#allocation2 + $0x18] sm:$0xff] (!%p254_p3), %vm351_vm0, %v1159_v0 }
   0x9   : > { %356 = vst.msk [vmem:[#allocation2 + $0x20] sm:$0xff] (!%p254_p3), %vm351_vm0, %v1159_v0  ;;  %357 = vst.msk [vmem:[#allocation2 + $0x28] sm:$0xff] (!%p254_p3), %vm351_vm0, %v1159_v0 }
   0xa   : > { %358 = vst.msk [vmem:[#allocation2 + $0x30] sm:$0xff] (!%p254_p3), %vm351_vm0, %v1159_v0  ;;  %359 = vst.msk [vmem:[#allocation2 + $0x38] sm:$0xff] (!%p254_p3), %vm351_vm0, %v1159_v0 }
   0xb   : > { %360 = vst.msk [vmem:[#allocation2 + $0x40] sm:$0xff] (!%p254_p3), %vm351_vm0, %v1159_v0  ;;  %361 = vst.msk [vmem:[#allocation2 + $0x48] sm:$0xff] (!%p254_p3), %vm351_vm0, %v1159_v0 }
   0xc   : > { %362 = vst.msk [vmem:[#allocation2 + $0x50] sm:$0xff] (!%p254_p3), %vm351_vm0, %v1159_v0  ;;  %363 = vst.msk [vmem:[#allocation2 + $0x58] sm:$0xff] (!%p254_p3), %vm351_vm0, %v1159_v0 }
   0xd   : > { %364 = vst.msk [vmem:[#allocation2 + $0x60] sm:$0xff] (!%p254_p3), %vm351_vm0, %v1159_v0  ;;  %365 = vst.msk [vmem:[#allocation2 + $0x68] sm:$0xff] (!%p254_p3), %vm351_vm0, %v1159_v0 }
   0xe   : > { %s1391_s18 = smov (!%p314_p4, %s1149_s18), 3  ;;  %366 = vst.msk [vmem:[#allocation2 + $0x70] sm:$0xff] %vm351_vm0, %v1159_v0  ;;  %367 = vst.msk [vmem:[#allocation2 + $0x78] sm:$0xff] %vm351_vm0, %v1159_v0 }
   0xf   : > { %s1224_s22 = sshll.u32 %s1391_s18, 6 }
  0x10   : > { %s1230_s25 = scalar_lea.vmem %s1383_s3, %s1224_s22  ;;  %s1239_s28 = scalar_lea.vmem %s1382_s2, %s1224_s22 }
  0x11   : > { %v1127_v1 = vld [vmem:[%s1230_s25] sm:$0xff]   ;;  %v1128_v2 = vld [vmem:[%s1230_s25 + $0x8] sm:$0xff]   ;;  %v1129_v3 = vld [vmem:[%s1230_s25 + $0x10] sm:$0xff]   ;;  %s1317_s12 = scalar_lea.vmem %s1385_s5, %s1224_s22 }
  0x12   : > { %1054 = vmatprep.subr.bf16.mxu0 %v1127_v1  ;;  %1086 = vmatprep.subr.bf16.mxu1 %v1127_v1  ;;  %v1130_v5 = vld [vmem:[%s1230_s25 + $0x18] sm:$0xff]   ;;  %v1000_v6 = vld [vmem:[%s1239_s28] sm:$0xff]   ;;  %v1031_v8 = vld [vmem:[%s1239_s28 + $0x8] sm:$0xff]  }
  0x13   : > { %1055 = vmatpush3.bf16.msra.mxu0 %v1127_v1  ;;  %1094 = vmatpush3.bf16.msra.mxu1 %v1127_v1  ;;  %v1034_v7 = vld [vmem:[%s1239_s28 + $0x20] sm:$0xff]   ;;  %v1001_v9 = vunpack.c.l.bf16 %v1000_v6  ;;  %v1002_v10 = vunpack.c.h.bf16 %v1000_v6  ;;  %v1035_v13 = vld [vmem:[%s1239_s28 + $0x28] sm:$0xff]   ;;  %v1005_v15 = vunpack.c.l.bf16 %v1031_v8  ;;  %v1032_v16 = vld [vmem:[%s1239_s28 + $0x10] sm:$0xff]   ;;  %v1006_v22 = vunpack.c.h.bf16 %v1031_v8 }
  0x14   : > { %1056 = vmatprep.subr.bf16.mxu0 %v1128_v2  ;;  %1087 = vmatprep.subr.bf16.mxu1 %v1128_v2  ;;  %v1017_v11 = vunpack.c.l.bf16 %v1034_v7  ;;  %v1018_v12 = vunpack.c.h.bf16 %v1034_v7  ;;  %v1131_v20 = vld [vmem:[%s1230_s25 + $0x20] sm:$0xff]   ;;  %v1021_v23 = vunpack.c.l.bf16 %v1035_v13  ;;  %v1022_v24 = vunpack.c.h.bf16 %v1035_v13  ;;  %v1036_v35 = vld [vmem:[%s1239_s28 + $0x30] sm:$0xff]   ;;  %v1132_v36 = vld [vmem:[%s1230_s25 + $0x28] sm:$0xff]  }
  0x15   : > { %v407_v17 = vmul.f32 %v1001_v9, %v1244_v4  ;;  %v408_v18 = vmul.f32 %v1002_v10, %v1244_v4  ;;  %v1009_v28 = vunpack.c.l.bf16 %v1032_v16  ;;  %v409_v30 = vmul.f32 %v1005_v15, %v1244_v4  ;;  %v1033_v48 = vld [vmem:[%s1239_s28 + $0x18] sm:$0xff]   ;;  %v1133_v50 = vld [vmem:[%s1230_s25 + $0x30] sm:$0xff]  }
  0x16   : > { %v415_v19 = vmul.f32 %v1017_v11, %v1244_v4  ;;  %v416_v21 = vmul.f32 %v1018_v12, %v1244_v4  ;;  %v1010_v34 = vunpack.c.h.bf16 %v1032_v16  ;;  %v410_v38 = vmul.f32 %v1006_v22, %v1244_v4  ;;  %v1037_v49 = vld [vmem:[%s1239_s28 + $0x38] sm:$0xff]  }
  0x17   : > { %1057 = vmatpush3.bf16.msra.mxu0 %v1128_v2  ;;  %1095 = vmatpush3.bf16.msra.mxu1 %v1128_v2  ;;  %v430_v25 = vadd.f32 %v1254_v14, %v407_v17  ;;  %v431_v26 = vadd.f32 %v1254_v14, %v408_v18  ;;  %v417_v39 = vmul.f32 %v1021_v23, %v1244_v4  ;;  %v1025_v44 = vunpack.c.l.bf16 %v1036_v35  ;;  %v1134_v0 = vld [vmem:[%s1230_s25 + $0x38] sm:$0xff]  }
  0x18   : > { %1058 = vmatprep.subr.bf16.mxu0 %v1129_v3  ;;  %1088 = vmatprep.subr.bf16.mxu1 %v1129_v3  ;;  %v438_v27 = vadd.f32 %v1254_v14, %v415_v19  ;;  %v439_v29 = vadd.f32 %v1254_v14, %v416_v21  ;;  %v418_v41 = vmul.f32 %v1022_v24, %v1244_v4  ;;  %v1026_v47 = vunpack.c.h.bf16 %v1036_v35 }
  0x19   : > { %v446_v31 = vmax.f32 %v430_v25, 0.0  ;;  %v447_v32 = vmax.f32 %v431_v26, 0.0  ;;  %v411_v42 = vmul.f32 %v1009_v28, %v1244_v4  ;;  %v432_v45 = vadd.f32 %v1254_v14, %v409_v30  ;;  %v472_v28 = vld [vmem:[#allocation2 + $0x10] sm:$0xff]  ;;  %v470_v30 = vld [vmem:[#allocation2] sm:$0xff] }
  0x1a   : > { %v454_v33 = vmax.f32 %v438_v27, 0.0  ;;  %v455_v37 = vmax.f32 %v439_v29, 0.0  ;;  %v412_v46 = vmul.f32 %v1010_v34, %v1244_v4  ;;  %v433_v51 = vadd.f32 %v1254_v14, %v410_v38  ;;  %v480_v29 = vld [vmem:[#allocation2 + $0x50] sm:$0xff]  ;;  %v481_v34 = vld [vmem:[#allocation2 + $0x58] sm:$0xff] }
  0x1b   : > { %1059 = vmatpush3.bf16.msra.mxu0 %v1129_v3  ;;  %1096 = vmatpush3.bf16.msra.mxu1 %v1129_v3  ;;  %v462_v40 = vpack.c.bf16 %v447_v32, %v446_v31  ;;  %v440_v52 = vadd.f32 %v1254_v14, %v417_v39  ;;  %v419_v53 = vmul.f32 %v1025_v44, %v1244_v4  ;;  %v1013_v57 = vunpack.c.l.bf16 %v1033_v48  ;;  %v471_v39 = vld [vmem:[#allocation2 + $0x8] sm:$0xff] }
  0x1c   : > { %1060 = vmatprep.subr.bf16.mxu0 %v1130_v5  ;;  %1089 = vmatprep.subr.bf16.mxu1 %v1130_v5  ;;  %v466_v43 = vpack.c.bf16 %v455_v37, %v454_v33  ;;  %v441_v54 = vadd.f32 %v1254_v14, %v418_v41  ;;  %v434_v55 = vadd.f32 %v1254_v14, %v411_v42  ;;  %v1014_v58 = vunpack.c.h.bf16 %v1033_v48  ;;  %v473_v33 = vld [vmem:[#allocation2 + $0x18] sm:$0xff] }
  0x1d   : > { %1070 = vmatprep.mubr.bf16.mxu0 %v462_v40  ;;  %v420_v56 = vmul.f32 %v1026_v47, %v1244_v4  ;;  %v1029_v59 = vunpack.c.l.bf16 %v1037_v49  ;;  %v1030_v60 = vunpack.c.h.bf16 %v1037_v49  ;;  %v435_v61 = vadd.f32 %v1254_v14, %v412_v46  ;;  %v479_v40 = vld [vmem:[#allocation2 + $0x48] sm:$0xff] }
  0x1e   : > { %1078 = vmatprep.mubr.bf16.mxu1 %v466_v43  ;;  %v442_v62 = vadd.f32 %v1254_v14, %v419_v53  ;;  %v448_v1 = vmax.f32 %v432_v45, 0.0  ;;  %v449_v2 = vmax.f32 %v433_v51, 0.0  ;;  %v456_v3 = vmax.f32 %v440_v52, 0.0  ;;  %v476_v51 = vld [vmem:[#allocation2 + $0x30] sm:$0xff]  ;;  %v474_v53 = vld [vmem:[#allocation2 + $0x20] sm:$0xff] }
  0x1f   : > { %1061 = vmatpush3.bf16.msra.mxu0 %v1130_v5  ;;  %1097 = vmatpush3.bf16.msra.mxu1 %v1130_v5  ;;  %v443_v63 = vadd.f32 %v1254_v14, %v420_v56  ;;  %v457_v5 = vmax.f32 %v441_v54, 0.0  ;;  %v413_v6 = vmul.f32 %v1013_v57, %v1244_v4  ;;  %v414_v7 = vmul.f32 %v1014_v58, %v1244_v4  ;;  %v484_v52 = vld [vmem:[#allocation2 + $0x70] sm:$0xff]  ;;  %v482_v54 = vld [vmem:[#allocation2 + $0x60] sm:$0xff]  ;;  %v477_v58 = vld [vmem:[#allocation2 + $0x38] sm:$0xff] }
  0x20   : > { %1062 = vmatprep.subr.bf16.mxu0 %v1131_v20  ;;  %1090 = vmatprep.subr.bf16.mxu1 %v1131_v20  ;;  %v421_v8 = vmul.f32 %v1029_v59, %v1244_v4  ;;  %v422_v9 = vmul.f32 %v1030_v60, %v1244_v4  ;;  %v450_v10 = vmax.f32 %v434_v55, 0.0  ;;  %v451_v11 = vmax.f32 %v435_v61, 0.0  ;;  %v1307_v55 = vld [vmem:[%s1384_s4] ss:$0 sm:$0xff]  ;;  %v485_v59 = vld [vmem:[#allocation2 + $0x78] sm:$0xff] }
  0x21   : > { %v458_v12 = vmax.f32 %v442_v62, 0.0  ;;  %v459_v13 = vmax.f32 %v443_v63, 0.0  ;;  %v463_v15 = vpack.c.bf16 %v449_v2, %v448_v1  ;;  %v467_v16 = vpack.c.bf16 %v457_v5, %v456_v3  ;;  %v483_v1 = vld [vmem:[#allocation2 + $0x68] sm:$0xff] }
  0x22   : > { %v436_v17 = vadd.f32 %v1254_v14, %v413_v6  ;;  %v437_v18 = vadd.f32 %v1254_v14, %v414_v7  ;;  %v444_v19 = vadd.f32 %v1254_v14, %v421_v8  ;;  %v464_v4 = vpack.c.bf16 %v451_v11, %v450_v10 }
  0x23   : > { %1063 = vmatpush3.bf16.msra.mxu0 %v1131_v20  ;;  %1098 = vmatpush3.bf16.msra.mxu1 %v1131_v20  ;;  %v445_v20 = vadd.f32 %v1254_v14, %v422_v9  ;;  %v468_v21 = vpack.c.bf16 %v459_v13, %v458_v12  ;;  %v478_v14 = vld [vmem:[#allocation2 + $0x40] sm:$0xff] }
  0x24   : > { %1064 = vmatprep.subr.bf16.mxu0 %v1132_v36  ;;  %1091 = vmatprep.subr.bf16.mxu1 %v1132_v36  ;;  %v452_v22 = vmax.f32 %v436_v17, 0.0  ;;  %v453_v23 = vmax.f32 %v437_v18, 0.0  ;;  %v460_v24 = vmax.f32 %v444_v19, 0.0 }
  0x25   : > { %v461_v25 = vmax.f32 %v445_v20, 0.0 }
  0x26   : > { %v465_v26 = vpack.c.bf16 %v453_v23, %v452_v22 }
  0x27   : > { %1065 = vmatpush3.bf16.msra.mxu0 %v1132_v36  ;;  %1099 = vmatpush3.bf16.msra.mxu1 %v1132_v36  ;;  %v469_v27 = vpack.c.bf16 %v461_v25, %v460_v24 }
  0x28   : > { %1066 = vmatprep.subr.bf16.mxu0 %v1133_v50  ;;  %1092 = vmatprep.subr.bf16.mxu1 %v1133_v50 }
  0x2b   : > { %1067 = vmatpush3.bf16.msra.mxu0 %v1133_v50  ;;  %1100 = vmatpush3.bf16.msra.mxu1 %v1133_v50 }
  0x2c   : > { %1068 = vmatprep.subr.bf16.mxu0 %v1134_v0  ;;  %1093 = vmatprep.subr.bf16.mxu1 %v1134_v0 }
  0x2f   : > { %1069 = vmatpush3.bf16.msra.mxu0 %v1134_v0  ;;  %1101 = vmatpush3.bf16.msra.mxu1 %v1134_v0  ;;  %v475_v0 = vld [vmem:[#allocation2 + $0x28] sm:$0xff] }
  0x32   : > { %1071 = vmatmul.mubr.bf16.vlgmr.msra.gmra.mrb[0].mxu0 %v463_v15  ;;  %1079 = vmatmul.mubr.bf16.vlgmr.msra.gmra.mrb[0].mxu1 %v467_v16 }
  0x33   : > { %1074 = vmatprep.mubr.bf16.mxu0 %v464_v4  ;;  %1082 = vmatprep.mubr.bf16.mxu1 %v468_v21 }
  0x3a   : > { %1075 = vmatmul.mubr.bf16.gmra.mrb[4].mxu0 %v465_v26  ;;  %1083 = vmatmul.mubr.bf16.gmra.mrb[4].mxu1 %v469_v27 }
 0x105   : > { %v1072_v31 = vpop.f32.mrb[0].mxu0  ;;  %v1080_v32 = vpop.f32.mrb[0].mxu1 }
 0x106   : > { %v649_v35 = vadd.f32 %v1072_v31, %v472_v28  ;;  %v657_v36 = vadd.f32 %v1080_v32, %v480_v29  ;;  %v584_v37 = vpop.f32.mrb[1].mxu0  ;;  %v616_v38 = vpop.f32.mrb[1].mxu1 }
 0x107   : > { %v647_v41 = vadd.f32 %v584_v37, %v470_v30  ;;  %v655_v42 = vadd.f32 %v616_v38, %v478_v14  ;;  %v1073_v43 = vpop.f32.mrb[2].mxu0  ;;  %v1081_v44 = vpop.f32.mrb[2].mxu1 }
 0x108   : > { %666 = vst.msk [vmem:[#allocation2 + $0x10] sm:$0xff] %vm351_vm0, %v649_v35  ;;  %674 = vst.msk [vmem:[#allocation2 + $0x50] sm:$0xff] %vm351_vm0, %v657_v36  ;;  %v650_v45 = vadd.f32 %v1073_v43, %v473_v33  ;;  %v658_v46 = vadd.f32 %v1081_v44, %v481_v34  ;;  %v587_v47 = vpop.f32.mrb[3].mxu0  ;;  %v619_v48 = vpop.f32.mrb[3].mxu1 }
 0x109   : > { %664 = vst.msk [vmem:[#allocation2] sm:$0xff] %vm351_vm0, %v647_v41  ;;  %672 = vst.msk [vmem:[#allocation2 + $0x40] sm:$0xff] %vm351_vm0, %v655_v42  ;;  %v648_v49 = vadd.f32 %v587_v47, %v471_v39  ;;  %v656_v50 = vadd.f32 %v619_v48, %v479_v40 }
 0x10a   : > { %667 = vst.msk [vmem:[#allocation2 + $0x18] sm:$0xff] %vm351_vm0, %v650_v45  ;;  %675 = vst.msk [vmem:[#allocation2 + $0x58] sm:$0xff] %vm351_vm0, %v658_v46 }
 0x10b   : > { %665 = vst.msk [vmem:[#allocation2 + $0x8] sm:$0xff] %vm351_vm0, %v648_v49  ;;  %673 = vst.msk [vmem:[#allocation2 + $0x48] sm:$0xff] %vm351_vm0, %v656_v50 }
 0x10d   : > { %v1076_v56 = vpop.f32.mrb[4].mxu0  ;;  %v1084_v57 = vpop.f32.mrb[4].mxu1 }
 0x10e   : > { %v653_v60 = vadd.f32 %v1076_v56, %v476_v51  ;;  %v661_v61 = vadd.f32 %v1084_v57, %v484_v52  ;;  %v600_v62 = vpop.f32.mrb[5].mxu0  ;;  %v632_v63 = vpop.f32.mrb[5].mxu1 }
 0x10f   : > { %v685_v2 = vld [vmem:[#allocation2 + $0x10] sm:$0xff]  ;;  %v651_v5 = vadd.f32 %v600_v62, %v474_v53  ;;  %v659_v6 = vadd.f32 %v632_v63, %v482_v54  ;;  %v1077_v7 = vpop.f32.mrb[6].mxu0  ;;  %v1085_v8 = vpop.f32.mrb[6].mxu1 }
 0x110   : > { %v693_v3 = vld [vmem:[#allocation2 + $0x50] sm:$0xff]  ;;  %v708_v9 = vadd.f32 %v1307_v55, %v685_v2  ;;  %v683_v11 = vld [vmem:[#allocation2] sm:$0xff]  ;;  %670 = vst.msk [vmem:[#allocation2 + $0x30] sm:$0xff] %vm351_vm0, %v653_v60  ;;  %678 = vst.msk [vmem:[#allocation2 + $0x70] sm:$0xff] %vm351_vm0, %v661_v61  ;;  %v654_v13 = vadd.f32 %v1077_v7, %v477_v58  ;;  %v662_v15 = vadd.f32 %v1085_v8, %v485_v59  ;;  %v603_v16 = vpop.f32.mrb[7].mxu0  ;;  %v635_v17 = vpop.f32.mrb[7].mxu1 }
 0x111   : > { %v716_v10 = vadd.f32 %v1307_v55, %v693_v3  ;;  %v691_v12 = vld [vmem:[#allocation2 + $0x40] sm:$0xff]  ;;  %v706_v18 = vadd.f32 %v1307_v55, %v683_v11  ;;  %v686_v20 = vld [vmem:[#allocation2 + $0x18] sm:$0xff]  ;;  %668 = vst.msk [vmem:[#allocation2 + $0x20] sm:$0xff] %vm351_vm0, %v651_v5  ;;  %676 = vst.msk [vmem:[#allocation2 + $0x60] sm:$0xff] %vm351_vm0, %v659_v6  ;;  %v652_v21 = vadd.f32 %v603_v16, %v475_v0 }
 0x112   : > { %v714_v19 = vadd.f32 %v1307_v55, %v691_v12  ;;  %v694_v4 = vld [vmem:[#allocation2 + $0x58] sm:$0xff]  ;;  %v660_v22 = vadd.f32 %v635_v17, %v483_v1  ;;  %v985_v23 = vpack.c.bf16 %v708_v9, %v708_v9  ;;  %v709_v25 = vadd.f32 %v1307_v55, %v686_v20  ;;  %v684_v27 = vld [vmem:[#allocation2 + $0x8] sm:$0xff]  ;;  %671 = vst.msk [vmem:[#allocation2 + $0x38] sm:$0xff] %vm351_vm0, %v654_v13 }
 0x113   : > { %v993_v24 = vpack.c.bf16 %v716_v10, %v716_v10  ;;  %v717_v26 = vadd.f32 %v1307_v55, %v694_v4  ;;  %v692_v28 = vld [vmem:[#allocation2 + $0x48] sm:$0xff]  ;;  %679 = vst.msk [vmem:[#allocation2 + $0x78] sm:$0xff] %vm351_vm0, %v662_v15  ;;  %v983_v29 = vpack.c.bf16 %v706_v18, %v706_v18  ;;  %v707_v14 = vadd.f32 %v1307_v55, %v684_v27 }
 0x114   : > { %v991_v30 = vpack.c.bf16 %v714_v19, %v714_v19  ;;  %v715_v31 = vadd.f32 %v1307_v55, %v692_v28  ;;  %669 = vst.msk [vmem:[#allocation2 + $0x28] sm:$0xff] %vm351_vm0, %v652_v21  ;;  %677 = vst.msk [vmem:[#allocation2 + $0x68] sm:$0xff] %vm351_vm0, %v660_v22  ;;  %v986_v32 = vpack.c.bf16 %v709_v25, %v709_v25 }
 0x115   : > { %789 = vst.msk [vmem:[%s1317_s12 + $0x8] sm:$0xf] %vm786_vm1, %v985_v23  ;;  %797 = vst.msk [vmem:[%s1317_s12 + $0x28] sm:$0xf] %vm786_vm1, %v993_v24  ;;  %v994_v33 = vpack.c.bf16 %v717_v26, %v717_v26  ;;  %v984_v34 = vpack.c.bf16 %v707_v14, %v707_v14 }
 0x116   : > { %787 = vst.msk [vmem:[%s1317_s12] sm:$0xf] %vm786_vm1, %v983_v29  ;;  %795 = vst.msk [vmem:[%s1317_s12 + $0x20] sm:$0xf] %vm786_vm1, %v991_v30  ;;  %v992_v35 = vpack.c.bf16 %v715_v31, %v715_v31 }
 0x117   : > { %790 = vst.msk [vmem:[%s1317_s12 + $0xc] sm:$0xf] %vm786_vm1, %v986_v32  ;;  %798 = vst.msk [vmem:[%s1317_s12 + $0x2c] sm:$0xf] %vm786_vm1, %v994_v33  ;;  %v689_v36 = vld [vmem:[#allocation2 + $0x30] sm:$0xff] }
 0x118   : > { %788 = vst.msk [vmem:[%s1317_s12 + $0x4] sm:$0xf] %vm786_vm1, %v984_v34  ;;  %796 = vst.msk [vmem:[%s1317_s12 + $0x24] sm:$0xf] %vm786_vm1, %v992_v35  ;;  %v697_v37 = vld [vmem:[#allocation2 + $0x70] sm:$0xff]  ;;  %v712_v38 = vadd.f32 %v1307_v55, %v689_v36  ;;  %v687_v40 = vld [vmem:[#allocation2 + $0x20] sm:$0xff] }
 0x119   : > { %v720_v39 = vadd.f32 %v1307_v55, %v697_v37  ;;  %v695_v41 = vld [vmem:[#allocation2 + $0x60] sm:$0xff]  ;;  %v710_v42 = vadd.f32 %v1307_v55, %v687_v40  ;;  %v690_v44 = vld [vmem:[#allocation2 + $0x38] sm:$0xff] }
 0x11a   : > { %v718_v43 = vadd.f32 %v1307_v55, %v695_v41  ;;  %v698_v45 = vld [vmem:[#allocation2 + $0x78] sm:$0xff]  ;;  %v989_v46 = vpack.c.bf16 %v712_v38, %v712_v38  ;;  %v713_v48 = vadd.f32 %v1307_v55, %v690_v44 }
 0x11b   : > { %v997_v47 = vpack.c.bf16 %v720_v39, %v720_v39  ;;  %v721_v49 = vadd.f32 %v1307_v55, %v698_v45  ;;  %v688_v50 = vld [vmem:[#allocation2 + $0x28] sm:$0xff]  ;;  %v987_v52 = vpack.c.bf16 %v710_v42, %v710_v42 }
 0x11c   : > { %v696_v51 = vld [vmem:[#allocation2 + $0x68] sm:$0xff]  ;;  %v995_v53 = vpack.c.bf16 %v718_v43, %v718_v43  ;;  %v711_v54 = vadd.f32 %v1307_v55, %v688_v50  ;;  %793 = vst.msk [vmem:[%s1317_s12 + $0x18] sm:$0xf] %vm786_vm1, %v989_v46  ;;  %v990_v57 = vpack.c.bf16 %v713_v48, %v713_v48 }
 0x11d   : > { %v719_v56 = vadd.f32 %v1307_v55, %v696_v51  ;;  %801 = vst.msk [vmem:[%s1317_s12 + $0x38] sm:$0xf] %vm786_vm1, %v997_v47  ;;  %v998_v58 = vpack.c.bf16 %v721_v49, %v721_v49  ;;  %791 = vst.msk [vmem:[%s1317_s12 + $0x10] sm:$0xf] %vm786_vm1, %v987_v52 }
 0x11e   : > { %799 = vst.msk [vmem:[%s1317_s12 + $0x30] sm:$0xf] %vm786_vm1, %v995_v53  ;;  %v988_v59 = vpack.c.bf16 %v711_v54, %v711_v54  ;;  %794 = vst.msk [vmem:[%s1317_s12 + $0x1c] sm:$0xf] %vm786_vm1, %v990_v57 }
 0x11f   : > { %v996_v60 = vpack.c.bf16 %v719_v56, %v719_v56  ;;  %802 = vst.msk [vmem:[%s1317_s12 + $0x3c] sm:$0xf] %vm786_vm1, %v998_v58 }
 0x120   : > { %792 = vst.msk [vmem:[%s1317_s12 + $0x14] sm:$0xf] %vm786_vm1, %v988_v59 }
 0x121   : > { %800 = vst.msk [vmem:[%s1317_s12 + $0x34] sm:$0xf] %vm786_vm1, %v996_v60 }
 0x122 PF: > { %s15_s20 = sadd.s32 1, %s1157_s20   ;;  %s1386_s18 = smov %s1153_s19 }
 0x123   : > { %p12_p5 = scmp.ge.s32.totalorder %s15_s20, 6   ;;  %s1387_s19 = smov %s1389_s21 }
 0x125   :  { %14 = sbr.rel (!%p12_p5) target bundleno = 2 (0x2), region = 87 }

// kernel: unet_generator.32
= control target key start
LH: loop header
LB: loop body
LE: loop exit
PB: predicated region body
PF: predicated region fallthrough
CT: control target
= control target key end

     0   :  { %vm14_vm0 = vcmask 57344   ;;  %v651_v0 = vmov 0.0   ;;  %vm146_vm1 = vcmask 64512   ;;  %s1446_s1 = inlined_call_operand.vmem [shape: f32[1,8], index: 1, kind: output, shape index: {0}]   ;;  %s1447_s2 = inlined_call_operand.vmem [shape: f32[1,8], index: 2, kind: output, shape index: {1}]   ;;  %s1448_s0 = inlined_call_operand.vmem [shape: bf16[512,8], index: 0, kind: input, shape index: {}]  }
   0x1   :  { %15 = vst.msk [vmem:[%s1446_s1] sm:$0x1] %vm14_vm0, %v651_v0  ;;  %16 = vst.msk [vmem:[%s1447_s2] sm:$0x1] %vm14_vm0, %v651_v0  ;;  %v492_v1 = vld [vmem:[%s1448_s0] sm:$0xff]   ;;  %v619_v2 = vld [vmem:[%s1448_s0 + $0x8] sm:$0xff]  }
   0x2   :  { %v620_v3 = vld [vmem:[%s1448_s0 + $0x10] sm:$0xff]   ;;  %v621_v4 = vld [vmem:[%s1448_s0 + $0x18] sm:$0xff]   ;;  %v622_v5 = vld [vmem:[%s1448_s0 + $0x20] sm:$0xff]   ;;  %v693_v7 = vunpack.c.l.bf16 %v492_v1  ;;  %v695_v8 = vunpack.c.h.bf16 %v492_v1  ;;  %v697_v9 = vunpack.c.l.bf16 %v619_v2  ;;  %v705_v12 = vunpack.c.h.bf16 %v619_v2 }
   0x3   :  { %v623_v6 = vld [vmem:[%s1448_s0 + $0x28] sm:$0xff]   ;;  %v636_v11 = vld [vmem:[%s1448_s0 + $0x90] sm:$0xff]   ;;  %v707_v13 = vunpack.c.l.bf16 %v620_v3  ;;  %v709_v14 = vunpack.c.h.bf16 %v620_v3  ;;  %v711_v15 = vunpack.c.l.bf16 %v621_v4  ;;  %v637_v16 = vld [vmem:[%s1448_s0 + $0x98] sm:$0xff]   ;;  %v719_v18 = vunpack.c.h.bf16 %v621_v4 }
   0x4   :  { %v635_v10 = vld [vmem:[%s1448_s0 + $0x88] sm:$0xff]   ;;  %v638_v17 = vld [vmem:[%s1448_s0 + $0xa0] sm:$0xff]   ;;  %v721_v19 = vunpack.c.l.bf16 %v622_v5  ;;  %v723_v20 = vunpack.c.h.bf16 %v622_v5  ;;  %v725_v21 = vunpack.c.l.bf16 %v623_v6  ;;  %v727_v22 = vunpack.c.h.bf16 %v623_v6  ;;  %v640_v27 = vld [vmem:[%s1448_s0 + $0xb0] sm:$0xff]  }
   0x5   :  { %v729_v23 = vunpack.c.l.bf16 %v635_v10  ;;  %v731_v24 = vunpack.c.h.bf16 %v635_v10  ;;  %v733_v25 = vunpack.c.l.bf16 %v636_v11  ;;  %v639_v26 = vld [vmem:[%s1448_s0 + $0xa8] sm:$0xff]   ;;  %v741_v28 = vunpack.c.h.bf16 %v636_v11  ;;  %v641_v32 = vld [vmem:[%s1448_s0 + $0xb8] sm:$0xff]   ;;  %v642_v34 = vld [vmem:[%s1448_s0 + $0xc0] sm:$0xff]  }
   0x6   :  { %v743_v29 = vunpack.c.l.bf16 %v637_v16  ;;  %v745_v30 = vunpack.c.h.bf16 %v637_v16  ;;  %v747_v31 = vunpack.c.l.bf16 %v638_v17  ;;  %v752_v33 = vunpack.c.h.bf16 %v638_v17  ;;  %v643_v35 = vld [vmem:[%s1448_s0 + $0xc8] sm:$0xff]   ;;  %v644_v42 = vld [vmem:[%s1448_s0 + $0xd0] sm:$0xff]   ;;  %v645_v47 = vld [vmem:[%s1448_s0 + $0xd8] sm:$0xff]  }
   0x7   :  { %v147_v36 = vsel %vm146_vm1, %v693_v7, 0.0  ;;  %v148_v37 = vsel %vm146_vm1, %v695_v8, 0.0  ;;  %v150_v38 = vsel %vm146_vm1, %v697_v9, 0.0  ;;  %v766_v39 = vunpack.c.l.bf16 %v639_v26  ;;  %v646_v48 = vld [vmem:[%s1448_s0 + $0xe0] sm:$0xff]   ;;  %v647_v53 = vld [vmem:[%s1448_s0 + $0xe8] sm:$0xff]   ;;  %v648_v58 = vld [vmem:[%s1448_s0 + $0xf0] sm:$0xff]  }
   0x8   :  { %v768_v40 = vunpack.c.h.bf16 %v639_v26  ;;  %v770_v41 = vunpack.c.l.bf16 %v640_v27  ;;  %v149_v43 = vadd.f32 %v148_v37, %v147_v36  ;;  %v775_v44 = vunpack.c.h.bf16 %v640_v27  ;;  %v649_v59 = vld [vmem:[%s1448_s0 + $0xf8] sm:$0xff]  }
   0x9   :  { %v777_v45 = vunpack.c.l.bf16 %v641_v32  ;;  %v779_v46 = vunpack.c.h.bf16 %v641_v32  ;;  %v152_v49 = vsel %vm146_vm1, %v705_v12, 0.0  ;;  %v789_v50 = vunpack.c.l.bf16 %v642_v34 }
   0xa   :  { %v791_v51 = vunpack.c.h.bf16 %v642_v34  ;;  %v793_v52 = vunpack.c.l.bf16 %v643_v35  ;;  %v151_v54 = vadd.f32 %v150_v38, %v149_v43  ;;  %v798_v55 = vunpack.c.h.bf16 %v643_v35 }
   0xb   :  { %v800_v56 = vunpack.c.l.bf16 %v644_v42  ;;  %v802_v57 = vunpack.c.h.bf16 %v644_v42  ;;  %v154_v60 = vsel %vm146_vm1, %v707_v13, 0.0  ;;  %v812_v61 = vunpack.c.l.bf16 %v645_v47 }
   0xc   :  { %v814_v62 = vunpack.c.h.bf16 %v645_v47  ;;  %v816_v63 = vunpack.c.l.bf16 %v646_v48  ;;  %v153_v0 = vadd.f32 %v152_v49, %v151_v54  ;;  %v818_v1 = vunpack.c.h.bf16 %v646_v48 }
   0xd   :  { %v820_v2 = vunpack.c.l.bf16 %v647_v53  ;;  %v822_v3 = vunpack.c.h.bf16 %v647_v53  ;;  %v156_v4 = vsel %vm146_vm1, %v709_v14, 0.0  ;;  %v826_v5 = vunpack.c.l.bf16 %v648_v58 }
   0xe   :  { %1471 = vst [vmem:[#allocation2_spill] sm:$0xff] %v814_v62  ;;  %1472 = vst [vmem:[#allocation3_spill] sm:$0xff] %v816_v63  ;;  %v828_v6 = vunpack.c.h.bf16 %v648_v58  ;;  %v830_v10 = vunpack.c.l.bf16 %v649_v59  ;;  %v155_v11 = vadd.f32 %v154_v60, %v153_v0  ;;  %v832_v16 = vunpack.c.h.bf16 %v649_v59 }
   0xf   :  { %1473 = vst [vmem:[#allocation4_spill] sm:$0xff] %v818_v1  ;;  %1474 = vst [vmem:[#allocation5_spill] sm:$0xff] %v820_v2  ;;  %v158_v17 = vsel %vm146_vm1, %v711_v15, 0.0  ;;  %v160_v26 = vsel %vm146_vm1, %v719_v18, 0.0  ;;  %v162_v27 = vsel %vm146_vm1, %v721_v19, 0.0  ;;  %v164_v34 = vsel %vm146_vm1, %v723_v20, 0.0 }
  0x10   :  { %1475 = vst [vmem:[#allocation6_spill] sm:$0xff] %v822_v3  ;;  %1476 = vst [vmem:[#allocation7_spill] sm:$0xff] %v826_v5  ;;  %v157_v32 = vadd.f32 %v156_v4, %v155_v11  ;;  %v166_v35 = vsel %vm146_vm1, %v725_v21, 0.0  ;;  %v846_v36 = vsel %vm146_vm1, %v729_v23, 0.0  ;;  %v850_v37 = vsel %vm146_vm1, %v731_v24, 0.0 }
  0x11   :  { %1477 = vst [vmem:[#allocation8_spill] sm:$0xff] %v828_v6  ;;  %1478 = vst [vmem:[#allocation9_spill] sm:$0xff] %v830_v10  ;;  %v854_v38 = vsel %vm146_vm1, %v733_v25, 0.0  ;;  %v858_v42 = vsel %vm146_vm1, %v741_v28, 0.0  ;;  %v862_v43 = vsel %vm146_vm1, %v743_v29, 0.0  ;;  %v866_v48 = vsel %vm146_vm1, %v745_v30, 0.0 }
  0x12   :  { %1479 = vst [vmem:[#allocation10_spill] sm:$0xff] %v832_v16  ;;  %1480 = vst [vmem:[#allocation11_spill] sm:$0xff] %v846_v36  ;;  %v159_v47 = vadd.f32 %v158_v17, %v157_v32  ;;  %v870_v49 = vsel %vm146_vm1, %v747_v31, 0.0  ;;  %v874_v53 = vsel %vm146_vm1, %v752_v33, 0.0  ;;  %v878_v54 = vsel %vm146_vm1, %v766_v39, 0.0 }
  0x13   :  { %1481 = vst [vmem:[#allocation12_spill] sm:$0xff] %v850_v37  ;;  %1482 = vst [vmem:[#allocation13_spill] sm:$0xff] %v854_v38  ;;  %v882_v58 = vsel %vm146_vm1, %v768_v40, 0.0  ;;  %v886_v59 = vsel %vm146_vm1, %v770_v41, 0.0  ;;  %v890_v60 = vsel %vm146_vm1, %v775_v44, 0.0  ;;  %v894_v4 = vsel %vm146_vm1, %v777_v45, 0.0 }
  0x14   :  { %1483 = vst [vmem:[#allocation14_spill] sm:$0xff] %v858_v42  ;;  %1484 = vst [vmem:[#allocation15_spill] sm:$0xff] %v862_v43  ;;  %v161_v0 = vadd.f32 %v160_v26, %v159_v47  ;;  %v898_v11 = vsel %vm146_vm1, %v779_v46, 0.0  ;;  %v902_v17 = vsel %vm146_vm1, %v789_v50, 0.0  ;;  %v906_v32 = vsel %vm146_vm1, %v791_v51, 0.0 }
  0x15   :  { %1485 = vst [vmem:[#allocation16_spill] sm:$0xff] %v866_v48  ;;  %1486 = vst [vmem:[#allocation17_spill] sm:$0xff] %v870_v49  ;;  %v914_v26 = vsel %vm146_vm1, %v798_v55, 0.0  ;;  %v918_v47 = vsel %vm146_vm1, %v800_v56, 0.0 }
  0x16   :  { %1487 = vst [vmem:[#allocation18_spill] sm:$0xff] %v874_v53  ;;  %1488 = vst [vmem:[#allocation19_spill] sm:$0xff] %v878_v54  ;;  %v630_v53 = vld [vmem:[%s1448_s0 + $0x60] sm:$0xff]  }
  0x17   :  { %1489 = vst [vmem:[#allocation20_spill] sm:$0xff] %v882_v58  ;;  %1490 = vst [vmem:[#allocation21_spill] sm:$0xff] %v886_v59 }
  0x18   :  { %1491 = vst [vmem:[#allocation22_spill] sm:$0xff] %v890_v60  ;;  %1492 = vst [vmem:[#allocation23_spill] sm:$0xff] %v894_v4  ;;  %v910_v60 = vsel %vm146_vm1, %v793_v52, 0.0  ;;  %v627_v4 = vld [vmem:[%s1448_s0 + $0x48] sm:$0xff]  }
  0x19   :  { %1493 = vst [vmem:[#allocation24_spill] sm:$0xff] %v898_v11  ;;  %1494 = vst [vmem:[#allocation25_spill] sm:$0xff] %v902_v17  ;;  %v624_v17 = vld [vmem:[%s1448_s0 + $0x30] sm:$0xff]   ;;  %v163_v11 = vadd.f32 %v162_v27, %v161_v0  ;;  %v626_v27 = vld [vmem:[%s1448_s0 + $0x40] sm:$0xff]   ;;  %v943_v0 = vsel %vm146_vm1, %v816_v63, 0.0  ;;  %v999_v43 = vunpack.c.l.bf16 %v627_v4  ;;  %v1001_v42 = vunpack.c.h.bf16 %v627_v4 }
  0x1a   :  { %1495 = vst [vmem:[#allocation26_spill] sm:$0xff] %v906_v32  ;;  %1496 = vst [vmem:[#allocation27_spill] sm:$0xff] %v910_v60  ;;  %v925_v32 = vsel %vm146_vm1, %v802_v57, 0.0  ;;  %v929_v60 = vsel %vm146_vm1, %v812_v61, 0.0  ;;  %v972_v58 = vunpack.c.l.bf16 %v624_v17  ;;  %v997_v48 = vunpack.c.h.bf16 %v626_v27  ;;  %v633_v4 = vld [vmem:[%s1448_s0 + $0x78] sm:$0xff]  }
  0x1b   :  { %1497 = vst [vmem:[#allocation28_spill] sm:$0xff] %v914_v26  ;;  %1498 = vst [vmem:[#allocation29_spill] sm:$0xff] %v918_v47  ;;  %v933_v26 = vsel %vm146_vm1, %v814_v62, 0.0  ;;  %v625_v47 = vld [vmem:[%s1448_s0 + $0x38] sm:$0xff]   ;;  %v165_v59 = vadd.f32 %v164_v34, %v163_v11  ;;  %v628_v34 = vld [vmem:[%s1448_s0 + $0x50] sm:$0xff]   ;;  %v1036_v63 = vunpack.c.l.bf16 %v633_v4 }
  0x1c   :  { %1499 = vst [vmem:[#allocation30_spill] sm:$0xff] %v925_v32  ;;  %1500 = vst [vmem:[#allocation31_spill] sm:$0xff] %v929_v60  ;;  %v947_v32 = vsel %vm146_vm1, %v818_v1, 0.0  ;;  %v951_v60 = vsel %vm146_vm1, %v820_v2, 0.0  ;;  %v629_v11 = vld [vmem:[%s1448_s0 + $0x58] sm:$0xff]   ;;  %v990_v54 = vunpack.c.h.bf16 %v625_v47  ;;  %v170_v38 = vsel %vm146_vm1, %v972_v58, 0.0 }
  0x1d   :  { %1501 = vst [vmem:[#allocation32_spill] sm:$0xff] %v933_v26  ;;  %1502 = vst [vmem:[#allocation33_spill] sm:$0xff] %v943_v0  ;;  %v955_v26 = vsel %vm146_vm1, %v822_v3, 0.0  ;;  %v962_v0 = vsel %vm146_vm1, %v826_v5, 0.0  ;;  %v167_v49 = vadd.f32 %v166_v35, %v165_v59  ;;  %v1011_v37 = vunpack.c.l.bf16 %v628_v34 }
  0x1e   :  { %1503 = vst [vmem:[#allocation34_spill] sm:$0xff] %v947_v32  ;;  %1504 = vst [vmem:[#allocation35_spill] sm:$0xff] %v951_v60  ;;  %v966_v32 = vsel %vm146_vm1, %v828_v6, 0.0  ;;  %v970_v60 = vsel %vm146_vm1, %v830_v10, 0.0  ;;  %v1013_v35 = vunpack.c.h.bf16 %v628_v34  ;;  %v1015_v59 = vunpack.c.l.bf16 %v629_v11 }
  0x1f   :  { %1505 = vst [vmem:[#allocation36_spill] sm:$0xff] %v955_v26  ;;  %1506 = vst [vmem:[#allocation37_spill] sm:$0xff] %v962_v0  ;;  %v974_v26 = vunpack.c.h.bf16 %v624_v17  ;;  %v168_v0 = vsel %vm146_vm1, %v727_v22, 0.0  ;;  %v992_v17 = vunpack.c.l.bf16 %v626_v27  ;;  %v1020_v36 = vunpack.c.h.bf16 %v629_v11 }
  0x20   :  { %1507 = vst [vmem:[#allocation38_spill] sm:$0xff] %v966_v32  ;;  %1508 = vst [vmem:[#allocation39_spill] sm:$0xff] %v970_v60  ;;  %v986_v32 = vsel %vm146_vm1, %v832_v16, 0.0  ;;  %v988_v60 = vunpack.c.l.bf16 %v625_v47  ;;  %v632_v47 = vld [vmem:[%s1448_s0 + $0x70] sm:$0xff]   ;;  %v169_v27 = vadd.f32 %v168_v0, %v167_v49  ;;  %v1022_v16 = vunpack.c.l.bf16 %v630_v53 }
  0x21   :  { %1509 = vst [vmem:[#allocation40_spill] sm:$0xff] %v986_v32  ;;  %1510 = vst [vmem:[#allocation41_spill] sm:$0xff] %v997_v48  ;;  %v631_v32 = vld [vmem:[%s1448_s0 + $0x68] sm:$0xff]   ;;  %v1024_v10 = vunpack.c.h.bf16 %v630_v53  ;;  %v172_v6 = vsel %vm146_vm1, %v974_v26, 0.0  ;;  %v1032_v3 = vunpack.c.l.bf16 %v632_v47  ;;  %v1034_v1 = vunpack.c.h.bf16 %v632_v47 }
  0x22   :  { %1511 = vst [vmem:[#allocation42_spill] sm:$0xff] %v999_v43  ;;  %1512 = vst [vmem:[#allocation43_spill] sm:$0xff] %v1001_v42  ;;  %v1028_v5 = vunpack.c.l.bf16 %v631_v32  ;;  %v1030_v34 = vunpack.c.h.bf16 %v631_v32  ;;  %v171_v2 = vadd.f32 %v170_v38, %v169_v27  ;;  %v1038_v49 = vunpack.c.h.bf16 %v633_v4 }
  0x23   :  { %1513 = vst [vmem:[#allocation44_spill] sm:$0xff] %v1013_v35  ;;  %1514 = vst [vmem:[#allocation45_spill] sm:$0xff] %v1015_v59  ;;  %v174_v53 = vsel %vm146_vm1, %v988_v60, 0.0  ;;  %v176_v11 = vsel %vm146_vm1, %v990_v54, 0.0  ;;  %v178_v32 = vsel %vm146_vm1, %v992_v17, 0.0  ;;  %v180_v62 = vsel %vm146_vm1, %v997_v48, 0.0 }
  0x24   :  { %1515 = vst [vmem:[#allocation46_spill] sm:$0xff] %v1020_v36  ;;  %1516 = vst [vmem:[#allocation47_spill] sm:$0xff] %v1022_v16  ;;  %v173_v0 = vadd.f32 %v172_v6, %v171_v2  ;;  %v182_v38 = vsel %vm146_vm1, %v999_v43, 0.0  ;;  %v184_v47 = vsel %vm146_vm1, %v1001_v42, 0.0  ;;  %v186_v4 = vsel %vm146_vm1, %v1011_v37, 0.0 }
  0x25   :  { %1517 = vst [vmem:[#allocation48_spill] sm:$0xff] %v1024_v10  ;;  %1518 = vst [vmem:[#allocation49_spill] sm:$0xff] %v1028_v5  ;;  %v188_v2 = vsel %vm146_vm1, %v1013_v35, 0.0  ;;  %v1058_v27 = vsel %vm146_vm1, %v1015_v59, 0.0  ;;  %v1062_v48 = vsel %vm146_vm1, %v1020_v36, 0.0  ;;  %v1066_v43 = vsel %vm146_vm1, %v1022_v16, 0.0 }
  0x26   :  { %1519 = vst [vmem:[#allocation50_spill] sm:$0xff] %v1030_v34  ;;  %1520 = vst [vmem:[#allocation51_spill] sm:$0xff] %v1032_v3  ;;  %v175_v6 = vadd.f32 %v174_v53, %v173_v0  ;;  %v1070_v42 = vsel %vm146_vm1, %v1024_v10, 0.0  ;;  %v1074_v35 = vsel %vm146_vm1, %v1028_v5, 0.0  ;;  %v1078_v53 = vsel %vm146_vm1, %v1030_v34, 0.0 }
  0x27   :  { %1521 = vst [vmem:[#allocation52_spill] sm:$0xff] %v1034_v1  ;;  %1522 = vst [vmem:[#allocation53_spill] sm:$0xff] %v1036_v63  ;;  %v1082_v0 = vsel %vm146_vm1, %v1032_v3, 0.0  ;;  %v1086_v16 = vsel %vm146_vm1, %v1034_v1, 0.0  ;;  %v1090_v10 = vsel %vm146_vm1, %v1036_v63, 0.0  ;;  %v284_v5 = vmul.f32 %v693_v7, %v693_v7 }
  0x28   :  { %v177_v36 = vadd.f32 %v176_v11, %v175_v6  ;;  %v285_v34 = vmul.f32 %v695_v8, %v695_v8  ;;  %v286_v59 = vmul.f32 %v697_v9, %v697_v9  ;;  %v287_v11 = vmul.f32 %v705_v12, %v705_v12 }
  0x29   :  { %v288_v6 = vmul.f32 %v707_v13, %v707_v13  ;;  %v289_v63 = vmul.f32 %v709_v14, %v709_v14  ;;  %v290_v3 = vmul.f32 %v711_v15, %v711_v15  ;;  %v291_v7 = vmul.f32 %v719_v18, %v719_v18 }
  0x2a   :  { %v179_v1 = vadd.f32 %v178_v32, %v177_v36  ;;  %v292_v8 = vmul.f32 %v721_v19, %v721_v19  ;;  %v293_v9 = vmul.f32 %v723_v20, %v723_v20  ;;  %v294_v12 = vmul.f32 %v725_v21, %v725_v21 }
  0x2b   :  { %v295_v13 = vmul.f32 %v727_v22, %v727_v22  ;;  %v296_v14 = vmul.f32 %v972_v58, %v972_v58  ;;  %v1120_v15 = vmul.f32 %v974_v26, %v974_v26  ;;  %v1124_v18 = vmul.f32 %v988_v60, %v988_v60 }
  0x2c   :  { %v181_v36 = vadd.f32 %v180_v62, %v179_v1  ;;  %v318_v19 = vmul.f32 %v729_v23, %v729_v23  ;;  %v319_v20 = vmul.f32 %v731_v24, %v731_v24  ;;  %v320_v21 = vmul.f32 %v733_v25, %v733_v25 }
  0x2d   :  { %v321_v22 = vmul.f32 %v741_v28, %v741_v28  ;;  %v322_v1 = vmul.f32 %v743_v29, %v743_v29  ;;  %v323_v58 = vmul.f32 %v745_v30, %v745_v30  ;;  %v324_v60 = vmul.f32 %v747_v31, %v747_v31 }
  0x2e   :  { %v183_v62 = vadd.f32 %v182_v38, %v181_v36  ;;  %v325_v23 = vmul.f32 %v752_v33, %v752_v33  ;;  %v326_v24 = vmul.f32 %v766_v39, %v766_v39  ;;  %v348_v25 = vsel %vm146_vm1, %v284_v5, 0.0 }
  0x2f   :  { %v349_v28 = vsel %vm146_vm1, %v285_v34, 0.0  ;;  %v327_v29 = vmul.f32 %v768_v40, %v768_v40  ;;  %v351_v30 = vsel %vm146_vm1, %v286_v59, 0.0  ;;  %v328_v31 = vmul.f32 %v770_v41, %v770_v41 }
  0x30   :  { %v185_v26 = vadd.f32 %v184_v47, %v183_v62  ;;  %v350_v32 = vadd.f32 %v349_v28, %v348_v25  ;;  %v329_v33 = vmul.f32 %v775_v44, %v775_v44  ;;  %v330_v39 = vmul.f32 %v777_v45, %v777_v45  ;;  %v1526_v28 = vld [vmem:[#allocation5_spill] sm:$0xff] }
  0x31   :  { %v353_v5 = vsel %vm146_vm1, %v287_v11, 0.0  ;;  %v331_v34 = vmul.f32 %v779_v46, %v779_v46  ;;  %v332_v40 = vmul.f32 %v789_v50, %v789_v50  ;;  %v333_v59 = vmul.f32 %v791_v51, %v791_v51  ;;  %v1523_v51 = vld [vmem:[#allocation2_spill] sm:$0xff] }
  0x32   :  { %v187_v38 = vadd.f32 %v186_v4, %v185_v26  ;;  %v352_v47 = vadd.f32 %v351_v30, %v350_v32  ;;  %v334_v41 = vmul.f32 %v793_v52, %v793_v52  ;;  %v335_v44 = vmul.f32 %v798_v55, %v798_v55  ;;  %v1524_v52 = vld [vmem:[#allocation3_spill] sm:$0xff]  ;;  %v1527_v32 = vld [vmem:[#allocation6_spill] sm:$0xff] }
  0x33   :  { %v355_v45 = vsel %vm146_vm1, %v288_v6, 0.0  ;;  %v336_v4 = vmul.f32 %v800_v56, %v800_v56  ;;  %v337_v46 = vmul.f32 %v802_v57, %v802_v57  ;;  %v338_v36 = vmul.f32 %v812_v61, %v812_v61  ;;  %v1525_v6 = vld [vmem:[#allocation4_spill] sm:$0xff]  ;;  %v1528_v30 = vld [vmem:[#allocation7_spill] sm:$0xff] }
  0x34   :  { %v189_v11 = vadd.f32 %v188_v2, %v187_v38  ;;  %v354_v50 = vadd.f32 %v353_v5, %v352_v47  ;;  %v339_v62 = vmul.f32 %v1523_v51, %v1523_v51  ;;  %v340_v25 = vmul.f32 %v1524_v52, %v1524_v52  ;;  %v1529_v38 = vld [vmem:[#allocation8_spill] sm:$0xff]  ;;  %v1531_v52 = vld [vmem:[#allocation10_spill] sm:$0xff] }
  0x35   :  { %v357_v55 = vsel %vm146_vm1, %v289_v63, 0.0  ;;  %v341_v56 = vmul.f32 %v1525_v6, %v1525_v6  ;;  %v342_v57 = vmul.f32 %v1526_v28, %v1526_v28  ;;  %v343_v61 = vmul.f32 %v1527_v32, %v1527_v32 }
  0x36   :  { %v191_v2 = vadd.f32 %v1058_v27, %v189_v11  ;;  %v356_v26 = vadd.f32 %v355_v45, %v354_v50  ;;  %v344_v5 = vmul.f32 %v1528_v30, %v1528_v30  ;;  %v345_v47 = vmul.f32 %v1529_v38, %v1529_v38  ;;  %v1530_v11 = vld [vmem:[#allocation9_spill] sm:$0xff] }
  0x37   :  { %v359_v63 = vsel %vm146_vm1, %v290_v3, 0.0  ;;  %v346_v51 = vmul.f32 %v1530_v11, %v1530_v11  ;;  %v347_v6 = vmul.f32 %v1531_v52, %v1531_v52  ;;  %v361_v50 = vsel %vm146_vm1, %v291_v7, 0.0 }
  0x38   :  { %v193_v27 = vadd.f32 %v1062_v48, %v191_v2  ;;  %v358_v45 = vadd.f32 %v357_v55, %v356_v26  ;;  %v363_v28 = vsel %vm146_vm1, %v292_v8, 0.0  ;;  %v365_v32 = vsel %vm146_vm1, %v293_v9, 0.0 }
  0x39   :  { %v367_v30 = vsel %vm146_vm1, %v294_v12, 0.0  ;;  %v369_v48 = vsel %vm146_vm1, %v295_v13, 0.0  ;;  %v371_v2 = vsel %vm146_vm1, %v296_v14, 0.0  ;;  %v1203_v11 = vsel %vm146_vm1, %v318_v19, 0.0 }
  0x3a   :  { %v195_v38 = vadd.f32 %v1066_v43, %v193_v27  ;;  %v360_v3 = vadd.f32 %v359_v63, %v358_v45  ;;  %v1206_v55 = vsel %vm146_vm1, %v319_v20, 0.0  ;;  %v1209_v7 = vsel %vm146_vm1, %v320_v21, 0.0 }
  0x3b   :  { %v1212_v8 = vsel %vm146_vm1, %v321_v22, 0.0  ;;  %v1216_v12 = vsel %vm146_vm1, %v322_v1, 0.0  ;;  %v1219_v13 = vsel %vm146_vm1, %v323_v58, 0.0  ;;  %v1222_v14 = vsel %vm146_vm1, %v324_v60, 0.0 }
  0x3c   :  { %v197_v9 = vadd.f32 %v1070_v42, %v195_v38  ;;  %v362_v43 = vadd.f32 %v361_v50, %v360_v3  ;;  %v1225_v19 = vsel %vm146_vm1, %v325_v23, 0.0  ;;  %v1228_v20 = vsel %vm146_vm1, %v326_v24, 0.0 }
  0x3d   :  { %v1231_v21 = vsel %vm146_vm1, %v327_v29, 0.0  ;;  %v1235_v1 = vsel %vm146_vm1, %v328_v31, 0.0  ;;  %v1238_v58 = vsel %vm146_vm1, %v329_v33, 0.0  ;;  %v1241_v60 = vsel %vm146_vm1, %v330_v39, 0.0 }
  0x3e   :  { %v199_v42 = vadd.f32 %v1074_v35, %v197_v9  ;;  %v364_v22 = vadd.f32 %v363_v28, %v362_v43  ;;  %v1244_v23 = vsel %vm146_vm1, %v331_v34, 0.0  ;;  %v1247_v24 = vsel %vm146_vm1, %v332_v40, 0.0 }
  0x3f   :  { %v1250_v29 = vsel %vm146_vm1, %v333_v59, 0.0  ;;  %v1254_v31 = vsel %vm146_vm1, %v334_v41, 0.0  ;;  %v1257_v33 = vsel %vm146_vm1, %v335_v44, 0.0  ;;  %v1260_v39 = vsel %vm146_vm1, %v336_v4, 0.0 }
  0x40   :  { %v201_v35 = vadd.f32 %v1078_v53, %v199_v42  ;;  %v366_v26 = vadd.f32 %v365_v32, %v364_v22  ;;  %v1263_v34 = vsel %vm146_vm1, %v337_v46, 0.0  ;;  %v1266_v40 = vsel %vm146_vm1, %v338_v36, 0.0  ;;  %v634_v53 = vld [vmem:[%s1448_s0 + $0x80] sm:$0xff]  }
  0x41   :  { %v1269_v59 = vsel %vm146_vm1, %v339_v62, 0.0  ;;  %v1276_v63 = vsel %vm146_vm1, %v340_v25, 0.0  ;;  %v1279_v4 = vsel %vm146_vm1, %v341_v56, 0.0  ;;  %v1282_v46 = vsel %vm146_vm1, %v342_v57, 0.0 }
  0x42   :  { %v203_v41 = vadd.f32 %v1082_v0, %v201_v35  ;;  %v368_v44 = vadd.f32 %v367_v30, %v366_v26  ;;  %v1285_v36 = vsel %vm146_vm1, %v343_v61, 0.0  ;;  %v1288_v62 = vsel %vm146_vm1, %v344_v5, 0.0  ;;  %v1535_v26 = vld [vmem:[#allocation11_spill] sm:$0xff] }
  0x43   :  { %v1291_v27 = vsel %vm146_vm1, %v345_v47, 0.0  ;;  %v1295_v25 = vsel %vm146_vm1, %v346_v51, 0.0  ;;  %v1298_v56 = vsel %vm146_vm1, %v347_v6, 0.0  ;;  %v1300_v57 = vunpack.c.l.bf16 %v634_v53 }
  0x44   :  { %v205_v0 = vadd.f32 %v1086_v16, %v203_v41  ;;  %v370_v52 = vadd.f32 %v369_v48, %v368_v44  ;;  %v208_v61 = vsel %vm146_vm1, %v1038_v49, 0.0  ;;  %v299_v5 = vmul.f32 %v990_v54, %v990_v54 }
  0x45   :  { %v373_v47 = vsel %vm146_vm1, %v1120_v15, 0.0  ;;  %v1309_v50 = vunpack.c.h.bf16 %v634_v53  ;;  %v210_v51 = vsel %vm146_vm1, %v1300_v57, 0.0  ;;  %v300_v6 = vmul.f32 %v992_v17, %v992_v17  ;;  %v1532_v15 = vld [vmem:[#allocation41_spill] sm:$0xff] }
  0x46   :  { %v207_v16 = vadd.f32 %v1090_v10, %v205_v0  ;;  %v372_v45 = vadd.f32 %v371_v2, %v370_v52  ;;  %v375_v28 = vsel %vm146_vm1, %v1124_v18, 0.0  ;;  %v301_v10 = vmul.f32 %v1532_v15, %v1532_v15  ;;  %v1533_v2 = vld [vmem:[#allocation42_spill] sm:$0xff]  ;;  %v1534_v18 = vld [vmem:[#allocation43_spill] sm:$0xff]  ;;  %v1536_v52 = vld [vmem:[#allocation12_spill] sm:$0xff] }
  0x47   :  { %v212_v54 = vsel %vm146_vm1, %v1309_v50, 0.0  ;;  %v377_v38 = vsel %vm146_vm1, %v299_v5, 0.0  ;;  %v302_v9 = vmul.f32 %v1533_v2, %v1533_v2  ;;  %v379_v17 = vsel %vm146_vm1, %v300_v6, 0.0  ;;  %v1540_v15 = vld [vmem:[#allocation14_spill] sm:$0xff]  ;;  %v1542_v2 = vld [vmem:[#allocation15_spill] sm:$0xff] }
  0x48   :  { %v209_v32 = vadd.f32 %v208_v61, %v207_v16  ;;  %v374_v30 = vadd.f32 %v373_v47, %v372_v45  ;;  %v303_v22 = vmul.f32 %v1534_v18, %v1534_v18  ;;  %v381_v35 = vsel %vm146_vm1, %v301_v10, 0.0  ;;  %v1537_v47 = vld [vmem:[#allocation44_spill] sm:$0xff] }
  0x49   :  { %v304_v44 = vmul.f32 %v1011_v37, %v1011_v37  ;;  %v383_v0 = vsel %vm146_vm1, %v302_v9, 0.0  ;;  %v305_v16 = vmul.f32 %v1537_v47, %v1537_v47 }
  0x4a   :  { %v211_v3 = vadd.f32 %v210_v51, %v209_v32  ;;  %v376_v48 = vadd.f32 %v375_v28, %v374_v30  ;;  %v385_v45 = vsel %vm146_vm1, %v303_v22, 0.0  ;;  %v1538_v51 = vld [vmem:[#allocation13_spill] sm:$0xff]  ;;  %v1544_v22 = vld [vmem:[#allocation16_spill] sm:$0xff] }
  0x4b   :  { %v1539_v32 = vld [vmem:[#allocation45_spill] sm:$0xff] }
  0x4c   :  { %v213_v43 = vadd.f32 %v212_v54, %v211_v3  ;;  %v378_v42 = vadd.f32 %v377_v38, %v376_v48  ;;  %v306_v30 = vmul.f32 %v1539_v32, %v1539_v32  ;;  %v387_v54 = vsel %vm146_vm1, %v304_v44, 0.0  ;;  %v1541_v38 = vld [vmem:[#allocation46_spill] sm:$0xff] }
  0x4d   :  { %v307_v3 = vmul.f32 %v1541_v38, %v1541_v38  ;;  %v389_v48 = vsel %vm146_vm1, %v305_v16, 0.0 }
  0x4e   :  { %v215_v53 = vadd.f32 %v1535_v26, %v213_v43  ;;  %v380_v41 = vadd.f32 %v379_v17, %v378_v42  ;;  %v1543_v43 = vld [vmem:[#allocation47_spill] sm:$0xff]  ;;  %v391_v18 = vsel %vm146_vm1, %v306_v30, 0.0 }
  0x4f   :  { %v308_v42 = vmul.f32 %v1543_v43, %v1543_v43  ;;  %v393_v44 = vsel %vm146_vm1, %v307_v3, 0.0 }
  0x50   :  { %v217_v61 = vadd.f32 %v1536_v52, %v215_v53  ;;  %v382_v5 = vadd.f32 %v381_v35, %v380_v41  ;;  %v1545_v53 = vld [vmem:[#allocation48_spill] sm:$0xff] }
  0x51   :  { %v309_v41 = vmul.f32 %v1545_v53, %v1545_v53  ;;  %v395_v16 = vsel %vm146_vm1, %v308_v42, 0.0 }
  0x52   :  { %v219_v6 = vadd.f32 %v1538_v51, %v217_v61  ;;  %v384_v28 = vadd.f32 %v383_v0, %v382_v5  ;;  %v1546_v0 = vld [vmem:[#allocation17_spill] sm:$0xff] }
  0x53   :  { %v1547_v5 = vld [vmem:[#allocation49_spill] sm:$0xff]  ;;  %v397_v30 = vsel %vm146_vm1, %v309_v41, 0.0 }
  0x54   :  { %v221_v37 = vadd.f32 %v1540_v15, %v219_v6  ;;  %v386_v10 = vadd.f32 %v385_v45, %v384_v28  ;;  %v310_v47 = vmul.f32 %v1547_v5, %v1547_v5  ;;  %v1548_v45 = vld [vmem:[#allocation18_spill] sm:$0xff] }
  0x55   :  { %v1549_v28 = vld [vmem:[#allocation50_spill] sm:$0xff] }
  0x56   :  { %v223_v9 = vadd.f32 %v1542_v2, %v221_v37  ;;  %v388_v17 = vadd.f32 %v387_v54, %v386_v10  ;;  %v311_v32 = vmul.f32 %v1549_v28, %v1549_v28  ;;  %v1550_v54 = vld [vmem:[#allocation19_spill] sm:$0xff]  ;;  %v399_v3 = vsel %vm146_vm1, %v310_v47, 0.0  ;;  %v1558_v28 = vld [vmem:[#allocation24_spill] sm:$0xff] }
  0x57   :  { %v1551_v10 = vld [vmem:[#allocation51_spill] sm:$0xff] }
  0x58   :  { %v225_v35 = vadd.f32 %v1544_v22, %v223_v9  ;;  %v390_v26 = vadd.f32 %v389_v48, %v388_v17  ;;  %v312_v38 = vmul.f32 %v1551_v10, %v1551_v10  ;;  %v1552_v48 = vld [vmem:[#allocation20_spill] sm:$0xff]  ;;  %v401_v42 = vsel %vm146_vm1, %v311_v32, 0.0  ;;  %v1557_v47 = vld [vmem:[#allocation23_spill] sm:$0xff] }
  0x59   :  { %v1553_v17 = vld [vmem:[#allocation52_spill] sm:$0xff] }
  0x5a   :  { %v227_v52 = vadd.f32 %v1546_v0, %v225_v35  ;;  %v392_v61 = vadd.f32 %v391_v18, %v390_v26  ;;  %v313_v43 = vmul.f32 %v1553_v17, %v1553_v17  ;;  %v1554_v18 = vld [vmem:[#allocation21_spill] sm:$0xff]  ;;  %v403_v41 = vsel %vm146_vm1, %v312_v38, 0.0 }
  0x5b   :  { %v1555_v26 = vld [vmem:[#allocation53_spill] sm:$0xff] }
  0x5c   :  { %v229_v51 = vadd.f32 %v1548_v45, %v227_v52  ;;  %v394_v6 = vadd.f32 %v393_v44, %v392_v61  ;;  %v314_v53 = vmul.f32 %v1555_v26, %v1555_v26  ;;  %v1556_v44 = vld [vmem:[#allocation22_spill] sm:$0xff]  ;;  %v315_v61 = vmul.f32 %v1038_v49, %v1038_v49 }
  0x5d   :  { %v405_v5 = vsel %vm146_vm1, %v313_v43, 0.0 }
  0x5e   :  { %v231_v15 = vadd.f32 %v1550_v54, %v229_v51  ;;  %v396_v37 = vadd.f32 %v395_v16, %v394_v6  ;;  %v316_v51 = vmul.f32 %v1300_v57, %v1300_v57  ;;  %v407_v6 = vsel %vm146_vm1, %v314_v53, 0.0  ;;  %v1564_v53 = vld [vmem:[#allocation30_spill] sm:$0xff] }
  0x5f   :  { %v317_v54 = vmul.f32 %v1309_v50, %v1309_v50 }
  0x60   :  { %v233_v2 = vadd.f32 %v1552_v48, %v231_v15  ;;  %v398_v9 = vadd.f32 %v397_v30, %v396_v37  ;;  %v409_v15 = vsel %vm146_vm1, %v315_v61, 0.0  ;;  %v1559_v37 = vld [vmem:[#allocation25_spill] sm:$0xff]  ;;  %v411_v38 = vsel %vm146_vm1, %v316_v51, 0.0 }
  0x61   :  { %v413_v57 = vsel %vm146_vm1, %v317_v54, 0.0 }
  0x62   :  { %v235_v22 = vadd.f32 %v1554_v18, %v233_v2  ;;  %v400_v35 = vadd.f32 %v399_v3, %v398_v9  ;;  %v1560_v3 = vld [vmem:[#allocation26_spill] sm:$0xff]  ;;  %v1561_v9 = vld [vmem:[#allocation27_spill] sm:$0xff] }
  0x64   :  { %v237_v0 = vadd.f32 %v1556_v44, %v235_v22  ;;  %v402_v52 = vadd.f32 %v401_v42, %v400_v35  ;;  %v1562_v42 = vld [vmem:[#allocation28_spill] sm:$0xff]  ;;  %v1563_v35 = vld [vmem:[#allocation29_spill] sm:$0xff] }
  0x66   :  { %v239_v16 = vadd.f32 %v1557_v47, %v237_v0  ;;  %v404_v45 = vadd.f32 %v403_v41, %v402_v52  ;;  %v1565_v0 = vld [vmem:[#allocation31_spill] sm:$0xff] }
  0x68   :  { %v241_v32 = vadd.f32 %v1558_v28, %v239_v16  ;;  %v406_v30 = vadd.f32 %v405_v5, %v404_v45  ;;  %v1566_v5 = vld [vmem:[#allocation32_spill] sm:$0xff]  ;;  %v1567_v45 = vld [vmem:[#allocation33_spill] sm:$0xff]  ;;  %v1568_v28 = vld [vmem:[#allocation34_spill] sm:$0xff] }
  0x6a   :  { %v243_v49 = vadd.f32 %v1559_v37, %v241_v32  ;;  %v408_v10 = vadd.f32 %v407_v6, %v406_v30  ;;  %v1569_v30 = vld [vmem:[#allocation35_spill] sm:$0xff] }
  0x6c   :  { %v245_v48 = vadd.f32 %v1560_v3, %v243_v49  ;;  %v410_v2 = vadd.f32 %v409_v15, %v408_v10  ;;  %v1570_v15 = vld [vmem:[#allocation36_spill] sm:$0xff]  ;;  %v1571_v49 = vld [vmem:[#allocation37_spill] sm:$0xff] }
  0x6e   :  { %v247_v17 = vadd.f32 %v1561_v9, %v245_v48  ;;  %v412_v43 = vadd.f32 %v411_v38, %v410_v2  ;;  %v1572_v38 = vld [vmem:[#allocation38_spill] sm:$0xff]  ;;  %v1573_v48 = vld [vmem:[#allocation39_spill] sm:$0xff] }
  0x70   :  { %v249_v18 = vadd.f32 %v1562_v42, %v247_v17  ;;  %v414_v22 = vadd.f32 %v413_v57, %v412_v43  ;;  %v1574_v57 = vld [vmem:[#allocation40_spill] sm:$0xff] }
  0x72   :  { %v251_v50 = vadd.f32 %v1563_v35, %v249_v18  ;;  %v416_v26 = vadd.f32 %v1203_v11, %v414_v22 }
  0x74   :  { %v253_v41 = vadd.f32 %v1564_v53, %v251_v50  ;;  %v418_v44 = vadd.f32 %v1206_v55, %v416_v26 }
  0x76   :  { %v255_v52 = vadd.f32 %v1565_v0, %v253_v41  ;;  %v420_v61 = vadd.f32 %v1209_v7, %v418_v44 }
  0x78   :  { %v257_v47 = vadd.f32 %v1566_v5, %v255_v52  ;;  %v422_v16 = vadd.f32 %v1212_v8, %v420_v61 }
  0x7a   :  { %v259_v51 = vadd.f32 %v1567_v45, %v257_v47  ;;  %v424_v6 = vadd.f32 %v1216_v12, %v422_v16 }
  0x7c   :  { %v261_v32 = vadd.f32 %v1568_v28, %v259_v51  ;;  %v426_v11 = vadd.f32 %v1219_v13, %v424_v6 }
  0x7e   :  { %v263_v54 = vadd.f32 %v1569_v30, %v261_v32  ;;  %v428_v55 = vadd.f32 %v1222_v14, %v426_v11 }
  0x80   :  { %v265_v37 = vadd.f32 %v1570_v15, %v263_v54  ;;  %v430_v7 = vadd.f32 %v1225_v19, %v428_v55 }
  0x82   :  { %v267_v10 = vadd.f32 %v1571_v49, %v265_v37  ;;  %v432_v8 = vadd.f32 %v1228_v20, %v430_v7 }
  0x84   :  { %v269_v3 = vadd.f32 %v1572_v38, %v267_v10  ;;  %v434_v12 = vadd.f32 %v1231_v21, %v432_v8 }
  0x86   :  { %v271_v2 = vadd.f32 %v1573_v48, %v269_v3  ;;  %v436_v13 = vadd.f32 %v1235_v1, %v434_v12  ;;  %v145_v1 = vld [vmem:[%s1446_s1] sm:$0x1] }
  0x88   :  { %v273_v9 = vadd.f32 %v1574_v57, %v271_v2  ;;  %v438_v14 = vadd.f32 %v1238_v58, %v436_v13 }
  0x8a   :  { %v274_v17 = vrot.slane %v273_v9, 4  ;;  %v440_v43 = vadd.f32 %v1241_v60, %v438_v14 }
  0x8c   :  { %v275_v19 = vadd.f32 %v274_v17, %v273_v9  ;;  %v442_v42 = vadd.f32 %v1244_v23, %v440_v43 }
  0x8e   :  { %v276_v18 = vrot.slane %v275_v19, 2  ;;  %v444_v20 = vadd.f32 %v1247_v24, %v442_v42 }
  0x90   :  { %v277_v22 = vadd.f32 %v276_v18, %v275_v19  ;;  %v446_v21 = vadd.f32 %v1250_v29, %v444_v20 }
  0x92   :  { %v278_v35 = vrot.slane %v277_v22, 1  ;;  %v448_v50 = vadd.f32 %v1254_v31, %v446_v21 }
  0x94   :  { %v279_v58 = vadd.f32 %v278_v35, %v277_v22  ;;  %v450_v26 = vadd.f32 %v1257_v33, %v448_v50 }
  0x96   :  { %v280_v60 = vadd.f32 %v279_v58, %v145_v1  ;;  %v452_v53 = vadd.f32 %v1260_v39, %v450_v26 }
  0x98   :  { %282 = vst.msk [vmem:[%s1446_s1] sm:$0x1] %vm14_vm0, %v280_v60  ;;  %v454_v23 = vadd.f32 %v1263_v34, %v452_v53 }
  0x9a   :  { %v456_v24 = vadd.f32 %v1266_v40, %v454_v23 }
  0x9c   :  { %v458_v29 = vadd.f32 %v1269_v59, %v456_v24 }
  0x9e   :  { %v460_v31 = vadd.f32 %v1276_v63, %v458_v29  ;;  %v283_v63 = vld [vmem:[%s1447_s2] sm:$0x1] }
  0xa0   :  { %v462_v41 = vadd.f32 %v1279_v4, %v460_v31 }
  0xa2   :  { %v464_v33 = vadd.f32 %v1282_v46, %v462_v41 }
  0xa4   :  { %v466_v44 = vadd.f32 %v1285_v36, %v464_v33 }
  0xa6   :  { %v468_v39 = vadd.f32 %v1288_v62, %v466_v44 }
  0xa8   :  { %v470_v0 = vadd.f32 %v1291_v27, %v468_v39 }
  0xaa   :  { %v472_v52 = vadd.f32 %v1295_v25, %v470_v0 }
  0xac   :  { %v474_v34 = vadd.f32 %v1298_v56, %v472_v52 }
  0xae   :  { %v475_v61 = vrot.slane %v474_v34, 4 }
  0xb0   :  { %v476_v40 = vadd.f32 %v475_v61, %v474_v34 }
  0xb2   :  { %v477_v5 = vrot.slane %v476_v40, 2 }
  0xb4   :  { %v478_v59 = vadd.f32 %v477_v5, %v476_v40 }
  0xb6   :  { %v479_v47 = vrot.slane %v478_v59, 1 }
  0xb8   :  { %v480_v4 = vadd.f32 %v479_v47, %v478_v59 }
  0xba   :  { %v481_v46 = vadd.f32 %v480_v4, %v283_v63 }
  0xbc   :  { %482 = vst.msk [vmem:[%s1447_s2] sm:$0x1] %vm14_vm0, %v481_v46 }

// kernel: tile.133
= control target key start
LH: loop header
LB: loop body
LE: loop exit
PB: predicated region body
PF: predicated region fallthrough
CT: control target
= control target key end

     0   :  { %s22_s0 = inlined_call_operand.vmem [shape: f32[16], index: 0, kind: input, shape index: {}]   ;;  %s23_s1 = inlined_call_operand.vmem [shape: f32[4,16], index: 1, kind: output, shape index: {}]  }
   0x1   :  { %v4_v0 = vld [vmem:[%s22_s0] ss:$0 sm:$0xff] }
   0x2   :  { %5 = vst [vmem:[%s23_s1] sm:$0xf] %v4_v0 }

// kernel: tile.134
= control target key start
LH: loop header
LB: loop body
LE: loop exit
PB: predicated region body
PF: predicated region fallthrough
CT: control target
= control target key end

     0   :  { %vm7_vm0 = vcmask 130048   ;;  %s37_s8 = smov 16   ;;  %s38_s9 = smov 32   ;;  %vm13_vm1 = vcmask 523648   ;;  %vm19_vm2 = vcmask 392448   ;;  %vm25_vm3 = vcmask 261248   ;;  %s55_s0 = inlined_call_operand.vmem [shape: f32[4,16], index: 0, kind: input, shape index: {}]   ;;  %s56_s1 = inlined_call_operand.vmem [shape: f32[1,64], index: 1, kind: output, shape index: {}]  }
   0x1   :  { %v4_v0 = vld [vmem:[%s55_s0] sm:$0xf]  ;;  %s36_s0 = smov 48  }
   0x2   :  { %5 = vst [vmem:[#allocation1] sm:$0xf] %v4_v0 }
   0x9   :  { %v10_v1 = vld [vmem:[#allocation1 + $0x3] sm:$0x1]   ;;  %v22_v2 = vld [vmem:[#allocation1 + $0x1] sm:$0x1]   ;;  %v6_v3 = vld [vmem:[#allocation1] sm:$0x1]  }
   0xa   :  { %11 = vrot.lane.b32.xlu0 %v10_v1, %s36_s0  ;;  %23 = vrot.lane.b32.xlu1 %v22_v2, %s37_s8  ;;  %v16_v4 = vld [vmem:[#allocation1 + $0x2] sm:$0x1]   ;;  %8 = vst.msk [vmem:[#allocation0] sm:$0x1] %vm7_vm0, %v6_v3  }
   0xe   :  { %17 = vrot.lane.b32.xlu0 %v16_v4, %s38_s9 }
  0x7c   :  { %v12_v5 = vpop.permute.xlu0 %11   ;;  %v24_v6 = vpop.permute.xlu1 %23  }
  0x7d   :  { %14 = vst.msk [vmem:[#allocation0] sm:$0x1] %vm13_vm1, %v12_v5  }
  0x80   :  { %v18_v7 = vpop.permute.xlu0 %17  }
  0x81   :  { %20 = vst.msk [vmem:[#allocation0] sm:$0x1] %vm19_vm2, %v18_v7  }
  0x82   :  { %26 = vst.msk [vmem:[#allocation0] sm:$0x1] %vm25_vm3, %v24_v6  }
  0x89   :  { %v30_v8 = vld [vmem:[#allocation0] sm:$0x1] }
  0x8a   :  { %32 = vst [vmem:[%s56_s1] sm:$0x1] %v30_v8 }

// kernel: unet_generator.33
= control target key start
LH: loop header
LB: loop body
LE: loop exit
PB: predicated region body
PF: predicated region fallthrough
CT: control target
= control target key end

     0   :  { %s1813_s18 = smov 0   ;;  %s1815_s19 = smov 0   ;;  %s2172_s0 = inlined_call_operand.vmem [shape: f32[1,64], index: 0, kind: input, shape index: {}]   ;;  %s2173_s1 = inlined_call_operand.vmem [shape: f32[1,64], index: 1, kind: input, shape index: {}]   ;;  %s2174_s2 = inlined_call_operand.vmem [shape: bf16[4,512,64], index: 2, kind: input, shape index: {}]   ;;  %s2175_s3 = inlined_call_operand.vmem [shape: bf16[4,64,4], index: 3, kind: input, shape index: {}]   ;;  %s2176_s4 = inlined_call_operand.vmem [shape: f32[1,4], index: 4, kind: input, shape index: {}]   ;;  %s2177_s5 = inlined_call_operand.vmem [shape: f32[4,512,4], index: 5, kind: output, shape index: {}]  }
   0x1   :  { %s1817_s20 = smov 0   ;;  %s1819_s21 = smov 0  }
   0x2   :  { %s1821_s22 = smov 0  }
   0x3 LB: > { %s30_s23 = sadd.s32 1, %s1772_s20  ;;  %s34_s24 = sadd.s32 1, %s1776_s21  ;;  %s1780_s22 = sphi %s1821_s22, %s15_s22   ;;  %s1776_s21 = sphi %s1819_s21, %s2182_s21   ;;  %s1772_s20 = sphi %s1817_s20, %s2181_s20   ;;  %s1768_s19 = sphi %s1815_s19, %s2180_s19   ;;  %s1764_s18 = sphi %s1813_s18, %s2179_s18  }
   0x4   : > { %p32_p0 = scmp.ge.s32.totalorder %s30_s23, 2  ;;  %p1355_p1 = scmp.ge.s32.totalorder %s1780_s22, 1 }
   0x5   : > { %p253_p2 = scmp.lt.s32.totalorder %s1780_s22, 9 }
   0x6   : > { %s2184_s23 = smov (%p32_p0, %s30_s23), 0  ;;  %s2186_s24 = smov (!%p32_p0, %s34_s24), %s1776_s21 }
   0x7   : > { %p254_p3 = pnand %p1355_p1, %p253_p2  ;;  %p36_p4 = scmp.ge.s32.totalorder %s2186_s24, 4 }
   0x8   : > { %s1356_s25 = sshll.u32 (!%p254_p3), %s1764_s18, 5  ;;  %p314_p5 = scmp.lt.s32.totalorder (!%p254_p3), %s1768_s19, 3  ;;  %vm351_vm0 = vcmask (!%p254_p3), 31744   ;;  %v1782_v0 = vmov (!%p254_p3), 0.0   ;;  %v1910_v3 = vld [vmem:[%s2172_s0] ss:$0 sm:$0xff] (!%p254_p3) }
   0x9   : > { %s2188_s24 = smov (%p36_p4, %s2186_s24), 0  ;;  %257 = sbr.rel (%p254_p3) target bundleno = 345 (0x159), region = 40 }
   0xa   : > { %p1848_p6 = scmp.lt.s32.totalorder (!%p254_p3), %s1356_s25, 63  ;;  %354 = vst.msk [vmem:[#allocation2 + $0x10] sm:$0xff] (!%p254_p3), %vm351_vm0, %v1782_v0  ;;  %352 = vst.msk [vmem:[#allocation2] sm:$0xff] (!%p254_p3), %vm351_vm0, %v1782_v0  ;;  %vm638_vm1 = vcmask (!%p254_p3), 523264   ;;  %v1921_v14 = vld [vmem:[%s2173_s1] ss:$0 sm:$0xff] (!%p254_p3) }
   0xb   : > { %353 = vst.msk [vmem:[#allocation2 + $0x8] sm:$0xff] (!%p254_p3), %vm351_vm0, %v1782_v0  ;;  %355 = vst.msk [vmem:[#allocation2 + $0x18] sm:$0xff] (!%p254_p3), %vm351_vm0, %v1782_v0 }
   0xc   : > { %356 = vst.msk [vmem:[#allocation2 + $0x20] sm:$0xff] (!%p254_p3), %vm351_vm0, %v1782_v0  ;;  %357 = vst.msk [vmem:[#allocation2 + $0x28] sm:$0xff] (!%p254_p3), %vm351_vm0, %v1782_v0 }
   0xd   : > { %358 = vst.msk [vmem:[#allocation2 + $0x30] sm:$0xff] (!%p254_p3), %vm351_vm0, %v1782_v0  ;;  %359 = vst.msk [vmem:[#allocation2 + $0x38] sm:$0xff] (!%p254_p3), %vm351_vm0, %v1782_v0 }
   0xe   : > { %360 = vst.msk [vmem:[#allocation2 + $0x40] sm:$0xff] (!%p254_p3), %vm351_vm0, %v1782_v0  ;;  %361 = vst.msk [vmem:[#allocation2 + $0x48] sm:$0xff] (!%p254_p3), %vm351_vm0, %v1782_v0 }
   0xf   : > { %362 = vst.msk [vmem:[#allocation2 + $0x50] sm:$0xff] (!%p254_p3), %vm351_vm0, %v1782_v0  ;;  %363 = vst.msk [vmem:[#allocation2 + $0x58] sm:$0xff] (!%p254_p3), %vm351_vm0, %v1782_v0 }
  0x10   : > { %s2190_s19 = smov (!%p314_p5, %s1768_s19), 3  ;;  %364 = vst.msk [vmem:[#allocation2 + $0x60] sm:$0xff] %vm351_vm0, %v1782_v0  ;;  %365 = vst.msk [vmem:[#allocation2 + $0x68] sm:$0xff] %vm351_vm0, %v1782_v0  ;;  %s2192_s25 = smov (!%p1848_p6, %s1356_s25), 63 }
  0x11   : > { %366 = vst.msk [vmem:[#allocation2 + $0x70] sm:$0xff] %vm351_vm0, %v1782_v0  ;;  %367 = vst.msk [vmem:[#allocation2 + $0x78] sm:$0xff] %vm351_vm0, %v1782_v0  ;;  %s1357_s27 = sshll.u32 %s2190_s19, 6  ;;  %s1421_s28 = sshll.u32 %s2190_s19, 5 }
  0x12   : > { %368 = vst.msk [vmem:[#allocation2 + $0x80] sm:$0xff] %vm351_vm0, %v1782_v0  ;;  %369 = vst.msk [vmem:[#allocation2 + $0x88] sm:$0xff] %vm351_vm0, %v1782_v0  ;;  %s1892_s29 = sadd.s32 %s1357_s27, %s2192_s25  ;;  %s1897_s7 = scalar_lea.vmem %s2175_s3, %s1421_s28 }
  0x13   : > { %370 = vst.msk [vmem:[#allocation2 + $0x90] sm:$0xff] %vm351_vm0, %v1782_v0  ;;  %371 = vst.msk [vmem:[#allocation2 + $0x98] sm:$0xff] %vm351_vm0, %v1782_v0  ;;  %s1358_s8 = sshll.u32 %s1892_s29, 2  ;;  %v1610_v1 = vld [vmem:[%s1897_s7] sm:$0xff]   ;;  %v1611_v2 = vld [vmem:[%s1897_s7 + $0x8] sm:$0xff]   ;;  %s1363_s18 = sshll.u32 %s1892_s29, 3 }
  0x14   : > { %372 = vst.msk [vmem:[#allocation2 + $0xa0] sm:$0xff] %vm351_vm0, %v1782_v0  ;;  %373 = vst.msk [vmem:[#allocation2 + $0xa8] sm:$0xff] %vm351_vm0, %v1782_v0  ;;  %s1903_s11 = scalar_lea.vmem %s2174_s2, %s1358_s8  ;;  %1521 = vmatprep.subr.bf16.mxu0 %v1610_v1  ;;  %1561 = vmatprep.subr.bf16.mxu1 %v1610_v1  ;;  %v1612_v4 = vld [vmem:[%s1897_s7 + $0x10] sm:$0xff]   ;;  %v1613_v27 = vld [vmem:[%s1897_s7 + $0x18] sm:$0xff]   ;;  %s2070_s26 = scalar_lea.vmem %s2177_s5, %s1363_s18 }
  0x15   : > { %374 = vst.msk [vmem:[#allocation2 + $0xb0] sm:$0xff] %vm351_vm0, %v1782_v0  ;;  %375 = vst.msk [vmem:[#allocation2 + $0xb8] sm:$0xff] %vm351_vm0, %v1782_v0  ;;  %1522 = vmatpush3.bf16.msra.mxu0 %v1610_v1  ;;  %1565 = vmatpush3.bf16.msra.mxu1 %v1610_v1  ;;  %v1423_v5 = vld [vmem:[%s1903_s11] sm:$0xff]   ;;  %v1486_v11 = vld [vmem:[%s1903_s11 + $0x8] sm:$0xff]  }
  0x16   : > { %376 = vst.msk [vmem:[#allocation2 + $0xc0] sm:$0xff] %vm351_vm0, %v1782_v0  ;;  %377 = vst.msk [vmem:[#allocation2 + $0xc8] sm:$0xff] %vm351_vm0, %v1782_v0  ;;  %v1493_v6 = vld [vmem:[%s1903_s11 + $0x40] sm:$0xff]   ;;  %1523 = vmatprep.subr.bf16.mxu0 %v1611_v2  ;;  %1562 = vmatprep.subr.bf16.mxu1 %v1611_v2  ;;  %v1424_v7 = vunpack.c.l.bf16 %v1423_v5  ;;  %v1425_v8 = vunpack.c.h.bf16 %v1423_v5  ;;  %v1494_v12 = vld [vmem:[%s1903_s11 + $0x48] sm:$0xff]   ;;  %v1428_v15 = vunpack.c.l.bf16 %v1486_v11  ;;  %v1429_v16 = vunpack.c.h.bf16 %v1486_v11 }
  0x17   : > { %378 = vst.msk [vmem:[#allocation2 + $0xd0] sm:$0xff] %vm351_vm0, %v1782_v0  ;;  %379 = vst.msk [vmem:[#allocation2 + $0xd8] sm:$0xff] %vm351_vm0, %v1782_v0  ;;  %v1456_v9 = vunpack.c.l.bf16 %v1493_v6  ;;  %v1457_v10 = vunpack.c.h.bf16 %v1493_v6  ;;  %v1487_v13 = vld [vmem:[%s1903_s11 + $0x10] sm:$0xff]   ;;  %v1460_v17 = vunpack.c.l.bf16 %v1494_v12  ;;  %v1461_v18 = vunpack.c.h.bf16 %v1494_v12  ;;  %v1488_v45 = vld [vmem:[%s1903_s11 + $0x18] sm:$0xff]  }
  0x18   : > { %380 = vst.msk [vmem:[#allocation2 + $0xe0] sm:$0xff] %vm351_vm0, %v1782_v0  ;;  %381 = vst.msk [vmem:[#allocation2 + $0xe8] sm:$0xff] %vm351_vm0, %v1782_v0  ;;  %v455_v19 = vmul.f32 %v1424_v7, %v1910_v3  ;;  %v456_v20 = vmul.f32 %v1425_v8, %v1910_v3  ;;  %v457_v23 = vmul.f32 %v1428_v15, %v1910_v3  ;;  %v1432_v26 = vunpack.c.l.bf16 %v1487_v13  ;;  %v1495_v40 = vld [vmem:[%s1903_s11 + $0x50] sm:$0xff]   ;;  %v1496_v50 = vld [vmem:[%s1903_s11 + $0x58] sm:$0xff]  }
  0x19   : > { %382 = vst.msk [vmem:[#allocation2 + $0xf0] sm:$0xff] %vm351_vm0, %v1782_v0  ;;  %383 = vst.msk [vmem:[#allocation2 + $0xf8] sm:$0xff] %vm351_vm0, %v1782_v0  ;;  %v471_v21 = vmul.f32 %v1456_v9, %v1910_v3  ;;  %v472_v22 = vmul.f32 %v1457_v10, %v1910_v3  ;;  %1524 = vmatpush3.bf16.msra.mxu0 %v1611_v2  ;;  %1566 = vmatpush3.bf16.msra.mxu1 %v1611_v2  ;;  %v1433_v31 = vunpack.c.h.bf16 %v1487_v13  ;;  %v1489_v63 = vld [vmem:[%s1903_s11 + $0x20] sm:$0xff]  }
  0x1a   : > { %v458_v24 = vmul.f32 %v1429_v16, %v1910_v3  ;;  %v473_v25 = vmul.f32 %v1460_v17, %v1910_v3  ;;  %1525 = vmatprep.subr.bf16.mxu0 %v1612_v4  ;;  %1563 = vmatprep.subr.bf16.mxu1 %v1612_v4  ;;  %v494_v28 = vadd.f32 %v1921_v14, %v455_v19  ;;  %v1464_v54 = vunpack.c.l.bf16 %v1495_v40  ;;  %v1497_v13 = vld [vmem:[%s1903_s11 + $0x60] sm:$0xff]  }
  0x1b   : > { %v495_v29 = vadd.f32 %v1921_v14, %v456_v20  ;;  %v510_v30 = vadd.f32 %v1921_v14, %v471_v21  ;;  %v511_v32 = vadd.f32 %v1921_v14, %v472_v22  ;;  %v496_v33 = vadd.f32 %v1921_v14, %v457_v23  ;;  %v1490_v23 = vld [vmem:[%s1903_s11 + $0x28] sm:$0xff]  }
  0x1c   : > { %v497_v34 = vadd.f32 %v1921_v14, %v458_v24  ;;  %v474_v35 = vmul.f32 %v1461_v18, %v1910_v3  ;;  %v526_v36 = vmax.f32 %v494_v28, 0.0  ;;  %v512_v39 = vadd.f32 %v1921_v14, %v473_v25 }
  0x1d   : > { %v527_v37 = vmax.f32 %v495_v29, 0.0  ;;  %v542_v38 = vmax.f32 %v510_v30, 0.0  ;;  %1526 = vmatpush3.bf16.msra.mxu0 %v1612_v4  ;;  %1567 = vmatpush3.bf16.msra.mxu1 %v1612_v4  ;;  %v543_v41 = vmax.f32 %v511_v32, 0.0  ;;  %v528_v42 = vmax.f32 %v496_v33, 0.0  ;;  %v1498_v32 = vld [vmem:[%s1903_s11 + $0x68] sm:$0xff]  }
  0x1e   : > { %v529_v43 = vmax.f32 %v497_v34, 0.0  ;;  %v513_v44 = vadd.f32 %v1921_v14, %v474_v35  ;;  %1527 = vmatprep.subr.bf16.mxu0 %v1613_v27  ;;  %1564 = vmatprep.subr.bf16.mxu1 %v1613_v27  ;;  %v544_v47 = vmax.f32 %v512_v39, 0.0  ;;  %v459_v48 = vmul.f32 %v1432_v26, %v1910_v3 }
  0x1f   : > { %v558_v46 = vpack.c.bf16 %v527_v37, %v526_v36  ;;  %v460_v49 = vmul.f32 %v1433_v31, %v1910_v3  ;;  %v566_v51 = vpack.c.bf16 %v543_v41, %v542_v38  ;;  %v1465_v57 = vunpack.c.h.bf16 %v1495_v40  ;;  %v1491_v41 = vld [vmem:[%s1903_s11 + $0x30] sm:$0xff]  }
  0x20   : > { %v559_v52 = vpack.c.bf16 %v529_v43, %v528_v42  ;;  %v545_v53 = vmax.f32 %v513_v44, 0.0  ;;  %v498_v55 = vadd.f32 %v1921_v14, %v459_v48  ;;  %v1436_v58 = vunpack.c.l.bf16 %v1488_v45 }
  0x21   : > { %1529 = vmatprep.mubr.msk.bf16.mxu0 %vm638_vm1, %v558_v46  ;;  %v499_v56 = vadd.f32 %v1921_v14, %v460_v49  ;;  %1528 = vmatpush3.bf16.msra.mxu0 %v1613_v27  ;;  %v475_v60 = vmul.f32 %v1464_v54, %v1910_v3  ;;  %v1437_v61 = vunpack.c.h.bf16 %v1488_v45  ;;  %v1468_v62 = vunpack.c.l.bf16 %v1496_v50  ;;  %v1499_v54 = vld [vmem:[%s1903_s11 + $0x70] sm:$0xff]  }
  0x22   : > { %1568 = vmatpush3.bf16.msra.mxu1 %v1613_v27  ;;  %v567_v59 = vpack.c.bf16 %v545_v53, %v544_v47  ;;  %1545 = vmatprep.mubr.msk.bf16.mxu1 %vm638_vm1, %v566_v51  ;;  %v530_v0 = vmax.f32 %v498_v55, 0.0  ;;  %v476_v2 = vmul.f32 %v1465_v57, %v1910_v3  ;;  %v461_v4 = vmul.f32 %v1436_v58, %v1910_v3 }
  0x23   : > { %v531_v1 = vmax.f32 %v499_v56, 0.0  ;;  %v514_v5 = vadd.f32 %v1921_v14, %v475_v60  ;;  %v462_v6 = vmul.f32 %v1437_v61, %v1910_v3  ;;  %v1469_v7 = vunpack.c.h.bf16 %v1496_v50 }
  0x24   : > { %v477_v8 = vmul.f32 %v1468_v62, %v1910_v3  ;;  %1530 = vmatmul.mubr.msk.bf16.vlgmr.msra.gmra.mrb[0].mxu0 %vm638_vm1, %v559_v52  ;;  %v515_v10 = vadd.f32 %v1921_v14, %v476_v2  ;;  %v500_v11 = vadd.f32 %v1921_v14, %v461_v4  ;;  %v1440_v12 = vunpack.c.l.bf16 %v1489_v63 }
  0x25   : > { %1546 = vmatmul.mubr.msk.bf16.vlgmr.msra.gmra.mrb[0].mxu1 %vm638_vm1, %v567_v59  ;;  %v560_v9 = vpack.c.bf16 %v531_v1, %v530_v0  ;;  %v546_v15 = vmax.f32 %v514_v5, 0.0  ;;  %v501_v16 = vadd.f32 %v1921_v14, %v462_v6  ;;  %v478_v17 = vmul.f32 %v1469_v7, %v1910_v3 }
  0x26   : > { %v516_v18 = vadd.f32 %v1921_v14, %v477_v8  ;;  %v547_v19 = vmax.f32 %v515_v10, 0.0  ;;  %v532_v20 = vmax.f32 %v500_v11, 0.0  ;;  %v1441_v21 = vunpack.c.h.bf16 %v1489_v63  ;;  %v1492_v63 = vld [vmem:[%s1903_s11 + $0x38] sm:$0xff]  }
  0x27   : > { %1533 = vmatprep.mubr.msk.bf16.mxu0 %vm638_vm1, %v560_v9  ;;  %v463_v22 = vmul.f32 %v1440_v12, %v1910_v3  ;;  %v533_v24 = vmax.f32 %v501_v16, 0.0  ;;  %v517_v25 = vadd.f32 %v1921_v14, %v478_v17  ;;  %v1472_v27 = vunpack.c.l.bf16 %v1497_v13  ;;  %v1500_v9 = vld [vmem:[%s1903_s11 + $0x78] sm:$0xff]  }
  0x28   : > { %v548_v26 = vmax.f32 %v516_v18, 0.0  ;;  %v568_v28 = vpack.c.bf16 %v547_v19, %v546_v15  ;;  %v464_v29 = vmul.f32 %v1441_v21, %v1910_v3  ;;  %v1473_v31 = vunpack.c.h.bf16 %v1497_v13 }
  0x29   : > { %v502_v30 = vadd.f32 %v1921_v14, %v463_v22  ;;  %v561_v33 = vpack.c.bf16 %v533_v24, %v532_v20  ;;  %v549_v34 = vmax.f32 %v517_v25, 0.0  ;;  %v479_v35 = vmul.f32 %v1472_v27, %v1910_v3 }
  0x2a   : > { %v1444_v36 = vunpack.c.l.bf16 %v1490_v23  ;;  %1549 = vmatprep.mubr.msk.bf16.mxu1 %vm638_vm1, %v568_v28  ;;  %v503_v37 = vadd.f32 %v1921_v14, %v464_v29  ;;  %v480_v39 = vmul.f32 %v1473_v31, %v1910_v3  ;;  %v1445_v40 = vunpack.c.h.bf16 %v1490_v23 }
  0x2b   : > { %v534_v38 = vmax.f32 %v502_v30, 0.0  ;;  %v569_v42 = vpack.c.bf16 %v549_v34, %v548_v26  ;;  %v518_v43 = vadd.f32 %v1921_v14, %v479_v35  ;;  %v1476_v45 = vunpack.c.l.bf16 %v1498_v32 }
  0x2c   : > { %v465_v44 = vmul.f32 %v1444_v36, %v1910_v3  ;;  %1534 = vmatmul.mubr.msk.bf16.gmra.mrb[4].mxu0 %vm638_vm1, %v561_v33  ;;  %v535_v46 = vmax.f32 %v503_v37, 0.0  ;;  %v519_v47 = vadd.f32 %v1921_v14, %v480_v39  ;;  %v466_v48 = vmul.f32 %v1445_v40, %v1910_v3 }
  0x2d   : > { %v1477_v49 = vunpack.c.h.bf16 %v1498_v32  ;;  %1550 = vmatmul.mubr.msk.bf16.gmra.mrb[4].mxu1 %vm638_vm1, %v569_v42  ;;  %v550_v50 = vmax.f32 %v518_v43, 0.0  ;;  %v481_v52 = vmul.f32 %v1476_v45, %v1910_v3  ;;  %v1448_v53 = vunpack.c.l.bf16 %v1491_v41  ;;  %v592_v43 = vld [vmem:[#allocation2 + $0x90] sm:$0xff]  ;;  %v590_v45 = vld [vmem:[#allocation2 + $0x80] sm:$0xff] }
  0x2e   : > { %v504_v51 = vadd.f32 %v1921_v14, %v465_v44  ;;  %v562_v55 = vpack.c.bf16 %v535_v46, %v534_v38  ;;  %v551_v56 = vmax.f32 %v519_v47, 0.0  ;;  %v505_v57 = vadd.f32 %v1921_v14, %v466_v48  ;;  %v574_v44 = vld [vmem:[#allocation2] sm:$0xff]  ;;  %v577_v48 = vld [vmem:[#allocation2 + $0x18] sm:$0xff] }
  0x2f   : > { %v482_v58 = vmul.f32 %v1477_v49, %v1910_v3  ;;  %v520_v60 = vadd.f32 %v1921_v14, %v481_v52  ;;  %v1449_v61 = vunpack.c.h.bf16 %v1491_v41  ;;  %v467_v62 = vmul.f32 %v1448_v53, %v1910_v3  ;;  %v593_v49 = vld [vmem:[#allocation2 + $0x98] sm:$0xff]  ;;  %v575_v53 = vld [vmem:[#allocation2 + $0x8] sm:$0xff] }
  0x30   : > { %v536_v59 = vmax.f32 %v504_v51, 0.0  ;;  %1537 = vmatprep.mubr.msk.bf16.mxu0 %vm638_vm1, %v562_v55  ;;  %v570_v0 = vpack.c.bf16 %v551_v56, %v550_v50  ;;  %v537_v1 = vmax.f32 %v505_v57, 0.0  ;;  %v1480_v4 = vunpack.c.l.bf16 %v1499_v54 }
  0x31   : > { %v521_v2 = vadd.f32 %v1921_v14, %v482_v58  ;;  %v552_v5 = vmax.f32 %v520_v60, 0.0  ;;  %v468_v6 = vmul.f32 %v1449_v61, %v1910_v3  ;;  %v506_v7 = vadd.f32 %v1921_v14, %v467_v62 }
  0x32   : > { %v1481_v8 = vunpack.c.h.bf16 %v1499_v54  ;;  %1553 = vmatprep.mubr.msk.bf16.mxu1 %vm638_vm1, %v570_v0  ;;  %v563_v10 = vpack.c.bf16 %v537_v1, %v536_v59  ;;  %v483_v12 = vmul.f32 %v1480_v4, %v1910_v3  ;;  %v1452_v13 = vunpack.c.l.bf16 %v1492_v63  ;;  %v591_v54 = vld [vmem:[#allocation2 + $0x88] sm:$0xff]  ;;  %v580_v1 = vld [vmem:[#allocation2 + $0x30] sm:$0xff]  ;;  %v578_v4 = vld [vmem:[#allocation2 + $0x20] sm:$0xff] }
  0x33   : > { %v553_v11 = vmax.f32 %v521_v2, 0.0  ;;  %v507_v15 = vadd.f32 %v1921_v14, %v468_v6  ;;  %v538_v16 = vmax.f32 %v506_v7, 0.0  ;;  %v1453_v18 = vunpack.c.h.bf16 %v1492_v63  ;;  %v596_v2 = vld [vmem:[#allocation2 + $0xb0] sm:$0xff]  ;;  %v594_v7 = vld [vmem:[#allocation2 + $0xa0] sm:$0xff] }
  0x34   : > { %v484_v17 = vmul.f32 %v1481_v8, %v1910_v3  ;;  %1538 = vmatmul.mubr.msk.bf16.gmra.mrb[8].mxu0 %vm638_vm1, %v563_v10  ;;  %v522_v20 = vadd.f32 %v1921_v14, %v483_v12  ;;  %v469_v21 = vmul.f32 %v1452_v13, %v1910_v3  ;;  %v1484_v22 = vunpack.c.l.bf16 %v1500_v9  ;;  %v581_v8 = vld [vmem:[#allocation2 + $0x38] sm:$0xff]  ;;  %v579_v13 = vld [vmem:[#allocation2 + $0x28] sm:$0xff] }
  0x35   : > { %v571_v19 = vpack.c.bf16 %v553_v11, %v552_v5  ;;  %v539_v23 = vmax.f32 %v507_v15, 0.0  ;;  %v470_v25 = vmul.f32 %v1453_v18, %v1910_v3  ;;  %v1485_v26 = vunpack.c.h.bf16 %v1500_v9  ;;  %v2026_v5 = vld [vmem:[%s2176_s4] ss:$0 sm:$0xff]  ;;  %v597_v12 = vld [vmem:[#allocation2 + $0xb8] sm:$0xff] }
  0x36   : > { %v523_v24 = vadd.f32 %v1921_v14, %v484_v17  ;;  %v554_v27 = vmax.f32 %v522_v20, 0.0  ;;  %v508_v28 = vadd.f32 %v1921_v14, %v469_v21  ;;  %v485_v29 = vmul.f32 %v1484_v22, %v1910_v3 }
  0x37   : > { %1554 = vmatmul.mubr.msk.bf16.gmra.mrb[8].mxu1 %vm638_vm1, %v571_v19  ;;  %v564_v30 = vpack.c.bf16 %v539_v23, %v538_v16  ;;  %v509_v32 = vadd.f32 %v1921_v14, %v470_v25  ;;  %v486_v33 = vmul.f32 %v1485_v26, %v1910_v3  ;;  %v576_v3 = vld [vmem:[#allocation2 + $0x10] sm:$0xff] }
  0x38   : > { %v555_v31 = vmax.f32 %v523_v24, 0.0  ;;  %v540_v34 = vmax.f32 %v508_v28, 0.0  ;;  %v524_v35 = vadd.f32 %v1921_v14, %v485_v29 }
  0x39   : > { %1541 = vmatprep.mubr.msk.bf16.mxu0 %vm638_vm1, %v564_v30  ;;  %v541_v37 = vmax.f32 %v509_v32, 0.0  ;;  %v525_v38 = vadd.f32 %v1921_v14, %v486_v33 }
  0x3a   : > { %v572_v36 = vpack.c.bf16 %v555_v31, %v554_v27  ;;  %v556_v39 = vmax.f32 %v524_v35, 0.0  ;;  %v595_v35 = vld [vmem:[#allocation2 + $0xa8] sm:$0xff] }
  0x3b   : > { %v565_v40 = vpack.c.bf16 %v541_v37, %v540_v34  ;;  %v557_v41 = vmax.f32 %v525_v38, 0.0 }
  0x3c   : > { %1557 = vmatprep.mubr.msk.bf16.mxu1 %vm638_vm1, %v572_v36 }
  0x3d   : > { %1542 = vmatmul.mubr.msk.bf16.gmra.mrb[12].mxu0 %vm638_vm1, %v565_v40  ;;  %v573_v42 = vpack.c.bf16 %v557_v41, %v556_v39 }
  0x3f   : > { %1558 = vmatmul.mubr.msk.bf16.gmra.mrb[12].mxu1 %vm638_vm1, %v573_v42 }
  0xf7   : > { %v1531_v46 = vpop.f32.mrb[0].mxu0 }
  0xf8   : > { %v1547_v47 = vpop.f32.mrb[0].mxu1  ;;  %v850_v50 = vadd.f32 %v1531_v46, %v576_v3  ;;  %v721_v51 = vpop.f32.mrb[1].mxu0  ;;  %v584_v46 = vld [vmem:[#allocation2 + $0x50] sm:$0xff] }
  0xf9   : > { %v866_v14 = vadd.f32 %v1547_v47, %v592_v43  ;;  %v785_v52 = vpop.f32.mrb[1].mxu1  ;;  %v848_v55 = vadd.f32 %v721_v51, %v574_v44  ;;  %v1532_v57 = vpop.f32.mrb[2].mxu0  ;;  %v600_v51 = vld [vmem:[#allocation2 + $0xd0] sm:$0xff] }
  0xfa   : > { %v864_v56 = vadd.f32 %v785_v52, %v590_v45  ;;  %v1548_v58 = vpop.f32.mrb[2].mxu1  ;;  %883 = vst.msk [vmem:[#allocation2 + $0x10] sm:$0xff] %vm351_vm0, %v850_v50  ;;  %v851_v59 = vadd.f32 %v1532_v57, %v577_v48  ;;  %v724_v61 = vpop.f32.mrb[3].mxu0  ;;  %v585_v52 = vld [vmem:[#allocation2 + $0x58] sm:$0xff] }
  0xfb   : > { %899 = vst.msk [vmem:[#allocation2 + $0x90] sm:$0xff] %vm351_vm0, %v866_v14  ;;  %v867_v60 = vadd.f32 %v1548_v58, %v593_v49  ;;  %v788_v62 = vpop.f32.mrb[3].mxu1  ;;  %881 = vst.msk [vmem:[#allocation2] sm:$0xff] %vm351_vm0, %v848_v55  ;;  %v849_v63 = vadd.f32 %v724_v61, %v575_v53  ;;  %v582_v49 = vld [vmem:[#allocation2 + $0x40] sm:$0xff] }
  0xfc   : > { %897 = vst.msk [vmem:[#allocation2 + $0x80] sm:$0xff] %vm351_vm0, %v864_v56  ;;  %v865_v0 = vadd.f32 %v788_v62, %v591_v54  ;;  %884 = vst.msk [vmem:[#allocation2 + $0x18] sm:$0xff] %vm351_vm0, %v851_v59  ;;  %v598_v56 = vld [vmem:[#allocation2 + $0xc0] sm:$0xff] }
  0xfd   : > { %900 = vst.msk [vmem:[#allocation2 + $0x98] sm:$0xff] %vm351_vm0, %v867_v60  ;;  %882 = vst.msk [vmem:[#allocation2 + $0x8] sm:$0xff] %vm351_vm0, %v849_v63 }
  0xfe   : > { %898 = vst.msk [vmem:[#allocation2 + $0x88] sm:$0xff] %vm351_vm0, %v865_v0 }
  0xff   : > { %v1535_v6 = vpop.f32.mrb[4].mxu0 }
 0x100   : > { %v854_v9 = vadd.f32 %v1535_v6, %v580_v1  ;;  %v1551_v10 = vpop.f32.mrb[4].mxu1  ;;  %v737_v11 = vpop.f32.mrb[5].mxu0 }
 0x101   : > { %v918_v15 = vld [vmem:[#allocation2 + $0x10] sm:$0xff]  ;;  %v870_v17 = vadd.f32 %v1551_v10, %v596_v2  ;;  %v852_v18 = vadd.f32 %v737_v11, %v578_v4  ;;  %v801_v19 = vpop.f32.mrb[5].mxu1  ;;  %v1536_v20 = vpop.f32.mrb[6].mxu0 }
 0x102   : > { %v934_v16 = vld [vmem:[#allocation2 + $0x90] sm:$0xff]  ;;  %v957_v21 = vadd.f32 %v2026_v5, %v918_v15  ;;  %v916_v23 = vld [vmem:[#allocation2] sm:$0xff]  ;;  %887 = vst.msk [vmem:[#allocation2 + $0x30] sm:$0xff] %vm351_vm0, %v854_v9  ;;  %v868_v25 = vadd.f32 %v801_v19, %v594_v7  ;;  %v855_v26 = vadd.f32 %v1536_v20, %v581_v8  ;;  %v1552_v27 = vpop.f32.mrb[6].mxu1  ;;  %v740_v28 = vpop.f32.mrb[7].mxu0 }
 0x103   : > { %v973_v22 = vadd.f32 %v2026_v5, %v934_v16  ;;  %v932_v24 = vld [vmem:[#allocation2 + $0x80] sm:$0xff]  ;;  %v955_v29 = vadd.f32 %v2026_v5, %v916_v23  ;;  %v919_v31 = vld [vmem:[#allocation2 + $0x18] sm:$0xff]  ;;  %903 = vst.msk [vmem:[#allocation2 + $0xb0] sm:$0xff] %vm351_vm0, %v870_v17  ;;  %885 = vst.msk [vmem:[#allocation2 + $0x20] sm:$0xff] %vm351_vm0, %v852_v18  ;;  %v871_v33 = vadd.f32 %v1552_v27, %v597_v12  ;;  %v804_v36 = vpop.f32.mrb[7].mxu1 }
 0x104   : > { %v971_v30 = vadd.f32 %v2026_v5, %v932_v24  ;;  %v935_v32 = vld [vmem:[#allocation2 + $0x98] sm:$0xff]  ;;  %v853_v34 = vadd.f32 %v740_v28, %v579_v13  ;;  %v1389_v37 = vmul.f32 -1.442695, %v957_v21  ;;  %v958_v39 = vadd.f32 %v2026_v5, %v919_v31  ;;  %v917_v41 = vld [vmem:[#allocation2 + $0x8] sm:$0xff]  ;;  %901 = vst.msk [vmem:[#allocation2 + $0xa0] sm:$0xff] %vm351_vm0, %v868_v25  ;;  %888 = vst.msk [vmem:[#allocation2 + $0x38] sm:$0xff] %vm351_vm0, %v855_v26 }
 0x105   : > { %v1405_v38 = vmul.f32 -1.442695, %v973_v22  ;;  %v974_v40 = vadd.f32 %v2026_v5, %v935_v32  ;;  %v933_v42 = vld [vmem:[#allocation2 + $0x88] sm:$0xff]  ;;  %v1387_v3 = vmul.f32 -1.442695, %v955_v29  ;;  %v956_v44 = vadd.f32 %v2026_v5, %v917_v41  ;;  %904 = vst.msk [vmem:[#allocation2 + $0xb8] sm:$0xff] %vm351_vm0, %v871_v33 }
 0x106   : > { %v1403_v43 = vmul.f32 -1.442695, %v971_v30  ;;  %v972_v45 = vadd.f32 %v2026_v5, %v933_v42  ;;  %886 = vst.msk [vmem:[#allocation2 + $0x28] sm:$0xff] %vm351_vm0, %v853_v34  ;;  %1614 = vpow2.f32 %v1389_v37  ;;  %v1390_v47 = vmul.f32 -1.442695, %v958_v39  ;;  %v601_v17 = vld [vmem:[#allocation2 + $0xd8] sm:$0xff] }
 0x107   : > { %v869_v48 = vadd.f32 %v804_v36, %v595_v35  ;;  %1616 = vpow2.f32 %v1405_v38  ;;  %v1406_v50 = vmul.f32 -1.442695, %v974_v40  ;;  %v1539_v14 = vpop.f32.mrb[8].mxu0  ;;  %v1388_v53 = vmul.f32 -1.442695, %v956_v44  ;;  %v583_v18 = vld [vmem:[#allocation2 + $0x48] sm:$0xff] }
 0x108   : > { %1618 = vpow2.f32 %v1387_v3  ;;  %v858_v54 = vadd.f32 %v1539_v14, %v584_v46  ;;  %v753_v55 = vpop.f32.mrb[9].mxu0  ;;  %v1404_v57 = vmul.f32 -1.442695, %v972_v45  ;;  %v599_v22 = vld [vmem:[#allocation2 + $0xc8] sm:$0xff]  ;;  %v588_v25 = vld [vmem:[#allocation2 + $0x70] sm:$0xff] }
 0x109   : > { %902 = vst.msk [vmem:[#allocation2 + $0xa8] sm:$0xff] %vm351_vm0, %v869_v48  ;;  %1620 = vpow2.f32 %v1403_v43  ;;  %v922_v58 = vld [vmem:[#allocation2 + $0x30] sm:$0xff]  ;;  %v856_v60 = vadd.f32 %v753_v55, %v582_v49  ;;  %v1540_v61 = vpop.f32.mrb[10].mxu0  ;;  %v586_v48 = vld [vmem:[#allocation2 + $0x60] sm:$0xff] }
 0x10a   : > { %v1555_v59 = vpop.f32.mrb[8].mxu1  ;;  %1622 = vpow2.f32 %v1390_v47  ;;  %v961_v62 = vadd.f32 %v2026_v5, %v922_v58  ;;  %v938_v63 = vld [vmem:[#allocation2 + $0xb0] sm:$0xff]  ;;  %v920_v0 = vld [vmem:[#allocation2 + $0x20] sm:$0xff]  ;;  %891 = vst.msk [vmem:[#allocation2 + $0x50] sm:$0xff] %vm351_vm0, %v858_v54  ;;  %v859_v4 = vadd.f32 %v1540_v61, %v585_v52  ;;  %v756_v6 = vpop.f32.mrb[11].mxu0  ;;  %v589_v61 = vld [vmem:[#allocation2 + $0x78] sm:$0xff] }
 0x10b   : > { %v874_v1 = vadd.f32 %v1555_v59, %v600_v51  ;;  %v817_v2 = vpop.f32.mrb[9].mxu1  ;;  %1624 = vpow2.f32 %v1406_v50  ;;  %v977_v7 = vadd.f32 %v2026_v5, %v938_v63  ;;  %v959_v8 = vadd.f32 %v2026_v5, %v920_v0  ;;  %v936_v9 = vld [vmem:[#allocation2 + $0xa0] sm:$0xff]  ;;  %v923_v10 = vld [vmem:[#allocation2 + $0x38] sm:$0xff]  ;;  %889 = vst.msk [vmem:[#allocation2 + $0x40] sm:$0xff] %vm351_vm0, %v856_v60  ;;  %v604_v31 = vld [vmem:[#allocation2 + $0xf0] sm:$0xff] }
 0x10c   : > { %v872_v11 = vadd.f32 %v817_v2, %v598_v56  ;;  %v1556_v12 = vpop.f32.mrb[10].mxu1  ;;  %1626 = vpow2.f32 %v1388_v53  ;;  %v1393_v13 = vmul.f32 -1.442695, %v961_v62  ;;  %v975_v15 = vadd.f32 %v2026_v5, %v936_v9  ;;  %892 = vst.msk [vmem:[#allocation2 + $0x58] sm:$0xff] %vm351_vm0, %v859_v4  ;;  %v939_v42 = vld [vmem:[#allocation2 + $0xb8] sm:$0xff]  ;;  %v602_v52 = vld [vmem:[#allocation2 + $0xe0] sm:$0xff] }
 0x10d   : > { %v962_v16 = vadd.f32 %v2026_v5, %v923_v10  ;;  %907 = vst.msk [vmem:[#allocation2 + $0xd0] sm:$0xff] %vm351_vm0, %v874_v1  ;;  %v820_v19 = vpop.f32.mrb[11].mxu1  ;;  %1628 = vpow2.f32 %v1404_v57  ;;  %v1409_v20 = vmul.f32 -1.442695, %v977_v7  ;;  %v1391_v21 = vmul.f32 -1.442695, %v959_v8 }
 0x10e   : > { %905 = vst.msk [vmem:[#allocation2 + $0xc0] sm:$0xff] %vm351_vm0, %v872_v11  ;;  %1630 = vpow2.f32 %v1393_v13  ;;  %v1407_v23 = vmul.f32 -1.442695, %v975_v15  ;;  %v875_v26 = vadd.f32 %v1556_v12, %v601_v17  ;;  %v857_v27 = vadd.f32 %v756_v6, %v583_v18  ;;  %v921_v47 = vld [vmem:[#allocation2 + $0x28] sm:$0xff]  ;;  %v605_v13 = vld [vmem:[#allocation2 + $0xf8] sm:$0xff] }
 0x10f   : > { %v1394_v24 = vmul.f32 -1.442695, %v962_v16  ;;  %1632 = vpow2.f32 %v1409_v20  ;;  %v873_v29 = vadd.f32 %v820_v19, %v599_v22  ;;  %v978_v56 = vadd.f32 %v2026_v5, %v939_v42  ;;  %v587_v20 = vld [vmem:[#allocation2 + $0x68] sm:$0xff] }
 0x110   : > { %v1615_v28 = vpop.eup %1614  ;;  %1634 = vpow2.f32 %v1391_v21  ;;  %v1543_v30 = vpop.f32.mrb[12].mxu0  ;;  %908 = vst.msk [vmem:[#allocation2 + $0xd8] sm:$0xff] %vm351_vm0, %v875_v26  ;;  %890 = vst.msk [vmem:[#allocation2 + $0x48] sm:$0xff] %vm351_vm0, %v857_v27  ;;  %v937_v51 = vld [vmem:[#allocation2 + $0xa8] sm:$0xff]  ;;  %v960_v59 = vadd.f32 %v2026_v5, %v921_v47 }
 0x111   : > { %v1617_v32 = vpop.eup %1616  ;;  %v1085_v33 = vadd.f32 1.0, %v1615_v28  ;;  %1636 = vpow2.f32 %v1407_v23  ;;  %v862_v34 = vadd.f32 %v1543_v30, %v588_v25  ;;  %v769_v35 = vpop.f32.mrb[13].mxu0  ;;  %906 = vst.msk [vmem:[#allocation2 + $0xc8] sm:$0xff] %vm351_vm0, %v873_v29  ;;  %v976_v0 = vadd.f32 %v2026_v5, %v937_v51  ;;  %v926_v1 = vld [vmem:[#allocation2 + $0x50] sm:$0xff]  ;;  %v603_v21 = vld [vmem:[#allocation2 + $0xe8] sm:$0xff] }
 0x112   : > { %v1619_v36 = vpop.eup %1618  ;;  %v1101_v37 = vadd.f32 1.0, %v1617_v32  ;;  %1638 = vpow2.f32 %v1394_v24  ;;  %v1559_v38 = vpop.f32.mrb[12].mxu1  ;;  %v860_v60 = vadd.f32 %v769_v35, %v586_v48  ;;  %v1410_v10 = vmul.f32 -1.442695, %v978_v56  ;;  %v924_v11 = vld [vmem:[#allocation2 + $0x40] sm:$0xff] }
 0x113   : > { %v1544_v39 = vpop.f32.mrb[14].mxu0  ;;  %v1621_v40 = vpop.eup %1620  ;;  %1640 = vrcp.f32 %v1085_v33  ;;  %v1083_v41 = vadd.f32 1.0, %v1619_v36  ;;  %895 = vst.msk [vmem:[#allocation2 + $0x70] sm:$0xff] %vm351_vm0, %v862_v34  ;;  %v878_v3 = vadd.f32 %v1559_v38, %v604_v31  ;;  %v1392_v17 = vmul.f32 -1.442695, %v960_v59  ;;  %v927_v26 = vld [vmem:[#allocation2 + $0x58] sm:$0xff] }
 0x114   : > { %v833_v43 = vpop.f32.mrb[13].mxu1  ;;  %v2058_v44 = vpop.f32.mrb[15].mxu0  ;;  %1642 = vrcp.f32 %v1101_v37  ;;  %v1099_v46 = vadd.f32 1.0, %v1621_v40  ;;  %v942_v7 = vld [vmem:[#allocation2 + $0xd0] sm:$0xff]  ;;  %893 = vst.msk [vmem:[#allocation2 + $0x60] sm:$0xff] %vm351_vm0, %v860_v60  ;;  %v863_v12 = vadd.f32 %v1544_v39, %v589_v61  ;;  %v965_v18 = vadd.f32 %v2026_v5, %v926_v1 }
 0x115   : > { %v1623_v45 = vpop.eup %1622  ;;  %v1560_v49 = vpop.f32.mrb[14].mxu1  ;;  %1644 = vrcp.f32 %v1083_v41  ;;  %911 = vst.msk [vmem:[#allocation2 + $0xf0] sm:$0xff] %vm351_vm0, %v878_v3  ;;  %v876_v2 = vadd.f32 %v833_v43, %v602_v52  ;;  %v940_v19 = vld [vmem:[#allocation2 + $0xc0] sm:$0xff]  ;;  %v1408_v24 = vmul.f32 -1.442695, %v976_v0  ;;  %v981_v25 = vadd.f32 %v2026_v5, %v942_v7 }
 0x116   : > { %v1625_v50 = vpop.eup %1624  ;;  %v1086_v14 = vadd.f32 1.0, %v1623_v45  ;;  %v836_v53 = vpop.f32.mrb[15].mxu1  ;;  %1646 = vrcp.f32 %v1099_v46  ;;  %896 = vst.msk [vmem:[#allocation2 + $0x78] sm:$0xff] %vm351_vm0, %v863_v12  ;;  %v963_v29 = vadd.f32 %v2026_v5, %v924_v11  ;;  %v879_v31 = vadd.f32 %v1560_v49, %v605_v13 }
 0x117   : > { %v1627_v54 = vpop.eup %1626  ;;  %v1102_v55 = vadd.f32 1.0, %v1625_v50  ;;  %909 = vst.msk [vmem:[#allocation2 + $0xe0] sm:$0xff] %vm351_vm0, %v876_v2  ;;  %v943_v30 = vld [vmem:[#allocation2 + $0xd8] sm:$0xff]  ;;  %v979_v33 = vadd.f32 %v2026_v5, %v940_v19  ;;  %v925_v34 = vld [vmem:[#allocation2 + $0x48] sm:$0xff]  ;;  %v861_v35 = vadd.f32 %v2058_v44, %v587_v20  ;;  %v877_v36 = vadd.f32 %v836_v53, %v603_v21 }
 0x118   : > { %v1629_v57 = vpop.eup %1628  ;;  %1648 = vrcp.f32 %v1086_v14  ;;  %v1084_v58 = vadd.f32 1.0, %v1627_v54  ;;  %v1397_v38 = vmul.f32 -1.442695, %v965_v18  ;;  %v966_v39 = vadd.f32 %v2026_v5, %v927_v26  ;;  %v941_v40 = vld [vmem:[#allocation2 + $0xc8] sm:$0xff]  ;;  %912 = vst.msk [vmem:[#allocation2 + $0xf8] sm:$0xff] %vm351_vm0, %v879_v31 }
 0x119   : > { %v1631_v62 = vpop.eup %1630  ;;  %1650 = vrcp.f32 %v1102_v55  ;;  %v1100_v63 = vadd.f32 1.0, %v1629_v57  ;;  %v1413_v42 = vmul.f32 -1.442695, %v981_v25  ;;  %v982_v3 = vadd.f32 %v2026_v5, %v943_v30  ;;  %894 = vst.msk [vmem:[#allocation2 + $0x68] sm:$0xff] %vm351_vm0, %v861_v35  ;;  %910 = vst.msk [vmem:[#allocation2 + $0xe8] sm:$0xff] %vm351_vm0, %v877_v36 }
 0x11a   : > { %v1633_v4 = vpop.eup %1632  ;;  %1652 = vrcp.f32 %v1084_v58  ;;  %v1089_v6 = vadd.f32 1.0, %v1631_v62  ;;  %v930_v43 = vld [vmem:[#allocation2 + $0x70] sm:$0xff]  ;;  %v1395_v45 = vmul.f32 -1.442695, %v963_v29  ;;  %v964_v46 = vadd.f32 %v2026_v5, %v925_v34 }
 0x11b   : > { %v1635_v8 = vpop.eup %1634  ;;  %1654 = vrcp.f32 %v1100_v63  ;;  %v1105_v9 = vadd.f32 1.0, %v1633_v4  ;;  %v1411_v49 = vmul.f32 -1.442695, %v979_v33  ;;  %v980_v50 = vadd.f32 %v2026_v5, %v941_v40 }
 0x11c   : > { %v1637_v15 = vpop.eup %1636  ;;  %1656 = vrcp.f32 %v1089_v6  ;;  %v1087_v16 = vadd.f32 1.0, %v1635_v8  ;;  %v946_v47 = vld [vmem:[#allocation2 + $0xf0] sm:$0xff]  ;;  %v1398_v51 = vmul.f32 -1.442695, %v966_v39  ;;  %v969_v52 = vadd.f32 %v2026_v5, %v930_v43 }
 0x11d   : > { %v1639_v22 = vpop.eup %1638  ;;  %1658 = vrcp.f32 %v1105_v9  ;;  %v1103_v23 = vadd.f32 1.0, %v1637_v15  ;;  %v1414_v54 = vmul.f32 -1.442695, %v982_v3  ;;  %v985_v55 = vadd.f32 %v2026_v5, %v946_v47  ;;  %v928_v15 = vld [vmem:[#allocation2 + $0x60] sm:$0xff]  ;;  %v931_v21 = vld [vmem:[#allocation2 + $0x78] sm:$0xff] }
 0x11e   : > { %v1641_v27 = vpop.eup %1640  ;;  %1660 = vrcp.f32 %v1087_v16  ;;  %v1090_v28 = vadd.f32 1.0, %v1639_v22  ;;  %v1396_v57 = vmul.f32 -1.442695, %v964_v46  ;;  %v1412_v59 = vmul.f32 -1.442695, %v980_v50  ;;  %v944_v18 = vld [vmem:[#allocation2 + $0xe0] sm:$0xff] }
 0x11f   : > { %v1643_v32 = vpop.eup %1642  ;;  %1181 = vst.msk [vmem:[%s2070_s26 + $0x10] sm:$0xff] %vm351_vm0, %v1641_v27  ;;  %1662 = vrcp.f32 %v1103_v23  ;;  %v1401_v61 = vmul.f32 -1.442695, %v969_v52  ;;  %v1417_v63 = vmul.f32 -1.442695, %v985_v55  ;;  %v947_v25 = vld [vmem:[#allocation2 + $0xf8] sm:$0xff] }
 0x120   : > { %v1645_v37 = vpop.eup %1644  ;;  %1197 = vst.msk [vmem:[%s2070_s26 + $0x90] sm:$0xff] %vm351_vm0, %v1643_v32  ;;  %1664 = vrcp.f32 %v1090_v28  ;;  %v983_v28 = vadd.f32 %v2026_v5, %v944_v18  ;;  %v929_v29 = vld [vmem:[#allocation2 + $0x68] sm:$0xff]  ;;  %v970_v32 = vadd.f32 %v2026_v5, %v931_v21  ;;  %v986_v36 = vadd.f32 %v2026_v5, %v947_v25 }
 0x121   : > { %v1647_v41 = vpop.eup %1646  ;;  %1179 = vst.msk [vmem:[%s2070_s26] sm:$0xff] %vm351_vm0, %v1645_v37  ;;  %1666 = vpow2.f32 %v1410_v10  ;;  %v945_v33 = vld [vmem:[#allocation2 + $0xe8] sm:$0xff]  ;;  %v968_v40 = vadd.f32 %v2026_v5, %v929_v29 }
 0x122   : > { %v1649_v44 = vpop.eup %1648  ;;  %1195 = vst.msk [vmem:[%s2070_s26 + $0x80] sm:$0xff] %vm351_vm0, %v1647_v41  ;;  %1668 = vpow2.f32 %v1392_v17  ;;  %v1415_v3 = vmul.f32 -1.442695, %v983_v28  ;;  %v984_v43 = vadd.f32 %v2026_v5, %v945_v33  ;;  %v1418_v47 = vmul.f32 -1.442695, %v986_v36 }
 0x123   : > { %v1651_v48 = vpop.eup %1650  ;;  %1182 = vst.msk [vmem:[%s2070_s26 + $0x18] sm:$0xff] %vm351_vm0, %v1649_v44  ;;  %1670 = vpow2.f32 %v1408_v24  ;;  %v967_v24 = vadd.f32 %v2026_v5, %v928_v15 }
 0x124   : > { %v1653_v14 = vpop.eup %1652  ;;  %1198 = vst.msk [vmem:[%s2070_s26 + $0x98] sm:$0xff] %vm351_vm0, %v1651_v48  ;;  %1672 = vpow2.f32 %v1397_v38  ;;  %v1416_v50 = vmul.f32 -1.442695, %v984_v43 }
 0x125   : > { %v1655_v53 = vpop.eup %1654  ;;  %1180 = vst.msk [vmem:[%s2070_s26 + $0x8] sm:$0xff] %vm351_vm0, %v1653_v14  ;;  %1674 = vpow2.f32 %v1413_v42  ;;  %v1399_v39 = vmul.f32 -1.442695, %v967_v24 }
 0x126   : > { %v1657_v56 = vpop.eup %1656  ;;  %1196 = vst.msk [vmem:[%s2070_s26 + $0x88] sm:$0xff] %vm351_vm0, %v1655_v53  ;;  %1676 = vpow2.f32 %v1395_v45  ;;  %v1402_v45 = vmul.f32 -1.442695, %v970_v32 }
 0x127   : > { %v1659_v58 = vpop.eup %1658  ;;  %1185 = vst.msk [vmem:[%s2070_s26 + $0x30] sm:$0xff] %vm351_vm0, %v1657_v56  ;;  %1678 = vpow2.f32 %v1411_v49  ;;  %v1400_v49 = vmul.f32 -1.442695, %v968_v40 }
 0x128   : > { %v1661_v60 = vpop.eup %1660  ;;  %1201 = vst.msk [vmem:[%s2070_s26 + $0xb0] sm:$0xff] %vm351_vm0, %v1659_v58  ;;  %1680 = vpow2.f32 %v1398_v51 }
 0x129   : > { %v1663_v62 = vpop.eup %1662  ;;  %1183 = vst.msk [vmem:[%s2070_s26 + $0x20] sm:$0xff] %vm351_vm0, %v1661_v60  ;;  %1682 = vpow2.f32 %v1414_v54 }
 0x12a   : > { %v1665_v0 = vpop.eup %1664  ;;  %1199 = vst.msk [vmem:[%s2070_s26 + $0xa0] sm:$0xff] %vm351_vm0, %v1663_v62  ;;  %1684 = vpow2.f32 %v1396_v57 }
 0x12b   : > { %v1667_v1 = vpop.eup %1666  ;;  %1186 = vst.msk [vmem:[%s2070_s26 + $0x38] sm:$0xff] %vm351_vm0, %v1665_v0  ;;  %1686 = vpow2.f32 %v1412_v59 }
 0x12c   : > { %v1669_v2 = vpop.eup %1668  ;;  %v1106_v4 = vadd.f32 1.0, %v1667_v1  ;;  %1688 = vpow2.f32 %v1401_v61 }
 0x12d   : > { %v1671_v6 = vpop.eup %1670  ;;  %v1088_v7 = vadd.f32 1.0, %v1669_v2  ;;  %1690 = vpow2.f32 %v1417_v63 }
 0x12e   : > { %v1673_v8 = vpop.eup %1672  ;;  %1692 = vrcp.f32 %v1106_v4  ;;  %v1104_v9 = vadd.f32 1.0, %v1671_v6 }
 0x12f   : > { %v1675_v10 = vpop.eup %1674  ;;  %1694 = vrcp.f32 %v1088_v7  ;;  %v1093_v11 = vadd.f32 1.0, %v1673_v8 }
 0x130   : > { %v1677_v12 = vpop.eup %1676  ;;  %1696 = vrcp.f32 %v1104_v9  ;;  %v1109_v13 = vadd.f32 1.0, %v1675_v10 }
 0x131   : > { %v1679_v16 = vpop.eup %1678  ;;  %1698 = vrcp.f32 %v1093_v11  ;;  %v1091_v17 = vadd.f32 1.0, %v1677_v12 }
 0x132   : > { %v1681_v19 = vpop.eup %1680  ;;  %1700 = vrcp.f32 %v1109_v13  ;;  %v1107_v20 = vadd.f32 1.0, %v1679_v16 }
 0x133   : > { %v1683_v22 = vpop.eup %1682  ;;  %1702 = vrcp.f32 %v1091_v17  ;;  %v1094_v23 = vadd.f32 1.0, %v1681_v19 }
 0x134   : > { %v1685_v26 = vpop.eup %1684  ;;  %1704 = vrcp.f32 %v1107_v20  ;;  %v1110_v27 = vadd.f32 1.0, %v1683_v22 }
 0x135   : > { %v1687_v30 = vpop.eup %1686  ;;  %1706 = vrcp.f32 %v1094_v23  ;;  %v1092_v31 = vadd.f32 1.0, %v1685_v26 }
 0x136   : > { %v1689_v34 = vpop.eup %1688  ;;  %1708 = vrcp.f32 %v1110_v27  ;;  %v1108_v35 = vadd.f32 1.0, %v1687_v30 }
 0x137   : > { %v1691_v37 = vpop.eup %1690  ;;  %1710 = vrcp.f32 %v1092_v31  ;;  %v1097_v38 = vadd.f32 1.0, %v1689_v34 }
 0x138   : > { %v1693_v41 = vpop.eup %1692  ;;  %1712 = vrcp.f32 %v1108_v35  ;;  %v1113_v42 = vadd.f32 1.0, %v1691_v37 }
 0x139   : > { %v1695_v44 = vpop.eup %1694  ;;  %1202 = vst.msk [vmem:[%s2070_s26 + $0xb8] sm:$0xff] %vm351_vm0, %v1693_v41  ;;  %1714 = vrcp.f32 %v1097_v38 }
 0x13a   : > { %v1697_v46 = vpop.eup %1696  ;;  %1184 = vst.msk [vmem:[%s2070_s26 + $0x28] sm:$0xff] %vm351_vm0, %v1695_v44  ;;  %1716 = vrcp.f32 %v1113_v42 }
 0x13b   : > { %v1699_v48 = vpop.eup %1698  ;;  %1200 = vst.msk [vmem:[%s2070_s26 + $0xa8] sm:$0xff] %vm351_vm0, %v1697_v46  ;;  %1718 = vpow2.f32 %v1399_v39 }
 0x13c   : > { %v1701_v5 = vpop.eup %1700  ;;  %1189 = vst.msk [vmem:[%s2070_s26 + $0x50] sm:$0xff] %vm351_vm0, %v1699_v48  ;;  %1720 = vpow2.f32 %v1415_v3 }
 0x13d   : > { %v1703_v14 = vpop.eup %1702  ;;  %1205 = vst.msk [vmem:[%s2070_s26 + $0xd0] sm:$0xff] %vm351_vm0, %v1701_v5  ;;  %1722 = vpow2.f32 %v1402_v45 }
 0x13e   : > { %v1705_v51 = vpop.eup %1704  ;;  %1187 = vst.msk [vmem:[%s2070_s26 + $0x40] sm:$0xff] %vm351_vm0, %v1703_v14  ;;  %1724 = vpow2.f32 %v1418_v47 }
 0x13f   : > { %v1707_v52 = vpop.eup %1706  ;;  %1203 = vst.msk [vmem:[%s2070_s26 + $0xc0] sm:$0xff] %vm351_vm0, %v1705_v51  ;;  %1726 = vpow2.f32 %v1400_v49 }
 0x140   : > { %v1709_v53 = vpop.eup %1708  ;;  %1190 = vst.msk [vmem:[%s2070_s26 + $0x58] sm:$0xff] %vm351_vm0, %v1707_v52  ;;  %1728 = vpow2.f32 %v1416_v50 }
 0x141   : > { %v1711_v54 = vpop.eup %1710  ;;  %1206 = vst.msk [vmem:[%s2070_s26 + $0xd8] sm:$0xff] %vm351_vm0, %v1709_v53 }
 0x142   : > { %v1713_v55 = vpop.eup %1712  ;;  %1188 = vst.msk [vmem:[%s2070_s26 + $0x48] sm:$0xff] %vm351_vm0, %v1711_v54 }
 0x143   : > { %v1715_v56 = vpop.eup %1714  ;;  %1204 = vst.msk [vmem:[%s2070_s26 + $0xc8] sm:$0xff] %vm351_vm0, %v1713_v55 }
 0x144   : > { %v1717_v57 = vpop.eup %1716  ;;  %1193 = vst.msk [vmem:[%s2070_s26 + $0x70] sm:$0xff] %vm351_vm0, %v1715_v56 }
 0x145   : > { %v1719_v58 = vpop.eup %1718  ;;  %1209 = vst.msk [vmem:[%s2070_s26 + $0xf0] sm:$0xff] %vm351_vm0, %v1717_v57 }
 0x146   : > { %v1721_v59 = vpop.eup %1720  ;;  %v1095_v60 = vadd.f32 1.0, %v1719_v58 }
 0x147   : > { %v1723_v61 = vpop.eup %1722  ;;  %v1111_v62 = vadd.f32 1.0, %v1721_v59 }
 0x148   : > { %v1725_v63 = vpop.eup %1724  ;;  %1730 = vrcp.f32 %v1095_v60  ;;  %v1098_v0 = vadd.f32 1.0, %v1723_v61 }
 0x149   : > { %v1727_v1 = vpop.eup %1726  ;;  %1732 = vrcp.f32 %v1111_v62  ;;  %v1114_v2 = vadd.f32 1.0, %v1725_v63 }
 0x14a   : > { %v1729_v4 = vpop.eup %1728  ;;  %1734 = vrcp.f32 %v1098_v0  ;;  %v1096_v6 = vadd.f32 1.0, %v1727_v1 }
 0x14b   : > { %1736 = vrcp.f32 %v1114_v2  ;;  %v1112_v7 = vadd.f32 1.0, %v1729_v4 }
 0x14c   : > { %1738 = vrcp.f32 %v1096_v6 }
 0x14d   : > { %1740 = vrcp.f32 %v1112_v7 }
 0x152   : > { %v1731_v8 = vpop.eup %1730 }
 0x153   : > { %v1733_v9 = vpop.eup %1732  ;;  %1191 = vst.msk [vmem:[%s2070_s26 + $0x60] sm:$0xff] %vm351_vm0, %v1731_v8 }
 0x154   : > { %v1735_v10 = vpop.eup %1734  ;;  %1207 = vst.msk [vmem:[%s2070_s26 + $0xe0] sm:$0xff] %vm351_vm0, %v1733_v9 }
 0x155   : > { %v1737_v11 = vpop.eup %1736  ;;  %1194 = vst.msk [vmem:[%s2070_s26 + $0x78] sm:$0xff] %vm351_vm0, %v1735_v10 }
 0x156   : > { %v1739_v12 = vpop.eup %1738  ;;  %1210 = vst.msk [vmem:[%s2070_s26 + $0xf8] sm:$0xff] %vm351_vm0, %v1737_v11 }
 0x157   : > { %v1741_v13 = vpop.eup %1740  ;;  %1192 = vst.msk [vmem:[%s2070_s26 + $0x68] sm:$0xff] %vm351_vm0, %v1739_v12 }
 0x158   : > { %1208 = vst.msk [vmem:[%s2070_s26 + $0xe8] sm:$0xff] %vm351_vm0, %v1741_v13 }
 0x159 PF: > { %s15_s22 = sadd.s32 1, %s1780_s22   ;;  %s2179_s18 = smov %s1772_s20 }
 0x15a   : > { %p12_p7 = scmp.ge.s32.totalorder %s15_s22, 10   ;;  %s2180_s19 = smov %s1776_s21 }
 0x15b   : > { %s2181_s20 = smov %s2184_s23  ;;  %s2182_s21 = smov %s2188_s24 }
 0x15c   :  { %14 = sbr.rel (!%p12_p7) target bundleno = 3 (0x3), region = 87 }

</bundles_post_ra>
